<compile_context>
chip_gen: v7x
topology: tpu7x:2x2x1
jax: 0.10.0
libtpu: 0.0.40
codegen_flags: <defaults>
</compile_context>

<pallas_src>
import functools

import jax
import jax.numpy as jnp
from jax.experimental import pallas as pl
from jax.experimental.pallas import tpu as pltpu

_EPS = 1e-5


def _grid_params(n_axes):
    return pltpu.CompilerParams(dimension_semantics=("parallel",) * n_axes)


# ----------------------------------------------------------------------------
# Fused ConditionalGroupNorm kernels (norm + affine [+SiLU] [+projection(s)] [+residual])
# ----------------------------------------------------------------------------
def _gn_core(x, scale, shift, gmat):
    """Conditional GroupNorm of one sample: x (N, C), scale/shift (1, C) f32, gmat (C, C).
    Single pass over the tile; stats & elementwise math in f32."""
    xf = x.astype(jnp.float32)
    inv_n = 1.0 / xf.shape[0]
    s1 = jnp.sum(xf, axis=0, keepdims=True) * inv_n            # E[x]   per channel
    s2 = jnp.sum(xf * xf, axis=0, keepdims=True) * inv_n       # E[x^2] per channel
    g = jnp.dot(jnp.concatenate([s1, s2], axis=0), gmat,        # one (2,C)@(C,C) MXU op
                preferred_element_type=jnp.float32)
    mean = g[0:1]
    var = jnp.maximum(g[1:2] - mean * mean, 0.0)                # one-pass var, f32 accum
    inv = jax.lax.rsqrt(var + _EPS)
    return (xf - mean) * inv * (scale + 1.0) + shift


def _gn_kernel(x_ref, sc_ref, sh_ref, gmat_ref, o_ref, *, silu):
    y = _gn_core(x_ref[0], sc_ref[0], sh_ref[0], gmat_ref[...])
    if silu:
        y = y * jax.nn.sigmoid(y)
    o_ref[0] = y.astype(o_ref.dtype)


def _gn_proj_kernel(x_ref, sc_ref, sh_ref, gmat_ref, w_ref, o_ref, *, pre_silu):
    y = _gn_core(x_ref[0], sc_ref[0], sh_ref[0], gmat_ref[...])
    if pre_silu:
        y = y * jax.nn.sigmoid(y)
    acc = jnp.dot(y.astype(w_ref.dtype), w_ref[...], preferred_element_type=jnp.float32)
    o_ref[0] = acc.astype(o_ref.dtype)


def _gn_proj_bias_kernel(x_ref, sc_ref, sh_ref, gmat_ref, w_ref, b_ref, o_ref, *, pre_silu):
    y = _gn_core(x_ref[0], sc_ref[0], sh_ref[0], gmat_ref[...])
    if pre_silu:
        y = y * jax.nn.sigmoid(y)
    acc = jnp.dot(y.astype(w_ref.dtype), w_ref[...], preferred_element_type=jnp.float32)
    o_ref[0] = (acc + b_ref[...]).astype(o_ref.dtype)


def _gn_ff_kernel(x_ref, sc_ref, sh_ref, gmat_ref, w1_ref, w2_ref, o_ref):
    xt = x_ref[0]
    y = _gn_core(xt, sc_ref[0], sh_ref[0], gmat_ref[...])
    h = jnp.dot(y.astype(w1_ref.dtype), w1_ref[...], preferred_element_type=jnp.float32)
    h = h * jax.nn.sigmoid(h)
    f = jnp.dot(h.astype(w2_ref.dtype), w2_ref[...], preferred_element_type=jnp.float32)
    o_ref[0] = (xt.astype(jnp.float32) + f).astype(o_ref.dtype)   # fused residual add


def gn_norm(x_tokens, scale, shift, gmat, silu):
    # TODO(synk): split into stats + apply passes (N-tiled) for real resolutions / v7x.
    B, N, C = x_tokens.shape
    return pl.pallas_call(
        functools.partial(_gn_kernel, silu=silu),
        out_shape=jax.ShapeDtypeStruct((B, N, C), jnp.bfloat16),
        grid=(B,),
        in_specs=[
            pl.BlockSpec((1, N, C), lambda b: (b, 0, 0)),
            pl.BlockSpec((1, 1, C), lambda b: (b, 0, 0)),
            pl.BlockSpec((1, 1, C), lambda b: (b, 0, 0)),
            pl.BlockSpec((C, C), lambda b: (0, 0)),
        ],
        out_specs=pl.BlockSpec((1, N, C), lambda b: (b, 0, 0)),
        compiler_params=_grid_params(1),
    )(x_tokens, scale, shift, gmat)


def gn_proj(x_tokens, scale, shift, gmat, w, bias, pre_silu):
    """Fused ConditionalGroupNorm [+SiLU] + 1x1-conv / linear projection (bf16 out)."""
    B, N, C = x_tokens.shape
    O = w.shape[1]
    in_specs = [
        pl.BlockSpec((1, N, C), lambda b: (b, 0, 0)),
        pl.BlockSpec((1, 1, C), lambda b: (b, 0, 0)),
        pl.BlockSpec((1, 1, C), lambda b: (b, 0, 0)),
        pl.BlockSpec((C, C), lambda b: (0, 0)),
        pl.BlockSpec((C, O), lambda b: (0, 0)),
    ]
    args = [x_tokens, scale, shift, gmat, w]
    if bias is not None:
        in_specs.append(pl.BlockSpec((1, O), lambda b: (0, 0)))
        args.append(bias)
        kern = functools.partial(_gn_proj_bias_kernel, pre_silu=pre_silu)
    else:
        kern = functools.partial(_gn_proj_kernel, pre_silu=pre_silu)
    return pl.pallas_call(
        kern,
        out_shape=jax.ShapeDtypeStruct((B, N, O), jnp.bfloat16),
        grid=(B,),
        in_specs=in_specs,
        out_specs=pl.BlockSpec((1, N, O), lambda b: (b, 0, 0)),
        compiler_params=_grid_params(1),
    )(*args)


def gn_ff(x_tokens, scale, shift, gmat, w1, w2):
    """Fused GN -> 1x1 -> SiLU -> 1x1 -> +residual (AttentionBlock feed-forward)."""
    B, N, C = x_tokens.shape
    Hd = w1.shape[1]
    return pl.pallas_call(
        _gn_ff_kernel,
        out_shape=jax.ShapeDtypeStruct((B, N, C), jnp.bfloat16),
        grid=(B,),
        in_specs=[
            pl.BlockSpec((1, N, C), lambda b: (b, 0, 0)),
            pl.BlockSpec((1, 1, C), lambda b: (b, 0, 0)),
            pl.BlockSpec((1, 1, C), lambda b: (b, 0, 0)),
            pl.BlockSpec((C, C), lambda b: (0, 0)),
            pl.BlockSpec((C, Hd), lambda b: (0, 0)),
            pl.BlockSpec((Hd, C), lambda b: (0, 0)),
        ],
        out_specs=pl.BlockSpec((1, N, C), lambda b: (b, 0, 0)),
        compiler_params=_grid_params(1),
    )(x_tokens, scale, shift, gmat, w1, w2)


# ----------------------------------------------------------------------------
# Attention: all heads per batch element; per-head outputs concatenated in a VMEM scratch,
# ONE output-projection matmul, residual add fused; softmax scale pre-folded into Wq.
# ----------------------------------------------------------------------------
def _attn_kernel(qkv_ref, wo_ref, res_ref, o_ref, cat_ref, *, nh, hd):
    qkv = qkv_ref[0]                                  # (N, 3C) bf16 (q already scaled)
    C = nh * hd
    for h in range(nh):                               # heads are lane slices (no transpose)
        sl = slice(h * hd, (h + 1) * hd)
        qh = qkv[:, sl]
        kh = qkv[:, C + h * hd:C + (h + 1) * hd]
        vh = qkv[:, 2 * C + h * hd:2 * C + (h + 1) * hd]
        s = jax.lax.dot_general(qh, kh, (((1,), (1,)), ((), ())),
                                preferred_element_type=jnp.float32)
        s = s - jnp.max(s, axis=-1, keepdims=True)
        p = jnp.exp(s)
        p = p * pl.reciprocal(jnp.sum(p, axis=-1, keepdims=True), approx=True)
        oh = jnp.dot(p.astype(vh.dtype), vh, preferred_element_type=jnp.float32)
        cat_ref[:, sl] = oh.astype(cat_ref.dtype)     # concat heads at lane offset h*hd
    out = res_ref[0].astype(jnp.float32) + jnp.dot(
        cat_ref[...], wo_ref[...], preferred_element_type=jnp.float32)
    o_ref[0] = out.astype(o_ref.dtype)


def attention_core(qkv, wo_t, residual, head_dim):
    """All heads of one batch element per grid step; softmax + out-proj + residual fused.
    TODO(synk): flash-attention tiling + head packing (hd<128 underfills lanes/MXU)."""
    B, N, C3 = qkv.shape
    C = C3 // 3
    nh = C // head_dim
    return pl.pallas_call(
        functools.partial(_attn_kernel, nh=nh, hd=head_dim),
        out_shape=jax.ShapeDtypeStruct((B, N, C), jnp.bfloat16),
        grid=(B,),
        in_specs=[
            pl.BlockSpec((1, N, C3), lambda b: (b, 0, 0)),
            pl.BlockSpec((C, C), lambda b: (0, 0)),
            pl.BlockSpec((1, N, C), lambda b: (b, 0, 0)),
        ],
        out_specs=pl.BlockSpec((1, N, C), lambda b: (b, 0, 0)),
        scratch_shapes=[pltpu.VMEM((N, C), jnp.bfloat16)],
        compiler_params=_grid_params(1),
    )(qkv, wo_t, residual)


# ----------------------------------------------------------------------------
# Convolutions
# ----------------------------------------------------------------------------
def _conv3x3_kernel(x_ref, w_ref, b_ref, o_ref, *, wp, n_out):
    acc = jnp.zeros((n_out, w_ref.shape[-1]), jnp.float32)
    for kh in range(3):
        for kw in range(3):
            off = kh * wp + kw
            acc += jnp.dot(x_ref[0, off:off + n_out, :], w_ref[kh * 3 + kw],
                           preferred_element_type=jnp.float32)
    o_ref[0] = (acc + b_ref[...]).astype(o_ref.dtype)


def conv3x3_same(x, wmat, b2):
    """3x3 / stride-1 / pad-1 conv: per-batch halo tile in VMEM, 9 shifted bf16 matmuls
    accumulated in f32 (no im2col in HBM).  Columns W..W+1 of each output row are
    wrap-around garbage and are sliced away afterwards.
    TODO(synk): row-tiled variant (skip garbage columns in-kernel) for real resolutions."""
    B, H, W, C = x.shape
    O = wmat.shape[-1]
    Wp = W + 2
    n_out = H * Wp
    xp = jnp.pad(x, ((0, 0), (1, 2), (1, 1), (0, 0))).reshape(B, (H + 3) * Wp, C)
    out = pl.pallas_call(
        functools.partial(_conv3x3_kernel, wp=Wp, n_out=n_out),
        out_shape=jax.ShapeDtypeStruct((B, n_out, O), jnp.bfloat16),
        grid=(B,),
        in_specs=[
            pl.BlockSpec((1, (H + 3) * Wp, C), lambda b: (b, 0, 0)),
            pl.BlockSpec((9, C, O), lambda b: (0, 0, 0)),
            pl.BlockSpec((1, O), lambda b: (0, 0)),
        ],
        out_specs=pl.BlockSpec((1, n_out, O), lambda b: (b, 0, 0)),
        compiler_params=_grid_params(1),
    )(xp, wmat, b2)
    return out.reshape(B, H, Wp, O)[:, :, :W, :]


def _conv2x2_kernel(x_ref, w_ref, b_ref, o_ref):
    acc = jnp.dot(x_ref[0, 0], w_ref[0], preferred_element_type=jnp.float32)   # rows 2i
    acc += jnp.dot(x_ref[0, 1], w_ref[1], preferred_element_type=jnp.float32)  # rows 2i+1
    o_ref[0, 0] = (acc + b_ref[...]).astype(o_ref.dtype)


def conv2x2_down(x, wmat, b2):
    """2x2 / stride-2 conv as a kernel: the (B,H,W,C)->(B,H,Wo,2C) reshape is contiguous
    (no HBM relayout); each grid step consumes one input row pair and emits one output row
    via two (Wo,2C)@(2C,O) accumulated matmuls."""
    B, H, W, C = x.shape
    Ho, Wo = H // 2, W // 2
    O = wmat.shape[-1]
    xr = x.reshape(B, H, Wo, 2 * C)
    return pl.pallas_call(
        _conv2x2_kernel,
        out_shape=jax.ShapeDtypeStruct((B, Ho, Wo, O), jnp.bfloat16),
        grid=(B, Ho),
        in_specs=[
            pl.BlockSpec((1, 2, Wo, 2 * C), lambda b, i: (b, i, 0, 0)),
            pl.BlockSpec((2, 2 * C, O), lambda b, i: (0, 0, 0)),
            pl.BlockSpec((1, O), lambda b, i: (0, 0)),
        ],
        out_specs=pl.BlockSpec((1, 1, Wo, O), lambda b, i: (b, i, 0, 0)),
        compiler_params=_grid_params(2),
    )(xr, wmat, b2)


def _linear_kernel(x_ref, w_ref, b_ref, o_ref):
    acc = jnp.dot(x_ref[0], w_ref[...], preferred_element_type=jnp.float32)
    o_ref[0] = (acc + b_ref[...]).astype(o_ref.dtype)


def linear_proj(x_tokens, wt, b2):
    """Per-batch 1x1 conv (shortcut projection); no XLA pad/cast/slice wrappers."""
    B, N, C = x_tokens.shape
    O = wt.shape[-1]
    return pl.pallas_call(
        _linear_kernel,
        out_shape=jax.ShapeDtypeStruct((B, N, O), jnp.bfloat16),
        grid=(B,),
        in_specs=[
            pl.BlockSpec((1, N, C), lambda b: (b, 0, 0)),
            pl.BlockSpec((C, O), lambda b: (0, 0)),
            pl.BlockSpec((1, O), lambda b: (0, 0)),
        ],
        out_specs=pl.BlockSpec((1, N, O), lambda b: (b, 0, 0)),
        compiler_params=_grid_params(1),
    )(x_tokens, wt, b2)


# ----------------------------------------------------------------------------
# Module forward (Block / ResNetBlock / AttentionBlock / DownSampleBlock)
# ----------------------------------------------------------------------------
def cond_scale_shift(te_act, norm_p, C):
    """SiLU(time_embed) -> Linear -> (scale, shift); tiny, so plain JAX (below launch cost).
    te_act (= SiLU(time_embed)) is computed once per forward and reused by every norm."""
    ctx = jnp.dot(te_act, norm_p["wt"]) + norm_p["b"]
    return ctx[:, :C].reshape(-1, 1, C), ctx[:, C:].reshape(-1, 1, C)


def block_forward(x, te_act, bp):
    """Block: ConditionalGroupNorm -> SiLU -> (up_sample = Identity) -> projection conv
    -> optional 2x2/stride-2 down-sample conv."""
    B, H, W, Cin = x.shape
    scale, shift = cond_scale_shift(te_act, bp["norm"], Cin)
    xt = x.reshape(B, H * W, Cin)
    if "proj_wt" in bp:                                           # kernel_size == 1
        Cout = bp["proj_wt"].shape[1]
        x = gn_proj(xt, scale, shift, bp["gmat"], bp["proj_wt"], bp["proj_b"],
                    pre_silu=True).reshape(B, H, W, Cout)
    else:                                                         # kernel_size == 3
        xn = gn_norm(xt, scale, shift, bp["gmat"], silu=True).reshape(B, H, W, Cin)
        x = conv3x3_same(xn, bp["proj_wmat"], bp["proj_b"])
    if "down_wmat" in bp:
        x = conv2x2_down(x, bp["down_wmat"], bp["down_b"])
    return x


def resnet_block(x, te_act, rp):
    out = x
    for bp in rp["blocks"]:
        out = block_forward(out, te_act, bp)
    sc = x                                                        # shortcut_up_sample = Identity
    if "short_wt" in rp:
        B, H, W, C = sc.shape
        O = rp["short_wt"].shape[1]
        sc = linear_proj(sc.reshape(B, H * W, C), rp["short_wt"],
                         rp["short_b"]).reshape(B, H, W, O)
    if "short_down_wmat" in rp:
        sc = conv2x2_down(sc, rp["short_down_wmat"], rp["short_down_b"])
    return sc + out


def attention_block(x, te_act, ap, head_dim):
    # TODO(synk): cross-attention context/context_mask path not implemented (context_dim=None
    # for DownSampleBlock's self-attention block, so it is never exercised).
    B, H, W, C = x.shape
    N = H * W
    xt = x.reshape(B, N, C)
    # in_norm fused with the QKV projection (pre-concatenated, q-scaled weight).
    s1, b1 = cond_scale_shift(te_act, ap["in_norm"], C)
    qkv = gn_proj(xt, s1, b1, ap["gmat"], ap["wqkv"], None, pre_silu=False)
    # softmax attention (all heads) + output projection + residual add in one kernel.
    x1 = attention_core(qkv, ap["wo_t"], xt, head_dim)
    # out_norm + feed-forward (1x1 -> SiLU -> 1x1) + residual, fully fused.
    s2, b2 = cond_scale_shift(te_act, ap["out_norm"], C)
    x2 = gn_ff(x1, s2, b2, ap["gmat"], ap["ff_w1t"], ap["ff_w2t"])
    return x2.reshape(B, H, W, C)


def downsample_block(x, time_embed, params, head_dim):
    te_act = time_embed * jax.nn.sigmoid(time_embed)              # SiLU once, shared by all norms
    x = x.astype(jnp.bfloat16)                                    # bf16 activation chain
    x = attention_block(x, te_act, params["self_attn"], head_dim)
    for pair in params["pairs"]:
        x = resnet_block(x, te_act, pair["in_res"])
        # per-pair attention is Identity (context_dim=None)
        x = resnet_block(x, te_act, pair["out_res"])
    return x.astype(jnp.float32)


# ----------------------------------------------------------------------------
# One-time parameter preparation (hoisted out of the jitted forward)
# ----------------------------------------------------------------------------
def prepare_params(p, groups, head_dim):
    """Transposes, concats, conv-weight relayouts, bf16 casts, group matrices and bias
    reshapes all happen ONCE here, never per forward step."""
    def norm_prep(np_):
        return {"wt": jnp.asarray(np_["w"], jnp.float32).T,
                "b": jnp.asarray(np_["b"], jnp.float32).reshape(1, -1)}

    def gmat(C):
        cpg = C // groups
        idx = jnp.arange(C) // cpg
        return (idx[:, None] == idx[None, :]).astype(jnp.float32) / float(cpg)

    def conv3_prep(w):                                 # (O,C,3,3) -> (9,C,O) bf16
        O, C = w.shape[0], w.shape[1]
        return jnp.transpose(w, (2, 3, 1, 0)).reshape(9, C, O).astype(jnp.bfloat16)

    def conv2_prep(w):                                 # (O,C,2,2) -> (2, 2C, O) bf16
        taps = [jnp.concatenate([w[:, :, kh, 0].T, w[:, :, kh, 1].T], axis=0)
                for kh in range(2)]
        return jnp.stack(taps, axis=0).astype(jnp.bfloat16)

    def bias_prep(b):
        return jnp.asarray(b, jnp.float32).reshape(1, -1)

    def block_prep(bp):
        Cin, ksize = bp["proj_w"].shape[1], bp["proj_w"].shape[2]
        out = {"norm": norm_prep(bp["norm"]), "gmat": gmat(Cin),
               "proj_b": bias_prep(bp["proj_b"])}
        if ksize == 1:
            out["proj_wt"] = bp["proj_w"][:, :, 0, 0].T.astype(jnp.bfloat16)
        else:
            out["proj_wmat"] = conv3_prep(bp["proj_w"])
        if "down_w" in bp:
            out["down_wmat"] = conv2_prep(bp["down_w"])
            out["down_b"] = bias_prep(bp["down_b"])
        return out

    def resnet_prep(rp):
        out = {"blocks": [block_prep(b) for b in rp["blocks"]]}
        if "short_proj_w" in rp:
            out["short_wt"] = rp["short_proj_w"][:, :, 0, 0].T.astype(jnp.bfloat16)
            out["short_b"] = bias_prep(rp["short_proj_b"])
        if "short_down_w" in rp:
            out["short_down_wmat"] = conv2_prep(rp["short_down_w"])
            out["short_down_b"] = bias_prep(rp["short_down_b"])
        return out

    def attn_prep(ap):
        C = ap["attn"]["wq"].shape[0]
        scale = head_dim ** -0.5
        wqkv = jnp.concatenate([ap["attn"]["wq"].T * scale,       # fold softmax scale into q
                                ap["attn"]["wk"].T,
                                ap["attn"]["wv"].T], axis=1).astype(jnp.bfloat16)
        return {"in_norm": norm_prep(ap["in_norm"]), "out_norm": norm_prep(ap["out_norm"]),
                "gmat": gmat(C), "wqkv": wqkv,
                "wo_t": ap["attn"]["wo"].T.astype(jnp.bfloat16),
                "ff_w1t": ap["ff_w1"][:, :, 0, 0].T.astype(jnp.bfloat16),
                "ff_w2t": ap["ff_w2"][:, :, 0, 0].T.astype(jnp.bfloat16)}

    return {"self_attn": attn_prep(p["self_attn"]),
            "pairs": [{"in_res": resnet_prep(pr["in_res"]),
                       "out_res": resnet_prep(pr["out_res"])} for pr in p["pairs"]]}


# ----------------------------------------------------------------------------
# Deterministic synthetic parameter initialization (shapes follow the module __init__)
# ----------------------------------------------------------------------------
def init_params(key, in_channels, out_channels, time_embed_dim, num_blocks, groups,
                head_dim, expansion_ratio, compression_ratio):
    keys = iter(jax.random.split(key, 4096))

    def rnd(shape):
        return 0.02 * jax.random.normal(next(keys), shape, jnp.float32)

    def norm_p(C):
        return {"w": rnd((2 * C, time_embed_dim)), "b": rnd((2 * C,))}

    def attn_block_p(C):
        return {
            "in_norm": norm_p(C),
            "attn": {"wq": rnd((C, C)), "wk": rnd((C, C)),
                     "wv": rnd((C, C)), "wo": rnd((C, C))},
            "out_norm": norm_p(C),
            "ff_w1": rnd((expansion_ratio * C, C, 1, 1)),
            "ff_w2": rnd((C, expansion_ratio * C, 1, 1)),
        }

    def block_p(cin, cout, ksize, has_down):
        bp = {"norm": norm_p(cin),
              "proj_w": rnd((cout, cin, ksize, ksize)),
              "proj_b": rnd((cout,))}
        if has_down:
            bp["down_w"] = rnd((cout, cout, 2, 2))
            bp["down_b"] = rnd((cout,))
        return bp

    def resnet_p(cin, cout, up_res):
        hidden = max(cin, cout) // compression_ratio
        chans = [(cin, hidden), (hidden, hidden), (hidden, hidden), (hidden, cout)]
        ksizes = [1, 3, 3, 1]
        rp = {"blocks": [block_p(a, b, k, ur is False)
                         for (a, b), k, ur in zip(chans, ksizes, up_res)]}
        if cin != cout:
            rp["short_proj_w"] = rnd((cout, cin, 1, 1))
            rp["short_proj_b"] = rnd((cout,))
        if False in up_res:
            rp["short_down_w"] = rnd((cout, cout, 2, 2))
            rp["short_down_b"] = rnd((cout,))
        return rp

    up_resolutions = [[None] * 4] * (num_blocks - 1) + [[None, None, False, None]]
    hidden_channels = [(in_channels, out_channels)] + [(out_channels, out_channels)] * (num_blocks - 1)
    pairs = [{"in_res": resnet_p(a, b, [None] * 4), "out_res": resnet_p(b, b, ur)}
             for (a, b), ur in zip(hidden_channels, up_resolutions)]
    return {"self_attn": attn_block_p(in_channels), "pairs": pairs}


# ----------------------------------------------------------------------------
if __name__ == "__main__":
    B, C_in, C_out, H, W = 2, 32, 64, 8, 8
    T_DIM = 32
    GROUPS = 8
    HEAD_DIM = 16
    NUM_BLOCKS = 2

    key = jax.random.PRNGKey(0)
    kx, kt, kp = jax.random.split(key, 3)
    x_nchw = jax.random.normal(kx, (B, C_in, H, W), jnp.float32)       # PyTorch-style NCHW input
    time_embed = jax.random.normal(kt, (B, T_DIM), jnp.float32)

    raw_params = init_params(kp, C_in, C_out, T_DIM, NUM_BLOCKS, GROUPS,
                             HEAD_DIM, expansion_ratio=4, compression_ratio=2)
    params = prepare_params(raw_params, GROUPS, HEAD_DIM)              # one-time weight prep

    fwd = jax.jit(functools.partial(downsample_block, head_dim=HEAD_DIM))
    x_nhwc = jnp.transpose(x_nchw, (0, 2, 3, 1))                       # to kernel layout
    out_nhwc = jax.block_until_ready(fwd(x_nhwc, time_embed, params))
    out_nchw = jnp.transpose(out_nhwc, (0, 3, 1, 2))                   # back to NCHW

    assert out_nchw.shape == (B, C_out, H // 2, W // 2), out_nchw.shape
    assert bool(jnp.all(jnp.isfinite(out_nchw)))
    print("KERNEL_OK")
</pallas_src>

<mosaic_0001>
module attributes {stable_mosaic.version = 11 : i64} {
  func.func @_gn_proj_kernel(%arg0: i32, %arg1: memref<1x64x32xbf16, #tpu.memory_space<vmem>>, %arg2: memref<1x1x32xf32, #tpu.memory_space<vmem>>, %arg3: memref<1x1x32xf32, #tpu.memory_space<vmem>>, %arg4: memref<32x32xf32, #tpu.memory_space<vmem>>, %arg5: memref<32x96xbf16, #tpu.memory_space<vmem>>, %arg6: memref<1x64x96xbf16, #tpu.memory_space<vmem>>) attributes {dimension_semantics = [#tpu.dimension_semantics<parallel>], iteration_bounds = array<i64: 2>, scalar_prefetch = 0 : i64, scratch_operands = 0 : i64, tpu.core_type = #tpu.core_type<tc>, window_params = [{transform_indices = @transform_0, window_bounds = array<i64: 1, 64, 32>}, {transform_indices = @transform_1, window_bounds = array<i64: 1, 1, 32>}, {transform_indices = @transform_2, window_bounds = array<i64: 1, 1, 32>}, {pipeline_mode = #tpu.pipeline_mode<synchronous>, transform_indices = @transform_3, window_bounds = array<i64: 32, 32>}, {pipeline_mode = #tpu.pipeline_mode<synchronous>, transform_indices = @transform_4, window_bounds = array<i64: 32, 96>}, {transform_indices = @transform_5, window_bounds = array<i64: 1, 64, 96>}]} {
    %c0 = arith.constant 0 : index
    %c0_0 = arith.constant 0 : index
    %c0_1 = arith.constant 0 : index
    %0 = vector.load %arg1[%c0, %c0_0, %c0_1] : memref<1x64x32xbf16, #tpu.memory_space<vmem>>, vector<1x64x32xbf16>
    %1 = vector.shape_cast %0 : vector<1x64x32xbf16> to vector<64x32xbf16>
    %c0_2 = arith.constant 0 : index
    %c0_3 = arith.constant 0 : index
    %c0_4 = arith.constant 0 : index
    %2 = vector.load %arg2[%c0_2, %c0_3, %c0_4] : memref<1x1x32xf32, #tpu.memory_space<vmem>>, vector<1x1x32xf32>
    %3 = vector.shape_cast %2 : vector<1x1x32xf32> to vector<1x32xf32>
    %c0_5 = arith.constant 0 : index
    %c0_6 = arith.constant 0 : index
    %c0_7 = arith.constant 0 : index
    %4 = vector.load %arg3[%c0_5, %c0_6, %c0_7] : memref<1x1x32xf32, #tpu.memory_space<vmem>>, vector<1x1x32xf32>
    %5 = vector.shape_cast %4 : vector<1x1x32xf32> to vector<1x32xf32>
    %c0_8 = arith.constant 0 : index
    %c0_9 = arith.constant 0 : index
    %6 = vector.load %arg4[%c0_8, %c0_9] : memref<32x32xf32, #tpu.memory_space<vmem>>, vector<32x32xf32>
    %7 = arith.extf %1 : vector<64x32xbf16> to vector<64x32xf32>
    %cst = arith.constant dense<0.000000e+00> : vector<32xf32>
    %8 = vector.multi_reduction <add>, %7, %cst [0] : vector<64x32xf32> to vector<32xf32>
    %9 = vector.shape_cast %8 : vector<32xf32> to vector<1x32xf32>
    %cst_10 = arith.constant 1.562500e-02 : f32
    %10 = vector.broadcast %cst_10 : f32 to vector<1x32xf32>
    %11 = arith.mulf %9, %10 : vector<1x32xf32>
    %12 = arith.mulf %7, %7 : vector<64x32xf32>
    %cst_11 = arith.constant dense<0.000000e+00> : vector<32xf32>
    %13 = vector.multi_reduction <add>, %12, %cst_11 [0] : vector<64x32xf32> to vector<32xf32>
    %14 = vector.shape_cast %13 : vector<32xf32> to vector<1x32xf32>
    %cst_12 = arith.constant 1.562500e-02 : f32
    %15 = vector.broadcast %cst_12 : f32 to vector<1x32xf32>
    %16 = arith.mulf %14, %15 : vector<1x32xf32>
    %17 = tpu.concatenate %11, %16 in 0 : vector<1x32xf32>, vector<1x32xf32> -> vector<2x32xf32>
    %cst_13 = arith.constant dense<0.000000e+00> : vector<2x32xf32>
    %18 = tpu.matmul %17, %6, %cst_13 {dimension_numbers = #tpu.dot_dimension_numbers<[1], [0], [0], [1], [0, 0, 1, 1], [], []>} : vector<2x32xf32>, vector<32x32xf32>, vector<2x32xf32> -> vector<2x32xf32>
    %19 = vector.extract_strided_slice %18 {offsets = [0, 0], sizes = [1, 32], strides = [1, 1]} : vector<2x32xf32> to vector<1x32xf32>
    %20 = vector.extract_strided_slice %18 {offsets = [1, 0], sizes = [1, 32], strides = [1, 1]} : vector<2x32xf32> to vector<1x32xf32>
    %21 = arith.mulf %19, %19 : vector<1x32xf32>
    %22 = arith.subf %20, %21 : vector<1x32xf32>
    %cst_14 = arith.constant 0.000000e+00 : f32
    %23 = vector.broadcast %cst_14 : f32 to vector<1x32xf32>
    %24 = arith.maximumf %22, %23 : vector<1x32xf32>
    %cst_15 = arith.constant 9.99999974E-6 : f32
    %25 = vector.broadcast %cst_15 : f32 to vector<1x32xf32>
    %26 = arith.addf %24, %25 : vector<1x32xf32>
    %27 = math.rsqrt %26 : vector<1x32xf32>
    %28 = vector.broadcast %19 : vector<1x32xf32> to vector<64x32xf32>
    %29 = arith.subf %7, %28 : vector<64x32xf32>
    %30 = vector.broadcast %27 : vector<1x32xf32> to vector<64x32xf32>
    %31 = arith.mulf %29, %30 : vector<64x32xf32>
    %cst_16 = arith.constant 1.000000e+00 : f32
    %32 = vector.broadcast %cst_16 : f32 to vector<1x32xf32>
    %33 = arith.addf %3, %32 : vector<1x32xf32>
    %34 = vector.broadcast %33 : vector<1x32xf32> to vector<64x32xf32>
    %35 = arith.mulf %31, %34 : vector<64x32xf32>
    %36 = vector.broadcast %5 : vector<1x32xf32> to vector<64x32xf32>
    %37 = arith.addf %35, %36 : vector<64x32xf32>
    %38 = arith.truncf %37 : vector<64x32xf32> to vector<64x32xbf16>
    %c0_17 = arith.constant 0 : index
    %c0_18 = arith.constant 0 : index
    %39 = vector.load %arg5[%c0_17, %c0_18] : memref<32x96xbf16, #tpu.memory_space<vmem>>, vector<32x96xbf16>
    %cst_19 = arith.constant dense<0.000000e+00> : vector<64x96xf32>
    %40 = tpu.matmul %38, %39, %cst_19 {dimension_numbers = #tpu.dot_dimension_numbers<[1], [0], [0], [1], [0, 0, 1, 1], [], []>} : vector<64x32xbf16>, vector<32x96xbf16>, vector<64x96xf32> -> vector<64x96xf32>
    %41 = arith.truncf %40 : vector<64x96xf32> to vector<64x96xbf16>
    %c0_20 = arith.constant 0 : index
    %c0_21 = arith.constant 0 : index
    %c0_22 = arith.constant 0 : index
    %42 = vector.load %arg6[%c0_20, %c0_21, %c0_22] : memref<1x64x96xbf16, #tpu.memory_space<vmem>>, vector<1x64x96xbf16>
    %43 = vector.shape_cast %42 : vector<1x64x96xbf16> to vector<64x96xbf16>
    %44 = vector.shape_cast %41 : vector<64x96xbf16> to vector<1x64x96xbf16>
    tpu.vector_store %arg6[%c0_20, %c0_21, %c0_22], %44 {strides = array<i32>} : memref<1x64x96xbf16, #tpu.memory_space<vmem>>, vector<1x64x96xbf16>,
    return
  }
  func.func @transform_0(%arg0: i32) -> (i32, i32, i32) {
    %c0_i32 = arith.constant 0 : i32
    %c0_i32_0 = arith.constant 0 : i32
    %c0_i32_1 = arith.constant 0 : i32
    return %arg0, %c0_i32, %c0_i32_0 : i32, i32, i32
  }
  func.func @transform_1(%arg0: i32) -> (i32, i32, i32) {
    %c0_i32 = arith.constant 0 : i32
    %c0_i32_0 = arith.constant 0 : i32
    %c0_i32_1 = arith.constant 0 : i32
    return %arg0, %c0_i32, %c0_i32_0 : i32, i32, i32
  }
  func.func @transform_2(%arg0: i32) -> (i32, i32, i32) {
    %c0_i32 = arith.constant 0 : i32
    %c0_i32_0 = arith.constant 0 : i32
    %c0_i32_1 = arith.constant 0 : i32
    return %arg0, %c0_i32, %c0_i32_0 : i32, i32, i32
  }
  func.func @transform_3(%arg0: i32) -> (i32, i32) {
    %c0_i32 = arith.constant 0 : i32
    %c0_i32_0 = arith.constant 0 : i32
    %c0_i32_1 = arith.constant 0 : i32
    return %c0_i32, %c0_i32_0 : i32, i32
  }
  func.func @transform_4(%arg0: i32) -> (i32, i32) {
    %c0_i32 = arith.constant 0 : i32
    %c0_i32_0 = arith.constant 0 : i32
    %c0_i32_1 = arith.constant 0 : i32
    return %c0_i32, %c0_i32_0 : i32, i32
  }
  func.func @transform_5(%arg0: i32) -> (i32, i32, i32) {
    %c0_i32 = arith.constant 0 : i32
    %c0_i32_0 = arith.constant 0 : i32
    %c0_i32_1 = arith.constant 0 : i32
    return %arg0, %c0_i32, %c0_i32_0 : i32, i32, i32
  }
}

module attributes {stable_mosaic.version = 11 : i64} {
  func.func @_gn_ff_kernel(%arg0: i32, %arg1: memref<1x64x32xbf16, #tpu.memory_space<vmem>>, %arg2: memref<1x1x32xf32, #tpu.memory_space<vmem>>, %arg3: memref<1x1x32xf32, #tpu.memory_space<vmem>>, %arg4: memref<32x32xf32, #tpu.memory_space<vmem>>, %arg5: memref<32x128xbf16, #tpu.memory_space<vmem>>, %arg6: memref<128x32xbf16, #tpu.memory_space<vmem>>, %arg7: memref<1x64x32xbf16, #tpu.memory_space<vmem>>) attributes {dimension_semantics = [#tpu.dimension_semantics<parallel>], iteration_bounds = array<i64: 2>, scalar_prefetch = 0 : i64, scratch_operands = 0 : i64, tpu.core_type = #tpu.core_type<tc>, window_params = [{transform_indices = @transform_0, window_bounds = array<i64: 1, 64, 32>}, {transform_indices = @transform_1, window_bounds = array<i64: 1, 1, 32>}, {transform_indices = @transform_2, window_bounds = array<i64: 1, 1, 32>}, {pipeline_mode = #tpu.pipeline_mode<synchronous>, transform_indices = @transform_3, window_bounds = array<i64: 32, 32>}, {pipeline_mode = #tpu.pipeline_mode<synchronous>, transform_indices = @transform_4, window_bounds = array<i64: 32, 128>}, {pipeline_mode = #tpu.pipeline_mode<synchronous>, transform_indices = @transform_5, window_bounds = array<i64: 128, 32>}, {transform_indices = @transform_6, window_bounds = array<i64: 1, 64, 32>}]} {
    %c0 = arith.constant 0 : index
    %c0_0 = arith.constant 0 : index
    %c0_1 = arith.constant 0 : index
    %0 = vector.load %arg1[%c0, %c0_0, %c0_1] : memref<1x64x32xbf16, #tpu.memory_space<vmem>>, vector<1x64x32xbf16>
    %1 = vector.shape_cast %0 : vector<1x64x32xbf16> to vector<64x32xbf16>
    %c0_2 = arith.constant 0 : index
    %c0_3 = arith.constant 0 : index
    %c0_4 = arith.constant 0 : index
    %2 = vector.load %arg2[%c0_2, %c0_3, %c0_4] : memref<1x1x32xf32, #tpu.memory_space<vmem>>, vector<1x1x32xf32>
    %3 = vector.shape_cast %2 : vector<1x1x32xf32> to vector<1x32xf32>
    %c0_5 = arith.constant 0 : index
    %c0_6 = arith.constant 0 : index
    %c0_7 = arith.constant 0 : index
    %4 = vector.load %arg3[%c0_5, %c0_6, %c0_7] : memref<1x1x32xf32, #tpu.memory_space<vmem>>, vector<1x1x32xf32>
    %5 = vector.shape_cast %4 : vector<1x1x32xf32> to vector<1x32xf32>
    %c0_8 = arith.constant 0 : index
    %c0_9 = arith.constant 0 : index
    %6 = vector.load %arg4[%c0_8, %c0_9] : memref<32x32xf32, #tpu.memory_space<vmem>>, vector<32x32xf32>
    %7 = arith.extf %1 : vector<64x32xbf16> to vector<64x32xf32>
    %cst = arith.constant dense<0.000000e+00> : vector<32xf32>
    %8 = vector.multi_reduction <add>, %7, %cst [0] : vector<64x32xf32> to vector<32xf32>
    %9 = vector.shape_cast %8 : vector<32xf32> to vector<1x32xf32>
    %cst_10 = arith.constant 1.562500e-02 : f32
    %10 = vector.broadcast %cst_10 : f32 to vector<1x32xf32>
    %11 = arith.mulf %9, %10 : vector<1x32xf32>
    %12 = arith.mulf %7, %7 : vector<64x32xf32>
    %cst_11 = arith.constant dense<0.000000e+00> : vector<32xf32>
    %13 = vector.multi_reduction <add>, %12, %cst_11 [0] : vector<64x32xf32> to vector<32xf32>
    %14 = vector.shape_cast %13 : vector<32xf32> to vector<1x32xf32>
    %cst_12 = arith.constant 1.562500e-02 : f32
    %15 = vector.broadcast %cst_12 : f32 to vector<1x32xf32>
    %16 = arith.mulf %14, %15 : vector<1x32xf32>
    %17 = tpu.concatenate %11, %16 in 0 : vector<1x32xf32>, vector<1x32xf32> -> vector<2x32xf32>
    %cst_13 = arith.constant dense<0.000000e+00> : vector<2x32xf32>
    %18 = tpu.matmul %17, %6, %cst_13 {dimension_numbers = #tpu.dot_dimension_numbers<[1], [0], [0], [1], [0, 0, 1, 1], [], []>} : vector<2x32xf32>, vector<32x32xf32>, vector<2x32xf32> -> vector<2x32xf32>
    %19 = vector.extract_strided_slice %18 {offsets = [0, 0], sizes = [1, 32], strides = [1, 1]} : vector<2x32xf32> to vector<1x32xf32>
    %20 = vector.extract_strided_slice %18 {offsets = [1, 0], sizes = [1, 32], strides = [1, 1]} : vector<2x32xf32> to vector<1x32xf32>
    %21 = arith.mulf %19, %19 : vector<1x32xf32>
    %22 = arith.subf %20, %21 : vector<1x32xf32>
    %cst_14 = arith.constant 0.000000e+00 : f32
    %23 = vector.broadcast %cst_14 : f32 to vector<1x32xf32>
    %24 = arith.maximumf %22, %23 : vector<1x32xf32>
    %cst_15 = arith.constant 9.99999974E-6 : f32
    %25 = vector.broadcast %cst_15 : f32 to vector<1x32xf32>
    %26 = arith.addf %24, %25 : vector<1x32xf32>
    %27 = math.rsqrt %26 : vector<1x32xf32>
    %28 = vector.broadcast %19 : vector<1x32xf32> to vector<64x32xf32>
    %29 = arith.subf %7, %28 : vector<64x32xf32>
    %30 = vector.broadcast %27 : vector<1x32xf32> to vector<64x32xf32>
    %31 = arith.mulf %29, %30 : vector<64x32xf32>
    %cst_16 = arith.constant 1.000000e+00 : f32
    %32 = vector.broadcast %cst_16 : f32 to vector<1x32xf32>
    %33 = arith.addf %3, %32 : vector<1x32xf32>
    %34 = vector.broadcast %33 : vector<1x32xf32> to vector<64x32xf32>
    %35 = arith.mulf %31, %34 : vector<64x32xf32>
    %36 = vector.broadcast %5 : vector<1x32xf32> to vector<64x32xf32>
    %37 = arith.addf %35, %36 : vector<64x32xf32>
    %38 = arith.truncf %37 : vector<64x32xf32> to vector<64x32xbf16>
    %c0_17 = arith.constant 0 : index
    %c0_18 = arith.constant 0 : index
    %39 = vector.load %arg5[%c0_17, %c0_18] : memref<32x128xbf16, #tpu.memory_space<vmem>>, vector<32x128xbf16>
    %cst_19 = arith.constant dense<0.000000e+00> : vector<64x128xf32>
    %40 = tpu.matmul %38, %39, %cst_19 {dimension_numbers = #tpu.dot_dimension_numbers<[1], [0], [0], [1], [0, 0, 1, 1], [], []>} : vector<64x32xbf16>, vector<32x128xbf16>, vector<64x128xf32> -> vector<64x128xf32>
    %41 = arith.negf %40 : vector<64x128xf32>
    %42 = math.exp %41 : vector<64x128xf32>
    %cst_20 = arith.constant 1.000000e+00 : f32
    %43 = vector.broadcast %cst_20 : f32 to vector<64x128xf32>
    %44 = arith.addf %43, %42 : vector<64x128xf32>
    %45 = arith.divf %43, %44 : vector<64x128xf32>
    %46 = arith.mulf %40, %45 : vector<64x128xf32>
    %47 = arith.truncf %46 : vector<64x128xf32> to vector<64x128xbf16>
    %c0_21 = arith.constant 0 : index
    %c0_22 = arith.constant 0 : index
    %48 = vector.load %arg6[%c0_21, %c0_22] : memref<128x32xbf16, #tpu.memory_space<vmem>>, vector<128x32xbf16>
    %cst_23 = arith.constant dense<0.000000e+00> : vector<64x32xf32>
    %49 = tpu.matmul %47, %48, %cst_23 {dimension_numbers = #tpu.dot_dimension_numbers<[1], [0], [0], [1], [0, 0, 1, 1], [], []>} : vector<64x128xbf16>, vector<128x32xbf16>, vector<64x32xf32> -> vector<64x32xf32>
    %50 = arith.extf %1 : vector<64x32xbf16> to vector<64x32xf32>
    %51 = arith.addf %50, %49 : vector<64x32xf32>
    %52 = arith.truncf %51 : vector<64x32xf32> to vector<64x32xbf16>
    %c0_24 = arith.constant 0 : index
    %c0_25 = arith.constant 0 : index
    %c0_26 = arith.constant 0 : index
    %53 = vector.load %arg7[%c0_24, %c0_25, %c0_26] : memref<1x64x32xbf16, #tpu.memory_space<vmem>>, vector<1x64x32xbf16>
    %54 = vector.shape_cast %53 : vector<1x64x32xbf16> to vector<64x32xbf16>
    %55 = vector.shape_cast %52 : vector<64x32xbf16> to vector<1x64x32xbf16>
    tpu.vector_store %arg7[%c0_24, %c0_25, %c0_26], %55 {strides = array<i32>} : memref<1x64x32xbf16, #tpu.memory_space<vmem>>, vector<1x64x32xbf16>,
    return
  }
  func.func @transform_0(%arg0: i32) -> (i32, i32, i32) {
    %c0_i32 = arith.constant 0 : i32
    %c0_i32_0 = arith.constant 0 : i32
    %c0_i32_1 = arith.constant 0 : i32
    return %arg0, %c0_i32, %c0_i32_0 : i32, i32, i32
  }
  func.func @transform_1(%arg0: i32) -> (i32, i32, i32) {
    %c0_i32 = arith.constant 0 : i32
    %c0_i32_0 = arith.constant 0 : i32
    %c0_i32_1 = arith.constant 0 : i32
    return %arg0, %c0_i32, %c0_i32_0 : i32, i32, i32
  }
  func.func @transform_2(%arg0: i32) -> (i32, i32, i32) {
    %c0_i32 = arith.constant 0 : i32
    %c0_i32_0 = arith.constant 0 : i32
    %c0_i32_1 = arith.constant 0 : i32
    return %arg0, %c0_i32, %c0_i32_0 : i32, i32, i32
  }
  func.func @transform_3(%arg0: i32) -> (i32, i32) {
    %c0_i32 = arith.constant 0 : i32
    %c0_i32_0 = arith.constant 0 : i32
    %c0_i32_1 = arith.constant 0 : i32
    return %c0_i32, %c0_i32_0 : i32, i32
  }
  func.func @transform_4(%arg0: i32) -> (i32, i32) {
    %c0_i32 = arith.constant 0 : i32
    %c0_i32_0 = arith.constant 0 : i32
    %c0_i32_1 = arith.constant 0 : i32
    return %c0_i32, %c0_i32_0 : i32, i32
  }
  func.func @transform_5(%arg0: i32) -> (i32, i32) {
    %c0_i32 = arith.constant 0 : i32
    %c0_i32_0 = arith.constant 0 : i32
    %c0_i32_1 = arith.constant 0 : i32
    return %c0_i32, %c0_i32_0 : i32, i32
  }
  func.func @transform_6(%arg0: i32) -> (i32, i32, i32) {
    %c0_i32 = arith.constant 0 : i32
    %c0_i32_0 = arith.constant 0 : i32
    %c0_i32_1 = arith.constant 0 : i32
    return %arg0, %c0_i32, %c0_i32_0 : i32, i32, i32
  }
}

module attributes {stable_mosaic.version = 11 : i64} {
  func.func @_attn_kernel(%arg0: i32, %arg1: memref<1x64x96xbf16, #tpu.memory_space<vmem>>, %arg2: memref<32x32xbf16, #tpu.memory_space<vmem>>, %arg3: memref<1x64x32xbf16, #tpu.memory_space<vmem>>, %arg4: memref<1x64x32xbf16, #tpu.memory_space<vmem>>, %arg5: memref<64x32xbf16, #tpu.memory_space<vmem>>) attributes {dimension_semantics = [#tpu.dimension_semantics<parallel>], iteration_bounds = array<i64: 2>, scalar_prefetch = 0 : i64, scratch_operands = 1 : i64, tpu.core_type = #tpu.core_type<tc>, window_params = [{transform_indices = @transform_0, window_bounds = array<i64: 1, 64, 96>}, {pipeline_mode = #tpu.pipeline_mode<synchronous>, transform_indices = @transform_1, window_bounds = array<i64: 32, 32>}, {transform_indices = @transform_2, window_bounds = array<i64: 1, 64, 32>}, {transform_indices = @transform_3, window_bounds = array<i64: 1, 64, 32>}]} {
    %c0 = arith.constant 0 : index
    %c0_0 = arith.constant 0 : index
    %c0_1 = arith.constant 0 : index
    %0 = vector.load %arg1[%c0, %c0_0, %c0_1] : memref<1x64x96xbf16, #tpu.memory_space<vmem>>, vector<1x64x96xbf16>
    %1 = vector.shape_cast %0 : vector<1x64x96xbf16> to vector<64x96xbf16>
    %2 = vector.extract_strided_slice %1 {offsets = [0, 0], sizes = [64, 16], strides = [1, 1]} : vector<64x96xbf16> to vector<64x16xbf16>
    %3 = vector.extract_strided_slice %1 {offsets = [0, 32], sizes = [64, 16], strides = [1, 1]} : vector<64x96xbf16> to vector<64x16xbf16>
    %4 = vector.extract_strided_slice %1 {offsets = [0, 64], sizes = [64, 16], strides = [1, 1]} : vector<64x96xbf16> to vector<64x16xbf16>
    %cst = arith.constant dense<0.000000e+00> : vector<64x64xf32>
    %5 = tpu.matmul %2, %3, %cst {dimension_numbers = #tpu.dot_dimension_numbers<[1], [1], [0], [0], [0, 0, 1, 0], [], []>} : vector<64x16xbf16>, vector<64x16xbf16>, vector<64x64xf32> -> vector<64x64xf32>
    %cst_2 = arith.constant dense<0xFF800000> : vector<64xf32>
    %6 = vector.multi_reduction <maximumf>, %5, %cst_2 [1] : vector<64x64xf32> to vector<64xf32>
    %7 = vector.shape_cast %6 : vector<64xf32> to vector<64x1xf32>
    %8 = vector.broadcast %7 : vector<64x1xf32> to vector<64x64xf32>
    %9 = arith.subf %5, %8 : vector<64x64xf32>
    %10 = math.exp %9 : vector<64x64xf32>
    %cst_3 = arith.constant dense<0.000000e+00> : vector<64xf32>
    %11 = vector.multi_reduction <add>, %10, %cst_3 [1] : vector<64x64xf32> to vector<64xf32>
    %12 = vector.shape_cast %11 : vector<64xf32> to vector<64x1xf32>
    %13 = tpu.reciprocal %12 {approx = true} : vector<64x1xf32> -> vector<64x1xf32>
    %14 = vector.broadcast %13 : vector<64x1xf32> to vector<64x64xf32>
    %15 = arith.mulf %10, %14 : vector<64x64xf32>
    %16 = arith.truncf %15 : vector<64x64xf32> to vector<64x64xbf16>
    %cst_4 = arith.constant dense<0.000000e+00> : vector<64x16xf32>
    %17 = tpu.matmul %16, %4, %cst_4 {dimension_numbers = #tpu.dot_dimension_numbers<[1], [0], [0], [1], [0, 0, 1, 1], [], []>} : vector<64x64xbf16>, vector<64x16xbf16>, vector<64x16xf32> -> vector<64x16xf32>
    %18 = arith.truncf %17 : vector<64x16xf32> to vector<64x16xbf16>
    %c0_5 = arith.constant 0 : index
    %c0_6 = arith.constant 0 : index
    %19 = vector.load %arg5[%c0_5, %c0_6] : memref<64x32xbf16, #tpu.memory_space<vmem>>, vector<64x16xbf16>
    tpu.vector_store %arg5[%c0_5, %c0_6], %18 {strides = array<i32>} : memref<64x32xbf16, #tpu.memory_space<vmem>>, vector<64x16xbf16>,
    %20 = vector.extract_strided_slice %1 {offsets = [0, 16], sizes = [64, 16], strides = [1, 1]} : vector<64x96xbf16> to vector<64x16xbf16>
    %21 = vector.extract_strided_slice %1 {offsets = [0, 48], sizes = [64, 16], strides = [1, 1]} : vector<64x96xbf16> to vector<64x16xbf16>
    %22 = vector.extract_strided_slice %1 {offsets = [0, 80], sizes = [64, 16], strides = [1, 1]} : vector<64x96xbf16> to vector<64x16xbf16>
    %cst_7 = arith.constant dense<0.000000e+00> : vector<64x64xf32>
    %23 = tpu.matmul %20, %21, %cst_7 {dimension_numbers = #tpu.dot_dimension_numbers<[1], [1], [0], [0], [0, 0, 1, 0], [], []>} : vector<64x16xbf16>, vector<64x16xbf16>, vector<64x64xf32> -> vector<64x64xf32>
    %cst_8 = arith.constant dense<0xFF800000> : vector<64xf32>
    %24 = vector.multi_reduction <maximumf>, %23, %cst_8 [1] : vector<64x64xf32> to vector<64xf32>
    %25 = vector.shape_cast %24 : vector<64xf32> to vector<64x1xf32>
    %26 = vector.broadcast %25 : vector<64x1xf32> to vector<64x64xf32>
    %27 = arith.subf %23, %26 : vector<64x64xf32>
    %28 = math.exp %27 : vector<64x64xf32>
    %cst_9 = arith.constant dense<0.000000e+00> : vector<64xf32>
    %29 = vector.multi_reduction <add>, %28, %cst_9 [1] : vector<64x64xf32> to vector<64xf32>
    %30 = vector.shape_cast %29 : vector<64xf32> to vector<64x1xf32>
    %31 = tpu.reciprocal %30 {approx = true} : vector<64x1xf32> -> vector<64x1xf32>
    %32 = vector.broadcast %31 : vector<64x1xf32> to vector<64x64xf32>
    %33 = arith.mulf %28, %32 : vector<64x64xf32>
    %34 = arith.truncf %33 : vector<64x64xf32> to vector<64x64xbf16>
    %cst_10 = arith.constant dense<0.000000e+00> : vector<64x16xf32>
    %35 = tpu.matmul %34, %22, %cst_10 {dimension_numbers = #tpu.dot_dimension_numbers<[1], [0], [0], [1], [0, 0, 1, 1], [], []>} : vector<64x64xbf16>, vector<64x16xbf16>, vector<64x16xf32> -> vector<64x16xf32>
    %36 = arith.truncf %35 : vector<64x16xf32> to vector<64x16xbf16>
    %c0_11 = arith.constant 0 : index
    %c16 = arith.constant 16 : index
    %37 = vector.load %arg5[%c0_11, %c16] : memref<64x32xbf16, #tpu.memory_space<vmem>>, vector<64x16xbf16>
    tpu.vector_store %arg5[%c0_11, %c16], %36 {strides = array<i32>} : memref<64x32xbf16, #tpu.memory_space<vmem>>, vector<64x16xbf16>,
    %c0_12 = arith.constant 0 : index
    %c0_13 = arith.constant 0 : index
    %c0_14 = arith.constant 0 : index
    %38 = vector.load %arg3[%c0_12, %c0_13, %c0_14] : memref<1x64x32xbf16, #tpu.memory_space<vmem>>, vector<1x64x32xbf16>
    %39 = vector.shape_cast %38 : vector<1x64x32xbf16> to vector<64x32xbf16>
    %40 = arith.extf %39 : vector<64x32xbf16> to vector<64x32xf32>
    %c0_15 = arith.constant 0 : index
    %c0_16 = arith.constant 0 : index
    %41 = vector.load %arg5[%c0_15, %c0_16] : memref<64x32xbf16, #tpu.memory_space<vmem>>, vector<64x32xbf16>
    %c0_17 = arith.constant 0 : index
    %c0_18 = arith.constant 0 : index
    %42 = vector.load %arg2[%c0_17, %c0_18] : memref<32x32xbf16, #tpu.memory_space<vmem>>, vector<32x32xbf16>
    %cst_19 = arith.constant dense<0.000000e+00> : vector<64x32xf32>
    %43 = tpu.matmul %41, %42, %cst_19 {dimension_numbers = #tpu.dot_dimension_numbers<[1], [0], [0], [1], [0, 0, 1, 1], [], []>} : vector<64x32xbf16>, vector<32x32xbf16>, vector<64x32xf32> -> vector<64x32xf32>
    %44 = arith.addf %40, %43 : vector<64x32xf32>
    %45 = arith.truncf %44 : vector<64x32xf32> to vector<64x32xbf16>
    %c0_20 = arith.constant 0 : index
    %c0_21 = arith.constant 0 : index
    %c0_22 = arith.constant 0 : index
    %46 = vector.load %arg4[%c0_20, %c0_21, %c0_22] : memref<1x64x32xbf16, #tpu.memory_space<vmem>>, vector<1x64x32xbf16>
    %47 = vector.shape_cast %46 : vector<1x64x32xbf16> to vector<64x32xbf16>
    %48 = vector.shape_cast %45 : vector<64x32xbf16> to vector<1x64x32xbf16>
    tpu.vector_store %arg4[%c0_20, %c0_21, %c0_22], %48 {strides = array<i32>} : memref<1x64x32xbf16, #tpu.memory_space<vmem>>, vector<1x64x32xbf16>,
    return
  }
  func.func @transform_0(%arg0: i32) -> (i32, i32, i32) {
    %c0_i32 = arith.constant 0 : i32
    %c0_i32_0 = arith.constant 0 : i32
    %c0_i32_1 = arith.constant 0 : i32
    return %arg0, %c0_i32, %c0_i32_0 : i32, i32, i32
  }
  func.func @transform_1(%arg0: i32) -> (i32, i32) {
    %c0_i32 = arith.constant 0 : i32
    %c0_i32_0 = arith.constant 0 : i32
    %c0_i32_1 = arith.constant 0 : i32
    return %c0_i32, %c0_i32_0 : i32, i32
  }
  func.func @transform_2(%arg0: i32) -> (i32, i32, i32) {
    %c0_i32 = arith.constant 0 : i32
    %c0_i32_0 = arith.constant 0 : i32
    %c0_i32_1 = arith.constant 0 : i32
    return %arg0, %c0_i32, %c0_i32_0 : i32, i32, i32
  }
  func.func @transform_3(%arg0: i32) -> (i32, i32, i32) {
    %c0_i32 = arith.constant 0 : i32
    %c0_i32_0 = arith.constant 0 : i32
    %c0_i32_1 = arith.constant 0 : i32
    return %arg0, %c0_i32, %c0_i32_0 : i32, i32, i32
  }
}

module attributes {stable_mosaic.version = 11 : i64} {
  func.func @_gn_proj_bias_kernel(%arg0: i32, %arg1: memref<1x64x32xbf16, #tpu.memory_space<vmem>>, %arg2: memref<1x1x32xf32, #tpu.memory_space<vmem>>, %arg3: memref<1x1x32xf32, #tpu.memory_space<vmem>>, %arg4: memref<32x32xf32, #tpu.memory_space<vmem>>, %arg5: memref<32x32xbf16, #tpu.memory_space<vmem>>, %arg6: memref<1x32xf32, #tpu.memory_space<vmem>>, %arg7: memref<1x64x32xbf16, #tpu.memory_space<vmem>>) attributes {dimension_semantics = [#tpu.dimension_semantics<parallel>], iteration_bounds = array<i64: 2>, scalar_prefetch = 0 : i64, scratch_operands = 0 : i64, tpu.core_type = #tpu.core_type<tc>, window_params = [{transform_indices = @transform_0, window_bounds = array<i64: 1, 64, 32>}, {transform_indices = @transform_1, window_bounds = array<i64: 1, 1, 32>}, {transform_indices = @transform_2, window_bounds = array<i64: 1, 1, 32>}, {pipeline_mode = #tpu.pipeline_mode<synchronous>, transform_indices = @transform_3, window_bounds = array<i64: 32, 32>}, {pipeline_mode = #tpu.pipeline_mode<synchronous>, transform_indices = @transform_4, window_bounds = array<i64: 32, 32>}, {pipeline_mode = #tpu.pipeline_mode<synchronous>, transform_indices = @transform_5, window_bounds = array<i64: 1, 32>}, {transform_indices = @transform_6, window_bounds = array<i64: 1, 64, 32>}]} {
    %c0 = arith.constant 0 : index
    %c0_0 = arith.constant 0 : index
    %c0_1 = arith.constant 0 : index
    %0 = vector.load %arg1[%c0, %c0_0, %c0_1] : memref<1x64x32xbf16, #tpu.memory_space<vmem>>, vector<1x64x32xbf16>
    %1 = vector.shape_cast %0 : vector<1x64x32xbf16> to vector<64x32xbf16>
    %c0_2 = arith.constant 0 : index
    %c0_3 = arith.constant 0 : index
    %c0_4 = arith.constant 0 : index
    %2 = vector.load %arg2[%c0_2, %c0_3, %c0_4] : memref<1x1x32xf32, #tpu.memory_space<vmem>>, vector<1x1x32xf32>
    %3 = vector.shape_cast %2 : vector<1x1x32xf32> to vector<1x32xf32>
    %c0_5 = arith.constant 0 : index
    %c0_6 = arith.constant 0 : index
    %c0_7 = arith.constant 0 : index
    %4 = vector.load %arg3[%c0_5, %c0_6, %c0_7] : memref<1x1x32xf32, #tpu.memory_space<vmem>>, vector<1x1x32xf32>
    %5 = vector.shape_cast %4 : vector<1x1x32xf32> to vector<1x32xf32>
    %c0_8 = arith.constant 0 : index
    %c0_9 = arith.constant 0 : index
    %6 = vector.load %arg4[%c0_8, %c0_9] : memref<32x32xf32, #tpu.memory_space<vmem>>, vector<32x32xf32>
    %7 = arith.extf %1 : vector<64x32xbf16> to vector<64x32xf32>
    %cst = arith.constant dense<0.000000e+00> : vector<32xf32>
    %8 = vector.multi_reduction <add>, %7, %cst [0] : vector<64x32xf32> to vector<32xf32>
    %9 = vector.shape_cast %8 : vector<32xf32> to vector<1x32xf32>
    %cst_10 = arith.constant 1.562500e-02 : f32
    %10 = vector.broadcast %cst_10 : f32 to vector<1x32xf32>
    %11 = arith.mulf %9, %10 : vector<1x32xf32>
    %12 = arith.mulf %7, %7 : vector<64x32xf32>
    %cst_11 = arith.constant dense<0.000000e+00> : vector<32xf32>
    %13 = vector.multi_reduction <add>, %12, %cst_11 [0] : vector<64x32xf32> to vector<32xf32>
    %14 = vector.shape_cast %13 : vector<32xf32> to vector<1x32xf32>
    %cst_12 = arith.constant 1.562500e-02 : f32
    %15 = vector.broadcast %cst_12 : f32 to vector<1x32xf32>
    %16 = arith.mulf %14, %15 : vector<1x32xf32>
    %17 = tpu.concatenate %11, %16 in 0 : vector<1x32xf32>, vector<1x32xf32> -> vector<2x32xf32>
    %cst_13 = arith.constant dense<0.000000e+00> : vector<2x32xf32>
    %18 = tpu.matmul %17, %6, %cst_13 {dimension_numbers = #tpu.dot_dimension_numbers<[1], [0], [0], [1], [0, 0, 1, 1], [], []>} : vector<2x32xf32>, vector<32x32xf32>, vector<2x32xf32> -> vector<2x32xf32>
    %19 = vector.extract_strided_slice %18 {offsets = [0, 0], sizes = [1, 32], strides = [1, 1]} : vector<2x32xf32> to vector<1x32xf32>
    %20 = vector.extract_strided_slice %18 {offsets = [1, 0], sizes = [1, 32], strides = [1, 1]} : vector<2x32xf32> to vector<1x32xf32>
    %21 = arith.mulf %19, %19 : vector<1x32xf32>
    %22 = arith.subf %20, %21 : vector<1x32xf32>
    %cst_14 = arith.constant 0.000000e+00 : f32
    %23 = vector.broadcast %cst_14 : f32 to vector<1x32xf32>
    %24 = arith.maximumf %22, %23 : vector<1x32xf32>
    %cst_15 = arith.constant 9.99999974E-6 : f32
    %25 = vector.broadcast %cst_15 : f32 to vector<1x32xf32>
    %26 = arith.addf %24, %25 : vector<1x32xf32>
    %27 = math.rsqrt %26 : vector<1x32xf32>
    %28 = vector.broadcast %19 : vector<1x32xf32> to vector<64x32xf32>
    %29 = arith.subf %7, %28 : vector<64x32xf32>
    %30 = vector.broadcast %27 : vector<1x32xf32> to vector<64x32xf32>
    %31 = arith.mulf %29, %30 : vector<64x32xf32>
    %cst_16 = arith.constant 1.000000e+00 : f32
    %32 = vector.broadcast %cst_16 : f32 to vector<1x32xf32>
    %33 = arith.addf %3, %32 : vector<1x32xf32>
    %34 = vector.broadcast %33 : vector<1x32xf32> to vector<64x32xf32>
    %35 = arith.mulf %31, %34 : vector<64x32xf32>
    %36 = vector.broadcast %5 : vector<1x32xf32> to vector<64x32xf32>
    %37 = arith.addf %35, %36 : vector<64x32xf32>
    %38 = arith.negf %37 : vector<64x32xf32>
    %39 = math.exp %38 : vector<64x32xf32>
    %cst_17 = arith.constant 1.000000e+00 : f32
    %40 = vector.broadcast %cst_17 : f32 to vector<64x32xf32>
    %41 = arith.addf %40, %39 : vector<64x32xf32>
    %42 = arith.divf %40, %41 : vector<64x32xf32>
    %43 = arith.mulf %37, %42 : vector<64x32xf32>
    %44 = arith.truncf %43 : vector<64x32xf32> to vector<64x32xbf16>
    %c0_18 = arith.constant 0 : index
    %c0_19 = arith.constant 0 : index
    %45 = vector.load %arg5[%c0_18, %c0_19] : memref<32x32xbf16, #tpu.memory_space<vmem>>, vector<32x32xbf16>
    %cst_20 = arith.constant dense<0.000000e+00> : vector<64x32xf32>
    %46 = tpu.matmul %44, %45, %cst_20 {dimension_numbers = #tpu.dot_dimension_numbers<[1], [0], [0], [1], [0, 0, 1, 1], [], []>} : vector<64x32xbf16>, vector<32x32xbf16>, vector<64x32xf32> -> vector<64x32xf32>
    %c0_21 = arith.constant 0 : index
    %c0_22 = arith.constant 0 : index
    %47 = vector.load %arg6[%c0_21, %c0_22] : memref<1x32xf32, #tpu.memory_space<vmem>>, vector<1x32xf32>
    %48 = vector.broadcast %47 : vector<1x32xf32> to vector<64x32xf32>
    %49 = arith.addf %46, %48 : vector<64x32xf32>
    %50 = arith.truncf %49 : vector<64x32xf32> to vector<64x32xbf16>
    %c0_23 = arith.constant 0 : index
    %c0_24 = arith.constant 0 : index
    %c0_25 = arith.constant 0 : index
    %51 = vector.load %arg7[%c0_23, %c0_24, %c0_25] : memref<1x64x32xbf16, #tpu.memory_space<vmem>>, vector<1x64x32xbf16>
    %52 = vector.shape_cast %51 : vector<1x64x32xbf16> to vector<64x32xbf16>
    %53 = vector.shape_cast %50 : vector<64x32xbf16> to vector<1x64x32xbf16>
    tpu.vector_store %arg7[%c0_23, %c0_24, %c0_25], %53 {strides = array<i32>} : memref<1x64x32xbf16, #tpu.memory_space<vmem>>, vector<1x64x32xbf16>,
    return
  }
  func.func @transform_0(%arg0: i32) -> (i32, i32, i32) {
    %c0_i32 = arith.constant 0 : i32
    %c0_i32_0 = arith.constant 0 : i32
    %c0_i32_1 = arith.constant 0 : i32
    return %arg0, %c0_i32, %c0_i32_0 : i32, i32, i32
  }
  func.func @transform_1(%arg0: i32) -> (i32, i32, i32) {
    %c0_i32 = arith.constant 0 : i32
    %c0_i32_0 = arith.constant 0 : i32
    %c0_i32_1 = arith.constant 0 : i32
    return %arg0, %c0_i32, %c0_i32_0 : i32, i32, i32
  }
  func.func @transform_2(%arg0: i32) -> (i32, i32, i32) {
    %c0_i32 = arith.constant 0 : i32
    %c0_i32_0 = arith.constant 0 : i32
    %c0_i32_1 = arith.constant 0 : i32
    return %arg0, %c0_i32, %c0_i32_0 : i32, i32, i32
  }
  func.func @transform_3(%arg0: i32) -> (i32, i32) {
    %c0_i32 = arith.constant 0 : i32
    %c0_i32_0 = arith.constant 0 : i32
    %c0_i32_1 = arith.constant 0 : i32
    return %c0_i32, %c0_i32_0 : i32, i32
  }
  func.func @transform_4(%arg0: i32) -> (i32, i32) {
    %c0_i32 = arith.constant 0 : i32
    %c0_i32_0 = arith.constant 0 : i32
    %c0_i32_1 = arith.constant 0 : i32
    return %c0_i32, %c0_i32_0 : i32, i32
  }
  func.func @transform_5(%arg0: i32) -> (i32, i32) {
    %c0_i32 = arith.constant 0 : i32
    %c0_i32_0 = arith.constant 0 : i32
    %c0_i32_1 = arith.constant 0 : i32
    return %c0_i32, %c0_i32_0 : i32, i32
  }
  func.func @transform_6(%arg0: i32) -> (i32, i32, i32) {
    %c0_i32 = arith.constant 0 : i32
    %c0_i32_0 = arith.constant 0 : i32
    %c0_i32_1 = arith.constant 0 : i32
    return %arg0, %c0_i32, %c0_i32_0 : i32, i32, i32
  }
}

module attributes {stable_mosaic.version = 11 : i64} {
  func.func @_gn_kernel(%arg0: i32, %arg1: memref<1x64x32xbf16, #tpu.memory_space<vmem>>, %arg2: memref<1x1x32xf32, #tpu.memory_space<vmem>>, %arg3: memref<1x1x32xf32, #tpu.memory_space<vmem>>, %arg4: memref<32x32xf32, #tpu.memory_space<vmem>>, %arg5: memref<1x64x32xbf16, #tpu.memory_space<vmem>>) attributes {dimension_semantics = [#tpu.dimension_semantics<parallel>], iteration_bounds = array<i64: 2>, scalar_prefetch = 0 : i64, scratch_operands = 0 : i64, tpu.core_type = #tpu.core_type<tc>, window_params = [{transform_indices = @transform_0, window_bounds = array<i64: 1, 64, 32>}, {transform_indices = @transform_1, window_bounds = array<i64: 1, 1, 32>}, {transform_indices = @transform_2, window_bounds = array<i64: 1, 1, 32>}, {pipeline_mode = #tpu.pipeline_mode<synchronous>, transform_indices = @transform_3, window_bounds = array<i64: 32, 32>}, {transform_indices = @transform_4, window_bounds = array<i64: 1, 64, 32>}]} {
    %c0 = arith.constant 0 : index
    %c0_0 = arith.constant 0 : index
    %c0_1 = arith.constant 0 : index
    %0 = vector.load %arg1[%c0, %c0_0, %c0_1] : memref<1x64x32xbf16, #tpu.memory_space<vmem>>, vector<1x64x32xbf16>
    %1 = vector.shape_cast %0 : vector<1x64x32xbf16> to vector<64x32xbf16>
    %c0_2 = arith.constant 0 : index
    %c0_3 = arith.constant 0 : index
    %c0_4 = arith.constant 0 : index
    %2 = vector.load %arg2[%c0_2, %c0_3, %c0_4] : memref<1x1x32xf32, #tpu.memory_space<vmem>>, vector<1x1x32xf32>
    %3 = vector.shape_cast %2 : vector<1x1x32xf32> to vector<1x32xf32>
    %c0_5 = arith.constant 0 : index
    %c0_6 = arith.constant 0 : index
    %c0_7 = arith.constant 0 : index
    %4 = vector.load %arg3[%c0_5, %c0_6, %c0_7] : memref<1x1x32xf32, #tpu.memory_space<vmem>>, vector<1x1x32xf32>
    %5 = vector.shape_cast %4 : vector<1x1x32xf32> to vector<1x32xf32>
    %c0_8 = arith.constant 0 : index
    %c0_9 = arith.constant 0 : index
    %6 = vector.load %arg4[%c0_8, %c0_9] : memref<32x32xf32, #tpu.memory_space<vmem>>, vector<32x32xf32>
    %7 = arith.extf %1 : vector<64x32xbf16> to vector<64x32xf32>
    %cst = arith.constant dense<0.000000e+00> : vector<32xf32>
    %8 = vector.multi_reduction <add>, %7, %cst [0] : vector<64x32xf32> to vector<32xf32>
    %9 = vector.shape_cast %8 : vector<32xf32> to vector<1x32xf32>
    %cst_10 = arith.constant 1.562500e-02 : f32
    %10 = vector.broadcast %cst_10 : f32 to vector<1x32xf32>
    %11 = arith.mulf %9, %10 : vector<1x32xf32>
    %12 = arith.mulf %7, %7 : vector<64x32xf32>
    %cst_11 = arith.constant dense<0.000000e+00> : vector<32xf32>
    %13 = vector.multi_reduction <add>, %12, %cst_11 [0] : vector<64x32xf32> to vector<32xf32>
    %14 = vector.shape_cast %13 : vector<32xf32> to vector<1x32xf32>
    %cst_12 = arith.constant 1.562500e-02 : f32
    %15 = vector.broadcast %cst_12 : f32 to vector<1x32xf32>
    %16 = arith.mulf %14, %15 : vector<1x32xf32>
    %17 = tpu.concatenate %11, %16 in 0 : vector<1x32xf32>, vector<1x32xf32> -> vector<2x32xf32>
    %cst_13 = arith.constant dense<0.000000e+00> : vector<2x32xf32>
    %18 = tpu.matmul %17, %6, %cst_13 {dimension_numbers = #tpu.dot_dimension_numbers<[1], [0], [0], [1], [0, 0, 1, 1], [], []>} : vector<2x32xf32>, vector<32x32xf32>, vector<2x32xf32> -> vector<2x32xf32>
    %19 = vector.extract_strided_slice %18 {offsets = [0, 0], sizes = [1, 32], strides = [1, 1]} : vector<2x32xf32> to vector<1x32xf32>
    %20 = vector.extract_strided_slice %18 {offsets = [1, 0], sizes = [1, 32], strides = [1, 1]} : vector<2x32xf32> to vector<1x32xf32>
    %21 = arith.mulf %19, %19 : vector<1x32xf32>
    %22 = arith.subf %20, %21 : vector<1x32xf32>
    %cst_14 = arith.constant 0.000000e+00 : f32
    %23 = vector.broadcast %cst_14 : f32 to vector<1x32xf32>
    %24 = arith.maximumf %22, %23 : vector<1x32xf32>
    %cst_15 = arith.constant 9.99999974E-6 : f32
    %25 = vector.broadcast %cst_15 : f32 to vector<1x32xf32>
    %26 = arith.addf %24, %25 : vector<1x32xf32>
    %27 = math.rsqrt %26 : vector<1x32xf32>
    %28 = vector.broadcast %19 : vector<1x32xf32> to vector<64x32xf32>
    %29 = arith.subf %7, %28 : vector<64x32xf32>
    %30 = vector.broadcast %27 : vector<1x32xf32> to vector<64x32xf32>
    %31 = arith.mulf %29, %30 : vector<64x32xf32>
    %cst_16 = arith.constant 1.000000e+00 : f32
    %32 = vector.broadcast %cst_16 : f32 to vector<1x32xf32>
    %33 = arith.addf %3, %32 : vector<1x32xf32>
    %34 = vector.broadcast %33 : vector<1x32xf32> to vector<64x32xf32>
    %35 = arith.mulf %31, %34 : vector<64x32xf32>
    %36 = vector.broadcast %5 : vector<1x32xf32> to vector<64x32xf32>
    %37 = arith.addf %35, %36 : vector<64x32xf32>
    %38 = arith.negf %37 : vector<64x32xf32>
    %39 = math.exp %38 : vector<64x32xf32>
    %cst_17 = arith.constant 1.000000e+00 : f32
    %40 = vector.broadcast %cst_17 : f32 to vector<64x32xf32>
    %41 = arith.addf %40, %39 : vector<64x32xf32>
    %42 = arith.divf %40, %41 : vector<64x32xf32>
    %43 = arith.mulf %37, %42 : vector<64x32xf32>
    %44 = arith.truncf %43 : vector<64x32xf32> to vector<64x32xbf16>
    %c0_18 = arith.constant 0 : index
    %c0_19 = arith.constant 0 : index
    %c0_20 = arith.constant 0 : index
    %45 = vector.load %arg5[%c0_18, %c0_19, %c0_20] : memref<1x64x32xbf16, #tpu.memory_space<vmem>>, vector<1x64x32xbf16>
    %46 = vector.shape_cast %45 : vector<1x64x32xbf16> to vector<64x32xbf16>
    %47 = vector.shape_cast %44 : vector<64x32xbf16> to vector<1x64x32xbf16>
    tpu.vector_store %arg5[%c0_18, %c0_19, %c0_20], %47 {strides = array<i32>} : memref<1x64x32xbf16, #tpu.memory_space<vmem>>, vector<1x64x32xbf16>,
    return
  }
  func.func @transform_0(%arg0: i32) -> (i32, i32, i32) {
    %c0_i32 = arith.constant 0 : i32
    %c0_i32_0 = arith.constant 0 : i32
    %c0_i32_1 = arith.constant 0 : i32
    return %arg0, %c0_i32, %c0_i32_0 : i32, i32, i32
  }
  func.func @transform_1(%arg0: i32) -> (i32, i32, i32) {
    %c0_i32 = arith.constant 0 : i32
    %c0_i32_0 = arith.constant 0 : i32
    %c0_i32_1 = arith.constant 0 : i32
    return %arg0, %c0_i32, %c0_i32_0 : i32, i32, i32
  }
  func.func @transform_2(%arg0: i32) -> (i32, i32, i32) {
    %c0_i32 = arith.constant 0 : i32
    %c0_i32_0 = arith.constant 0 : i32
    %c0_i32_1 = arith.constant 0 : i32
    return %arg0, %c0_i32, %c0_i32_0 : i32, i32, i32
  }
  func.func @transform_3(%arg0: i32) -> (i32, i32) {
    %c0_i32 = arith.constant 0 : i32
    %c0_i32_0 = arith.constant 0 : i32
    %c0_i32_1 = arith.constant 0 : i32
    return %c0_i32, %c0_i32_0 : i32, i32
  }
  func.func @transform_4(%arg0: i32) -> (i32, i32, i32) {
    %c0_i32 = arith.constant 0 : i32
    %c0_i32_0 = arith.constant 0 : i32
    %c0_i32_1 = arith.constant 0 : i32
    return %arg0, %c0_i32, %c0_i32_0 : i32, i32, i32
  }
}

module attributes {stable_mosaic.version = 11 : i64} {
  func.func @_conv3x3_kernel(%arg0: i32, %arg1: memref<1x110x32xbf16, #tpu.memory_space<vmem>>, %arg2: memref<9x32x32xbf16, #tpu.memory_space<vmem>>, %arg3: memref<1x32xf32, #tpu.memory_space<vmem>>, %arg4: memref<1x80x32xbf16, #tpu.memory_space<vmem>>) attributes {dimension_semantics = [#tpu.dimension_semantics<parallel>], iteration_bounds = array<i64: 2>, scalar_prefetch = 0 : i64, scratch_operands = 0 : i64, tpu.core_type = #tpu.core_type<tc>, window_params = [{transform_indices = @transform_0, window_bounds = array<i64: 1, 110, 32>}, {pipeline_mode = #tpu.pipeline_mode<synchronous>, transform_indices = @transform_1, window_bounds = array<i64: 9, 32, 32>}, {pipeline_mode = #tpu.pipeline_mode<synchronous>, transform_indices = @transform_2, window_bounds = array<i64: 1, 32>}, {transform_indices = @transform_3, window_bounds = array<i64: 1, 80, 32>}]} {
    %cst = arith.constant 0.000000e+00 : f32
    %0 = vector.broadcast %cst : f32 to vector<80x32xf32>
    %c0 = arith.constant 0 : index
    %c0_0 = arith.constant 0 : index
    %c0_1 = arith.constant 0 : index
    %1 = vector.load %arg1[%c0, %c0_0, %c0_1] : memref<1x110x32xbf16, #tpu.memory_space<vmem>>, vector<1x80x32xbf16>
    %2 = vector.shape_cast %1 : vector<1x80x32xbf16> to vector<80x32xbf16>
    %c0_2 = arith.constant 0 : index
    %c0_3 = arith.constant 0 : index
    %c0_4 = arith.constant 0 : index
    %3 = vector.load %arg2[%c0_2, %c0_3, %c0_4] : memref<9x32x32xbf16, #tpu.memory_space<vmem>>, vector<1x32x32xbf16>
    %4 = vector.shape_cast %3 : vector<1x32x32xbf16> to vector<32x32xbf16>
    %cst_5 = arith.constant dense<0.000000e+00> : vector<80x32xf32>
    %5 = tpu.matmul %2, %4, %cst_5 {dimension_numbers = #tpu.dot_dimension_numbers<[1], [0], [0], [1], [0, 0, 1, 1], [], []>} : vector<80x32xbf16>, vector<32x32xbf16>, vector<80x32xf32> -> vector<80x32xf32>
    %6 = arith.addf %0, %5 : vector<80x32xf32>
    %c0_6 = arith.constant 0 : index
    %c1 = arith.constant 1 : index
    %c0_7 = arith.constant 0 : index
    %7 = vector.load %arg1[%c0_6, %c1, %c0_7] : memref<1x110x32xbf16, #tpu.memory_space<vmem>>, vector<1x80x32xbf16>
    %8 = vector.shape_cast %7 : vector<1x80x32xbf16> to vector<80x32xbf16>
    %c1_8 = arith.constant 1 : index
    %c0_9 = arith.constant 0 : index
    %c0_10 = arith.constant 0 : index
    %9 = vector.load %arg2[%c1_8, %c0_9, %c0_10] : memref<9x32x32xbf16, #tpu.memory_space<vmem>>, vector<1x32x32xbf16>
    %10 = vector.shape_cast %9 : vector<1x32x32xbf16> to vector<32x32xbf16>
    %cst_11 = arith.constant dense<0.000000e+00> : vector<80x32xf32>
    %11 = tpu.matmul %8, %10, %cst_11 {dimension_numbers = #tpu.dot_dimension_numbers<[1], [0], [0], [1], [0, 0, 1, 1], [], []>} : vector<80x32xbf16>, vector<32x32xbf16>, vector<80x32xf32> -> vector<80x32xf32>
    %12 = arith.addf %6, %11 : vector<80x32xf32>
    %c0_12 = arith.constant 0 : index
    %c2 = arith.constant 2 : index
    %c0_13 = arith.constant 0 : index
    %13 = vector.load %arg1[%c0_12, %c2, %c0_13] : memref<1x110x32xbf16, #tpu.memory_space<vmem>>, vector<1x80x32xbf16>
    %14 = vector.shape_cast %13 : vector<1x80x32xbf16> to vector<80x32xbf16>
    %c2_14 = arith.constant 2 : index
    %c0_15 = arith.constant 0 : index
    %c0_16 = arith.constant 0 : index
    %15 = vector.load %arg2[%c2_14, %c0_15, %c0_16] : memref<9x32x32xbf16, #tpu.memory_space<vmem>>, vector<1x32x32xbf16>
    %16 = vector.shape_cast %15 : vector<1x32x32xbf16> to vector<32x32xbf16>
    %cst_17 = arith.constant dense<0.000000e+00> : vector<80x32xf32>
    %17 = tpu.matmul %14, %16, %cst_17 {dimension_numbers = #tpu.dot_dimension_numbers<[1], [0], [0], [1], [0, 0, 1, 1], [], []>} : vector<80x32xbf16>, vector<32x32xbf16>, vector<80x32xf32> -> vector<80x32xf32>
    %18 = arith.addf %12, %17 : vector<80x32xf32>
    %c0_18 = arith.constant 0 : index
    %c10 = arith.constant 10 : index
    %c0_19 = arith.constant 0 : index
    %19 = vector.load %arg1[%c0_18, %c10, %c0_19] : memref<1x110x32xbf16, #tpu.memory_space<vmem>>, vector<1x80x32xbf16>
    %20 = vector.shape_cast %19 : vector<1x80x32xbf16> to vector<80x32xbf16>
    %c3 = arith.constant 3 : index
    %c0_20 = arith.constant 0 : index
    %c0_21 = arith.constant 0 : index
    %21 = vector.load %arg2[%c3, %c0_20, %c0_21] : memref<9x32x32xbf16, #tpu.memory_space<vmem>>, vector<1x32x32xbf16>
    %22 = vector.shape_cast %21 : vector<1x32x32xbf16> to vector<32x32xbf16>
    %cst_22 = arith.constant dense<0.000000e+00> : vector<80x32xf32>
    %23 = tpu.matmul %20, %22, %cst_22 {dimension_numbers = #tpu.dot_dimension_numbers<[1], [0], [0], [1], [0, 0, 1, 1], [], []>} : vector<80x32xbf16>, vector<32x32xbf16>, vector<80x32xf32> -> vector<80x32xf32>
    %24 = arith.addf %18, %23 : vector<80x32xf32>
    %c0_23 = arith.constant 0 : index
    %c11 = arith.constant 11 : index
    %c0_24 = arith.constant 0 : index
    %25 = vector.load %arg1[%c0_23, %c11, %c0_24] : memref<1x110x32xbf16, #tpu.memory_space<vmem>>, vector<1x80x32xbf16>
    %26 = vector.shape_cast %25 : vector<1x80x32xbf16> to vector<80x32xbf16>
    %c4 = arith.constant 4 : index
    %c0_25 = arith.constant 0 : index
    %c0_26 = arith.constant 0 : index
    %27 = vector.load %arg2[%c4, %c0_25, %c0_26] : memref<9x32x32xbf16, #tpu.memory_space<vmem>>, vector<1x32x32xbf16>
    %28 = vector.shape_cast %27 : vector<1x32x32xbf16> to vector<32x32xbf16>
    %cst_27 = arith.constant dense<0.000000e+00> : vector<80x32xf32>
    %29 = tpu.matmul %26, %28, %cst_27 {dimension_numbers = #tpu.dot_dimension_numbers<[1], [0], [0], [1], [0, 0, 1, 1], [], []>} : vector<80x32xbf16>, vector<32x32xbf16>, vector<80x32xf32> -> vector<80x32xf32>
    %30 = arith.addf %24, %29 : vector<80x32xf32>
    %c0_28 = arith.constant 0 : index
    %c12 = arith.constant 12 : index
    %c0_29 = arith.constant 0 : index
    %31 = vector.load %arg1[%c0_28, %c12, %c0_29] : memref<1x110x32xbf16, #tpu.memory_space<vmem>>, vector<1x80x32xbf16>
    %32 = vector.shape_cast %31 : vector<1x80x32xbf16> to vector<80x32xbf16>
    %c5 = arith.constant 5 : index
    %c0_30 = arith.constant 0 : index
    %c0_31 = arith.constant 0 : index
    %33 = vector.load %arg2[%c5, %c0_30, %c0_31] : memref<9x32x32xbf16, #tpu.memory_space<vmem>>, vector<1x32x32xbf16>
    %34 = vector.shape_cast %33 : vector<1x32x32xbf16> to vector<32x32xbf16>
    %cst_32 = arith.constant dense<0.000000e+00> : vector<80x32xf32>
    %35 = tpu.matmul %32, %34, %cst_32 {dimension_numbers = #tpu.dot_dimension_numbers<[1], [0], [0], [1], [0, 0, 1, 1], [], []>} : vector<80x32xbf16>, vector<32x32xbf16>, vector<80x32xf32> -> vector<80x32xf32>
    %36 = arith.addf %30, %35 : vector<80x32xf32>
    %c0_33 = arith.constant 0 : index
    %c20 = arith.constant 20 : index
    %c0_34 = arith.constant 0 : index
    %37 = vector.load %arg1[%c0_33, %c20, %c0_34] : memref<1x110x32xbf16, #tpu.memory_space<vmem>>, vector<1x80x32xbf16>
    %38 = vector.shape_cast %37 : vector<1x80x32xbf16> to vector<80x32xbf16>
    %c6 = arith.constant 6 : index
    %c0_35 = arith.constant 0 : index
    %c0_36 = arith.constant 0 : index
    %39 = vector.load %arg2[%c6, %c0_35, %c0_36] : memref<9x32x32xbf16, #tpu.memory_space<vmem>>, vector<1x32x32xbf16>
    %40 = vector.shape_cast %39 : vector<1x32x32xbf16> to vector<32x32xbf16>
    %cst_37 = arith.constant dense<0.000000e+00> : vector<80x32xf32>
    %41 = tpu.matmul %38, %40, %cst_37 {dimension_numbers = #tpu.dot_dimension_numbers<[1], [0], [0], [1], [0, 0, 1, 1], [], []>} : vector<80x32xbf16>, vector<32x32xbf16>, vector<80x32xf32> -> vector<80x32xf32>
    %42 = arith.addf %36, %41 : vector<80x32xf32>
    %c0_38 = arith.constant 0 : index
    %c21 = arith.constant 21 : index
    %c0_39 = arith.constant 0 : index
    %43 = vector.load %arg1[%c0_38, %c21, %c0_39] : memref<1x110x32xbf16, #tpu.memory_space<vmem>>, vector<1x80x32xbf16>
    %44 = vector.shape_cast %43 : vector<1x80x32xbf16> to vector<80x32xbf16>
    %c7 = arith.constant 7 : index
    %c0_40 = arith.constant 0 : index
    %c0_41 = arith.constant 0 : index
    %45 = vector.load %arg2[%c7, %c0_40, %c0_41] : memref<9x32x32xbf16, #tpu.memory_space<vmem>>, vector<1x32x32xbf16>
    %46 = vector.shape_cast %45 : vector<1x32x32xbf16> to vector<32x32xbf16>
    %cst_42 = arith.constant dense<0.000000e+00> : vector<80x32xf32>
    %47 = tpu.matmul %44, %46, %cst_42 {dimension_numbers = #tpu.dot_dimension_numbers<[1], [0], [0], [1], [0, 0, 1, 1], [], []>} : vector<80x32xbf16>, vector<32x32xbf16>, vector<80x32xf32> -> vector<80x32xf32>
    %48 = arith.addf %42, %47 : vector<80x32xf32>
    %c0_43 = arith.constant 0 : index
    %c22 = arith.constant 22 : index
    %c0_44 = arith.constant 0 : index
    %49 = vector.load %arg1[%c0_43, %c22, %c0_44] : memref<1x110x32xbf16, #tpu.memory_space<vmem>>, vector<1x80x32xbf16>
    %50 = vector.shape_cast %49 : vector<1x80x32xbf16> to vector<80x32xbf16>
    %c8 = arith.constant 8 : index
    %c0_45 = arith.constant 0 : index
    %c0_46 = arith.constant 0 : index
    %51 = vector.load %arg2[%c8, %c0_45, %c0_46] : memref<9x32x32xbf16, #tpu.memory_space<vmem>>, vector<1x32x32xbf16>
    %52 = vector.shape_cast %51 : vector<1x32x32xbf16> to vector<32x32xbf16>
    %cst_47 = arith.constant dense<0.000000e+00> : vector<80x32xf32>
    %53 = tpu.matmul %50, %52, %cst_47 {dimension_numbers = #tpu.dot_dimension_numbers<[1], [0], [0], [1], [0, 0, 1, 1], [], []>} : vector<80x32xbf16>, vector<32x32xbf16>, vector<80x32xf32> -> vector<80x32xf32>
    %54 = arith.addf %48, %53 : vector<80x32xf32>
    %c0_48 = arith.constant 0 : index
    %c0_49 = arith.constant 0 : index
    %55 = vector.load %arg3[%c0_48, %c0_49] : memref<1x32xf32, #tpu.memory_space<vmem>>, vector<1x32xf32>
    %56 = vector.broadcast %55 : vector<1x32xf32> to vector<80x32xf32>
    %57 = arith.addf %54, %56 : vector<80x32xf32>
    %58 = arith.truncf %57 : vector<80x32xf32> to vector<80x32xbf16>
    %c0_50 = arith.constant 0 : index
    %c0_51 = arith.constant 0 : index
    %c0_52 = arith.constant 0 : index
    %59 = vector.load %arg4[%c0_50, %c0_51, %c0_52] : memref<1x80x32xbf16, #tpu.memory_space<vmem>>, vector<1x80x32xbf16>
    %60 = vector.shape_cast %59 : vector<1x80x32xbf16> to vector<80x32xbf16>
    %61 = vector.shape_cast %58 : vector<80x32xbf16> to vector<1x80x32xbf16>
    tpu.vector_store %arg4[%c0_50, %c0_51, %c0_52], %61 {strides = array<i32>} : memref<1x80x32xbf16, #tpu.memory_space<vmem>>, vector<1x80x32xbf16>,
    return
  }
  func.func @transform_0(%arg0: i32) -> (i32, i32, i32) {
    %c0_i32 = arith.constant 0 : i32
    %c0_i32_0 = arith.constant 0 : i32
    %c0_i32_1 = arith.constant 0 : i32
    return %arg0, %c0_i32, %c0_i32_0 : i32, i32, i32
  }
  func.func @transform_1(%arg0: i32) -> (i32, i32, i32) {
    %c0_i32 = arith.constant 0 : i32
    %c0_i32_0 = arith.constant 0 : i32
    %c0_i32_1 = arith.constant 0 : i32
    %c0_i32_2 = arith.constant 0 : i32
    return %c0_i32, %c0_i32_0, %c0_i32_1 : i32, i32, i32
  }
  func.func @transform_2(%arg0: i32) -> (i32, i32) {
    %c0_i32 = arith.constant 0 : i32
    %c0_i32_0 = arith.constant 0 : i32
    %c0_i32_1 = arith.constant 0 : i32
    return %c0_i32, %c0_i32_0 : i32, i32
  }
  func.func @transform_3(%arg0: i32) -> (i32, i32, i32) {
    %c0_i32 = arith.constant 0 : i32
    %c0_i32_0 = arith.constant 0 : i32
    %c0_i32_1 = arith.constant 0 : i32
    return %arg0, %c0_i32, %c0_i32_0 : i32, i32, i32
  }
}

module attributes {stable_mosaic.version = 11 : i64} {
  func.func @_gn_proj_bias_kernel(%arg0: i32, %arg1: memref<1x64x32xbf16, #tpu.memory_space<vmem>>, %arg2: memref<1x1x32xf32, #tpu.memory_space<vmem>>, %arg3: memref<1x1x32xf32, #tpu.memory_space<vmem>>, %arg4: memref<32x32xf32, #tpu.memory_space<vmem>>, %arg5: memref<32x64xbf16, #tpu.memory_space<vmem>>, %arg6: memref<1x64xf32, #tpu.memory_space<vmem>>, %arg7: memref<1x64x64xbf16, #tpu.memory_space<vmem>>) attributes {dimension_semantics = [#tpu.dimension_semantics<parallel>], iteration_bounds = array<i64: 2>, scalar_prefetch = 0 : i64, scratch_operands = 0 : i64, tpu.core_type = #tpu.core_type<tc>, window_params = [{transform_indices = @transform_0, window_bounds = array<i64: 1, 64, 32>}, {transform_indices = @transform_1, window_bounds = array<i64: 1, 1, 32>}, {transform_indices = @transform_2, window_bounds = array<i64: 1, 1, 32>}, {pipeline_mode = #tpu.pipeline_mode<synchronous>, transform_indices = @transform_3, window_bounds = array<i64: 32, 32>}, {pipeline_mode = #tpu.pipeline_mode<synchronous>, transform_indices = @transform_4, window_bounds = array<i64: 32, 64>}, {pipeline_mode = #tpu.pipeline_mode<synchronous>, transform_indices = @transform_5, window_bounds = array<i64: 1, 64>}, {transform_indices = @transform_6, window_bounds = array<i64: 1, 64, 64>}]} {
    %c0 = arith.constant 0 : index
    %c0_0 = arith.constant 0 : index
    %c0_1 = arith.constant 0 : index
    %0 = vector.load %arg1[%c0, %c0_0, %c0_1] : memref<1x64x32xbf16, #tpu.memory_space<vmem>>, vector<1x64x32xbf16>
    %1 = vector.shape_cast %0 : vector<1x64x32xbf16> to vector<64x32xbf16>
    %c0_2 = arith.constant 0 : index
    %c0_3 = arith.constant 0 : index
    %c0_4 = arith.constant 0 : index
    %2 = vector.load %arg2[%c0_2, %c0_3, %c0_4] : memref<1x1x32xf32, #tpu.memory_space<vmem>>, vector<1x1x32xf32>
    %3 = vector.shape_cast %2 : vector<1x1x32xf32> to vector<1x32xf32>
    %c0_5 = arith.constant 0 : index
    %c0_6 = arith.constant 0 : index
    %c0_7 = arith.constant 0 : index
    %4 = vector.load %arg3[%c0_5, %c0_6, %c0_7] : memref<1x1x32xf32, #tpu.memory_space<vmem>>, vector<1x1x32xf32>
    %5 = vector.shape_cast %4 : vector<1x1x32xf32> to vector<1x32xf32>
    %c0_8 = arith.constant 0 : index
    %c0_9 = arith.constant 0 : index
    %6 = vector.load %arg4[%c0_8, %c0_9] : memref<32x32xf32, #tpu.memory_space<vmem>>, vector<32x32xf32>
    %7 = arith.extf %1 : vector<64x32xbf16> to vector<64x32xf32>
    %cst = arith.constant dense<0.000000e+00> : vector<32xf32>
    %8 = vector.multi_reduction <add>, %7, %cst [0] : vector<64x32xf32> to vector<32xf32>
    %9 = vector.shape_cast %8 : vector<32xf32> to vector<1x32xf32>
    %cst_10 = arith.constant 1.562500e-02 : f32
    %10 = vector.broadcast %cst_10 : f32 to vector<1x32xf32>
    %11 = arith.mulf %9, %10 : vector<1x32xf32>
    %12 = arith.mulf %7, %7 : vector<64x32xf32>
    %cst_11 = arith.constant dense<0.000000e+00> : vector<32xf32>
    %13 = vector.multi_reduction <add>, %12, %cst_11 [0] : vector<64x32xf32> to vector<32xf32>
    %14 = vector.shape_cast %13 : vector<32xf32> to vector<1x32xf32>
    %cst_12 = arith.constant 1.562500e-02 : f32
    %15 = vector.broadcast %cst_12 : f32 to vector<1x32xf32>
    %16 = arith.mulf %14, %15 : vector<1x32xf32>
    %17 = tpu.concatenate %11, %16 in 0 : vector<1x32xf32>, vector<1x32xf32> -> vector<2x32xf32>
    %cst_13 = arith.constant dense<0.000000e+00> : vector<2x32xf32>
    %18 = tpu.matmul %17, %6, %cst_13 {dimension_numbers = #tpu.dot_dimension_numbers<[1], [0], [0], [1], [0, 0, 1, 1], [], []>} : vector<2x32xf32>, vector<32x32xf32>, vector<2x32xf32> -> vector<2x32xf32>
    %19 = vector.extract_strided_slice %18 {offsets = [0, 0], sizes = [1, 32], strides = [1, 1]} : vector<2x32xf32> to vector<1x32xf32>
    %20 = vector.extract_strided_slice %18 {offsets = [1, 0], sizes = [1, 32], strides = [1, 1]} : vector<2x32xf32> to vector<1x32xf32>
    %21 = arith.mulf %19, %19 : vector<1x32xf32>
    %22 = arith.subf %20, %21 : vector<1x32xf32>
    %cst_14 = arith.constant 0.000000e+00 : f32
    %23 = vector.broadcast %cst_14 : f32 to vector<1x32xf32>
    %24 = arith.maximumf %22, %23 : vector<1x32xf32>
    %cst_15 = arith.constant 9.99999974E-6 : f32
    %25 = vector.broadcast %cst_15 : f32 to vector<1x32xf32>
    %26 = arith.addf %24, %25 : vector<1x32xf32>
    %27 = math.rsqrt %26 : vector<1x32xf32>
    %28 = vector.broadcast %19 : vector<1x32xf32> to vector<64x32xf32>
    %29 = arith.subf %7, %28 : vector<64x32xf32>
    %30 = vector.broadcast %27 : vector<1x32xf32> to vector<64x32xf32>
    %31 = arith.mulf %29, %30 : vector<64x32xf32>
    %cst_16 = arith.constant 1.000000e+00 : f32
    %32 = vector.broadcast %cst_16 : f32 to vector<1x32xf32>
    %33 = arith.addf %3, %32 : vector<1x32xf32>
    %34 = vector.broadcast %33 : vector<1x32xf32> to vector<64x32xf32>
    %35 = arith.mulf %31, %34 : vector<64x32xf32>
    %36 = vector.broadcast %5 : vector<1x32xf32> to vector<64x32xf32>
    %37 = arith.addf %35, %36 : vector<64x32xf32>
    %38 = arith.negf %37 : vector<64x32xf32>
    %39 = math.exp %38 : vector<64x32xf32>
    %cst_17 = arith.constant 1.000000e+00 : f32
    %40 = vector.broadcast %cst_17 : f32 to vector<64x32xf32>
    %41 = arith.addf %40, %39 : vector<64x32xf32>
    %42 = arith.divf %40, %41 : vector<64x32xf32>
    %43 = arith.mulf %37, %42 : vector<64x32xf32>
    %44 = arith.truncf %43 : vector<64x32xf32> to vector<64x32xbf16>
    %c0_18 = arith.constant 0 : index
    %c0_19 = arith.constant 0 : index
    %45 = vector.load %arg5[%c0_18, %c0_19] : memref<32x64xbf16, #tpu.memory_space<vmem>>, vector<32x64xbf16>
    %cst_20 = arith.constant dense<0.000000e+00> : vector<64x64xf32>
    %46 = tpu.matmul %44, %45, %cst_20 {dimension_numbers = #tpu.dot_dimension_numbers<[1], [0], [0], [1], [0, 0, 1, 1], [], []>} : vector<64x32xbf16>, vector<32x64xbf16>, vector<64x64xf32> -> vector<64x64xf32>
    %c0_21 = arith.constant 0 : index
    %c0_22 = arith.constant 0 : index
    %47 = vector.load %arg6[%c0_21, %c0_22] : memref<1x64xf32, #tpu.memory_space<vmem>>, vector<1x64xf32>
    %48 = vector.broadcast %47 : vector<1x64xf32> to vector<64x64xf32>
    %49 = arith.addf %46, %48 : vector<64x64xf32>
    %50 = arith.truncf %49 : vector<64x64xf32> to vector<64x64xbf16>
    %c0_23 = arith.constant 0 : index
    %c0_24 = arith.constant 0 : index
    %c0_25 = arith.constant 0 : index
    %51 = vector.load %arg7[%c0_23, %c0_24, %c0_25] : memref<1x64x64xbf16, #tpu.memory_space<vmem>>, vector<1x64x64xbf16>
    %52 = vector.shape_cast %51 : vector<1x64x64xbf16> to vector<64x64xbf16>
    %53 = vector.shape_cast %50 : vector<64x64xbf16> to vector<1x64x64xbf16>
    tpu.vector_store %arg7[%c0_23, %c0_24, %c0_25], %53 {strides = array<i32>} : memref<1x64x64xbf16, #tpu.memory_space<vmem>>, vector<1x64x64xbf16>,
    return
  }
  func.func @transform_0(%arg0: i32) -> (i32, i32, i32) {
    %c0_i32 = arith.constant 0 : i32
    %c0_i32_0 = arith.constant 0 : i32
    %c0_i32_1 = arith.constant 0 : i32
    return %arg0, %c0_i32, %c0_i32_0 : i32, i32, i32
  }
  func.func @transform_1(%arg0: i32) -> (i32, i32, i32) {
    %c0_i32 = arith.constant 0 : i32
    %c0_i32_0 = arith.constant 0 : i32
    %c0_i32_1 = arith.constant 0 : i32
    return %arg0, %c0_i32, %c0_i32_0 : i32, i32, i32
  }
  func.func @transform_2(%arg0: i32) -> (i32, i32, i32) {
    %c0_i32 = arith.constant 0 : i32
    %c0_i32_0 = arith.constant 0 : i32
    %c0_i32_1 = arith.constant 0 : i32
    return %arg0, %c0_i32, %c0_i32_0 : i32, i32, i32
  }
  func.func @transform_3(%arg0: i32) -> (i32, i32) {
    %c0_i32 = arith.constant 0 : i32
    %c0_i32_0 = arith.constant 0 : i32
    %c0_i32_1 = arith.constant 0 : i32
    return %c0_i32, %c0_i32_0 : i32, i32
  }
  func.func @transform_4(%arg0: i32) -> (i32, i32) {
    %c0_i32 = arith.constant 0 : i32
    %c0_i32_0 = arith.constant 0 : i32
    %c0_i32_1 = arith.constant 0 : i32
    return %c0_i32, %c0_i32_0 : i32, i32
  }
  func.func @transform_5(%arg0: i32) -> (i32, i32) {
    %c0_i32 = arith.constant 0 : i32
    %c0_i32_0 = arith.constant 0 : i32
    %c0_i32_1 = arith.constant 0 : i32
    return %c0_i32, %c0_i32_0 : i32, i32
  }
  func.func @transform_6(%arg0: i32) -> (i32, i32, i32) {
    %c0_i32 = arith.constant 0 : i32
    %c0_i32_0 = arith.constant 0 : i32
    %c0_i32_1 = arith.constant 0 : i32
    return %arg0, %c0_i32, %c0_i32_0 : i32, i32, i32
  }
}

module attributes {stable_mosaic.version = 11 : i64} {
  func.func @_linear_kernel(%arg0: i32, %arg1: memref<1x64x32xbf16, #tpu.memory_space<vmem>>, %arg2: memref<32x64xbf16, #tpu.memory_space<vmem>>, %arg3: memref<1x64xf32, #tpu.memory_space<vmem>>, %arg4: memref<1x64x64xbf16, #tpu.memory_space<vmem>>) attributes {dimension_semantics = [#tpu.dimension_semantics<parallel>], iteration_bounds = array<i64: 2>, scalar_prefetch = 0 : i64, scratch_operands = 0 : i64, tpu.core_type = #tpu.core_type<tc>, window_params = [{transform_indices = @transform_0, window_bounds = array<i64: 1, 64, 32>}, {pipeline_mode = #tpu.pipeline_mode<synchronous>, transform_indices = @transform_1, window_bounds = array<i64: 32, 64>}, {pipeline_mode = #tpu.pipeline_mode<synchronous>, transform_indices = @transform_2, window_bounds = array<i64: 1, 64>}, {transform_indices = @transform_3, window_bounds = array<i64: 1, 64, 64>}]} {
    %c0 = arith.constant 0 : index
    %c0_0 = arith.constant 0 : index
    %c0_1 = arith.constant 0 : index
    %0 = vector.load %arg1[%c0, %c0_0, %c0_1] : memref<1x64x32xbf16, #tpu.memory_space<vmem>>, vector<1x64x32xbf16>
    %1 = vector.shape_cast %0 : vector<1x64x32xbf16> to vector<64x32xbf16>
    %c0_2 = arith.constant 0 : index
    %c0_3 = arith.constant 0 : index
    %2 = vector.load %arg2[%c0_2, %c0_3] : memref<32x64xbf16, #tpu.memory_space<vmem>>, vector<32x64xbf16>
    %cst = arith.constant dense<0.000000e+00> : vector<64x64xf32>
    %3 = tpu.matmul %1, %2, %cst {dimension_numbers = #tpu.dot_dimension_numbers<[1], [0], [0], [1], [0, 0, 1, 1], [], []>} : vector<64x32xbf16>, vector<32x64xbf16>, vector<64x64xf32> -> vector<64x64xf32>
    %c0_4 = arith.constant 0 : index
    %c0_5 = arith.constant 0 : index
    %4 = vector.load %arg3[%c0_4, %c0_5] : memref<1x64xf32, #tpu.memory_space<vmem>>, vector<1x64xf32>
    %5 = vector.broadcast %4 : vector<1x64xf32> to vector<64x64xf32>
    %6 = arith.addf %3, %5 : vector<64x64xf32>
    %7 = arith.truncf %6 : vector<64x64xf32> to vector<64x64xbf16>
    %c0_6 = arith.constant 0 : index
    %c0_7 = arith.constant 0 : index
    %c0_8 = arith.constant 0 : index
    %8 = vector.load %arg4[%c0_6, %c0_7, %c0_8] : memref<1x64x64xbf16, #tpu.memory_space<vmem>>, vector<1x64x64xbf16>
    %9 = vector.shape_cast %8 : vector<1x64x64xbf16> to vector<64x64xbf16>
    %10 = vector.shape_cast %7 : vector<64x64xbf16> to vector<1x64x64xbf16>
    tpu.vector_store %arg4[%c0_6, %c0_7, %c0_8], %10 {strides = array<i32>} : memref<1x64x64xbf16, #tpu.memory_space<vmem>>, vector<1x64x64xbf16>,
    return
  }
  func.func @transform_0(%arg0: i32) -> (i32, i32, i32) {
    %c0_i32 = arith.constant 0 : i32
    %c0_i32_0 = arith.constant 0 : i32
    %c0_i32_1 = arith.constant 0 : i32
    return %arg0, %c0_i32, %c0_i32_0 : i32, i32, i32
  }
  func.func @transform_1(%arg0: i32) -> (i32, i32) {
    %c0_i32 = arith.constant 0 : i32
    %c0_i32_0 = arith.constant 0 : i32
    %c0_i32_1 = arith.constant 0 : i32
    return %c0_i32, %c0_i32_0 : i32, i32
  }
  func.func @transform_2(%arg0: i32) -> (i32, i32) {
    %c0_i32 = arith.constant 0 : i32
    %c0_i32_0 = arith.constant 0 : i32
    %c0_i32_1 = arith.constant 0 : i32
    return %c0_i32, %c0_i32_0 : i32, i32
  }
  func.func @transform_3(%arg0: i32) -> (i32, i32, i32) {
    %c0_i32 = arith.constant 0 : i32
    %c0_i32_0 = arith.constant 0 : i32
    %c0_i32_1 = arith.constant 0 : i32
    return %arg0, %c0_i32, %c0_i32_0 : i32, i32, i32
  }
}

module attributes {stable_mosaic.version = 11 : i64} {
  func.func @_gn_proj_bias_kernel(%arg0: i32, %arg1: memref<1x64x64xbf16, #tpu.memory_space<vmem>>, %arg2: memref<1x1x64xf32, #tpu.memory_space<vmem>>, %arg3: memref<1x1x64xf32, #tpu.memory_space<vmem>>, %arg4: memref<64x64xf32, #tpu.memory_space<vmem>>, %arg5: memref<64x32xbf16, #tpu.memory_space<vmem>>, %arg6: memref<1x32xf32, #tpu.memory_space<vmem>>, %arg7: memref<1x64x32xbf16, #tpu.memory_space<vmem>>) attributes {dimension_semantics = [#tpu.dimension_semantics<parallel>], iteration_bounds = array<i64: 2>, scalar_prefetch = 0 : i64, scratch_operands = 0 : i64, tpu.core_type = #tpu.core_type<tc>, window_params = [{transform_indices = @transform_0, window_bounds = array<i64: 1, 64, 64>}, {transform_indices = @transform_1, window_bounds = array<i64: 1, 1, 64>}, {transform_indices = @transform_2, window_bounds = array<i64: 1, 1, 64>}, {pipeline_mode = #tpu.pipeline_mode<synchronous>, transform_indices = @transform_3, window_bounds = array<i64: 64, 64>}, {pipeline_mode = #tpu.pipeline_mode<synchronous>, transform_indices = @transform_4, window_bounds = array<i64: 64, 32>}, {pipeline_mode = #tpu.pipeline_mode<synchronous>, transform_indices = @transform_5, window_bounds = array<i64: 1, 32>}, {transform_indices = @transform_6, window_bounds = array<i64: 1, 64, 32>}]} {
    %c0 = arith.constant 0 : index
    %c0_0 = arith.constant 0 : index
    %c0_1 = arith.constant 0 : index
    %0 = vector.load %arg1[%c0, %c0_0, %c0_1] : memref<1x64x64xbf16, #tpu.memory_space<vmem>>, vector<1x64x64xbf16>
    %1 = vector.shape_cast %0 : vector<1x64x64xbf16> to vector<64x64xbf16>
    %c0_2 = arith.constant 0 : index
    %c0_3 = arith.constant 0 : index
    %c0_4 = arith.constant 0 : index
    %2 = vector.load %arg2[%c0_2, %c0_3, %c0_4] : memref<1x1x64xf32, #tpu.memory_space<vmem>>, vector<1x1x64xf32>
    %3 = vector.shape_cast %2 : vector<1x1x64xf32> to vector<1x64xf32>
    %c0_5 = arith.constant 0 : index
    %c0_6 = arith.constant 0 : index
    %c0_7 = arith.constant 0 : index
    %4 = vector.load %arg3[%c0_5, %c0_6, %c0_7] : memref<1x1x64xf32, #tpu.memory_space<vmem>>, vector<1x1x64xf32>
    %5 = vector.shape_cast %4 : vector<1x1x64xf32> to vector<1x64xf32>
    %c0_8 = arith.constant 0 : index
    %c0_9 = arith.constant 0 : index
    %6 = vector.load %arg4[%c0_8, %c0_9] : memref<64x64xf32, #tpu.memory_space<vmem>>, vector<64x64xf32>
    %7 = arith.extf %1 : vector<64x64xbf16> to vector<64x64xf32>
    %cst = arith.constant dense<0.000000e+00> : vector<64xf32>
    %8 = vector.multi_reduction <add>, %7, %cst [0] : vector<64x64xf32> to vector<64xf32>
    %9 = vector.shape_cast %8 : vector<64xf32> to vector<1x64xf32>
    %cst_10 = arith.constant 1.562500e-02 : f32
    %10 = vector.broadcast %cst_10 : f32 to vector<1x64xf32>
    %11 = arith.mulf %9, %10 : vector<1x64xf32>
    %12 = arith.mulf %7, %7 : vector<64x64xf32>
    %cst_11 = arith.constant dense<0.000000e+00> : vector<64xf32>
    %13 = vector.multi_reduction <add>, %12, %cst_11 [0] : vector<64x64xf32> to vector<64xf32>
    %14 = vector.shape_cast %13 : vector<64xf32> to vector<1x64xf32>
    %cst_12 = arith.constant 1.562500e-02 : f32
    %15 = vector.broadcast %cst_12 : f32 to vector<1x64xf32>
    %16 = arith.mulf %14, %15 : vector<1x64xf32>
    %17 = tpu.concatenate %11, %16 in 0 : vector<1x64xf32>, vector<1x64xf32> -> vector<2x64xf32>
    %cst_13 = arith.constant dense<0.000000e+00> : vector<2x64xf32>
    %18 = tpu.matmul %17, %6, %cst_13 {dimension_numbers = #tpu.dot_dimension_numbers<[1], [0], [0], [1], [0, 0, 1, 1], [], []>} : vector<2x64xf32>, vector<64x64xf32>, vector<2x64xf32> -> vector<2x64xf32>
    %19 = vector.extract_strided_slice %18 {offsets = [0, 0], sizes = [1, 64], strides = [1, 1]} : vector<2x64xf32> to vector<1x64xf32>
    %20 = vector.extract_strided_slice %18 {offsets = [1, 0], sizes = [1, 64], strides = [1, 1]} : vector<2x64xf32> to vector<1x64xf32>
    %21 = arith.mulf %19, %19 : vector<1x64xf32>
    %22 = arith.subf %20, %21 : vector<1x64xf32>
    %cst_14 = arith.constant 0.000000e+00 : f32
    %23 = vector.broadcast %cst_14 : f32 to vector<1x64xf32>
    %24 = arith.maximumf %22, %23 : vector<1x64xf32>
    %cst_15 = arith.constant 9.99999974E-6 : f32
    %25 = vector.broadcast %cst_15 : f32 to vector<1x64xf32>
    %26 = arith.addf %24, %25 : vector<1x64xf32>
    %27 = math.rsqrt %26 : vector<1x64xf32>
    %28 = vector.broadcast %19 : vector<1x64xf32> to vector<64x64xf32>
    %29 = arith.subf %7, %28 : vector<64x64xf32>
    %30 = vector.broadcast %27 : vector<1x64xf32> to vector<64x64xf32>
    %31 = arith.mulf %29, %30 : vector<64x64xf32>
    %cst_16 = arith.constant 1.000000e+00 : f32
    %32 = vector.broadcast %cst_16 : f32 to vector<1x64xf32>
    %33 = arith.addf %3, %32 : vector<1x64xf32>
    %34 = vector.broadcast %33 : vector<1x64xf32> to vector<64x64xf32>
    %35 = arith.mulf %31, %34 : vector<64x64xf32>
    %36 = vector.broadcast %5 : vector<1x64xf32> to vector<64x64xf32>
    %37 = arith.addf %35, %36 : vector<64x64xf32>
    %38 = arith.negf %37 : vector<64x64xf32>
    %39 = math.exp %38 : vector<64x64xf32>
    %cst_17 = arith.constant 1.000000e+00 : f32
    %40 = vector.broadcast %cst_17 : f32 to vector<64x64xf32>
    %41 = arith.addf %40, %39 : vector<64x64xf32>
    %42 = arith.divf %40, %41 : vector<64x64xf32>
    %43 = arith.mulf %37, %42 : vector<64x64xf32>
    %44 = arith.truncf %43 : vector<64x64xf32> to vector<64x64xbf16>
    %c0_18 = arith.constant 0 : index
    %c0_19 = arith.constant 0 : index
    %45 = vector.load %arg5[%c0_18, %c0_19] : memref<64x32xbf16, #tpu.memory_space<vmem>>, vector<64x32xbf16>
    %cst_20 = arith.constant dense<0.000000e+00> : vector<64x32xf32>
    %46 = tpu.matmul %44, %45, %cst_20 {dimension_numbers = #tpu.dot_dimension_numbers<[1], [0], [0], [1], [0, 0, 1, 1], [], []>} : vector<64x64xbf16>, vector<64x32xbf16>, vector<64x32xf32> -> vector<64x32xf32>
    %c0_21 = arith.constant 0 : index
    %c0_22 = arith.constant 0 : index
    %47 = vector.load %arg6[%c0_21, %c0_22] : memref<1x32xf32, #tpu.memory_space<vmem>>, vector<1x32xf32>
    %48 = vector.broadcast %47 : vector<1x32xf32> to vector<64x32xf32>
    %49 = arith.addf %46, %48 : vector<64x32xf32>
    %50 = arith.truncf %49 : vector<64x32xf32> to vector<64x32xbf16>
    %c0_23 = arith.constant 0 : index
    %c0_24 = arith.constant 0 : index
    %c0_25 = arith.constant 0 : index
    %51 = vector.load %arg7[%c0_23, %c0_24, %c0_25] : memref<1x64x32xbf16, #tpu.memory_space<vmem>>, vector<1x64x32xbf16>
    %52 = vector.shape_cast %51 : vector<1x64x32xbf16> to vector<64x32xbf16>
    %53 = vector.shape_cast %50 : vector<64x32xbf16> to vector<1x64x32xbf16>
    tpu.vector_store %arg7[%c0_23, %c0_24, %c0_25], %53 {strides = array<i32>} : memref<1x64x32xbf16, #tpu.memory_space<vmem>>, vector<1x64x32xbf16>,
    return
  }
  func.func @transform_0(%arg0: i32) -> (i32, i32, i32) {
    %c0_i32 = arith.constant 0 : i32
    %c0_i32_0 = arith.constant 0 : i32
    %c0_i32_1 = arith.constant 0 : i32
    return %arg0, %c0_i32, %c0_i32_0 : i32, i32, i32
  }
  func.func @transform_1(%arg0: i32) -> (i32, i32, i32) {
    %c0_i32 = arith.constant 0 : i32
    %c0_i32_0 = arith.constant 0 : i32
    %c0_i32_1 = arith.constant 0 : i32
    return %arg0, %c0_i32, %c0_i32_0 : i32, i32, i32
  }
  func.func @transform_2(%arg0: i32) -> (i32, i32, i32) {
    %c0_i32 = arith.constant 0 : i32
    %c0_i32_0 = arith.constant 0 : i32
    %c0_i32_1 = arith.constant 0 : i32
    return %arg0, %c0_i32, %c0_i32_0 : i32, i32, i32
  }
  func.func @transform_3(%arg0: i32) -> (i32, i32) {
    %c0_i32 = arith.constant 0 : i32
    %c0_i32_0 = arith.constant 0 : i32
    %c0_i32_1 = arith.constant 0 : i32
    return %c0_i32, %c0_i32_0 : i32, i32
  }
  func.func @transform_4(%arg0: i32) -> (i32, i32) {
    %c0_i32 = arith.constant 0 : i32
    %c0_i32_0 = arith.constant 0 : i32
    %c0_i32_1 = arith.constant 0 : i32
    return %c0_i32, %c0_i32_0 : i32, i32
  }
  func.func @transform_5(%arg0: i32) -> (i32, i32) {
    %c0_i32 = arith.constant 0 : i32
    %c0_i32_0 = arith.constant 0 : i32
    %c0_i32_1 = arith.constant 0 : i32
    return %c0_i32, %c0_i32_0 : i32, i32
  }
  func.func @transform_6(%arg0: i32) -> (i32, i32, i32) {
    %c0_i32 = arith.constant 0 : i32
    %c0_i32_0 = arith.constant 0 : i32
    %c0_i32_1 = arith.constant 0 : i32
    return %arg0, %c0_i32, %c0_i32_0 : i32, i32, i32
  }
}

module attributes {stable_mosaic.version = 11 : i64} {
  func.func @_conv2x2_kernel(%arg0: i32, %arg1: i32, %arg2: memref<1x2x4x64xbf16, #tpu.memory_space<vmem>>, %arg3: memref<2x64x32xbf16, #tpu.memory_space<vmem>>, %arg4: memref<1x32xf32, #tpu.memory_space<vmem>>, %arg5: memref<1x1x4x32xbf16, #tpu.memory_space<vmem>>) attributes {dimension_semantics = [#tpu.dimension_semantics<parallel>, #tpu.dimension_semantics<parallel>], iteration_bounds = array<i64: 2, 4>, scalar_prefetch = 0 : i64, scratch_operands = 0 : i64, tpu.core_type = #tpu.core_type<tc>, window_params = [{transform_indices = @transform_0, window_bounds = array<i64: 1, 2, 4, 64>}, {pipeline_mode = #tpu.pipeline_mode<synchronous>, transform_indices = @transform_1, window_bounds = array<i64: 2, 64, 32>}, {pipeline_mode = #tpu.pipeline_mode<synchronous>, transform_indices = @transform_2, window_bounds = array<i64: 1, 32>}, {transform_indices = @transform_3, window_bounds = array<i64: 1, 1, 4, 32>}]} {
    %c0 = arith.constant 0 : index
    %c0_0 = arith.constant 0 : index
    %c0_1 = arith.constant 0 : index
    %c0_2 = arith.constant 0 : index
    %0 = vector.load %arg2[%c0, %c0_0, %c0_1, %c0_2] : memref<1x2x4x64xbf16, #tpu.memory_space<vmem>>, vector<1x1x4x64xbf16>
    %1 = vector.shape_cast %0 : vector<1x1x4x64xbf16> to vector<4x64xbf16>
    %c0_3 = arith.constant 0 : index
    %c0_4 = arith.constant 0 : index
    %c0_5 = arith.constant 0 : index
    %2 = vector.load %arg3[%c0_3, %c0_4, %c0_5] : memref<2x64x32xbf16, #tpu.memory_space<vmem>>, vector<1x64x32xbf16>
    %3 = vector.shape_cast %2 : vector<1x64x32xbf16> to vector<64x32xbf16>
    %cst = arith.constant dense<0.000000e+00> : vector<4x32xf32>
    %4 = tpu.matmul %1, %3, %cst {dimension_numbers = #tpu.dot_dimension_numbers<[1], [0], [0], [1], [0, 0, 1, 1], [], []>} : vector<4x64xbf16>, vector<64x32xbf16>, vector<4x32xf32> -> vector<4x32xf32>
    %c0_6 = arith.constant 0 : index
    %c1 = arith.constant 1 : index
    %c0_7 = arith.constant 0 : index
    %c0_8 = arith.constant 0 : index
    %5 = vector.load %arg2[%c0_6, %c1, %c0_7, %c0_8] : memref<1x2x4x64xbf16, #tpu.memory_space<vmem>>, vector<1x1x4x64xbf16>
    %6 = vector.shape_cast %5 : vector<1x1x4x64xbf16> to vector<4x64xbf16>
    %c1_9 = arith.constant 1 : index
    %c0_10 = arith.constant 0 : index
    %c0_11 = arith.constant 0 : index
    %7 = vector.load %arg3[%c1_9, %c0_10, %c0_11] : memref<2x64x32xbf16, #tpu.memory_space<vmem>>, vector<1x64x32xbf16>
    %8 = vector.shape_cast %7 : vector<1x64x32xbf16> to vector<64x32xbf16>
    %cst_12 = arith.constant dense<0.000000e+00> : vector<4x32xf32>
    %9 = tpu.matmul %6, %8, %cst_12 {dimension_numbers = #tpu.dot_dimension_numbers<[1], [0], [0], [1], [0, 0, 1, 1], [], []>} : vector<4x64xbf16>, vector<64x32xbf16>, vector<4x32xf32> -> vector<4x32xf32>
    %10 = arith.addf %4, %9 : vector<4x32xf32>
    %c0_13 = arith.constant 0 : index
    %c0_14 = arith.constant 0 : index
    %11 = vector.load %arg4[%c0_13, %c0_14] : memref<1x32xf32, #tpu.memory_space<vmem>>, vector<1x32xf32>
    %12 = vector.broadcast %11 : vector<1x32xf32> to vector<4x32xf32>
    %13 = arith.addf %10, %12 : vector<4x32xf32>
    %14 = arith.truncf %13 : vector<4x32xf32> to vector<4x32xbf16>
    %c0_15 = arith.constant 0 : index
    %c0_16 = arith.constant 0 : index
    %c0_17 = arith.constant 0 : index
    %c0_18 = arith.constant 0 : index
    %15 = vector.load %arg5[%c0_15, %c0_16, %c0_17, %c0_18] : memref<1x1x4x32xbf16, #tpu.memory_space<vmem>>, vector<1x1x4x32xbf16>
    %16 = vector.shape_cast %15 : vector<1x1x4x32xbf16> to vector<4x32xbf16>
    %17 = vector.shape_cast %14 : vector<4x32xbf16> to vector<1x1x4x32xbf16>
    tpu.vector_store %arg5[%c0_15, %c0_16, %c0_17, %c0_18], %17 {strides = array<i32>} : memref<1x1x4x32xbf16, #tpu.memory_space<vmem>>, vector<1x1x4x32xbf16>,
    return
  }
  func.func @transform_0(%arg0: i32, %arg1: i32) -> (i32, i32, i32, i32) {
    %c0_i32 = arith.constant 0 : i32
    %c0_i32_0 = arith.constant 0 : i32
    %c0_i32_1 = arith.constant 0 : i32
    return %arg0, %arg1, %c0_i32, %c0_i32_0 : i32, i32, i32, i32
  }
  func.func @transform_1(%arg0: i32, %arg1: i32) -> (i32, i32, i32) {
    %c0_i32 = arith.constant 0 : i32
    %c0_i32_0 = arith.constant 0 : i32
    %c0_i32_1 = arith.constant 0 : i32
    %c0_i32_2 = arith.constant 0 : i32
    return %c0_i32, %c0_i32_0, %c0_i32_1 : i32, i32, i32
  }
  func.func @transform_2(%arg0: i32, %arg1: i32) -> (i32, i32) {
    %c0_i32 = arith.constant 0 : i32
    %c0_i32_0 = arith.constant 0 : i32
    %c0_i32_1 = arith.constant 0 : i32
    return %c0_i32, %c0_i32_0 : i32, i32
  }
  func.func @transform_3(%arg0: i32, %arg1: i32) -> (i32, i32, i32, i32) {
    %c0_i32 = arith.constant 0 : i32
    %c0_i32_0 = arith.constant 0 : i32
    %c0_i32_1 = arith.constant 0 : i32
    return %arg0, %arg1, %c0_i32, %c0_i32_0 : i32, i32, i32, i32
  }
}

module attributes {stable_mosaic.version = 11 : i64} {
  func.func @_gn_proj_bias_kernel(%arg0: i32, %arg1: memref<1x16x32xbf16, #tpu.memory_space<vmem>>, %arg2: memref<1x1x32xf32, #tpu.memory_space<vmem>>, %arg3: memref<1x1x32xf32, #tpu.memory_space<vmem>>, %arg4: memref<32x32xf32, #tpu.memory_space<vmem>>, %arg5: memref<32x64xbf16, #tpu.memory_space<vmem>>, %arg6: memref<1x64xf32, #tpu.memory_space<vmem>>, %arg7: memref<1x16x64xbf16, #tpu.memory_space<vmem>>) attributes {dimension_semantics = [#tpu.dimension_semantics<parallel>], iteration_bounds = array<i64: 2>, scalar_prefetch = 0 : i64, scratch_operands = 0 : i64, tpu.core_type = #tpu.core_type<tc>, window_params = [{transform_indices = @transform_0, window_bounds = array<i64: 1, 16, 32>}, {transform_indices = @transform_1, window_bounds = array<i64: 1, 1, 32>}, {transform_indices = @transform_2, window_bounds = array<i64: 1, 1, 32>}, {pipeline_mode = #tpu.pipeline_mode<synchronous>, transform_indices = @transform_3, window_bounds = array<i64: 32, 32>}, {pipeline_mode = #tpu.pipeline_mode<synchronous>, transform_indices = @transform_4, window_bounds = array<i64: 32, 64>}, {pipeline_mode = #tpu.pipeline_mode<synchronous>, transform_indices = @transform_5, window_bounds = array<i64: 1, 64>}, {transform_indices = @transform_6, window_bounds = array<i64: 1, 16, 64>}]} {
    %c0 = arith.constant 0 : index
    %c0_0 = arith.constant 0 : index
    %c0_1 = arith.constant 0 : index
    %0 = vector.load %arg1[%c0, %c0_0, %c0_1] : memref<1x16x32xbf16, #tpu.memory_space<vmem>>, vector<1x16x32xbf16>
    %1 = vector.shape_cast %0 : vector<1x16x32xbf16> to vector<16x32xbf16>
    %c0_2 = arith.constant 0 : index
    %c0_3 = arith.constant 0 : index
    %c0_4 = arith.constant 0 : index
    %2 = vector.load %arg2[%c0_2, %c0_3, %c0_4] : memref<1x1x32xf32, #tpu.memory_space<vmem>>, vector<1x1x32xf32>
    %3 = vector.shape_cast %2 : vector<1x1x32xf32> to vector<1x32xf32>
    %c0_5 = arith.constant 0 : index
    %c0_6 = arith.constant 0 : index
    %c0_7 = arith.constant 0 : index
    %4 = vector.load %arg3[%c0_5, %c0_6, %c0_7] : memref<1x1x32xf32, #tpu.memory_space<vmem>>, vector<1x1x32xf32>
    %5 = vector.shape_cast %4 : vector<1x1x32xf32> to vector<1x32xf32>
    %c0_8 = arith.constant 0 : index
    %c0_9 = arith.constant 0 : index
    %6 = vector.load %arg4[%c0_8, %c0_9] : memref<32x32xf32, #tpu.memory_space<vmem>>, vector<32x32xf32>
    %7 = arith.extf %1 : vector<16x32xbf16> to vector<16x32xf32>
    %cst = arith.constant dense<0.000000e+00> : vector<32xf32>
    %8 = vector.multi_reduction <add>, %7, %cst [0] : vector<16x32xf32> to vector<32xf32>
    %9 = vector.shape_cast %8 : vector<32xf32> to vector<1x32xf32>
    %cst_10 = arith.constant 6.250000e-02 : f32
    %10 = vector.broadcast %cst_10 : f32 to vector<1x32xf32>
    %11 = arith.mulf %9, %10 : vector<1x32xf32>
    %12 = arith.mulf %7, %7 : vector<16x32xf32>
    %cst_11 = arith.constant dense<0.000000e+00> : vector<32xf32>
    %13 = vector.multi_reduction <add>, %12, %cst_11 [0] : vector<16x32xf32> to vector<32xf32>
    %14 = vector.shape_cast %13 : vector<32xf32> to vector<1x32xf32>
    %cst_12 = arith.constant 6.250000e-02 : f32
    %15 = vector.broadcast %cst_12 : f32 to vector<1x32xf32>
    %16 = arith.mulf %14, %15 : vector<1x32xf32>
    %17 = tpu.concatenate %11, %16 in 0 : vector<1x32xf32>, vector<1x32xf32> -> vector<2x32xf32>
    %cst_13 = arith.constant dense<0.000000e+00> : vector<2x32xf32>
    %18 = tpu.matmul %17, %6, %cst_13 {dimension_numbers = #tpu.dot_dimension_numbers<[1], [0], [0], [1], [0, 0, 1, 1], [], []>} : vector<2x32xf32>, vector<32x32xf32>, vector<2x32xf32> -> vector<2x32xf32>
    %19 = vector.extract_strided_slice %18 {offsets = [0, 0], sizes = [1, 32], strides = [1, 1]} : vector<2x32xf32> to vector<1x32xf32>
    %20 = vector.extract_strided_slice %18 {offsets = [1, 0], sizes = [1, 32], strides = [1, 1]} : vector<2x32xf32> to vector<1x32xf32>
    %21 = arith.mulf %19, %19 : vector<1x32xf32>
    %22 = arith.subf %20, %21 : vector<1x32xf32>
    %cst_14 = arith.constant 0.000000e+00 : f32
    %23 = vector.broadcast %cst_14 : f32 to vector<1x32xf32>
    %24 = arith.maximumf %22, %23 : vector<1x32xf32>
    %cst_15 = arith.constant 9.99999974E-6 : f32
    %25 = vector.broadcast %cst_15 : f32 to vector<1x32xf32>
    %26 = arith.addf %24, %25 : vector<1x32xf32>
    %27 = math.rsqrt %26 : vector<1x32xf32>
    %28 = vector.broadcast %19 : vector<1x32xf32> to vector<16x32xf32>
    %29 = arith.subf %7, %28 : vector<16x32xf32>
    %30 = vector.broadcast %27 : vector<1x32xf32> to vector<16x32xf32>
    %31 = arith.mulf %29, %30 : vector<16x32xf32>
    %cst_16 = arith.constant 1.000000e+00 : f32
    %32 = vector.broadcast %cst_16 : f32 to vector<1x32xf32>
    %33 = arith.addf %3, %32 : vector<1x32xf32>
    %34 = vector.broadcast %33 : vector<1x32xf32> to vector<16x32xf32>
    %35 = arith.mulf %31, %34 : vector<16x32xf32>
    %36 = vector.broadcast %5 : vector<1x32xf32> to vector<16x32xf32>
    %37 = arith.addf %35, %36 : vector<16x32xf32>
    %38 = arith.negf %37 : vector<16x32xf32>
    %39 = math.exp %38 : vector<16x32xf32>
    %cst_17 = arith.constant 1.000000e+00 : f32
    %40 = vector.broadcast %cst_17 : f32 to vector<16x32xf32>
    %41 = arith.addf %40, %39 : vector<16x32xf32>
    %42 = arith.divf %40, %41 : vector<16x32xf32>
    %43 = arith.mulf %37, %42 : vector<16x32xf32>
    %44 = arith.truncf %43 : vector<16x32xf32> to vector<16x32xbf16>
    %c0_18 = arith.constant 0 : index
    %c0_19 = arith.constant 0 : index
    %45 = vector.load %arg5[%c0_18, %c0_19] : memref<32x64xbf16, #tpu.memory_space<vmem>>, vector<32x64xbf16>
    %cst_20 = arith.constant dense<0.000000e+00> : vector<16x64xf32>
    %46 = tpu.matmul %44, %45, %cst_20 {dimension_numbers = #tpu.dot_dimension_numbers<[1], [0], [0], [1], [0, 0, 1, 1], [], []>} : vector<16x32xbf16>, vector<32x64xbf16>, vector<16x64xf32> -> vector<16x64xf32>
    %c0_21 = arith.constant 0 : index
    %c0_22 = arith.constant 0 : index
    %47 = vector.load %arg6[%c0_21, %c0_22] : memref<1x64xf32, #tpu.memory_space<vmem>>, vector<1x64xf32>
    %48 = vector.broadcast %47 : vector<1x64xf32> to vector<16x64xf32>
    %49 = arith.addf %46, %48 : vector<16x64xf32>
    %50 = arith.truncf %49 : vector<16x64xf32> to vector<16x64xbf16>
    %c0_23 = arith.constant 0 : index
    %c0_24 = arith.constant 0 : index
    %c0_25 = arith.constant 0 : index
    %51 = vector.load %arg7[%c0_23, %c0_24, %c0_25] : memref<1x16x64xbf16, #tpu.memory_space<vmem>>, vector<1x16x64xbf16>
    %52 = vector.shape_cast %51 : vector<1x16x64xbf16> to vector<16x64xbf16>
    %53 = vector.shape_cast %50 : vector<16x64xbf16> to vector<1x16x64xbf16>
    tpu.vector_store %arg7[%c0_23, %c0_24, %c0_25], %53 {strides = array<i32>} : memref<1x16x64xbf16, #tpu.memory_space<vmem>>, vector<1x16x64xbf16>,
    return
  }
  func.func @transform_0(%arg0: i32) -> (i32, i32, i32) {
    %c0_i32 = arith.constant 0 : i32
    %c0_i32_0 = arith.constant 0 : i32
    %c0_i32_1 = arith.constant 0 : i32
    return %arg0, %c0_i32, %c0_i32_0 : i32, i32, i32
  }
  func.func @transform_1(%arg0: i32) -> (i32, i32, i32) {
    %c0_i32 = arith.constant 0 : i32
    %c0_i32_0 = arith.constant 0 : i32
    %c0_i32_1 = arith.constant 0 : i32
    return %arg0, %c0_i32, %c0_i32_0 : i32, i32, i32
  }
  func.func @transform_2(%arg0: i32) -> (i32, i32, i32) {
    %c0_i32 = arith.constant 0 : i32
    %c0_i32_0 = arith.constant 0 : i32
    %c0_i32_1 = arith.constant 0 : i32
    return %arg0, %c0_i32, %c0_i32_0 : i32, i32, i32
  }
  func.func @transform_3(%arg0: i32) -> (i32, i32) {
    %c0_i32 = arith.constant 0 : i32
    %c0_i32_0 = arith.constant 0 : i32
    %c0_i32_1 = arith.constant 0 : i32
    return %c0_i32, %c0_i32_0 : i32, i32
  }
  func.func @transform_4(%arg0: i32) -> (i32, i32) {
    %c0_i32 = arith.constant 0 : i32
    %c0_i32_0 = arith.constant 0 : i32
    %c0_i32_1 = arith.constant 0 : i32
    return %c0_i32, %c0_i32_0 : i32, i32
  }
  func.func @transform_5(%arg0: i32) -> (i32, i32) {
    %c0_i32 = arith.constant 0 : i32
    %c0_i32_0 = arith.constant 0 : i32
    %c0_i32_1 = arith.constant 0 : i32
    return %c0_i32, %c0_i32_0 : i32, i32
  }
  func.func @transform_6(%arg0: i32) -> (i32, i32, i32) {
    %c0_i32 = arith.constant 0 : i32
    %c0_i32_0 = arith.constant 0 : i32
    %c0_i32_1 = arith.constant 0 : i32
    return %arg0, %c0_i32, %c0_i32_0 : i32, i32, i32
  }
}

module attributes {stable_mosaic.version = 11 : i64} {
  func.func @_conv2x2_kernel(%arg0: i32, %arg1: i32, %arg2: memref<1x2x4x128xbf16, #tpu.memory_space<vmem>>, %arg3: memref<2x128x64xbf16, #tpu.memory_space<vmem>>, %arg4: memref<1x64xf32, #tpu.memory_space<vmem>>, %arg5: memref<1x1x4x64xbf16, #tpu.memory_space<vmem>>) attributes {dimension_semantics = [#tpu.dimension_semantics<parallel>, #tpu.dimension_semantics<parallel>], iteration_bounds = array<i64: 2, 4>, scalar_prefetch = 0 : i64, scratch_operands = 0 : i64, tpu.core_type = #tpu.core_type<tc>, window_params = [{transform_indices = @transform_0, window_bounds = array<i64: 1, 2, 4, 128>}, {pipeline_mode = #tpu.pipeline_mode<synchronous>, transform_indices = @transform_1, window_bounds = array<i64: 2, 128, 64>}, {pipeline_mode = #tpu.pipeline_mode<synchronous>, transform_indices = @transform_2, window_bounds = array<i64: 1, 64>}, {transform_indices = @transform_3, window_bounds = array<i64: 1, 1, 4, 64>}]} {
    %c0 = arith.constant 0 : index
    %c0_0 = arith.constant 0 : index
    %c0_1 = arith.constant 0 : index
    %c0_2 = arith.constant 0 : index
    %0 = vector.load %arg2[%c0, %c0_0, %c0_1, %c0_2] : memref<1x2x4x128xbf16, #tpu.memory_space<vmem>>, vector<1x1x4x128xbf16>
    %1 = vector.shape_cast %0 : vector<1x1x4x128xbf16> to vector<4x128xbf16>
    %c0_3 = arith.constant 0 : index
    %c0_4 = arith.constant 0 : index
    %c0_5 = arith.constant 0 : index
    %2 = vector.load %arg3[%c0_3, %c0_4, %c0_5] : memref<2x128x64xbf16, #tpu.memory_space<vmem>>, vector<1x128x64xbf16>
    %3 = vector.shape_cast %2 : vector<1x128x64xbf16> to vector<128x64xbf16>
    %cst = arith.constant dense<0.000000e+00> : vector<4x64xf32>
    %4 = tpu.matmul %1, %3, %cst {dimension_numbers = #tpu.dot_dimension_numbers<[1], [0], [0], [1], [0, 0, 1, 1], [], []>} : vector<4x128xbf16>, vector<128x64xbf16>, vector<4x64xf32> -> vector<4x64xf32>
    %c0_6 = arith.constant 0 : index
    %c1 = arith.constant 1 : index
    %c0_7 = arith.constant 0 : index
    %c0_8 = arith.constant 0 : index
    %5 = vector.load %arg2[%c0_6, %c1, %c0_7, %c0_8] : memref<1x2x4x128xbf16, #tpu.memory_space<vmem>>, vector<1x1x4x128xbf16>
    %6 = vector.shape_cast %5 : vector<1x1x4x128xbf16> to vector<4x128xbf16>
    %c1_9 = arith.constant 1 : index
    %c0_10 = arith.constant 0 : index
    %c0_11 = arith.constant 0 : index
    %7 = vector.load %arg3[%c1_9, %c0_10, %c0_11] : memref<2x128x64xbf16, #tpu.memory_space<vmem>>, vector<1x128x64xbf16>
    %8 = vector.shape_cast %7 : vector<1x128x64xbf16> to vector<128x64xbf16>
    %cst_12 = arith.constant dense<0.000000e+00> : vector<4x64xf32>
    %9 = tpu.matmul %6, %8, %cst_12 {dimension_numbers = #tpu.dot_dimension_numbers<[1], [0], [0], [1], [0, 0, 1, 1], [], []>} : vector<4x128xbf16>, vector<128x64xbf16>, vector<4x64xf32> -> vector<4x64xf32>
    %10 = arith.addf %4, %9 : vector<4x64xf32>
    %c0_13 = arith.constant 0 : index
    %c0_14 = arith.constant 0 : index
    %11 = vector.load %arg4[%c0_13, %c0_14] : memref<1x64xf32, #tpu.memory_space<vmem>>, vector<1x64xf32>
    %12 = vector.broadcast %11 : vector<1x64xf32> to vector<4x64xf32>
    %13 = arith.addf %10, %12 : vector<4x64xf32>
    %14 = arith.truncf %13 : vector<4x64xf32> to vector<4x64xbf16>
    %c0_15 = arith.constant 0 : index
    %c0_16 = arith.constant 0 : index
    %c0_17 = arith.constant 0 : index
    %c0_18 = arith.constant 0 : index
    %15 = vector.load %arg5[%c0_15, %c0_16, %c0_17, %c0_18] : memref<1x1x4x64xbf16, #tpu.memory_space<vmem>>, vector<1x1x4x64xbf16>
    %16 = vector.shape_cast %15 : vector<1x1x4x64xbf16> to vector<4x64xbf16>
    %17 = vector.shape_cast %14 : vector<4x64xbf16> to vector<1x1x4x64xbf16>
    tpu.vector_store %arg5[%c0_15, %c0_16, %c0_17, %c0_18], %17 {strides = array<i32>} : memref<1x1x4x64xbf16, #tpu.memory_space<vmem>>, vector<1x1x4x64xbf16>,
    return
  }
  func.func @transform_0(%arg0: i32, %arg1: i32) -> (i32, i32, i32, i32) {
    %c0_i32 = arith.constant 0 : i32
    %c0_i32_0 = arith.constant 0 : i32
    %c0_i32_1 = arith.constant 0 : i32
    return %arg0, %arg1, %c0_i32, %c0_i32_0 : i32, i32, i32, i32
  }
  func.func @transform_1(%arg0: i32, %arg1: i32) -> (i32, i32, i32) {
    %c0_i32 = arith.constant 0 : i32
    %c0_i32_0 = arith.constant 0 : i32
    %c0_i32_1 = arith.constant 0 : i32
    %c0_i32_2 = arith.constant 0 : i32
    return %c0_i32, %c0_i32_0, %c0_i32_1 : i32, i32, i32
  }
  func.func @transform_2(%arg0: i32, %arg1: i32) -> (i32, i32) {
    %c0_i32 = arith.constant 0 : i32
    %c0_i32_0 = arith.constant 0 : i32
    %c0_i32_1 = arith.constant 0 : i32
    return %c0_i32, %c0_i32_0 : i32, i32
  }
  func.func @transform_3(%arg0: i32, %arg1: i32) -> (i32, i32, i32, i32) {
    %c0_i32 = arith.constant 0 : i32
    %c0_i32_0 = arith.constant 0 : i32
    %c0_i32_1 = arith.constant 0 : i32
    return %arg0, %arg1, %c0_i32, %c0_i32_0 : i32, i32, i32, i32
  }
}

</mosaic_0001>

<bundles_post_ra>
// kernel: downsample_block.31
= control target key start
LH: loop header
LB: loop body
LE: loop exit
PB: predicated region body
PF: predicated region fallthrough
CT: control target
= control target key end

     0   :  { %s1374_s12 = smov 0   ;;  %s1567_s0 = inlined_call_operand.vmem [shape: bf16[2,64,96], index: 0, kind: input, shape index: {}]   ;;  %s1568_s1 = inlined_call_operand.vmem [shape: bf16[32,32], index: 1, kind: input, shape index: {}]   ;;  %s1569_s2 = inlined_call_operand.vmem [shape: bf16[2,64,32], index: 2, kind: input, shape index: {}]   ;;  %s1570_s3 = inlined_call_operand.vmem [shape: bf16[2,64,32], index: 3, kind: output, shape index: {}]  }
   0x1 LB: > { %s1049_s13 = sadd.s32 4294967295, %s1346_s12   ;;  %p1053_p0 = scmp.ge.s32.totalorder %s1346_s12, 1  ;;  %s1346_s12 = sphi %s1374_s12, %s13_s12  }
   0x2   : > { %p147_p1 = scmp.lt.s32.totalorder %s1346_s12, 3 }
   0x4   : > { %p148_p2 = pnand %p1053_p0, %p147_p1 }
   0x5   : > { %p176_p3 = scmp.lt.s32.totalorder (!%p148_p2), %s1049_s13, 1  ;;  %vm228_vm0 = vcmask (!%p148_p2), 130048   ;;  %s1348_s18 = smov (!%p148_p2), 96   ;;  %vm318_vm1 = vcmask (!%p148_p2), 523264   ;;  %vm814_vm2 = vcmask (!%p148_p2), 261248   ;;  %vm855_vm3 = vcmask (!%p148_p2), 261120  }
   0x6   : > { %151 = sbr.rel (%p148_p2) target bundleno = 1877 (0x755), region = 32  ;;  %s1349_s19 = smov (!%p148_p2), 64   ;;  %vm973_vm4 = vcmask (!%p148_p2), 257024  }
   0x7   : > { %s1350_s20 = smov (!%p148_p2), 80   ;;  %s1351_s21 = smov (!%p148_p2), 112  }
   0x8   : > { %s1352_s22 = smov (!%p148_p2), 48   ;;  %s1353_s27 = smov (!%p148_p2), 16  }
   0xd   : > { %s1572_s13 = smov (!%p176_p3, %s1049_s13), 1 }
   0xe   : > { %s1382_s14 = sshll.u32 %s1572_s13, 5 }
   0xf   : > { %s180_s17 = scalar_lea.vmem %s1567_s0, %s1382_s14  ;;  %s185_s30 = scalar_lea.vmem %s1569_s2, %s1382_s14 }
  0x10   : > { %v1388_v0 = vld [vmem:[%s180_s17] sm:$0xff]   ;;  %v1390_v1 = vld [vmem:[%s180_s17 + $0x8] sm:$0xff]   ;;  %v1393_v2 = vld [vmem:[%s180_s17 + $0x10] sm:$0xff]   ;;  %s1546_s6 = scalar_lea.vmem %s1570_s3, %s1382_s14 }
  0x11   : > { %220 = vrot.lane.b32.xlu0 %v1388_v0, %s1348_s18  ;;  %1172 = vmatprep.mubr.msk.bf16.mxu0 %vm228_vm0, %v1388_v0  ;;  %v1398_v3 = vld [vmem:[%s180_s17 + $0x18] sm:$0xff]  }
  0x12   : > { %224 = vrot.lane.b32.xlu1 %v1393_v2, %s1348_s18 }
  0x15   : > { %222 = vrot.lane.b32.xlu0 %v1390_v1, %s1348_s18 }
  0x16   : > { %226 = vrot.lane.b32.xlu1 %v1398_v3, %s1348_s18 }
  0x83   : > { %v221_v4 = vpop.permute.xlu0 %220 }
  0x84   : > { %1248 = vmatprep.subr.msk.bf16.mxu0 %vm228_vm0, %v221_v4  ;;  %v242_v5 = vsel %vm228_vm0, %v221_v4, 0  ;;  %v225_v8 = vpop.permute.xlu1 %224 }
  0x85   : > { %1165 = vmatpush3.bf16.xpose.msra.mxu0 %v242_v5  ;;  %v248_v9 = vsel %vm228_vm0, %v225_v8, 0 }
  0x87   : > { %v223_v6 = vpop.permute.xlu0 %222 }
  0x88   : > { %1249 = vmatprep.subr.msk.bf16.mxu0 %vm228_vm0, %v223_v6  ;;  %v245_v7 = vsel %vm228_vm0, %v223_v6, 0  ;;  %v227_v10 = vpop.permute.xlu1 %226 }
  0x89   : > { %v251_v11 = vsel %vm228_vm0, %v227_v10, 0 }
  0x8d   : > { %1167 = vmatpush3.bf16.xpose.msra.mxu0 %v245_v7 }
  0x8e   : > { %1250 = vmatprep.subr.msk.bf16.mxu0 %vm228_vm0, %v225_v8 }
  0x95   : > { %1169 = vmatpush3.bf16.xpose.msra.mxu0 %v248_v9 }
  0x96   : > { %1251 = vmatprep.subr.msk.bf16.mxu0 %vm228_vm0, %v227_v10 }
  0x9d   : > { %1171 = vmatpush3.bf16.xpose.msra.mxu0 %v251_v11 }
  0xa4   : > { %1173 = vmatmul.mubr.msk.bf16.vlgmr.msra.gmra.mrb[0].mxu0 %vm228_vm0, %v1390_v1 }
  0xa5   : > { %1176 = vmatprep.mubr.msk.bf16.mxu0 %vm228_vm0, %v1393_v2 }
  0xac   : > { %1177 = vmatmul.mubr.msk.bf16.gmra.mrb[4].mxu0 %vm228_vm0, %v1398_v3 }
 0x177   : > { %v1174_v12 = vpop.f32.mrb[0].mxu0 }
 0x178   : > { %v287_v13 = vpop.f32.mrb[1].mxu0  ;;  %v325_v14 = vsel %vm318_vm1, %v1174_v12, -inf }
 0x179   : > { %326 = vmax.xlane.f32.xlu0 %v325_v14  ;;  %v1175_v15 = vpop.f32.mrb[2].mxu0  ;;  %v319_v18 = vsel %vm318_vm1, %v287_v13, -inf }
 0x17a   : > { %v290_v16 = vpop.f32.mrb[3].mxu0  ;;  %v328_v20 = vsel %vm318_vm1, %v1175_v15, -inf }
 0x17b   : > { %v322_v17 = vsel %vm318_vm1, %v290_v16, -inf }
 0x17c   : > { %323 = vmax.xlane.f32.xlu1 %v322_v17 }
 0x17d   : > { %320 = vmax.xlane.f32.xlu0 %v319_v18 }
 0x17f   : > { %v1178_v19 = vpop.f32.mrb[4].mxu0 }
 0x180   : > { %v337_v21 = vsel %vm318_vm1, %v1178_v19, -inf  ;;  %v303_v22 = vpop.f32.mrb[5].mxu0 }
 0x181   : > { %329 = vmax.xlane.f32.xlu0 %v328_v20  ;;  %338 = vmax.xlane.f32.xlu1 %v337_v21  ;;  %v1179_v23 = vpop.f32.mrb[6].mxu0  ;;  %v331_v25 = vsel %vm318_vm1, %v303_v22, -inf }
 0x182   : > { %v1421_v24 = vpop.f32.mrb[7].mxu0  ;;  %v340_v27 = vsel %vm318_vm1, %v1179_v23, -inf }
 0x183   : > { %v334_v26 = vsel %vm318_vm1, %v1421_v24, -inf }
 0x185   : > { %332 = vmax.xlane.f32.xlu1 %v331_v25  ;;  %335 = vmax.xlane.f32.xlu0 %v334_v26 }
 0x189   : > { %341 = vmax.xlane.f32.xlu0 %v340_v27 }
 0x196   : > { %411 = vrot.lane.b32.xlu1 %v1388_v0, %s1349_s19 }
 0x19a   : > { %415 = vrot.lane.b32.xlu1 %v1393_v2, %s1349_s19 }
 0x19e   : > { %417 = vrot.lane.b32.xlu1 %v1398_v3, %s1349_s19 }
 0x19f   : > { %413 = vrot.lane.b32.xlu0 %v1390_v1, %s1349_s19 }
 0x1a2   : > { %516 = vrot.lane.b32.xlu1 %v1388_v0, %s1350_s20 }
 0x206   : > { %v327_v28 = vpop.xlane.xlu0 %326 }
 0x207   : > { %v345_v29 = vsub.f32 %v1174_v12, %v327_v28 }
 0x209   : > { %v355_v30 = vmul.f32 1.442695, %v345_v29  ;;  %v324_v31 = vpop.xlane.xlu1 %323 }
 0x20a   : > { %v321_v32 = vpop.xlane.xlu0 %320  ;;  %v344_v34 = vsub.f32 %v290_v16, %v324_v31 }
 0x20b   : > { %1276 = vpow2.f32 %v355_v30  ;;  %v343_v33 = vsub.f32 %v287_v13, %v321_v32 }
 0x20c   : > { %v353_v39 = vmul.f32 1.442695, %v344_v34 }
 0x20d   : > { %v351_v35 = vmul.f32 1.442695, %v343_v33 }
 0x20e   : > { %v330_v36 = vpop.xlane.xlu0 %329  ;;  %v339_v37 = vpop.xlane.xlu1 %338 }
 0x20f   : > { %1278 = vpow2.f32 %v351_v35  ;;  %v346_v38 = vsub.f32 %v1175_v15, %v330_v36  ;;  %v349_v41 = vsub.f32 %v1178_v19, %v339_v37 }
 0x211   : > { %v357_v40 = vmul.f32 1.442695, %v346_v38  ;;  %v363_v45 = vmul.f32 1.442695, %v349_v41 }
 0x212   : > { %v333_v42 = vpop.xlane.xlu1 %332  ;;  %v336_v43 = vpop.xlane.xlu0 %335 }
 0x213   : > { %1280 = vpow2.f32 %v357_v40  ;;  %v347_v46 = vsub.f32 %v303_v22, %v333_v42  ;;  %v348_v9 = vsub.f32 %v1421_v24, %v336_v43 }
 0x214   : > { %1282 = vpow2.f32 %v353_v39 }
 0x215   : > { %v1433_v44 = vpop.eup %1276  ;;  %1284 = vpow2.f32 %v363_v45  ;;  %v359_v51 = vmul.f32 1.442695, %v347_v46  ;;  %v361_v10 = vmul.f32 1.442695, %v348_v9 }
 0x216   : > { %v342_v47 = vpop.xlane.xlu0 %341  ;;  %v373_v48 = vsel %vm318_vm1, %v1433_v44, 0.0  ;;  %v412_v49 = vpop.permute.xlu1 %411 }
 0x217   : > { %374 = vadd.xlane.f32.xlu1 %v373_v48  ;;  %1180 = vmatprep.subr.bf16.mxu1 %v412_v49  ;;  %v350_v52 = vsub.f32 %v1179_v23, %v342_v47  ;;  %1286 = vpow2.f32 %v359_v51 }
 0x218   : > { %1181 = vmatpush3.bf16.msra.mxu1 %v412_v49 }
 0x219   : > { %v1437_v50 = vpop.eup %1278  ;;  %v365_v57 = vmul.f32 1.442695, %v350_v52 }
 0x21a   : > { %v367_v53 = vsel %vm318_vm1, %v1437_v50, 0.0  ;;  %v414_v54 = vpop.permute.xlu0 %413  ;;  %v416_v55 = vpop.permute.xlu1 %415 }
 0x21b   : > { %368 = vadd.xlane.f32.xlu1 %v367_v53  ;;  %1182 = vmatprep.subr.bf16.mxu1 %v414_v54  ;;  %1288 = vpow2.f32 %v365_v57 }
 0x21c   : > { %1183 = vmatpush3.bf16.msra.mxu1 %v414_v54  ;;  %1290 = vpow2.f32 %v361_v10 }
 0x21d   : > { %v1281_v56 = vpop.eup %1280  ;;  %1184 = vmatprep.subr.bf16.mxu1 %v416_v55 }
 0x21e   : > { %v376_v58 = vsel %vm318_vm1, %v1281_v56, 0.0  ;;  %v418_v59 = vpop.permute.xlu1 %417  ;;  %v1283_v60 = vpop.eup %1282 }
 0x21f   : > { %377 = vadd.xlane.f32.xlu0 %v376_v58  ;;  %v370_v61 = vsel %vm318_vm1, %v1283_v60, 0.0  ;;  %v1443_v63 = vpop.eup %1284 }
 0x220   : > { %1185 = vmatpush3.bf16.msra.mxu1 %v416_v55  ;;  %v385_v4 = vsel %vm318_vm1, %v1443_v63, 0.0 }
 0x221   : > { %1186 = vmatprep.subr.bf16.mxu1 %v418_v59  ;;  %v1448_v5 = vpop.eup %1286 }
 0x222   : > { %v517_v62 = vpop.permute.xlu1 %516  ;;  %v379_v6 = vsel %vm318_vm1, %v1448_v5, 0.0 }
 0x223   : > { %371 = vadd.xlane.f32.xlu0 %v370_v61  ;;  %v537_v31 = vsel %vm228_vm0, %v517_v62, 0 }
 0x224   : > { %1187 = vmatpush3.bf16.msra.mxu1 %v418_v59 }
 0x225   : > { %1252 = vmatprep.subr.msk.bf16.mxu1 %vm228_vm0, %v517_v62  ;;  %v1452_v7 = vpop.eup %1288 }
 0x226   : > { %v388_v8 = vsel %vm318_vm1, %v1452_v7, 0.0  ;;  %v1291_v11 = vpop.eup %1290 }
 0x227   : > { %386 = vadd.xlane.f32.xlu0 %v385_v4  ;;  %v382_v12 = vsel %vm318_vm1, %v1291_v11, 0.0 }
 0x22b   : > { %380 = vadd.xlane.f32.xlu0 %v379_v6 }
 0x22c   : > { %520 = vrot.lane.b32.xlu1 %v1393_v2, %s1350_s20 }
 0x22f   : > { %389 = vadd.xlane.f32.xlu0 %v388_v8 }
 0x245   : > { %518 = vrot.lane.b32.xlu0 %v1390_v1, %s1350_s20 }
 0x249   : > { %508 = vrot.lane.b32.xlu0 %v1388_v0, %s1351_s21 }
 0x24d   : > { %512 = vrot.lane.b32.xlu0 %v1393_v2, %s1351_s21 }
 0x250   : > { %383 = vadd.xlane.f32.xlu1 %v382_v12 }
 0x261   : > { %522 = vrot.lane.b32.xlu1 %v1398_v3, %s1350_s20 }
 0x265   : > { %510 = vrot.lane.b32.xlu1 %v1390_v1, %s1351_s21 }
 0x269   : > { %514 = vrot.lane.b32.xlu1 %v1398_v3, %s1351_s21 }
 0x2a4   : > { %v375_v13 = vpop.xlane.xlu1 %374 }
 0x2a8   : > { %v369_v14 = vpop.xlane.xlu1 %368 }
 0x2ac   : > { %v378_v15 = vpop.xlane.xlu0 %377  ;;  %v521_v33 = vpop.permute.xlu1 %520 }
 0x2ad   : > { %1292 = vrcp.f32 %v378_v15  ;;  %v543_v34 = vsel %vm228_vm0, %v521_v33, 0 }
 0x2ae   : > { %1294 = vrcp.f32 %v369_v14 }
 0x2af   : > { %1296 = vrcp.f32 %v375_v13 }
 0x2b0   : > { %v372_v16 = vpop.xlane.xlu0 %371 }
 0x2b1   : > { %1298 = vrcp.f32 %v372_v16 }
 0x2b4   : > { %v387_v17 = vpop.xlane.xlu0 %386 }
 0x2b7   : > { %v1293_v18 = vpop.eup %1292 }
 0x2b8   : > { %v381_v19 = vpop.xlane.xlu0 %380  ;;  %v1295_v20 = vpop.eup %1294  ;;  %v402_v23 = vmul.f32 %v1293_v18, %v1281_v56 }
 0x2b9   : > { %v1297_v21 = vpop.eup %1296  ;;  %v399_v25 = vmul.f32 %v1295_v20, %v1437_v50 }
 0x2ba   : > { %v401_v27 = vmul.f32 %v1297_v21, %v1433_v44 }
 0x2bb   : > { %v1299_v22 = vpop.eup %1298 }
 0x2bc   : > { %v390_v24 = vpop.xlane.xlu0 %389  ;;  %v400_v26 = vmul.f32 %v1299_v22, %v1283_v60  ;;  %v408_v29 = vpack.c.bf16 %v402_v23, %v401_v27 }
 0x2bd   : > { %1300 = vrcp.f32 %v390_v24 }
 0x2be   : > { %v407_v28 = vpack.c.bf16 %v400_v26, %v399_v25  ;;  %1302 = vrcp.f32 %v381_v19 }
 0x2bf   : > { %1304 = vrcp.f32 %v387_v17 }
 0x2c0   : > { %1188 = vmatprep.mubr.msk.bf16.mxu1 %vm318_vm1, %v407_v28  ;;  %v519_v30 = vpop.permute.xlu0 %518 }
 0x2c1   : > { %1189 = vmatmul.mubr.msk.bf16.vlgmr.msra.gmra.mrb[0].mxu1 %vm318_vm1, %v408_v29  ;;  %v540_v32 = vsel %vm228_vm0, %v519_v30, 0 }
 0x2c2   : > { %1197 = vmatpush3.bf16.xpose.msra.mxu1 %v537_v31 }
 0x2c3   : > { %1253 = vmatprep.subr.msk.bf16.mxu1 %vm228_vm0, %v519_v30 }
 0x2c4   : > { %v509_v48 = vpop.permute.xlu0 %508 }
 0x2c7   : > { %v1301_v38 = vpop.eup %1300 }
 0x2c8   : > { %v1303_v39 = vpop.eup %1302  ;;  %v406_v42 = vmul.f32 %v1301_v38, %v1452_v7  ;;  %v513_v50 = vpop.permute.xlu0 %512 }
 0x2c9   : > { %v1305_v40 = vpop.eup %1304  ;;  %v403_v43 = vmul.f32 %v1303_v39, %v1448_v5 }
 0x2ca   : > { %1199 = vmatpush3.bf16.xpose.msra.mxu1 %v540_v32  ;;  %v405_v45 = vmul.f32 %v1305_v40, %v1443_v63 }
 0x2cb   : > { %1254 = vmatprep.subr.msk.bf16.mxu1 %vm228_vm0, %v521_v33 }
 0x2cc   : > { %v410_v47 = vpack.c.bf16 %v406_v42, %v405_v45 }
 0x2d2   : > { %1201 = vmatpush3.bf16.xpose.msra.mxu1 %v543_v34 }
 0x2dd   : > { %v384_v35 = vpop.xlane.xlu1 %383 }
 0x2de   : > { %1306 = vrcp.f32 %v384_v35 }
 0x2e1   : > { %v523_v36 = vpop.permute.xlu1 %522 }
 0x2e2   : > { %v546_v37 = vsel %vm228_vm0, %v523_v36, 0  ;;  %1255 = vmatprep.subr.msk.bf16.mxu1 %vm228_vm0, %v523_v36 }
 0x2e3   : > { %1203 = vmatpush3.bf16.xpose.msra.mxu1 %v546_v37 }
 0x2e5   : > { %v511_v49 = vpop.permute.xlu1 %510 }
 0x2e8   : > { %v1307_v41 = vpop.eup %1306 }
 0x2e9   : > { %v404_v44 = vmul.f32 %v1307_v41, %v1291_v11  ;;  %v515_v51 = vpop.permute.xlu1 %514 }
 0x2eb   : > { %v409_v46 = vpack.c.bf16 %v404_v44, %v403_v43 }
 0x2ed   : > { %1192 = vmatprep.mubr.msk.bf16.mxu1 %vm318_vm1, %v409_v46 }
 0x2ee   : > { %1193 = vmatmul.mubr.msk.bf16.gmra.mrb[4].mxu1 %vm318_vm1, %v410_v47 }
 0x2ef   : > { %1204 = vmatprep.mubr.msk.bf16.mxu1 %vm228_vm0, %v509_v48 }
 0x2f6   : > { %1205 = vmatmul.mubr.msk.bf16.vlgmr.msra.gmra.mrb[8].mxu1 %vm228_vm0, %v511_v49 }
 0x2f7   : > { %1208 = vmatprep.mubr.msk.bf16.mxu1 %vm228_vm0, %v513_v50 }
 0x2fe   : > { %1209 = vmatmul.mubr.msk.bf16.gmra.mrb[12].mxu1 %vm228_vm0, %v515_v51 }
 0x394   : > { %v1190_v52 = vpop.f32.mrb[0].mxu1 }
 0x395   : > { %v469_v53 = vpop.f32.mrb[1].mxu1 }
 0x396   : > { %v1191_v54 = vpop.f32.mrb[2].mxu1 }
 0x397   : > { %v501_v55 = vpack.c.bf16 %v1191_v54, %v1190_v52  ;;  %v472_v56 = vpop.f32.mrb[3].mxu1 }
 0x398   : > { %v500_v57 = vpack.c.bf16 %v472_v56, %v469_v53 }
 0x399   : > { %505 = vst.msk [vmem:[#allocation2 + $0x8] sm:$0xff] %vm228_vm0, %v501_v55 }
 0x39a   : > { %504 = vst.msk [vmem:[#allocation2] sm:$0xff] %vm228_vm0, %v500_v57 }
 0x3c1   : > { %v1194_v58 = vpop.f32.mrb[4].mxu1 }
 0x3c2   : > { %v485_v59 = vpop.f32.mrb[5].mxu1 }
 0x3c3   : > { %v1195_v60 = vpop.f32.mrb[6].mxu1 }
 0x3c4   : > { %v503_v61 = vpack.c.bf16 %v1195_v60, %v1194_v58  ;;  %v488_v62 = vpop.f32.mrb[7].mxu1 }
 0x3c5   : > { %v502_v63 = vpack.c.bf16 %v488_v62, %v485_v59 }
 0x3c6   : > { %507 = vst.msk [vmem:[#allocation2 + $0x18] sm:$0xff] %vm228_vm0, %v503_v61 }
 0x3c7   : > { %506 = vst.msk [vmem:[#allocation2 + $0x10] sm:$0xff] %vm228_vm0, %v502_v63 }
 0x3c9   : > { %v1206_v4 = vpop.f32.mrb[8].mxu1 }
 0x3ca   : > { %v582_v5 = vpop.f32.mrb[9].mxu1  ;;  %v619_v10 = vsel %vm318_vm1, %v1206_v4, -inf }
 0x3cb   : > { %v1207_v6 = vpop.f32.mrb[10].mxu1  ;;  %v613_v7 = vsel %vm318_vm1, %v582_v5, -inf }
 0x3cc   : > { %614 = vmax.xlane.f32.xlu0 %v613_v7  ;;  %v585_v8 = vpop.f32.mrb[11].mxu1  ;;  %v622_v14 = vsel %vm318_vm1, %v1207_v6, -inf }
 0x3cd   : > { %v616_v9 = vsel %vm318_vm1, %v585_v8, -inf }
 0x3ce   : > { %617 = vmax.xlane.f32.xlu1 %v616_v9 }
 0x3d0   : > { %620 = vmax.xlane.f32.xlu0 %v619_v10 }
 0x3d1   : > { %v1210_v11 = vpop.f32.mrb[12].mxu1 }
 0x3d2   : > { %v598_v12 = vpop.f32.mrb[13].mxu1  ;;  %v631_v17 = vsel %vm318_vm1, %v1210_v11, -inf }
 0x3d3   : > { %v1211_v13 = vpop.f32.mrb[14].mxu1  ;;  %v625_v15 = vsel %vm318_vm1, %v598_v12, -inf }
 0x3d4   : > { %623 = vmax.xlane.f32.xlu0 %v622_v14  ;;  %626 = vmax.xlane.f32.xlu1 %v625_v15  ;;  %v601_v16 = vpop.f32.mrb[15].mxu1  ;;  %v634_v19 = vsel %vm318_vm1, %v1211_v13, -inf }
 0x3d5   : > { %v628_v18 = vsel %vm318_vm1, %v601_v16, -inf }
 0x3d8   : > { %632 = vmax.xlane.f32.xlu1 %v631_v17  ;;  %629 = vmax.xlane.f32.xlu0 %v628_v18 }
 0x3dc   : > { %635 = vmax.xlane.f32.xlu0 %v634_v19 }
 0x3e9   : > { %705 = vrot.lane.b32.xlu1 %v1388_v0, %s1352_s22 }
 0x459   : > { %v615_v20 = vpop.xlane.xlu0 %614 }
 0x45a   : > { %v637_v21 = vsub.f32 %v582_v5, %v615_v20 }
 0x45b   : > { %v618_v22 = vpop.xlane.xlu1 %617 }
 0x45c   : > { %v645_v25 = vmul.f32 1.442695, %v637_v21  ;;  %v638_v27 = vsub.f32 %v585_v8, %v618_v22 }
 0x45d   : > { %v621_v23 = vpop.xlane.xlu0 %620 }
 0x45e   : > { %v639_v24 = vsub.f32 %v1206_v4, %v621_v23  ;;  %v647_v33 = vmul.f32 1.442695, %v638_v27 }
 0x460   : > { %v649_v26 = vmul.f32 1.442695, %v639_v24 }
 0x461   : > { %v627_v28 = vpop.xlane.xlu1 %626  ;;  %v624_v29 = vpop.xlane.xlu0 %623 }
 0x462   : > { %1308 = vpow2.f32 %v649_v26  ;;  %v640_v30 = vsub.f32 %v1207_v6, %v624_v29  ;;  %v641_v31 = vsub.f32 %v598_v12, %v627_v28  ;;  %v1274_v28 = vld [vmem:[%s1568_s1] sm:$0xff]   ;;  %v1275_v29 = vld [vmem:[%s1568_s1 + $0x8] sm:$0xff]  }
 0x463   : > { %1310 = vpow2.f32 %v645_v25 }
 0x464   : > { %v651_v32 = vmul.f32 1.442695, %v640_v30  ;;  %v653_v0 = vmul.f32 1.442695, %v641_v31 }
 0x465   : > { %v633_v34 = vpop.xlane.xlu1 %632  ;;  %v630_v35 = vpop.xlane.xlu0 %629 }
 0x466   : > { %v643_v36 = vsub.f32 %v1210_v11, %v633_v34  ;;  %1312 = vpow2.f32 %v651_v32  ;;  %v642_v38 = vsub.f32 %v601_v16, %v630_v35 }
 0x467   : > { %1314 = vpow2.f32 %v647_v33 }
 0x468   : > { %v657_v37 = vmul.f32 1.442695, %v643_v36  ;;  %v655_v44 = vmul.f32 1.442695, %v642_v38 }
 0x469   : > { %v636_v39 = vpop.xlane.xlu0 %635  ;;  %v706_v40 = vpop.permute.xlu1 %705 }
 0x46a   : > { %1316 = vpow2.f32 %v657_v37  ;;  %v644_v41 = vsub.f32 %v1211_v13, %v636_v39  ;;  %1212 = vmatprep.subr.bf16.mxu0 %v706_v40  ;;  %1240 = vmatprep.subr.bf16.mxu1 %v706_v40 }
 0x46b   : > { %1213 = vmatpush3.bf16.msra.mxu0 %v706_v40  ;;  %1244 = vmatpush3.bf16.msra.mxu1 %v706_v40  ;;  %1318 = vpow2.f32 %v653_v0 }
 0x46c   : > { %v1502_v42 = vpop.eup %1308  ;;  %v659_v43 = vmul.f32 1.442695, %v644_v41 }
 0x46d   : > { %v667_v45 = vsel %vm318_vm1, %v1502_v42, 0.0  ;;  %v1311_v46 = vpop.eup %1310 }
 0x46e   : > { %1320 = vpow2.f32 %v659_v43  ;;  %668 = vadd.xlane.f32.xlu1 %v667_v45  ;;  %v661_v48 = vsel %vm318_vm1, %v1311_v46, 0.0 }
 0x46f   : > { %1322 = vpow2.f32 %v655_v44 }
 0x470   : > { %v1506_v47 = vpop.eup %1312 }
 0x471   : > { %v670_v49 = vsel %vm318_vm1, %v1506_v47, 0.0  ;;  %v1315_v50 = vpop.eup %1314 }
 0x472   : > { %662 = vadd.xlane.f32.xlu1 %v661_v48  ;;  %671 = vadd.xlane.f32.xlu0 %v670_v49  ;;  %v664_v54 = vsel %vm318_vm1, %v1315_v50, 0.0  ;;  %v1123_v49 = vld [vmem:[%s185_s30 + $0x8] sm:$0xff]  }
 0x474   : > { %v1511_v51 = vpop.eup %1316 }
 0x475   : > { %v679_v52 = vsel %vm318_vm1, %v1511_v51, 0.0  ;;  %v1319_v53 = vpop.eup %1318 }
 0x476   : > { %680 = vadd.xlane.f32.xlu1 %v679_v52  ;;  %665 = vadd.xlane.f32.xlu0 %v664_v54  ;;  %v673_v56 = vsel %vm318_vm1, %v1319_v53, 0.0 }
 0x478   : > { %v1321_v55 = vpop.eup %1320 }
 0x479   : > { %v682_v57 = vsel %vm318_vm1, %v1321_v55, 0.0  ;;  %v1323_v58 = vpop.eup %1322 }
 0x47a   : > { %674 = vadd.xlane.f32.xlu1 %v673_v56  ;;  %683 = vadd.xlane.f32.xlu0 %v682_v57  ;;  %v676_v59 = vsel %vm318_vm1, %v1323_v58, 0.0 }
 0x47e   : > { %677 = vadd.xlane.f32.xlu0 %v676_v59 }
 0x48b   : > { %709 = vrot.lane.b32.xlu1 %v1393_v2, %s1352_s22 }
 0x48f   : > { %711 = vrot.lane.b32.xlu1 %v1398_v3, %s1352_s22 }
 0x494   : > { %707 = vrot.lane.b32.xlu0 %v1390_v1, %s1352_s22 }
 0x4fb   : > { %v669_v60 = vpop.xlane.xlu1 %668 }
 0x4ff   : > { %v663_v61 = vpop.xlane.xlu1 %662  ;;  %v672_v62 = vpop.xlane.xlu0 %671 }
 0x500   : > { %1324 = vrcp.f32 %v663_v61 }
 0x503   : > { %v681_v63 = vpop.xlane.xlu1 %680  ;;  %v666_v4 = vpop.xlane.xlu0 %665 }
 0x504   : > { %1326 = vrcp.f32 %v666_v4  ;;  %v1124_v4 = vld [vmem:[%s185_s30 + $0x10] sm:$0xff]  }
 0x505   : > { %1328 = vrcp.f32 %v669_v60  ;;  %v1125_v60 = vld [vmem:[%s185_s30 + $0x18] sm:$0xff]  }
 0x506   : > { %1330 = vrcp.f32 %v672_v62 }
 0x507   : > { %v675_v5 = vpop.xlane.xlu1 %674  ;;  %v684_v6 = vpop.xlane.xlu0 %683 }
 0x508   : > { %1332 = vrcp.f32 %v684_v6 }
 0x509   : > { %1334 = vrcp.f32 %v675_v5 }
 0x50a   : > { %1336 = vrcp.f32 %v681_v63  ;;  %v1325_v7 = vpop.eup %1324 }
 0x50b   : > { %v678_v2 = vpop.xlane.xlu0 %677  ;;  %v710_v3 = vpop.permute.xlu1 %709  ;;  %v693_v9 = vmul.f32 %v1325_v7, %v1311_v46  ;;  %v1121_v7 = vunpack.c.l.bf16 %v1125_v60 }
 0x50c   : > { %1338 = vrcp.f32 %v678_v2 }
 0x50e   : > { %v1327_v8 = vpop.eup %1326 }
 0x50f   : > { %v708_v1 = vpop.permute.xlu0 %707  ;;  %v694_v10 = vmul.f32 %v1327_v8, %v1315_v50  ;;  %v1329_v11 = vpop.eup %1328  ;;  %v1108_v50 = vld [vmem:[%s185_s30] sm:$0xff]   ;;  %v1117_v8 = vunpack.c.l.bf16 %v1124_v4 }
 0x510   : > { %1214 = vmatprep.subr.bf16.mxu0 %v708_v1  ;;  %1241 = vmatprep.subr.bf16.mxu1 %v708_v1  ;;  %v1331_v13 = vpop.eup %1330  ;;  %v712_v15 = vpop.permute.xlu1 %711  ;;  %v695_v23 = vmul.f32 %v1329_v11, %v1502_v42  ;;  %v1109_v52 = vunpack.c.l.bf16 %v1108_v50 }
 0x511   : > { %1215 = vmatpush3.bf16.msra.mxu0 %v708_v1  ;;  %1245 = vmatpush3.bf16.msra.mxu1 %v708_v1  ;;  %v701_v12 = vpack.c.bf16 %v694_v10, %v693_v9  ;;  %v696_v19 = vmul.f32 %v1331_v13, %v1506_v47  ;;  %v1122_v1 = vunpack.c.h.bf16 %v1125_v60  ;;  %v1118_v10 = vunpack.c.h.bf16 %v1124_v4 }
 0x512   : > { %1216 = vmatprep.subr.bf16.mxu0 %v710_v3  ;;  %1242 = vmatprep.subr.bf16.mxu1 %v710_v3  ;;  %v1333_v14 = vpop.eup %1332 }
 0x513   : > { %1220 = vmatprep.mubr.msk.bf16.mxu0 %vm318_vm1, %v701_v12  ;;  %v1335_v16 = vpop.eup %1334  ;;  %v700_v20 = vmul.f32 %v1333_v14, %v1321_v55  ;;  %v702_v26 = vpack.c.bf16 %v696_v19, %v695_v23  ;;  %v1110_v55 = vunpack.c.h.bf16 %v1108_v50 }
 0x514   : > { %v1337_v17 = vpop.eup %1336  ;;  %v697_v21 = vmul.f32 %v1335_v16, %v1319_v53  ;;  %v1114_v53 = vunpack.c.h.bf16 %v1123_v49 }
 0x515   : > { %1217 = vmatpush3.bf16.msra.mxu0 %v710_v3  ;;  %1246 = vmatpush3.bf16.msra.mxu1 %v710_v3  ;;  %v699_v24 = vmul.f32 %v1337_v17, %v1511_v51  ;;  %v1113_v51 = vunpack.c.l.bf16 %v1123_v49 }
 0x516   : > { %v1339_v18 = vpop.eup %1338  ;;  %1218 = vmatprep.subr.bf16.mxu0 %v712_v15  ;;  %1243 = vmatprep.subr.bf16.mxu1 %v712_v15 }
 0x517   : > { %v698_v22 = vmul.f32 %v1339_v18, %v1323_v58  ;;  %v704_v27 = vpack.c.bf16 %v700_v20, %v699_v24 }
 0x519   : > { %1219 = vmatpush3.bf16.msra.mxu0 %v712_v15  ;;  %1247 = vmatpush3.bf16.msra.mxu1 %v712_v15  ;;  %v703_v25 = vpack.c.bf16 %v698_v22, %v697_v21 }
 0x51a   : > { %1228 = vmatprep.subr.bf16.mxu0 %v1274_v28 }
 0x51b   : > { %1224 = vmatprep.mubr.msk.bf16.mxu1 %vm318_vm1, %v703_v25 }
 0x51c   : > { %1221 = vmatmul.mubr.msk.bf16.vlgmr.msra.gmra.mrb[8].mxu0 %vm318_vm1, %v702_v26  ;;  %1225 = vmatmul.mubr.msk.bf16.vlgmr.msra.gmra.mrb[16].mxu1 %vm318_vm1, %v704_v27 }
 0x51d   : > { %1229 = vmatpush3.bf16.msra.mxu0 %v1274_v28 }
 0x51e   : > { %1230 = vmatprep.subr.bf16.mxu0 %v1275_v29 }
 0x521   : > { %1231 = vmatpush3.bf16.msra.mxu0 %v1275_v29 }
 0x5ef   : > { %v1222_v30 = vpop.f32.mrb[8].mxu0  ;;  %v1226_v31 = vpop.f32.mrb[16].mxu1 }
 0x5f0   : > { %v763_v32 = vpop.f32.mrb[9].mxu0  ;;  %v779_v33 = vpop.f32.mrb[17].mxu1 }
 0x5f1   : > { %v1223_v34 = vpop.f32.mrb[10].mxu0  ;;  %v1227_v35 = vpop.f32.mrb[18].mxu1 }
 0x5f2   : > { %v795_v36 = vpack.c.bf16 %v1223_v34, %v1222_v30  ;;  %v797_v0 = vpack.c.bf16 %v1227_v35, %v1226_v31  ;;  %v766_v37 = vpop.f32.mrb[11].mxu0  ;;  %v782_v38 = vpop.f32.mrb[19].mxu1 }
 0x5f3   : > { %v794_v39 = vpack.c.bf16 %v766_v37, %v763_v32  ;;  %v796_v40 = vpack.c.bf16 %v782_v38, %v779_v33 }
 0x5f4   : > { %804 = vrot.lane.b32.xlu1 %v795_v36, %s1353_s27 }
 0x5f5   : > { %802 = vrot.lane.b32.xlu0 %v794_v39, %s1353_s27 }
 0x5f8   : > { %808 = vrot.lane.b32.xlu1 %v797_v0, %s1353_s27 }
 0x5f9   : > { %806 = vrot.lane.b32.xlu0 %v796_v40, %s1353_s27 }
 0x666   : > { %v805_v41 = vpop.permute.xlu1 %804 }
 0x667   : > { %816 = vst.msk [vmem:[#allocation2 + $0x8] sm:$0xff] %vm814_vm2, %v805_v41  ;;  %v803_v42 = vpop.permute.xlu0 %802 }
 0x668   : > { %815 = vst.msk [vmem:[#allocation2] sm:$0xff] %vm814_vm2, %v803_v42 }
 0x66a   : > { %v809_v43 = vpop.permute.xlu1 %808 }
 0x66b   : > { %818 = vst.msk [vmem:[#allocation2 + $0x18] sm:$0xff] %vm814_vm2, %v809_v43  ;;  %v807_v44 = vpop.permute.xlu0 %806 }
 0x66c   : > { %817 = vst.msk [vmem:[#allocation2 + $0x10] sm:$0xff] %vm814_vm2, %v807_v44 }
 0x66e   : > { %v836_v46 = vld [vmem:[#allocation2 + $0x8] sm:$0xff] }
 0x66f   : > { %v835_v45 = vld [vmem:[#allocation2] sm:$0xff] }
 0x670   : > { %1232 = vmatprep.mubr.msk.bf16.mxu0 %vm855_vm3, %v835_v45 }
 0x671   : > { %1233 = vmatmul.mubr.msk.bf16.vlgmr.msra.gmra.mrb[12].mxu0 %vm855_vm3, %v836_v46 }
 0x672   : > { %v838_v48 = vld [vmem:[#allocation2 + $0x18] sm:$0xff] }
 0x673   : > { %v837_v47 = vld [vmem:[#allocation2 + $0x10] sm:$0xff] }
 0x674   : > { %1236 = vmatprep.mubr.msk.bf16.mxu0 %vm855_vm3, %v837_v47 }
 0x679   : > { %1237 = vmatmul.mubr.msk.bf16.gmra.mrb[16].mxu0 %vm855_vm3, %v838_v48 }
 0x744   : > { %v1234_v54 = vpop.f32.mrb[12].mxu0 }
 0x745   : > { %v935_v56 = vadd.f32 %v1234_v54, %v1113_v51  ;;  %v902_v57 = vpop.f32.mrb[13].mxu0 }
 0x746   : > { %v933_v58 = vadd.f32 %v1109_v52, %v902_v57  ;;  %v1235_v59 = vpop.f32.mrb[14].mxu0 }
 0x747   : > { %v1101_v61 = vpack.c.bf16 %v935_v56, %v935_v56  ;;  %v936_v62 = vadd.f32 %v1235_v59, %v1114_v53  ;;  %v905_v63 = vpop.f32.mrb[15].mxu0 }
 0x748   : > { %v1099_v5 = vpack.c.bf16 %v933_v58, %v933_v58  ;;  %v934_v6 = vadd.f32 %v1110_v55, %v905_v63 }
 0x749   : > { %976 = vst.msk [vmem:[%s1546_s6 + $0x8] sm:$0xf] %vm973_vm4, %v1101_v61  ;;  %v1102_v2 = vpack.c.bf16 %v936_v62, %v936_v62 }
 0x74a   : > { %974 = vst.msk [vmem:[%s1546_s6] sm:$0xf] %vm973_vm4, %v1099_v5  ;;  %v1100_v3 = vpack.c.bf16 %v934_v6, %v934_v6 }
 0x74b   : > { %977 = vst.msk [vmem:[%s1546_s6 + $0xc] sm:$0xf] %vm973_vm4, %v1102_v2 }
 0x74c   : > { %975 = vst.msk [vmem:[%s1546_s6 + $0x4] sm:$0xf] %vm973_vm4, %v1100_v3  ;;  %v1238_v9 = vpop.f32.mrb[16].mxu0 }
 0x74d   : > { %v939_v11 = vadd.f32 %v1238_v9, %v1121_v7  ;;  %v918_v12 = vpop.f32.mrb[17].mxu0 }
 0x74e   : > { %v937_v13 = vadd.f32 %v1117_v8, %v918_v12  ;;  %v1239_v14 = vpop.f32.mrb[18].mxu0 }
 0x74f   : > { %v1105_v15 = vpack.c.bf16 %v939_v11, %v939_v11  ;;  %v940_v16 = vadd.f32 %v1239_v14, %v1122_v1  ;;  %v921_v17 = vpop.f32.mrb[19].mxu0 }
 0x750   : > { %v1103_v18 = vpack.c.bf16 %v937_v13, %v937_v13  ;;  %v938_v19 = vadd.f32 %v1118_v10, %v921_v17 }
 0x751   : > { %980 = vst.msk [vmem:[%s1546_s6 + $0x18] sm:$0xf] %vm973_vm4, %v1105_v15  ;;  %v1106_v20 = vpack.c.bf16 %v940_v16, %v940_v16 }
 0x752   : > { %978 = vst.msk [vmem:[%s1546_s6 + $0x10] sm:$0xf] %vm973_vm4, %v1103_v18  ;;  %v1104_v21 = vpack.c.bf16 %v938_v19, %v938_v19 }
 0x753   : > { %981 = vst.msk [vmem:[%s1546_s6 + $0x1c] sm:$0xf] %vm973_vm4, %v1106_v20 }
 0x754   : > { %979 = vst.msk [vmem:[%s1546_s6 + $0x14] sm:$0xf] %vm973_vm4, %v1104_v21 }
 0x755 PF: > { %s13_s12 = sadd.s32 1, %s1346_s12  }
 0x756   : > { %p10_p4 = scmp.ge.s32.totalorder %s13_s12, 4  }
 0x758   :  { %12 = sbr.rel (!%p10_p4) target bundleno = 1 (0x1), region = 65 }

// kernel: downsample_block.30
= control target key start
LH: loop header
LB: loop body
LE: loop exit
PB: predicated region body
PF: predicated region fallthrough
CT: control target
= control target key end

     0   :  { %s828_s18 = smov 0   ;;  %s955_s0 = inlined_call_operand.vmem [shape: bf16[2,64,32], index: 0, kind: input, shape index: {}]   ;;  %s956_s1 = inlined_call_operand.vmem [shape: f32[2,1,32], index: 1, kind: input, shape index: {}]   ;;  %s957_s2 = inlined_call_operand.vmem [shape: f32[2,1,32], index: 2, kind: input, shape index: {}]   ;;  %s958_s3 = inlined_call_operand.vmem [shape: f32[32,32], index: 3, kind: input, shape index: {}]   ;;  %s959_s4 = inlined_call_operand.vmem [shape: bf16[32,96], index: 4, kind: input, shape index: {}]   ;;  %s960_s5 = inlined_call_operand.vmem [shape: bf16[2,64,96], index: 5, kind: output, shape index: {}]  }
   0x1 LB: > { %s676_s19 = sadd.s32 4294967295, %s793_s18   ;;  %p680_p0 = scmp.ge.s32.totalorder %s793_s18, 1  ;;  %s793_s18 = sphi %s828_s18, %s15_s18  }
   0x2   : > { %p203_p1 = scmp.lt.s32.totalorder %s793_s18, 3 }
   0x4   : > { %p204_p2 = pnand %p680_p0, %p203_p1 }
   0x5   : > { %v264_v0 = vld [vmem:[%s958_s3] sm:$0xff] (!%p204_p2)  ;;  %v265_v1 = vld [vmem:[%s958_s3 + $0x8] sm:$0xff] (!%p204_p2)  ;;  %v266_v2 = vld [vmem:[%s958_s3 + $0x10] sm:$0xff] (!%p204_p2)  ;;  %v795_v3 = vmov (!%p204_p2), 0.0|0.0   ;;  %vm796_vm0 = vmmov (!%p204_p2), 0   ;;  %v797_v6 = vmov (!%p204_p2), 0.0  }
   0x6   : > { %207 = sbr.rel (%p204_p2) target bundleno = 522 (0x20a), region = 40  ;;  %766 = vmatprep.subr.bf16.mxu0 (!%p204_p2), %v795_v3  ;;  %v767_v4 = vpack.c.bf16 (!%p204_p2), %v265_v1, %v264_v0  ;;  %v267_v5 = vld [vmem:[%s958_s3 + $0x18] sm:$0xff] (!%p204_p2)  ;;  %751 = vmatprep.mubr.msk.f32.mxu0 (!%p204_p2), %vm796_vm0, %v797_v6  ;;  %p237_p3 = scmp.lt.s32.totalorder (!%p204_p2), %s676_s19, 1  ;;  %vm276_vm1 = vcmask (!%p204_p2), 261120   ;;  %vm329_vm2 = vcmask (!%p204_p2), 1040384   ;;  %vm594_vm3 = vcmask (!%p204_p2), 781312  }
   0x7   : > { %v770_v7 = vpack.c.bf16 (!%p204_p2), %v267_v5, %v266_v2 }
   0x8   : > { %768 = vmatpush3.bf16.msra.mxu0 (!%p204_p2), %v767_v4 }
   0x9   : > { %769 = vmatprep.subr.bf16.mxu0 (!%p204_p2), %v795_v3 }
   0xc   : > { %771 = vmatpush3.bf16.msra.mxu0 (!%p204_p2), %v770_v7 }
   0xd   : > { %s962_s19 = smov (!%p237_p3, %s676_s19), 1 }
   0xe   : > { %s703_s28 = sshll.u32 %s962_s19, 5  ;;  %s244_s13 = scalar_lea.vmem %s956_s1, %s962_s19 }
   0xf   : > { %s241_s6 = scalar_lea.vmem %s955_s0, %s703_s28  ;;  %s247_s16 = scalar_lea.vmem %s957_s2, %s962_s19 }
  0x10   : > { %v714_v8 = vld [vmem:[%s241_s6] sm:$0xff]   ;;  %v729_v9 = vld [vmem:[%s241_s6 + $0x8] sm:$0xff]   ;;  %v730_v10 = vld [vmem:[%s241_s6 + $0x10] sm:$0xff]   ;;  %s252_s21 = scalar_lea.vmem %s960_s5, %s703_s28 }
  0x11   : > { %v856_v11 = vunpack.c.l.bf16 %v714_v8  ;;  %v858_v12 = vunpack.c.h.bf16 %v714_v8  ;;  %v860_v13 = vunpack.c.l.bf16 %v729_v9  ;;  %v862_v14 = vunpack.c.h.bf16 %v729_v9  ;;  %v731_v16 = vld [vmem:[%s241_s6 + $0x18] sm:$0xff]   ;;  %v783_v9 = vld [vmem:[%s959_s4] sm:$0xff]  }
  0x12   : > { %v864_v15 = vunpack.c.l.bf16 %v730_v10  ;;  %v872_v20 = vunpack.c.h.bf16 %v730_v10  ;;  %v882_v26 = vunpack.c.l.bf16 %v731_v16  ;;  %v893_v36 = vunpack.c.h.bf16 %v731_v16  ;;  %v784_v10 = vld [vmem:[%s959_s4 + $0x8] sm:$0xff]   ;;  %754 = vmatprep.subr.bf16.mxu1 %v783_v9 }
  0x13   : > { %v277_v17 = vsel %vm276_vm1, %v856_v11, 0.0  ;;  %v278_v18 = vsel %vm276_vm1, %v858_v12, 0.0  ;;  %v280_v19 = vsel %vm276_vm1, %v860_v13, 0.0  ;;  %v282_v22 = vsel %vm276_vm1, %v862_v14, 0.0  ;;  %755 = vmatpush3.bf16.msra.mxu1 %v783_v9 }
  0x14   : > { %v279_v21 = vadd.f32 %v278_v18, %v277_v17  ;;  %v299_v23 = vmul.f32 %v856_v11, %v856_v11  ;;  %v300_v24 = vmul.f32 %v858_v12, %v858_v12  ;;  %v301_v25 = vmul.f32 %v860_v13, %v860_v13  ;;  %756 = vmatprep.subr.bf16.mxu1 %v784_v10 }
  0x15   : > { %v302_v28 = vmul.f32 %v862_v14, %v862_v14  ;;  %v284_v29 = vsel %vm276_vm1, %v864_v15, 0.0  ;;  %v303_v30 = vmul.f32 %v864_v15, %v864_v15  ;;  %v286_v37 = vsel %vm276_vm1, %v872_v20, 0.0 }
  0x16   : > { %v281_v27 = vadd.f32 %v280_v19, %v279_v21  ;;  %v307_v31 = vsel %vm276_vm1, %v299_v23, 0.0  ;;  %v308_v32 = vsel %vm276_vm1, %v300_v24, 0.0  ;;  %v310_v35 = vsel %vm276_vm1, %v301_v25, 0.0 }
  0x17   : > { %v309_v34 = vadd.f32 %v308_v32, %v307_v31  ;;  %v304_v38 = vmul.f32 %v872_v20, %v872_v20  ;;  %v312_v39 = vsel %vm276_vm1, %v302_v28, 0.0  ;;  %v288_v42 = vsel %vm276_vm1, %v882_v26, 0.0  ;;  %757 = vmatpush3.bf16.msra.mxu1 %v784_v10  ;;  %v262_v28 = vld [vmem:[%s244_s13] sm:$0x1] }
  0x18   : > { %v283_v33 = vadd.f32 %v282_v22, %v281_v27  ;;  %v305_v43 = vmul.f32 %v882_v26, %v882_v26  ;;  %v314_v44 = vsel %vm276_vm1, %v303_v30, 0.0  ;;  %v290_v47 = vsel %vm276_vm1, %v893_v36, 0.0 }
  0x19   : > { %v311_v41 = vadd.f32 %v310_v35, %v309_v34  ;;  %v306_v48 = vmul.f32 %v893_v36, %v893_v36  ;;  %v316_v49 = vsel %vm276_vm1, %v304_v38, 0.0  ;;  %v412_v22 = vlaneseq }
  0x1a   : > { %v285_v40 = vadd.f32 %v284_v29, %v283_v33  ;;  %v318_v52 = vsel %vm276_vm1, %v305_v43, 0.0  ;;  %v436_v30 = vadd.f32 1.0, %v262_v28 }
  0x1b   : > { %v313_v46 = vadd.f32 %v312_v39, %v311_v41  ;;  %v320_v55 = vsel %vm276_vm1, %v306_v48, 0.0  ;;  %v413_v25 = vshrl.u32 %v412_v22, 7 }
  0x1c   : > { %v287_v45 = vadd.f32 %v286_v37, %v285_v40 }
  0x1d   : > { %v315_v51 = vadd.f32 %v314_v44, %v313_v46  ;;  %v414_v27 = vsub.s32 0, %v413_v25  ;;  %v426_v31 = vsub.s32 1, %v413_v25 }
  0x1e   : > { %v289_v50 = vadd.f32 %v288_v42, %v287_v45 }
  0x1f   : > { %v317_v54 = vadd.f32 %v316_v49, %v315_v51  ;;  %v441_v33 = vrot.slane %v436_v30, %v414_v27 }
  0x20   : > { %v291_v53 = vadd.f32 %v290_v47, %v289_v50 }
  0x21   : > { %v319_v57 = vadd.f32 %v318_v52, %v317_v54 }
  0x22   : > { %v292_v56 = vrot.slane %v291_v53, 4 }
  0x23   : > { %v321_v59 = vadd.f32 %v320_v55, %v319_v57 }
  0x24   : > { %v293_v58 = vadd.f32 %v292_v56, %v291_v53 }
  0x25   : > { %v322_v61 = vrot.slane %v321_v59, 4 }
  0x26   : > { %v294_v60 = vrot.slane %v293_v58, 2 }
  0x27   : > { %v323_v63 = vadd.f32 %v322_v61, %v321_v59 }
  0x28   : > { %v295_v62 = vadd.f32 %v294_v60, %v293_v58 }
  0x29   : > { %v324_v1 = vrot.slane %v323_v63, 2 }
  0x2a   : > { %v296_v0 = vrot.slane %v295_v62, 1 }
  0x2b   : > { %v325_v3 = vadd.f32 %v324_v1, %v323_v63 }
  0x2c   : > { %v297_v2 = vadd.f32 %v296_v0, %v295_v62 }
  0x2d   : > { %v326_v4 = vrot.slane %v325_v3, 1 }
  0x2e   : > { %v298_v5 = vmul.f32 0.015625, %v297_v2 }
  0x2f   : > { %v327_v6 = vadd.f32 %v326_v4, %v325_v3 }
  0x31   : > { %v328_v7 = vmul.f32 0.015625, %v327_v6 }
  0x33   : > { %v330_v8 = vsel %vm329_vm2, %v298_v5, %v328_v7 }
  0x34   : > { %752 = vmatmul.mubr.msk.f32.vlgmr.msra.gmra.mrb[0].mxu0 %vm276_vm1, %v330_v8 }
 0x107   : > { %v400_v16 = vpop.f32.mrb[0].mxu0 }
 0x108   : > { %v404_v17 = vmul.f32 %v400_v16, %v400_v16  ;;  %v753_v18 = vpop.f32.mrb[1].mxu0  ;;  %v415_v29 = vrot.slane %v400_v16, %v414_v27 }
 0x10a   : > { %v406_v19 = vrot.slane %v404_v17, 7  ;;  %v416_v34 = vsub.f32 %v856_v11, %v415_v29  ;;  %v417_v37 = vsub.f32 %v858_v12, %v415_v29  ;;  %v418_v38 = vsub.f32 %v860_v13, %v415_v29  ;;  %v686_v11 = vld [vmem:[%s247_s16] ss:$0 sm:$0xff] }
 0x10b   : > { %v419_v39 = vsub.f32 %v862_v14, %v415_v29  ;;  %v420_v40 = vsub.f32 %v864_v15, %v415_v29  ;;  %v421_v41 = vsub.f32 %v872_v20, %v415_v29  ;;  %v422_v48 = vsub.f32 %v882_v26, %v415_v29 }
 0x10c   : > { %v408_v21 = vsub.f32 %v400_v16, %v406_v19  ;;  %v423_v49 = vsub.f32 %v893_v36, %v415_v29 }
 0x10e   : > { %v409_v23 = vmax.f32 %v408_v21, 0.0 }
 0x110   : > { %v410_v24 = vadd.f32 1e-05, %v409_v23 }
 0x112   : > { %785 = vrsqrt.f32 %v410_v24 }
 0x11c   : > { %v786_v32 = vpop.eup %785 }
 0x11d   : > { %v427_v35 = vrot.slane %v786_v32, %v426_v31 }
 0x11f   : > { %v428_v42 = vmul.f32 %v427_v35, %v416_v34  ;;  %v429_v43 = vmul.f32 %v427_v35, %v417_v37  ;;  %v430_v44 = vmul.f32 %v427_v35, %v418_v38  ;;  %v431_v45 = vmul.f32 %v427_v35, %v419_v39 }
 0x120   : > { %v432_v46 = vmul.f32 %v427_v35, %v420_v40  ;;  %v433_v47 = vmul.f32 %v427_v35, %v421_v41  ;;  %v434_v15 = vmul.f32 %v427_v35, %v422_v48  ;;  %v435_v53 = vmul.f32 %v427_v35, %v423_v49 }
 0x121   : > { %v443_v12 = vmul.f32 %v441_v33, %v428_v42  ;;  %v444_v50 = vmul.f32 %v441_v33, %v429_v43  ;;  %v445_v13 = vmul.f32 %v441_v33, %v430_v44  ;;  %v446_v51 = vmul.f32 %v441_v33, %v431_v45 }
 0x122   : > { %v447_v14 = vmul.f32 %v441_v33, %v432_v46  ;;  %v448_v52 = vmul.f32 %v441_v33, %v433_v47  ;;  %v449_v26 = vmul.f32 %v441_v33, %v434_v15  ;;  %v450_v61 = vmul.f32 %v441_v33, %v435_v53 }
 0x123   : > { %v457_v20 = vadd.f32 %v686_v11, %v443_v12  ;;  %v458_v54 = vadd.f32 %v686_v11, %v444_v50  ;;  %v459_v55 = vadd.f32 %v686_v11, %v445_v13  ;;  %v460_v56 = vadd.f32 %v686_v11, %v446_v51 }
 0x124   : > { %v461_v57 = vadd.f32 %v686_v11, %v447_v14  ;;  %v462_v58 = vadd.f32 %v686_v11, %v448_v52  ;;  %v463_v62 = vadd.f32 %v686_v11, %v449_v26  ;;  %v464_v63 = vadd.f32 %v686_v11, %v450_v61 }
 0x125   : > { %v465_v59 = vpack.c.bf16 %v458_v54, %v457_v20  ;;  %v466_v60 = vpack.c.bf16 %v460_v56, %v459_v55 }
 0x126   : > { %v467_v36 = vpack.c.bf16 %v462_v58, %v461_v57  ;;  %v468_v0 = vpack.c.bf16 %v464_v63, %v463_v62 }
 0x127   : > { %758 = vmatprep.mubr.msk.bf16.mxu1 %vm276_vm1, %v465_v59 }
 0x128   : > { %759 = vmatmul.mubr.msk.bf16.vlgmr.msra.gmra.mrb[0].mxu1 %vm276_vm1, %v466_v60 }
 0x129   : > { %762 = vmatprep.mubr.msk.bf16.mxu1 %vm276_vm1, %v467_v36 }
 0x130   : > { %763 = vmatmul.mubr.msk.bf16.gmra.mrb[4].mxu1 %vm276_vm1, %v468_v0 }
 0x1fb   : > { %v760_v1 = vpop.f32.mrb[0].mxu1 }
 0x1fc   : > { %v707_v2 = vpack.c.bf16 %v760_v1, %v760_v1  ;;  %v531_v3 = vpop.f32.mrb[1].mxu1 }
 0x1fd   : > { %v705_v4 = vpack.c.bf16 %v531_v3, %v531_v3  ;;  %v761_v5 = vpop.f32.mrb[2].mxu1 }
 0x1fe   : > { %597 = vst.msk [vmem:[%s252_s21 + $0x8] sm:$0xf] %vm594_vm3, %v707_v2  ;;  %v708_v6 = vpack.c.bf16 %v761_v5, %v761_v5  ;;  %v534_v7 = vpop.f32.mrb[3].mxu1 }
 0x1ff   : > { %595 = vst.msk [vmem:[%s252_s21] sm:$0xf] %vm594_vm3, %v705_v4  ;;  %v706_v8 = vpack.c.bf16 %v534_v7, %v534_v7 }
 0x200   : > { %598 = vst.msk [vmem:[%s252_s21 + $0xc] sm:$0xf] %vm594_vm3, %v708_v6 }
 0x201   : > { %596 = vst.msk [vmem:[%s252_s21 + $0x4] sm:$0xf] %vm594_vm3, %v706_v8 }
 0x203   : > { %v764_v9 = vpop.f32.mrb[4].mxu1 }
 0x204   : > { %v711_v10 = vpack.c.bf16 %v764_v9, %v764_v9  ;;  %v547_v16 = vpop.f32.mrb[5].mxu1 }
 0x205   : > { %v709_v17 = vpack.c.bf16 %v547_v16, %v547_v16  ;;  %v765_v18 = vpop.f32.mrb[6].mxu1 }
 0x206   : > { %601 = vst.msk [vmem:[%s252_s21 + $0x18] sm:$0xf] %vm594_vm3, %v711_v10  ;;  %v712_v19 = vpack.c.bf16 %v765_v18, %v765_v18  ;;  %v550_v21 = vpop.f32.mrb[7].mxu1 }
 0x207   : > { %599 = vst.msk [vmem:[%s252_s21 + $0x10] sm:$0xf] %vm594_vm3, %v709_v17  ;;  %v710_v22 = vpack.c.bf16 %v550_v21, %v550_v21 }
 0x208   : > { %602 = vst.msk [vmem:[%s252_s21 + $0x1c] sm:$0xf] %vm594_vm3, %v712_v19 }
 0x209   : > { %600 = vst.msk [vmem:[%s252_s21 + $0x14] sm:$0xf] %vm594_vm3, %v710_v22 }
 0x20a PF: > { %s15_s18 = sadd.s32 1, %s793_s18  }
 0x20b   : > { %p12_p4 = scmp.ge.s32.totalorder %s15_s18, 4  }
 0x20d   :  { %14 = sbr.rel (!%p12_p4) target bundleno = 1 (0x1), region = 76 }

// kernel: downsample_block.33
= control target key start
LH: loop header
LB: loop body
LE: loop exit
PB: predicated region body
PF: predicated region fallthrough
CT: control target
= control target key end

     0   :  { %s964_s21 = smov 0   ;;  %s1094_s0 = inlined_call_operand.vmem [shape: bf16[2,64,32], index: 0, kind: input, shape index: {}]   ;;  %s1095_s1 = inlined_call_operand.vmem [shape: f32[2,1,32], index: 1, kind: input, shape index: {}]   ;;  %s1096_s2 = inlined_call_operand.vmem [shape: f32[2,1,32], index: 2, kind: input, shape index: {}]   ;;  %s1097_s3 = inlined_call_operand.vmem [shape: f32[32,32], index: 3, kind: input, shape index: {}]   ;;  %s1098_s4 = inlined_call_operand.vmem [shape: bf16[32,32], index: 4, kind: input, shape index: {}]   ;;  %s1099_s5 = inlined_call_operand.vmem [shape: f32[1,32], index: 5, kind: input, shape index: {}]   ;;  %s1100_s6 = inlined_call_operand.vmem [shape: bf16[2,64,32], index: 6, kind: output, shape index: {}]  }
   0x1 LB: > { %s766_s22 = sadd.s32 4294967295, %s924_s21   ;;  %p770_p0 = scmp.ge.s32.totalorder %s924_s21, 1  ;;  %s924_s21 = sphi %s964_s21, %s16_s21  }
   0x2   : > { %p228_p1 = scmp.lt.s32.totalorder %s924_s21, 3 }
   0x4   : > { %p229_p2 = pnand %p770_p0, %p228_p1 }
   0x5   : > { %v291_v0 = vld [vmem:[%s1097_s3] sm:$0xff] (!%p229_p2)  ;;  %v292_v1 = vld [vmem:[%s1097_s3 + $0x8] sm:$0xff] (!%p229_p2)  ;;  %v293_v2 = vld [vmem:[%s1097_s3 + $0x10] sm:$0xff] (!%p229_p2)  ;;  %v926_v3 = vmov (!%p229_p2), 0.0|0.0   ;;  %vm927_vm0 = vmmov (!%p229_p2), 0   ;;  %v928_v6 = vmov (!%p229_p2), 0.0  }
   0x6   : > { %232 = sbr.rel (%p229_p2) target bundleno = 554 (0x22a), region = 44  ;;  %865 = vmatprep.subr.bf16.mxu0 (!%p229_p2), %v926_v3  ;;  %v866_v4 = vpack.c.bf16 (!%p229_p2), %v292_v1, %v291_v0  ;;  %v294_v5 = vld [vmem:[%s1097_s3 + $0x18] sm:$0xff] (!%p229_p2)  ;;  %850 = vmatprep.mubr.msk.f32.mxu0 (!%p229_p2), %vm927_vm0, %v928_v6  ;;  %p264_p3 = scmp.lt.s32.totalorder (!%p229_p2), %s766_s22, 1  ;;  %vm303_vm1 = vcmask (!%p229_p2), 261120   ;;  %vm356_vm2 = vcmask (!%p229_p2), 1040384   ;;  %vm684_vm3 = vcmask (!%p229_p2), 257024  }
   0x7   : > { %v869_v7 = vpack.c.bf16 (!%p229_p2), %v294_v5, %v293_v2 }
   0x8   : > { %867 = vmatpush3.bf16.msra.mxu0 (!%p229_p2), %v866_v4 }
   0x9   : > { %868 = vmatprep.subr.bf16.mxu0 (!%p229_p2), %v926_v3 }
   0xc   : > { %870 = vmatpush3.bf16.msra.mxu0 (!%p229_p2), %v869_v7 }
   0xd   : > { %s1102_s22 = smov (!%p264_p3, %s766_s22), 1 }
   0xe   : > { %s802_s7 = sshll.u32 %s1102_s22, 5  ;;  %s271_s17 = scalar_lea.vmem %s1095_s1, %s1102_s22 }
   0xf   : > { %s268_s10 = scalar_lea.vmem %s1094_s0, %s802_s7  ;;  %s274_s20 = scalar_lea.vmem %s1096_s2, %s1102_s22 }
  0x10   : > { %v813_v8 = vld [vmem:[%s268_s10] sm:$0xff]   ;;  %v828_v9 = vld [vmem:[%s268_s10 + $0x8] sm:$0xff]   ;;  %v829_v10 = vld [vmem:[%s268_s10 + $0x10] sm:$0xff]   ;;  %s279_s27 = scalar_lea.vmem %s1100_s6, %s802_s7 }
  0x11   : > { %v992_v11 = vunpack.c.l.bf16 %v813_v8  ;;  %v994_v12 = vunpack.c.h.bf16 %v813_v8  ;;  %v996_v13 = vunpack.c.l.bf16 %v828_v9  ;;  %v998_v14 = vunpack.c.h.bf16 %v828_v9  ;;  %v830_v16 = vld [vmem:[%s268_s10 + $0x18] sm:$0xff]   ;;  %v882_v9 = vld [vmem:[%s1098_s4] sm:$0xff]  }
  0x12   : > { %v1000_v15 = vunpack.c.l.bf16 %v829_v10  ;;  %v1008_v20 = vunpack.c.h.bf16 %v829_v10  ;;  %v1018_v26 = vunpack.c.l.bf16 %v830_v16  ;;  %v1029_v36 = vunpack.c.h.bf16 %v830_v16  ;;  %v883_v10 = vld [vmem:[%s1098_s4 + $0x8] sm:$0xff]   ;;  %853 = vmatprep.subr.bf16.mxu1 %v882_v9 }
  0x13   : > { %v304_v17 = vsel %vm303_vm1, %v992_v11, 0.0  ;;  %v305_v18 = vsel %vm303_vm1, %v994_v12, 0.0  ;;  %v307_v19 = vsel %vm303_vm1, %v996_v13, 0.0  ;;  %v309_v22 = vsel %vm303_vm1, %v998_v14, 0.0  ;;  %854 = vmatpush3.bf16.msra.mxu1 %v882_v9 }
  0x14   : > { %v306_v21 = vadd.f32 %v305_v18, %v304_v17  ;;  %v326_v23 = vmul.f32 %v992_v11, %v992_v11  ;;  %v327_v24 = vmul.f32 %v994_v12, %v994_v12  ;;  %v328_v25 = vmul.f32 %v996_v13, %v996_v13  ;;  %855 = vmatprep.subr.bf16.mxu1 %v883_v10 }
  0x15   : > { %v329_v28 = vmul.f32 %v998_v14, %v998_v14  ;;  %v311_v29 = vsel %vm303_vm1, %v1000_v15, 0.0  ;;  %v330_v30 = vmul.f32 %v1000_v15, %v1000_v15  ;;  %v313_v37 = vsel %vm303_vm1, %v1008_v20, 0.0 }
  0x16   : > { %v308_v27 = vadd.f32 %v307_v19, %v306_v21  ;;  %v334_v31 = vsel %vm303_vm1, %v326_v23, 0.0  ;;  %v335_v32 = vsel %vm303_vm1, %v327_v24, 0.0  ;;  %v337_v35 = vsel %vm303_vm1, %v328_v25, 0.0 }
  0x17   : > { %v336_v34 = vadd.f32 %v335_v32, %v334_v31  ;;  %v331_v38 = vmul.f32 %v1008_v20, %v1008_v20  ;;  %v339_v39 = vsel %vm303_vm1, %v329_v28, 0.0  ;;  %v315_v42 = vsel %vm303_vm1, %v1018_v26, 0.0  ;;  %856 = vmatpush3.bf16.msra.mxu1 %v883_v10  ;;  %v289_v28 = vld [vmem:[%s271_s17] sm:$0x1] }
  0x18   : > { %v310_v33 = vadd.f32 %v309_v22, %v308_v27  ;;  %v332_v43 = vmul.f32 %v1018_v26, %v1018_v26  ;;  %v341_v44 = vsel %vm303_vm1, %v330_v30, 0.0  ;;  %v317_v47 = vsel %vm303_vm1, %v1029_v36, 0.0 }
  0x19   : > { %v338_v41 = vadd.f32 %v337_v35, %v336_v34  ;;  %v333_v48 = vmul.f32 %v1029_v36, %v1029_v36  ;;  %v343_v49 = vsel %vm303_vm1, %v331_v38, 0.0  ;;  %v439_v22 = vlaneseq }
  0x1a   : > { %v312_v40 = vadd.f32 %v311_v29, %v310_v33  ;;  %v345_v52 = vsel %vm303_vm1, %v332_v43, 0.0  ;;  %v463_v30 = vadd.f32 1.0, %v289_v28 }
  0x1b   : > { %v340_v46 = vadd.f32 %v339_v39, %v338_v41  ;;  %v347_v55 = vsel %vm303_vm1, %v333_v48, 0.0  ;;  %v440_v25 = vshrl.u32 %v439_v22, 7 }
  0x1c   : > { %v314_v45 = vadd.f32 %v313_v37, %v312_v40 }
  0x1d   : > { %v342_v51 = vadd.f32 %v341_v44, %v340_v46  ;;  %v441_v27 = vsub.s32 0, %v440_v25  ;;  %v453_v31 = vsub.s32 1, %v440_v25 }
  0x1e   : > { %v316_v50 = vadd.f32 %v315_v42, %v314_v45 }
  0x1f   : > { %v344_v54 = vadd.f32 %v343_v49, %v342_v51  ;;  %v468_v33 = vrot.slane %v463_v30, %v441_v27 }
  0x20   : > { %v318_v53 = vadd.f32 %v317_v47, %v316_v50  ;;  %v776_v47 = vld [vmem:[%s274_s20] ss:$0 sm:$0xff] }
  0x21   : > { %v346_v57 = vadd.f32 %v345_v52, %v344_v54 }
  0x22   : > { %v319_v56 = vrot.slane %v318_v53, 4 }
  0x23   : > { %v348_v59 = vadd.f32 %v347_v55, %v346_v57 }
  0x24   : > { %v320_v58 = vadd.f32 %v319_v56, %v318_v53 }
  0x25   : > { %v349_v61 = vrot.slane %v348_v59, 4 }
  0x26   : > { %v321_v60 = vrot.slane %v320_v58, 2 }
  0x27   : > { %v350_v63 = vadd.f32 %v349_v61, %v348_v59 }
  0x28   : > { %v322_v62 = vadd.f32 %v321_v60, %v320_v58 }
  0x29   : > { %v351_v1 = vrot.slane %v350_v63, 2 }
  0x2a   : > { %v323_v0 = vrot.slane %v322_v62, 1 }
  0x2b   : > { %v352_v3 = vadd.f32 %v351_v1, %v350_v63 }
  0x2c   : > { %v324_v2 = vadd.f32 %v323_v0, %v322_v62 }
  0x2d   : > { %v353_v4 = vrot.slane %v352_v3, 1 }
  0x2e   : > { %v325_v5 = vmul.f32 0.015625, %v324_v2 }
  0x2f   : > { %v354_v6 = vadd.f32 %v353_v4, %v352_v3 }
  0x31   : > { %v355_v7 = vmul.f32 0.015625, %v354_v6 }
  0x33   : > { %v357_v8 = vsel %vm356_vm2, %v325_v5, %v355_v7 }
  0x34   : > { %851 = vmatmul.mubr.msk.f32.vlgmr.msra.gmra.mrb[0].mxu0 %vm303_vm1, %v357_v8 }
 0x107   : > { %v427_v16 = vpop.f32.mrb[0].mxu0 }
 0x108   : > { %v431_v17 = vmul.f32 %v427_v16, %v427_v16  ;;  %v852_v18 = vpop.f32.mrb[1].mxu0  ;;  %v442_v29 = vrot.slane %v427_v16, %v441_v27 }
 0x10a   : > { %v433_v19 = vrot.slane %v431_v17, 7  ;;  %v443_v34 = vsub.f32 %v992_v11, %v442_v29  ;;  %v444_v37 = vsub.f32 %v994_v12, %v442_v29  ;;  %v445_v38 = vsub.f32 %v996_v13, %v442_v29 }
 0x10b   : > { %v446_v39 = vsub.f32 %v998_v14, %v442_v29  ;;  %v447_v40 = vsub.f32 %v1000_v15, %v442_v29  ;;  %v448_v41 = vsub.f32 %v1008_v20, %v442_v29  ;;  %v449_v42 = vsub.f32 %v1018_v26, %v442_v29 }
 0x10c   : > { %v435_v21 = vsub.f32 %v427_v16, %v433_v19  ;;  %v450_v43 = vsub.f32 %v1029_v36, %v442_v29 }
 0x10e   : > { %v436_v23 = vmax.f32 %v435_v21, 0.0 }
 0x110   : > { %v437_v24 = vadd.f32 1e-05, %v436_v23 }
 0x112   : > { %884 = vrsqrt.f32 %v437_v24 }
 0x11c   : > { %v885_v32 = vpop.eup %884 }
 0x11d   : > { %v454_v35 = vrot.slane %v885_v32, %v453_v31 }
 0x11f   : > { %v455_v11 = vmul.f32 %v454_v35, %v443_v34  ;;  %v456_v44 = vmul.f32 %v454_v35, %v444_v37  ;;  %v457_v45 = vmul.f32 %v454_v35, %v445_v38  ;;  %v458_v46 = vmul.f32 %v454_v35, %v446_v39 }
 0x120   : > { %v459_v48 = vmul.f32 %v454_v35, %v447_v40  ;;  %v460_v49 = vmul.f32 %v454_v35, %v448_v41  ;;  %v461_v12 = vmul.f32 %v454_v35, %v449_v42  ;;  %v462_v50 = vmul.f32 %v454_v35, %v450_v43 }
 0x121   : > { %v470_v13 = vmul.f32 %v468_v33, %v455_v11  ;;  %v471_v51 = vmul.f32 %v468_v33, %v456_v44  ;;  %v472_v14 = vmul.f32 %v468_v33, %v457_v45  ;;  %v473_v52 = vmul.f32 %v468_v33, %v458_v46 }
 0x122   : > { %v474_v15 = vmul.f32 %v468_v33, %v459_v48  ;;  %v475_v53 = vmul.f32 %v468_v33, %v460_v49  ;;  %v476_v20 = vmul.f32 %v468_v33, %v461_v12  ;;  %v477_v54 = vmul.f32 %v468_v33, %v462_v50  ;;  %v785_v48 = vld [vmem:[%s1099_s5] ss:$0 sm:$0xff] }
 0x123   : > { %v484_v26 = vadd.f32 %v776_v47, %v470_v13  ;;  %v485_v55 = vadd.f32 %v776_v47, %v471_v51  ;;  %v486_v36 = vadd.f32 %v776_v47, %v472_v14  ;;  %v487_v56 = vadd.f32 %v776_v47, %v473_v52 }
 0x124   : > { %v488_v57 = vadd.f32 %v776_v47, %v474_v15  ;;  %v489_v58 = vadd.f32 %v776_v47, %v475_v53  ;;  %v490_v62 = vadd.f32 %v776_v47, %v476_v20  ;;  %v491_v0 = vadd.f32 %v776_v47, %v477_v54 }
 0x125   : > { %v777_v59 = vmul.f32 -1.442695, %v484_v26  ;;  %v778_v60 = vmul.f32 -1.442695, %v485_v55  ;;  %v779_v61 = vmul.f32 -1.442695, %v486_v36 }
 0x126   : > { %v780_v63 = vmul.f32 -1.442695, %v487_v56  ;;  %v781_v1 = vmul.f32 -1.442695, %v488_v57  ;;  %v782_v2 = vmul.f32 -1.442695, %v489_v58 }
 0x127   : > { %886 = vpow2.f32 %v777_v59  ;;  %v783_v3 = vmul.f32 -1.442695, %v490_v62  ;;  %v784_v4 = vmul.f32 -1.442695, %v491_v0 }
 0x128   : > { %888 = vpow2.f32 %v778_v60 }
 0x129   : > { %890 = vpow2.f32 %v779_v61 }
 0x12a   : > { %892 = vpow2.f32 %v780_v63 }
 0x12b   : > { %894 = vpow2.f32 %v781_v1 }
 0x12c   : > { %896 = vpow2.f32 %v782_v2 }
 0x12d   : > { %898 = vpow2.f32 %v783_v3 }
 0x12e   : > { %900 = vpow2.f32 %v784_v4 }
 0x131   : > { %v887_v5 = vpop.eup %886 }
 0x132   : > { %v889_v6 = vpop.eup %888  ;;  %v516_v7 = vadd.f32 1.0, %v887_v5 }
 0x133   : > { %v891_v8 = vpop.eup %890  ;;  %v517_v9 = vadd.f32 1.0, %v889_v6 }
 0x134   : > { %v893_v10 = vpop.eup %892  ;;  %902 = vrcp.f32 %v516_v7  ;;  %v518_v16 = vadd.f32 1.0, %v891_v8 }
 0x135   : > { %v895_v17 = vpop.eup %894  ;;  %904 = vrcp.f32 %v517_v9  ;;  %v519_v18 = vadd.f32 1.0, %v893_v10 }
 0x136   : > { %v897_v19 = vpop.eup %896  ;;  %906 = vrcp.f32 %v518_v16  ;;  %v520_v21 = vadd.f32 1.0, %v895_v17 }
 0x137   : > { %v899_v22 = vpop.eup %898  ;;  %908 = vrcp.f32 %v519_v18  ;;  %v521_v23 = vadd.f32 1.0, %v897_v19 }
 0x138   : > { %v901_v24 = vpop.eup %900  ;;  %910 = vrcp.f32 %v520_v21  ;;  %v522_v25 = vadd.f32 1.0, %v899_v22 }
 0x139   : > { %912 = vrcp.f32 %v521_v23  ;;  %v523_v27 = vadd.f32 1.0, %v901_v24 }
 0x13a   : > { %914 = vrcp.f32 %v522_v25 }
 0x13b   : > { %916 = vrcp.f32 %v523_v27 }
 0x13e   : > { %v903_v28 = vpop.eup %902 }
 0x13f   : > { %v905_v29 = vpop.eup %904  ;;  %v540_v30 = vmul.f32 %v903_v28, %v484_v26 }
 0x140   : > { %v907_v31 = vpop.eup %906  ;;  %v541_v32 = vmul.f32 %v905_v29, %v485_v55 }
 0x141   : > { %v909_v33 = vpop.eup %908  ;;  %v542_v34 = vmul.f32 %v907_v31, %v486_v36 }
 0x142   : > { %v911_v35 = vpop.eup %910  ;;  %v548_v37 = vpack.c.bf16 %v541_v32, %v540_v30  ;;  %v543_v38 = vmul.f32 %v909_v33, %v487_v56 }
 0x143   : > { %v913_v39 = vpop.eup %912  ;;  %v544_v40 = vmul.f32 %v911_v35, %v488_v57 }
 0x144   : > { %v915_v41 = vpop.eup %914  ;;  %857 = vmatprep.mubr.msk.bf16.mxu1 %vm303_vm1, %v548_v37  ;;  %v549_v42 = vpack.c.bf16 %v543_v38, %v542_v34  ;;  %v545_v43 = vmul.f32 %v913_v39, %v489_v58 }
 0x145   : > { %v917_v11 = vpop.eup %916  ;;  %v546_v45 = vmul.f32 %v915_v41, %v490_v62 }
 0x146   : > { %858 = vmatmul.mubr.msk.bf16.vlgmr.msra.gmra.mrb[0].mxu1 %vm303_vm1, %v549_v42  ;;  %v550_v44 = vpack.c.bf16 %v545_v43, %v544_v40  ;;  %v547_v46 = vmul.f32 %v917_v11, %v491_v0 }
 0x148   : > { %861 = vmatprep.mubr.msk.bf16.mxu1 %vm303_vm1, %v550_v44  ;;  %v551_v47 = vpack.c.bf16 %v547_v46, %v546_v45 }
 0x14e   : > { %862 = vmatmul.mubr.msk.bf16.gmra.mrb[4].mxu1 %vm303_vm1, %v551_v47 }
 0x219   : > { %v859_v49 = vpop.f32.mrb[0].mxu1 }
 0x21a   : > { %v630_v12 = vadd.f32 %v859_v49, %v785_v48  ;;  %v621_v50 = vpop.f32.mrb[1].mxu1 }
 0x21b   : > { %v622_v13 = vadd.f32 %v785_v48, %v621_v50  ;;  %v860_v51 = vpop.f32.mrb[2].mxu1 }
 0x21c   : > { %v806_v14 = vpack.c.bf16 %v630_v12, %v630_v12  ;;  %v633_v52 = vadd.f32 %v860_v51, %v785_v48  ;;  %v624_v15 = vpop.f32.mrb[3].mxu1 }
 0x21d   : > { %v804_v53 = vpack.c.bf16 %v622_v13, %v622_v13  ;;  %v625_v20 = vadd.f32 %v785_v48, %v624_v15 }
 0x21e   : > { %687 = vst.msk [vmem:[%s279_s27 + $0x8] sm:$0xf] %vm684_vm3, %v806_v14  ;;  %v807_v54 = vpack.c.bf16 %v633_v52, %v633_v52 }
 0x21f   : > { %685 = vst.msk [vmem:[%s279_s27] sm:$0xf] %vm684_vm3, %v804_v53  ;;  %v805_v26 = vpack.c.bf16 %v625_v20, %v625_v20 }
 0x220   : > { %688 = vst.msk [vmem:[%s279_s27 + $0xc] sm:$0xf] %vm684_vm3, %v807_v54 }
 0x221   : > { %686 = vst.msk [vmem:[%s279_s27 + $0x4] sm:$0xf] %vm684_vm3, %v805_v26  ;;  %v863_v55 = vpop.f32.mrb[4].mxu1 }
 0x222   : > { %v646_v36 = vadd.f32 %v863_v55, %v785_v48  ;;  %v637_v56 = vpop.f32.mrb[5].mxu1 }
 0x223   : > { %v638_v57 = vadd.f32 %v785_v48, %v637_v56  ;;  %v864_v58 = vpop.f32.mrb[6].mxu1 }
 0x224   : > { %v810_v59 = vpack.c.bf16 %v646_v36, %v646_v36  ;;  %v649_v60 = vadd.f32 %v864_v58, %v785_v48  ;;  %v640_v61 = vpop.f32.mrb[7].mxu1 }
 0x225   : > { %v808_v62 = vpack.c.bf16 %v638_v57, %v638_v57  ;;  %v641_v63 = vadd.f32 %v785_v48, %v640_v61 }
 0x226   : > { %691 = vst.msk [vmem:[%s279_s27 + $0x18] sm:$0xf] %vm684_vm3, %v810_v59  ;;  %v811_v0 = vpack.c.bf16 %v649_v60, %v649_v60 }
 0x227   : > { %689 = vst.msk [vmem:[%s279_s27 + $0x10] sm:$0xf] %vm684_vm3, %v808_v62  ;;  %v809_v1 = vpack.c.bf16 %v641_v63, %v641_v63 }
 0x228   : > { %692 = vst.msk [vmem:[%s279_s27 + $0x1c] sm:$0xf] %vm684_vm3, %v811_v0 }
 0x229   : > { %690 = vst.msk [vmem:[%s279_s27 + $0x14] sm:$0xf] %vm684_vm3, %v809_v1 }
 0x22a PF: > { %s16_s21 = sadd.s32 1, %s924_s21  }
 0x22b   : > { %p13_p4 = scmp.ge.s32.totalorder %s16_s21, 4  }
 0x22d   :  { %15 = sbr.rel (!%p13_p4) target bundleno = 1 (0x1), region = 80 }

// kernel: downsample_block.32
= control target key start
LH: loop header
LB: loop body
LE: loop exit
PB: predicated region body
PF: predicated region fallthrough
CT: control target
= control target key end

     0   :  { %s1149_s21 = smov 0   ;;  %s1308_s0 = inlined_call_operand.vmem [shape: bf16[2,64,32], index: 0, kind: input, shape index: {}]   ;;  %s1309_s1 = inlined_call_operand.vmem [shape: f32[2,1,32], index: 1, kind: input, shape index: {}]   ;;  %s1310_s2 = inlined_call_operand.vmem [shape: f32[2,1,32], index: 2, kind: input, shape index: {}]   ;;  %s1311_s3 = inlined_call_operand.vmem [shape: f32[32,32], index: 3, kind: input, shape index: {}]   ;;  %s1312_s4 = inlined_call_operand.vmem [shape: bf16[32,128], index: 4, kind: input, shape index: {}]   ;;  %s1313_s5 = inlined_call_operand.vmem [shape: bf16[128,32], index: 5, kind: input, shape index: {}]   ;;  %s1314_s6 = inlined_call_operand.vmem [shape: bf16[2,64,32], index: 6, kind: output, shape index: {}]  }
   0x1 LB: > { %s900_s22 = sadd.s32 4294967295, %s1109_s21   ;;  %p904_p0 = scmp.ge.s32.totalorder %s1109_s21, 1  ;;  %s1109_s21 = sphi %s1149_s21, %s16_s21  }
   0x2   : > { %p228_p1 = scmp.lt.s32.totalorder %s1109_s21, 3 }
   0x4   : > { %p229_p2 = pnand %p904_p0, %p228_p1 }
   0x5   : > { %v291_v0 = vld [vmem:[%s1311_s3] sm:$0xff] (!%p229_p2)  ;;  %v292_v1 = vld [vmem:[%s1311_s3 + $0x8] sm:$0xff] (!%p229_p2)  ;;  %v293_v2 = vld [vmem:[%s1311_s3 + $0x10] sm:$0xff] (!%p229_p2)  ;;  %v1111_v3 = vmov (!%p229_p2), 0.0|0.0   ;;  %vm1112_vm0 = vmmov (!%p229_p2), 0   ;;  %v1113_v6 = vmov (!%p229_p2), 0.0  }
   0x6   : > { %232 = sbr.rel (%p229_p2) target bundleno = 770 (0x302), region = 44  ;;  %1042 = vmatprep.subr.bf16.mxu1 (!%p229_p2), %v1111_v3  ;;  %v1043_v4 = vpack.c.bf16 (!%p229_p2), %v292_v1, %v291_v0  ;;  %v294_v5 = vld [vmem:[%s1311_s3 + $0x18] sm:$0xff] (!%p229_p2)  ;;  %1003 = vmatprep.mubr.msk.f32.mxu1 (!%p229_p2), %vm1112_vm0, %v1113_v6  ;;  %p264_p3 = scmp.lt.s32.totalorder (!%p229_p2), %s900_s22, 1  ;;  %vm303_vm1 = vcmask (!%p229_p2), 261120   ;;  %vm356_vm2 = vcmask (!%p229_p2), 1040384   ;;  %vm818_vm3 = vcmask (!%p229_p2), 257024  }
   0x7   : > { %v1046_v7 = vpack.c.bf16 (!%p229_p2), %v294_v5, %v293_v2 }
   0x8   : > { %1044 = vmatpush3.bf16.msra.mxu1 (!%p229_p2), %v1043_v4 }
   0x9   : > { %1045 = vmatprep.subr.bf16.mxu1 (!%p229_p2), %v1111_v3 }
   0xc   : > { %1047 = vmatpush3.bf16.msra.mxu1 (!%p229_p2), %v1046_v7 }
   0xd   : > { %s1316_s22 = smov (!%p264_p3, %s900_s22), 1 }
   0xe   : > { %s943_s7 = sshll.u32 %s1316_s22, 5  ;;  %s271_s17 = scalar_lea.vmem %s1309_s1, %s1316_s22 }
   0xf   : > { %s268_s10 = scalar_lea.vmem %s1308_s0, %s943_s7  ;;  %s274_s20 = scalar_lea.vmem %s1310_s2, %s1316_s22 }
  0x10   : > { %v954_v8 = vld [vmem:[%s268_s10] sm:$0xff]   ;;  %v969_v9 = vld [vmem:[%s268_s10 + $0x8] sm:$0xff]   ;;  %v970_v10 = vld [vmem:[%s268_s10 + $0x10] sm:$0xff]   ;;  %s279_s18 = scalar_lea.vmem %s1314_s6, %s943_s7 }
  0x11   : > { %v1177_v11 = vunpack.c.l.bf16 %v954_v8  ;;  %v1179_v12 = vunpack.c.h.bf16 %v954_v8  ;;  %v1181_v13 = vunpack.c.l.bf16 %v969_v9  ;;  %v1183_v14 = vunpack.c.h.bf16 %v969_v9  ;;  %v971_v16 = vld [vmem:[%s268_s10 + $0x18] sm:$0xff]   ;;  %v1059_v9 = vld [vmem:[%s1312_s4] sm:$0xff]  }
  0x12   : > { %v1185_v15 = vunpack.c.l.bf16 %v970_v10  ;;  %v1193_v20 = vunpack.c.h.bf16 %v970_v10  ;;  %v1203_v26 = vunpack.c.l.bf16 %v971_v16  ;;  %v1214_v36 = vunpack.c.h.bf16 %v971_v16  ;;  %v1060_v10 = vld [vmem:[%s1312_s4 + $0x8] sm:$0xff]   ;;  %1006 = vmatprep.subr.bf16.mxu1 %v1059_v9 }
  0x13   : > { %v304_v17 = vsel %vm303_vm1, %v1177_v11, 0.0  ;;  %v305_v18 = vsel %vm303_vm1, %v1179_v12, 0.0  ;;  %v307_v19 = vsel %vm303_vm1, %v1181_v13, 0.0  ;;  %v309_v22 = vsel %vm303_vm1, %v1183_v14, 0.0 }
  0x14   : > { %v306_v21 = vadd.f32 %v305_v18, %v304_v17  ;;  %v326_v23 = vmul.f32 %v1177_v11, %v1177_v11  ;;  %v327_v24 = vmul.f32 %v1179_v12, %v1179_v12  ;;  %v328_v25 = vmul.f32 %v1181_v13, %v1181_v13 }
  0x15   : > { %v329_v28 = vmul.f32 %v1183_v14, %v1183_v14  ;;  %v311_v29 = vsel %vm303_vm1, %v1185_v15, 0.0  ;;  %v330_v30 = vmul.f32 %v1185_v15, %v1185_v15  ;;  %v313_v37 = vsel %vm303_vm1, %v1193_v20, 0.0 }
  0x16   : > { %v308_v27 = vadd.f32 %v307_v19, %v306_v21  ;;  %v334_v31 = vsel %vm303_vm1, %v326_v23, 0.0  ;;  %v335_v32 = vsel %vm303_vm1, %v327_v24, 0.0  ;;  %v337_v35 = vsel %vm303_vm1, %v328_v25, 0.0 }
  0x17   : > { %v336_v34 = vadd.f32 %v335_v32, %v334_v31  ;;  %v331_v38 = vmul.f32 %v1193_v20, %v1193_v20  ;;  %v339_v39 = vsel %vm303_vm1, %v329_v28, 0.0  ;;  %v315_v42 = vsel %vm303_vm1, %v1203_v26, 0.0  ;;  %v289_v28 = vld [vmem:[%s271_s17] sm:$0x1] }
  0x18   : > { %v310_v33 = vadd.f32 %v309_v22, %v308_v27  ;;  %v332_v43 = vmul.f32 %v1203_v26, %v1203_v26  ;;  %v341_v44 = vsel %vm303_vm1, %v330_v30, 0.0  ;;  %v317_v47 = vsel %vm303_vm1, %v1214_v36, 0.0 }
  0x19   : > { %v338_v41 = vadd.f32 %v337_v35, %v336_v34  ;;  %v333_v48 = vmul.f32 %v1214_v36, %v1214_v36  ;;  %v343_v49 = vsel %vm303_vm1, %v331_v38, 0.0  ;;  %v439_v22 = vlaneseq }
  0x1a   : > { %v312_v40 = vadd.f32 %v311_v29, %v310_v33  ;;  %v345_v52 = vsel %vm303_vm1, %v332_v43, 0.0  ;;  %v463_v30 = vadd.f32 1.0, %v289_v28 }
  0x1b   : > { %v340_v46 = vadd.f32 %v339_v39, %v338_v41  ;;  %v347_v55 = vsel %vm303_vm1, %v333_v48, 0.0  ;;  %v440_v25 = vshrl.u32 %v439_v22, 7  ;;  %v1068_v22 = vld [vmem:[%s1313_s5 + $0x38] sm:$0xff]  }
  0x1c   : > { %v314_v45 = vadd.f32 %v313_v37, %v312_v40 }
  0x1d   : > { %v342_v51 = vadd.f32 %v341_v44, %v340_v46  ;;  %v441_v27 = vsub.s32 0, %v440_v25  ;;  %v453_v31 = vsub.s32 1, %v440_v25  ;;  %v910_v46 = vld [vmem:[%s274_s20] ss:$0 sm:$0xff] }
  0x1e   : > { %v316_v50 = vadd.f32 %v315_v42, %v314_v45 }
  0x1f   : > { %v344_v54 = vadd.f32 %v343_v49, %v342_v51  ;;  %v468_v33 = vrot.slane %v463_v30, %v441_v27 }
  0x20   : > { %v318_v53 = vadd.f32 %v317_v47, %v316_v50 }
  0x21   : > { %v346_v57 = vadd.f32 %v345_v52, %v344_v54 }
  0x22   : > { %v319_v56 = vrot.slane %v318_v53, 4 }
  0x23   : > { %v348_v59 = vadd.f32 %v347_v55, %v346_v57 }
  0x24   : > { %v320_v58 = vadd.f32 %v319_v56, %v318_v53 }
  0x25   : > { %v349_v61 = vrot.slane %v348_v59, 4 }
  0x26   : > { %v321_v60 = vrot.slane %v320_v58, 2 }
  0x27   : > { %v350_v63 = vadd.f32 %v349_v61, %v348_v59 }
  0x28   : > { %v322_v62 = vadd.f32 %v321_v60, %v320_v58 }
  0x29   : > { %v351_v1 = vrot.slane %v350_v63, 2 }
  0x2a   : > { %v323_v0 = vrot.slane %v322_v62, 1 }
  0x2b   : > { %v352_v3 = vadd.f32 %v351_v1, %v350_v63 }
  0x2c   : > { %v324_v2 = vadd.f32 %v323_v0, %v322_v62 }
  0x2d   : > { %v353_v4 = vrot.slane %v352_v3, 1 }
  0x2e   : > { %v325_v5 = vmul.f32 0.015625, %v324_v2 }
  0x2f   : > { %v354_v6 = vadd.f32 %v353_v4, %v352_v3 }
  0x31   : > { %v355_v7 = vmul.f32 0.015625, %v354_v6 }
  0x33   : > { %v357_v8 = vsel %vm356_vm2, %v325_v5, %v355_v7 }
  0x34   : > { %1004 = vmatmul.mubr.msk.f32.vlgmr.msra.gmra.mrb[0].mxu1 %vm303_vm1, %v357_v8 }
  0x35   : > { %1007 = vmatpush3.bf16.msra.mxu1 %v1059_v9  ;;  %v1061_v9 = vld [vmem:[%s1313_s5] sm:$0xff]  }
  0x36   : > { %1008 = vmatprep.subr.bf16.mxu1 %v1060_v10  ;;  %1018 = vmatprep.subr.bf16.mxu0 %v1061_v9 }
  0x37   : > { %1019 = vmatpush3.bf16.msra.mxu0 %v1061_v9 }
  0x39   : > { %1009 = vmatpush3.bf16.msra.mxu1 %v1060_v10  ;;  %v1062_v10 = vld [vmem:[%s1313_s5 + $0x8] sm:$0xff]  }
  0x3a   : > { %1020 = vmatprep.subr.bf16.mxu0 %v1062_v10 }
  0x3b   : > { %1021 = vmatpush3.bf16.msra.mxu0 %v1062_v10 }
 0x107   : > { %v427_v16 = vpop.f32.mrb[0].mxu1 }
 0x108   : > { %v431_v17 = vmul.f32 %v427_v16, %v427_v16  ;;  %v1005_v18 = vpop.f32.mrb[1].mxu1  ;;  %v442_v29 = vrot.slane %v427_v16, %v441_v27 }
 0x109   : > { %v1065_v18 = vld [vmem:[%s1313_s5 + $0x20] sm:$0xff]  }
 0x10a   : > { %v433_v19 = vrot.slane %v431_v17, 7  ;;  %v443_v34 = vsub.f32 %v1177_v11, %v442_v29  ;;  %v444_v37 = vsub.f32 %v1179_v12, %v442_v29  ;;  %v445_v38 = vsub.f32 %v1181_v13, %v442_v29  ;;  %v1064_v17 = vld [vmem:[%s1313_s5 + $0x18] sm:$0xff]  }
 0x10b   : > { %v446_v39 = vsub.f32 %v1183_v14, %v442_v29  ;;  %v447_v40 = vsub.f32 %v1185_v15, %v442_v29  ;;  %v448_v41 = vsub.f32 %v1193_v20, %v442_v29  ;;  %v449_v49 = vsub.f32 %v1203_v26, %v442_v29 }
 0x10c   : > { %v435_v21 = vsub.f32 %v427_v16, %v433_v19  ;;  %v450_v50 = vsub.f32 %v1214_v36, %v442_v29  ;;  %v1063_v16 = vld [vmem:[%s1313_s5 + $0x10] sm:$0xff]   ;;  %v1066_v19 = vld [vmem:[%s1313_s5 + $0x28] sm:$0xff]  }
 0x10d   : > { %1022 = vmatprep.subr.bf16.mxu0 %v1063_v16 }
 0x10e   : > { %v436_v23 = vmax.f32 %v435_v21, 0.0  ;;  %1023 = vmatpush3.bf16.msra.mxu0 %v1063_v16  ;;  %v1067_v21 = vld [vmem:[%s1313_s5 + $0x30] sm:$0xff]  }
 0x10f   : > { %1024 = vmatprep.subr.bf16.mxu0 %v1064_v17 }
 0x110   : > { %v437_v24 = vadd.f32 1e-05, %v436_v23 }
 0x112   : > { %1069 = vrsqrt.f32 %v437_v24  ;;  %1025 = vmatpush3.bf16.msra.mxu0 %v1064_v17 }
 0x113   : > { %1026 = vmatprep.subr.bf16.mxu0 %v1065_v18 }
 0x116   : > { %1027 = vmatpush3.bf16.msra.mxu0 %v1065_v18 }
 0x117   : > { %1028 = vmatprep.subr.bf16.mxu0 %v1066_v19 }
 0x11a   : > { %1029 = vmatpush3.bf16.msra.mxu0 %v1066_v19 }
 0x11b   : > { %1030 = vmatprep.subr.bf16.mxu0 %v1067_v21 }
 0x11c   : > { %v1070_v32 = vpop.eup %1069 }
 0x11d   : > { %v454_v35 = vrot.slane %v1070_v32, %v453_v31 }
 0x11e   : > { %1031 = vmatpush3.bf16.msra.mxu0 %v1067_v21 }
 0x11f   : > { %v455_v42 = vmul.f32 %v454_v35, %v443_v34  ;;  %v456_v43 = vmul.f32 %v454_v35, %v444_v37  ;;  %v457_v44 = vmul.f32 %v454_v35, %v445_v38  ;;  %v458_v45 = vmul.f32 %v454_v35, %v446_v39  ;;  %1032 = vmatprep.subr.bf16.mxu0 %v1068_v22 }
 0x120   : > { %v459_v47 = vmul.f32 %v454_v35, %v447_v40  ;;  %v460_v48 = vmul.f32 %v454_v35, %v448_v41  ;;  %v461_v57 = vmul.f32 %v454_v35, %v449_v49  ;;  %v462_v58 = vmul.f32 %v454_v35, %v450_v50 }
 0x121   : > { %v470_v51 = vmul.f32 %v468_v33, %v455_v42  ;;  %v471_v52 = vmul.f32 %v468_v33, %v456_v43  ;;  %v472_v53 = vmul.f32 %v468_v33, %v457_v44  ;;  %v473_v54 = vmul.f32 %v468_v33, %v458_v45 }
 0x122   : > { %v474_v55 = vmul.f32 %v468_v33, %v459_v47  ;;  %v475_v56 = vmul.f32 %v468_v33, %v460_v48  ;;  %v476_v3 = vmul.f32 %v468_v33, %v461_v57  ;;  %v477_v4 = vmul.f32 %v468_v33, %v462_v58  ;;  %1033 = vmatpush3.bf16.msra.mxu0 %v1068_v22 }
 0x123   : > { %v484_v59 = vadd.f32 %v910_v46, %v470_v51  ;;  %v485_v60 = vadd.f32 %v910_v46, %v471_v52  ;;  %v486_v61 = vadd.f32 %v910_v46, %v472_v53  ;;  %v487_v62 = vadd.f32 %v910_v46, %v473_v54 }
 0x124   : > { %v488_v63 = vadd.f32 %v910_v46, %v474_v55  ;;  %v489_v0 = vadd.f32 %v910_v46, %v475_v56  ;;  %v490_v6 = vadd.f32 %v910_v46, %v476_v3  ;;  %v491_v7 = vadd.f32 %v910_v46, %v477_v4 }
 0x125   : > { %v492_v1 = vpack.c.bf16 %v485_v60, %v484_v59  ;;  %v493_v2 = vpack.c.bf16 %v487_v62, %v486_v61 }
 0x126   : > { %v494_v5 = vpack.c.bf16 %v489_v0, %v488_v63  ;;  %v495_v8 = vpack.c.bf16 %v491_v7, %v490_v6 }
 0x127   : > { %1010 = vmatprep.mubr.msk.bf16.mxu1 %vm303_vm1, %v492_v1 }
 0x128   : > { %1011 = vmatmul.mubr.msk.bf16.vlgmr.msra.gmra.mrb[4].mxu1 %vm303_vm1, %v493_v2 }
 0x129   : > { %1014 = vmatprep.mubr.msk.bf16.mxu1 %vm303_vm1, %v494_v5 }
 0x130   : > { %1015 = vmatmul.mubr.msk.bf16.gmra.mrb[8].mxu1 %vm303_vm1, %v495_v8 }
 0x1fb   : > { %v1012_v23 = vpop.f32.mrb[4].mxu1 }
 0x1fc   : > { %v919_v24 = vmul.f32 -1.442695, %v1012_v23  ;;  %v558_v25 = vpop.f32.mrb[5].mxu1 }
 0x1fd   : > { %v917_v27 = vmul.f32 -1.442695, %v558_v25  ;;  %v1013_v28 = vpop.f32.mrb[6].mxu1 }
 0x1fe   : > { %1071 = vpow2.f32 %v919_v24  ;;  %v920_v29 = vmul.f32 -1.442695, %v1013_v28  ;;  %v561_v30 = vpop.f32.mrb[7].mxu1 }
 0x1ff   : > { %1073 = vpow2.f32 %v917_v27  ;;  %v918_v31 = vmul.f32 -1.442695, %v561_v30 }
 0x200   : > { %1075 = vpow2.f32 %v920_v29 }
 0x201   : > { %1077 = vpow2.f32 %v918_v31 }
 0x203   : > { %v1016_v32 = vpop.f32.mrb[8].mxu1 }
 0x204   : > { %v923_v33 = vmul.f32 -1.442695, %v1016_v32  ;;  %v574_v34 = vpop.f32.mrb[9].mxu1 }
 0x205   : > { %v921_v35 = vmul.f32 -1.442695, %v574_v34  ;;  %v1017_v37 = vpop.f32.mrb[10].mxu1 }
 0x206   : > { %1079 = vpow2.f32 %v923_v33  ;;  %v924_v38 = vmul.f32 -1.442695, %v1017_v37  ;;  %v577_v39 = vpop.f32.mrb[11].mxu1 }
 0x207   : > { %1081 = vpow2.f32 %v921_v35  ;;  %v922_v40 = vmul.f32 -1.442695, %v577_v39 }
 0x208   : > { %v1072_v41 = vpop.eup %1071  ;;  %1083 = vpow2.f32 %v924_v38 }
 0x209   : > { %v1074_v42 = vpop.eup %1073  ;;  %v615_v43 = vadd.f32 1.0, %v1072_v41  ;;  %1085 = vpow2.f32 %v922_v40 }
 0x20a   : > { %v1076_v44 = vpop.eup %1075  ;;  %v613_v45 = vadd.f32 1.0, %v1074_v42 }
 0x20b   : > { %v1078_v46 = vpop.eup %1077  ;;  %1087 = vrcp.f32 %v615_v43  ;;  %v616_v47 = vadd.f32 1.0, %v1076_v44 }
 0x20c   : > { %1089 = vrcp.f32 %v613_v45  ;;  %v614_v48 = vadd.f32 1.0, %v1078_v46 }
 0x20d   : > { %1091 = vrcp.f32 %v616_v47 }
 0x20e   : > { %1093 = vrcp.f32 %v614_v48 }
 0x210   : > { %v1080_v49 = vpop.eup %1079 }
 0x211   : > { %v1082_v50 = vpop.eup %1081  ;;  %v619_v51 = vadd.f32 1.0, %v1080_v49 }
 0x212   : > { %v1084_v52 = vpop.eup %1083  ;;  %v617_v53 = vadd.f32 1.0, %v1082_v50 }
 0x213   : > { %v1086_v54 = vpop.eup %1085  ;;  %1095 = vrcp.f32 %v619_v51  ;;  %v620_v55 = vadd.f32 1.0, %v1084_v52 }
 0x214   : > { %1097 = vrcp.f32 %v617_v53  ;;  %v618_v56 = vadd.f32 1.0, %v1086_v54 }
 0x215   : > { %v1088_v57 = vpop.eup %1087  ;;  %1099 = vrcp.f32 %v620_v55 }
 0x216   : > { %v1090_v58 = vpop.eup %1089  ;;  %1101 = vrcp.f32 %v618_v56  ;;  %v639_v61 = vmul.f32 %v1088_v57, %v1012_v23 }
 0x217   : > { %v1092_v59 = vpop.eup %1091  ;;  %v637_v63 = vmul.f32 %v1090_v58, %v558_v25 }
 0x218   : > { %v1094_v60 = vpop.eup %1093  ;;  %v640_v62 = vmul.f32 %v1092_v59, %v1013_v28 }
 0x219   : > { %v638_v0 = vmul.f32 %v1094_v60, %v561_v30 }
 0x21a   : > { %v646_v1 = vpack.c.bf16 %v640_v62, %v639_v61 }
 0x21b   : > { %v645_v2 = vpack.c.bf16 %v638_v0, %v637_v63 }
 0x21d   : > { %v1096_v3 = vpop.eup %1095  ;;  %1034 = vmatprep.mubr.bf16.mxu0 %v645_v2 }
 0x21e   : > { %v1098_v4 = vpop.eup %1097  ;;  %1035 = vmatmul.mubr.bf16.vlgmr.msra.gmra.mrb[0].mxu0 %v646_v1  ;;  %v643_v7 = vmul.f32 %v1096_v3, %v1016_v32 }
 0x21f   : > { %v1100_v5 = vpop.eup %1099  ;;  %v641_v9 = vmul.f32 %v1098_v4, %v574_v34 }
 0x220   : > { %v1102_v6 = vpop.eup %1101  ;;  %v644_v8 = vmul.f32 %v1100_v5, %v1017_v37 }
 0x221   : > { %v642_v10 = vmul.f32 %v1102_v6, %v577_v39 }
 0x222   : > { %v648_v16 = vpack.c.bf16 %v644_v8, %v643_v7 }
 0x223   : > { %v647_v17 = vpack.c.bf16 %v642_v10, %v641_v9 }
 0x225   : > { %1038 = vmatprep.mubr.bf16.mxu0 %v647_v17 }
 0x226   : > { %1039 = vmatmul.mubr.bf16.gmra.mrb[4].mxu0 %v648_v16 }
 0x2f1   : > { %v1036_v18 = vpop.f32.mrb[0].mxu0 }
 0x2f2   : > { %v780_v19 = vadd.f32 %v1036_v18, %v1181_v13  ;;  %v747_v21 = vpop.f32.mrb[1].mxu0 }
 0x2f3   : > { %v778_v22 = vadd.f32 %v1177_v11, %v747_v21  ;;  %v1037_v23 = vpop.f32.mrb[2].mxu0 }
 0x2f4   : > { %v947_v24 = vpack.c.bf16 %v780_v19, %v780_v19  ;;  %v781_v25 = vadd.f32 %v1037_v23, %v1183_v14  ;;  %v750_v27 = vpop.f32.mrb[3].mxu0 }
 0x2f5   : > { %v945_v28 = vpack.c.bf16 %v778_v22, %v778_v22  ;;  %v779_v29 = vadd.f32 %v1179_v12, %v750_v27 }
 0x2f6   : > { %821 = vst.msk [vmem:[%s279_s18 + $0x8] sm:$0xf] %vm818_vm3, %v947_v24  ;;  %v948_v13 = vpack.c.bf16 %v781_v25, %v781_v25 }
 0x2f7   : > { %819 = vst.msk [vmem:[%s279_s18] sm:$0xf] %vm818_vm3, %v945_v28  ;;  %v946_v30 = vpack.c.bf16 %v779_v29, %v779_v29 }
 0x2f8   : > { %822 = vst.msk [vmem:[%s279_s18 + $0xc] sm:$0xf] %vm818_vm3, %v948_v13 }
 0x2f9   : > { %820 = vst.msk [vmem:[%s279_s18 + $0x4] sm:$0xf] %vm818_vm3, %v946_v30  ;;  %v1040_v31 = vpop.f32.mrb[4].mxu0 }
 0x2fa   : > { %v784_v11 = vadd.f32 %v1040_v31, %v1203_v26  ;;  %v763_v32 = vpop.f32.mrb[5].mxu0 }
 0x2fb   : > { %v782_v14 = vadd.f32 %v1185_v15, %v763_v32  ;;  %v1041_v33 = vpop.f32.mrb[6].mxu0 }
 0x2fc   : > { %v951_v34 = vpack.c.bf16 %v784_v11, %v784_v11  ;;  %v785_v12 = vadd.f32 %v1041_v33, %v1214_v36  ;;  %v766_v35 = vpop.f32.mrb[7].mxu0 }
 0x2fd   : > { %v949_v37 = vpack.c.bf16 %v782_v14, %v782_v14  ;;  %v783_v38 = vadd.f32 %v1193_v20, %v766_v35 }
 0x2fe   : > { %825 = vst.msk [vmem:[%s279_s18 + $0x18] sm:$0xf] %vm818_vm3, %v951_v34  ;;  %v952_v39 = vpack.c.bf16 %v785_v12, %v785_v12 }
 0x2ff   : > { %823 = vst.msk [vmem:[%s279_s18 + $0x10] sm:$0xf] %vm818_vm3, %v949_v37  ;;  %v950_v40 = vpack.c.bf16 %v783_v38, %v783_v38 }
 0x300   : > { %826 = vst.msk [vmem:[%s279_s18 + $0x1c] sm:$0xf] %vm818_vm3, %v952_v39 }
 0x301   : > { %824 = vst.msk [vmem:[%s279_s18 + $0x14] sm:$0xf] %vm818_vm3, %v950_v40 }
 0x302 PF: > { %s16_s21 = sadd.s32 1, %s1109_s21  }
 0x303   : > { %p13_p4 = scmp.ge.s32.totalorder %s16_s21, 4  }
 0x305   :  { %15 = sbr.rel (!%p13_p4) target bundleno = 1 (0x1), region = 80 }

// kernel: downsample_block.34
= control target key start
LH: loop header
LB: loop body
LE: loop exit
PB: predicated region body
PF: predicated region fallthrough
CT: control target
= control target key end

     0   :  { %s768_s15 = smov 0   ;;  %s893_s0 = inlined_call_operand.vmem [shape: bf16[2,64,32], index: 0, kind: input, shape index: {}]   ;;  %s894_s1 = inlined_call_operand.vmem [shape: f32[2,1,32], index: 1, kind: input, shape index: {}]   ;;  %s895_s2 = inlined_call_operand.vmem [shape: f32[2,1,32], index: 2, kind: input, shape index: {}]   ;;  %s896_s3 = inlined_call_operand.vmem [shape: f32[32,32], index: 3, kind: input, shape index: {}]   ;;  %s897_s4 = inlined_call_operand.vmem [shape: bf16[2,64,32], index: 4, kind: output, shape index: {}]  }
   0x1 LB: > { %s607_s16 = sadd.s32 4294967295, %s738_s15   ;;  %p611_p0 = scmp.ge.s32.totalorder %s738_s15, 1  ;;  %s738_s15 = sphi %s768_s15, %s14_s15  }
   0x2   : > { %p178_p1 = scmp.lt.s32.totalorder %s738_s15, 3 }
   0x4   : > { %p179_p2 = pnand %p611_p0, %p178_p1 }
   0x5   : > { %v236_v0 = vld [vmem:[%s896_s3] sm:$0xff] (!%p179_p2)  ;;  %v237_v1 = vld [vmem:[%s896_s3 + $0x8] sm:$0xff] (!%p179_p2)  ;;  %v238_v2 = vld [vmem:[%s896_s3 + $0x10] sm:$0xff] (!%p179_p2)  ;;  %v740_v3 = vmov (!%p179_p2), 0.0|0.0   ;;  %vm741_vm0 = vmmov (!%p179_p2), 0   ;;  %v742_v6 = vmov (!%p179_p2), 0.0  }
   0x6   : > { %182 = sbr.rel (%p179_p2) target bundleno = 331 (0x14b), region = 36  ;;  %681 = vmatprep.subr.bf16.mxu0 (!%p179_p2), %v740_v3  ;;  %v682_v4 = vpack.c.bf16 (!%p179_p2), %v237_v1, %v236_v0  ;;  %v239_v5 = vld [vmem:[%s896_s3 + $0x18] sm:$0xff] (!%p179_p2)  ;;  %678 = vmatprep.mubr.msk.f32.mxu0 (!%p179_p2), %vm741_vm0, %v742_v6  ;;  %p210_p3 = scmp.lt.s32.totalorder (!%p179_p2), %s607_s16, 1  ;;  %vm248_vm1 = vcmask (!%p179_p2), 261120   ;;  %vm301_vm2 = vcmask (!%p179_p2), 1040384   ;;  %vm525_vm3 = vcmask (!%p179_p2), 257024  }
   0x7   : > { %v685_v7 = vpack.c.bf16 (!%p179_p2), %v239_v5, %v238_v2 }
   0x8   : > { %683 = vmatpush3.bf16.msra.mxu0 (!%p179_p2), %v682_v4 }
   0x9   : > { %684 = vmatprep.subr.bf16.mxu0 (!%p179_p2), %v740_v3 }
   0xc   : > { %686 = vmatpush3.bf16.msra.mxu0 (!%p179_p2), %v685_v7 }
   0xd   : > { %s899_s16 = smov (!%p210_p3, %s607_s16), 1 }
   0xe   : > { %s636_s25 = sshll.u32 %s899_s16, 5  ;;  %s217_s5 = scalar_lea.vmem %s894_s1, %s899_s16 }
   0xf   : > { %s214_s28 = scalar_lea.vmem %s893_s0, %s636_s25  ;;  %s220_s8 = scalar_lea.vmem %s895_s2, %s899_s16 }
  0x10   : > { %v647_v8 = vld [vmem:[%s214_s28] sm:$0xff]   ;;  %v662_v9 = vld [vmem:[%s214_s28 + $0x8] sm:$0xff]   ;;  %v663_v10 = vld [vmem:[%s214_s28 + $0x10] sm:$0xff]   ;;  %s225_s11 = scalar_lea.vmem %s897_s4, %s636_s25 }
  0x11   : > { %v796_v11 = vunpack.c.l.bf16 %v647_v8  ;;  %v798_v12 = vunpack.c.h.bf16 %v647_v8  ;;  %v800_v13 = vunpack.c.l.bf16 %v662_v9  ;;  %v802_v14 = vunpack.c.h.bf16 %v662_v9  ;;  %v664_v16 = vld [vmem:[%s214_s28 + $0x18] sm:$0xff]  }
  0x12   : > { %v804_v15 = vunpack.c.l.bf16 %v663_v10  ;;  %v812_v20 = vunpack.c.h.bf16 %v663_v10  ;;  %v822_v26 = vunpack.c.l.bf16 %v664_v16  ;;  %v833_v36 = vunpack.c.h.bf16 %v664_v16 }
  0x13   : > { %v249_v17 = vsel %vm248_vm1, %v796_v11, 0.0  ;;  %v250_v18 = vsel %vm248_vm1, %v798_v12, 0.0  ;;  %v252_v19 = vsel %vm248_vm1, %v800_v13, 0.0  ;;  %v254_v22 = vsel %vm248_vm1, %v802_v14, 0.0 }
  0x14   : > { %v251_v21 = vadd.f32 %v250_v18, %v249_v17  ;;  %v271_v23 = vmul.f32 %v796_v11, %v796_v11  ;;  %v272_v24 = vmul.f32 %v798_v12, %v798_v12  ;;  %v273_v25 = vmul.f32 %v800_v13, %v800_v13 }
  0x15   : > { %v274_v28 = vmul.f32 %v802_v14, %v802_v14  ;;  %v256_v29 = vsel %vm248_vm1, %v804_v15, 0.0  ;;  %v275_v30 = vmul.f32 %v804_v15, %v804_v15  ;;  %v258_v37 = vsel %vm248_vm1, %v812_v20, 0.0 }
  0x16   : > { %v253_v27 = vadd.f32 %v252_v19, %v251_v21  ;;  %v279_v31 = vsel %vm248_vm1, %v271_v23, 0.0  ;;  %v280_v32 = vsel %vm248_vm1, %v272_v24, 0.0  ;;  %v282_v35 = vsel %vm248_vm1, %v273_v25, 0.0  ;;  %v234_v25 = vld [vmem:[%s217_s5] sm:$0x1] }
  0x17   : > { %v281_v34 = vadd.f32 %v280_v32, %v279_v31  ;;  %v276_v38 = vmul.f32 %v812_v20, %v812_v20  ;;  %v284_v39 = vsel %vm248_vm1, %v274_v28, 0.0  ;;  %v260_v42 = vsel %vm248_vm1, %v822_v26, 0.0 }
  0x18   : > { %v255_v33 = vadd.f32 %v254_v22, %v253_v27  ;;  %v277_v43 = vmul.f32 %v822_v26, %v822_v26  ;;  %v286_v44 = vsel %vm248_vm1, %v275_v30, 0.0  ;;  %v262_v47 = vsel %vm248_vm1, %v833_v36, 0.0 }
  0x19   : > { %v283_v41 = vadd.f32 %v282_v35, %v281_v34  ;;  %v278_v48 = vmul.f32 %v833_v36, %v833_v36  ;;  %v288_v49 = vsel %vm248_vm1, %v276_v38, 0.0  ;;  %v384_v19 = vlaneseq }
  0x1a   : > { %v257_v40 = vadd.f32 %v256_v29, %v255_v33  ;;  %v290_v52 = vsel %vm248_vm1, %v277_v43, 0.0  ;;  %v408_v28 = vadd.f32 1.0, %v234_v25 }
  0x1b   : > { %v285_v46 = vadd.f32 %v284_v39, %v283_v41  ;;  %v292_v55 = vsel %vm248_vm1, %v278_v48, 0.0  ;;  %v385_v23 = vshrl.u32 %v384_v19, 7 }
  0x1c   : > { %v259_v45 = vadd.f32 %v258_v37, %v257_v40 }
  0x1d   : > { %v287_v51 = vadd.f32 %v286_v44, %v285_v46  ;;  %v386_v24 = vsub.s32 0, %v385_v23  ;;  %v398_v29 = vsub.s32 1, %v385_v23 }
  0x1e   : > { %v261_v50 = vadd.f32 %v260_v42, %v259_v45  ;;  %v617_v45 = vld [vmem:[%s220_s8] ss:$0 sm:$0xff] }
  0x1f   : > { %v289_v54 = vadd.f32 %v288_v49, %v287_v51  ;;  %v413_v32 = vrot.slane %v408_v28, %v386_v24 }
  0x20   : > { %v263_v53 = vadd.f32 %v262_v47, %v261_v50 }
  0x21   : > { %v291_v57 = vadd.f32 %v290_v52, %v289_v54 }
  0x22   : > { %v264_v56 = vrot.slane %v263_v53, 4 }
  0x23   : > { %v293_v59 = vadd.f32 %v292_v55, %v291_v57 }
  0x24   : > { %v265_v58 = vadd.f32 %v264_v56, %v263_v53 }
  0x25   : > { %v294_v61 = vrot.slane %v293_v59, 4 }
  0x26   : > { %v266_v60 = vrot.slane %v265_v58, 2 }
  0x27   : > { %v295_v63 = vadd.f32 %v294_v61, %v293_v59 }
  0x28   : > { %v267_v62 = vadd.f32 %v266_v60, %v265_v58 }
  0x29   : > { %v296_v1 = vrot.slane %v295_v63, 2 }
  0x2a   : > { %v268_v0 = vrot.slane %v267_v62, 1 }
  0x2b   : > { %v297_v3 = vadd.f32 %v296_v1, %v295_v63 }
  0x2c   : > { %v269_v2 = vadd.f32 %v268_v0, %v267_v62 }
  0x2d   : > { %v298_v4 = vrot.slane %v297_v3, 1 }
  0x2e   : > { %v270_v5 = vmul.f32 0.015625, %v269_v2 }
  0x2f   : > { %v299_v6 = vadd.f32 %v298_v4, %v297_v3 }
  0x31   : > { %v300_v7 = vmul.f32 0.015625, %v299_v6 }
  0x33   : > { %v302_v8 = vsel %vm301_vm2, %v270_v5, %v300_v7 }
  0x34   : > { %679 = vmatmul.mubr.msk.f32.vlgmr.msra.gmra.mrb[0].mxu0 %vm248_vm1, %v302_v8 }
 0x107   : > { %v372_v9 = vpop.f32.mrb[0].mxu0 }
 0x108   : > { %v376_v10 = vmul.f32 %v372_v9, %v372_v9  ;;  %v680_v16 = vpop.f32.mrb[1].mxu0  ;;  %v387_v27 = vrot.slane %v372_v9, %v386_v24 }
 0x10a   : > { %v378_v17 = vrot.slane %v376_v10, 7  ;;  %v388_v31 = vsub.f32 %v796_v11, %v387_v27  ;;  %v389_v33 = vsub.f32 %v798_v12, %v387_v27  ;;  %v390_v34 = vsub.f32 %v800_v13, %v387_v27 }
 0x10b   : > { %v391_v35 = vsub.f32 %v802_v14, %v387_v27  ;;  %v392_v38 = vsub.f32 %v804_v15, %v387_v27  ;;  %v393_v39 = vsub.f32 %v812_v20, %v387_v27  ;;  %v394_v40 = vsub.f32 %v822_v26, %v387_v27 }
 0x10c   : > { %v380_v18 = vsub.f32 %v372_v9, %v378_v17  ;;  %v395_v11 = vsub.f32 %v833_v36, %v387_v27 }
 0x10e   : > { %v381_v21 = vmax.f32 %v380_v18, 0.0 }
 0x110   : > { %v382_v22 = vadd.f32 1e-05, %v381_v21 }
 0x112   : > { %698 = vrsqrt.f32 %v382_v22 }
 0x11c   : > { %v699_v30 = vpop.eup %698 }
 0x11d   : > { %v399_v37 = vrot.slane %v699_v30, %v398_v29 }
 0x11f   : > { %v400_v41 = vmul.f32 %v399_v37, %v388_v31  ;;  %v401_v42 = vmul.f32 %v399_v37, %v389_v33  ;;  %v402_v43 = vmul.f32 %v399_v37, %v390_v34  ;;  %v403_v44 = vmul.f32 %v399_v37, %v391_v35 }
 0x120   : > { %v404_v46 = vmul.f32 %v399_v37, %v392_v38  ;;  %v405_v12 = vmul.f32 %v399_v37, %v393_v39  ;;  %v406_v47 = vmul.f32 %v399_v37, %v394_v40  ;;  %v407_v13 = vmul.f32 %v399_v37, %v395_v11 }
 0x121   : > { %v415_v48 = vmul.f32 %v413_v32, %v400_v41  ;;  %v416_v14 = vmul.f32 %v413_v32, %v401_v42  ;;  %v417_v49 = vmul.f32 %v413_v32, %v402_v43  ;;  %v418_v50 = vmul.f32 %v413_v32, %v403_v44 }
 0x122   : > { %v419_v15 = vmul.f32 %v413_v32, %v404_v46  ;;  %v420_v51 = vmul.f32 %v413_v32, %v405_v12  ;;  %v421_v20 = vmul.f32 %v413_v32, %v406_v47  ;;  %v422_v52 = vmul.f32 %v413_v32, %v407_v13 }
 0x123   : > { %v429_v26 = vadd.f32 %v617_v45, %v415_v48  ;;  %v430_v53 = vadd.f32 %v617_v45, %v416_v14  ;;  %v431_v36 = vadd.f32 %v617_v45, %v417_v49  ;;  %v432_v54 = vadd.f32 %v617_v45, %v418_v50 }
 0x124   : > { %v433_v55 = vadd.f32 %v617_v45, %v419_v15  ;;  %v434_v56 = vadd.f32 %v617_v45, %v420_v51  ;;  %v869_v57 = vadd.f32 %v617_v45, %v421_v20  ;;  %v871_v58 = vadd.f32 %v617_v45, %v422_v52 }
 0x125   : > { %v618_v59 = vmul.f32 -1.442695, %v429_v26  ;;  %v619_v60 = vmul.f32 -1.442695, %v430_v53  ;;  %v620_v61 = vmul.f32 -1.442695, %v431_v36 }
 0x126   : > { %v621_v62 = vmul.f32 -1.442695, %v432_v54  ;;  %v622_v63 = vmul.f32 -1.442695, %v433_v55  ;;  %v623_v0 = vmul.f32 -1.442695, %v434_v56 }
 0x127   : > { %700 = vpow2.f32 %v618_v59  ;;  %v624_v1 = vmul.f32 -1.442695, %v869_v57  ;;  %v625_v2 = vmul.f32 -1.442695, %v871_v58 }
 0x128   : > { %702 = vpow2.f32 %v619_v60 }
 0x129   : > { %704 = vpow2.f32 %v620_v61 }
 0x12a   : > { %706 = vpow2.f32 %v621_v62 }
 0x12b   : > { %708 = vpow2.f32 %v622_v63 }
 0x12c   : > { %710 = vpow2.f32 %v623_v0 }
 0x12d   : > { %712 = vpow2.f32 %v624_v1 }
 0x12e   : > { %714 = vpow2.f32 %v625_v2 }
 0x131   : > { %v701_v3 = vpop.eup %700 }
 0x132   : > { %v703_v4 = vpop.eup %702  ;;  %v461_v5 = vadd.f32 1.0, %v701_v3 }
 0x133   : > { %v705_v6 = vpop.eup %704  ;;  %v462_v7 = vadd.f32 1.0, %v703_v4 }
 0x134   : > { %v707_v8 = vpop.eup %706  ;;  %v463_v9 = vadd.f32 1.0, %v705_v6  ;;  %716 = vrcp.f32 %v461_v5 }
 0x135   : > { %v709_v10 = vpop.eup %708  ;;  %v464_v16 = vadd.f32 1.0, %v707_v8  ;;  %718 = vrcp.f32 %v462_v7 }
 0x136   : > { %v711_v17 = vpop.eup %710  ;;  %v465_v18 = vadd.f32 1.0, %v709_v10  ;;  %720 = vrcp.f32 %v463_v9 }
 0x137   : > { %v713_v19 = vpop.eup %712  ;;  %v466_v21 = vadd.f32 1.0, %v711_v17  ;;  %722 = vrcp.f32 %v464_v16 }
 0x138   : > { %v715_v22 = vpop.eup %714  ;;  %v467_v23 = vadd.f32 1.0, %v713_v19  ;;  %724 = vrcp.f32 %v465_v18 }
 0x139   : > { %v468_v24 = vadd.f32 1.0, %v715_v22  ;;  %726 = vrcp.f32 %v466_v21 }
 0x13a   : > { %728 = vrcp.f32 %v467_v23 }
 0x13b   : > { %730 = vrcp.f32 %v468_v24 }
 0x13e   : > { %v717_v25 = vpop.eup %716 }
 0x13f   : > { %v719_v27 = vpop.eup %718  ;;  %v485_v28 = vmul.f32 %v717_v25, %v429_v26 }
 0x140   : > { %v721_v29 = vpop.eup %720  ;;  %v486_v30 = vmul.f32 %v719_v27, %v430_v53 }
 0x141   : > { %v723_v31 = vpop.eup %722  ;;  %v487_v32 = vmul.f32 %v721_v29, %v431_v36  ;;  %v638_v33 = vpack.c.bf16 %v485_v28, %v485_v28 }
 0x142   : > { %v725_v34 = vpop.eup %724  ;;  %v488_v35 = vmul.f32 %v723_v31, %v432_v54  ;;  %v639_v37 = vpack.c.bf16 %v486_v30, %v486_v30 }
 0x143   : > { %v727_v38 = vpop.eup %726  ;;  %v489_v39 = vmul.f32 %v725_v34, %v433_v55  ;;  %v640_v40 = vpack.c.bf16 %v487_v32, %v487_v32  ;;  %526 = vst.msk [vmem:[%s225_s11] sm:$0xf] %vm525_vm3, %v638_v33 }
 0x144   : > { %v729_v11 = vpop.eup %728  ;;  %v490_v41 = vmul.f32 %v727_v38, %v434_v56  ;;  %v641_v42 = vpack.c.bf16 %v488_v35, %v488_v35  ;;  %527 = vst.msk [vmem:[%s225_s11 + $0x4] sm:$0xf] %vm525_vm3, %v639_v37 }
 0x145   : > { %v731_v43 = vpop.eup %730  ;;  %v491_v44 = vmul.f32 %v729_v11, %v869_v57  ;;  %v642_v45 = vpack.c.bf16 %v489_v39, %v489_v39  ;;  %528 = vst.msk [vmem:[%s225_s11 + $0x8] sm:$0xf] %vm525_vm3, %v640_v40 }
 0x146   : > { %v492_v46 = vmul.f32 %v731_v43, %v871_v58  ;;  %v643_v12 = vpack.c.bf16 %v490_v41, %v490_v41  ;;  %529 = vst.msk [vmem:[%s225_s11 + $0xc] sm:$0xf] %vm525_vm3, %v641_v42 }
 0x147   : > { %v644_v47 = vpack.c.bf16 %v491_v44, %v491_v44  ;;  %530 = vst.msk [vmem:[%s225_s11 + $0x10] sm:$0xf] %vm525_vm3, %v642_v45 }
 0x148   : > { %v645_v13 = vpack.c.bf16 %v492_v46, %v492_v46  ;;  %531 = vst.msk [vmem:[%s225_s11 + $0x14] sm:$0xf] %vm525_vm3, %v643_v12 }
 0x149   : > { %532 = vst.msk [vmem:[%s225_s11 + $0x18] sm:$0xf] %vm525_vm3, %v644_v47 }
 0x14a   : > { %533 = vst.msk [vmem:[%s225_s11 + $0x1c] sm:$0xf] %vm525_vm3, %v645_v13 }
 0x14b PF: > { %s14_s15 = sadd.s32 1, %s738_s15  }
 0x14c   : > { %p11_p4 = scmp.ge.s32.totalorder %s14_s15, 4  }
 0x14e   :  { %13 = sbr.rel (!%p11_p4) target bundleno = 1 (0x1), region = 72 }

// kernel: downsample_block.38
= control target key start
LH: loop header
LB: loop body
LE: loop exit
PB: predicated region body
PF: predicated region fallthrough
CT: control target
= control target key end

     0   :  { %s964_s21 = smov 0   ;;  %s1094_s0 = inlined_call_operand.vmem [shape: bf16[2,64,32], index: 0, kind: input, shape index: {}]   ;;  %s1095_s1 = inlined_call_operand.vmem [shape: f32[2,1,32], index: 1, kind: input, shape index: {}]   ;;  %s1096_s2 = inlined_call_operand.vmem [shape: f32[2,1,32], index: 2, kind: input, shape index: {}]   ;;  %s1097_s3 = inlined_call_operand.vmem [shape: f32[32,32], index: 3, kind: input, shape index: {}]   ;;  %s1098_s4 = inlined_call_operand.vmem [shape: bf16[32,64], index: 4, kind: input, shape index: {}]   ;;  %s1099_s5 = inlined_call_operand.vmem [shape: f32[1,64], index: 5, kind: input, shape index: {}]   ;;  %s1100_s6 = inlined_call_operand.vmem [shape: bf16[2,64,64], index: 6, kind: output, shape index: {}]  }
   0x1 LB: > { %s766_s22 = sadd.s32 4294967295, %s924_s21   ;;  %p770_p0 = scmp.ge.s32.totalorder %s924_s21, 1  ;;  %s924_s21 = sphi %s964_s21, %s16_s21  }
   0x2   : > { %p228_p1 = scmp.lt.s32.totalorder %s924_s21, 3 }
   0x4   : > { %p229_p2 = pnand %p770_p0, %p228_p1 }
   0x5   : > { %v291_v0 = vld [vmem:[%s1097_s3] sm:$0xff] (!%p229_p2)  ;;  %v292_v1 = vld [vmem:[%s1097_s3 + $0x8] sm:$0xff] (!%p229_p2)  ;;  %v293_v2 = vld [vmem:[%s1097_s3 + $0x10] sm:$0xff] (!%p229_p2)  ;;  %v926_v3 = vmov (!%p229_p2), 0.0|0.0   ;;  %vm927_vm0 = vmmov (!%p229_p2), 0   ;;  %v928_v6 = vmov (!%p229_p2), 0.0  }
   0x6   : > { %232 = sbr.rel (%p229_p2) target bundleno = 554 (0x22a), region = 44  ;;  %865 = vmatprep.subr.bf16.mxu0 (!%p229_p2), %v926_v3  ;;  %v866_v4 = vpack.c.bf16 (!%p229_p2), %v292_v1, %v291_v0  ;;  %v294_v5 = vld [vmem:[%s1097_s3 + $0x18] sm:$0xff] (!%p229_p2)  ;;  %850 = vmatprep.mubr.msk.f32.mxu0 (!%p229_p2), %vm927_vm0, %v928_v6  ;;  %p264_p3 = scmp.lt.s32.totalorder (!%p229_p2), %s766_s22, 1  ;;  %vm303_vm1 = vcmask (!%p229_p2), 261120   ;;  %vm356_vm2 = vcmask (!%p229_p2), 1040384   ;;  %vm684_vm3 = vcmask (!%p229_p2), 519168  }
   0x7   : > { %v869_v7 = vpack.c.bf16 (!%p229_p2), %v294_v5, %v293_v2 }
   0x8   : > { %867 = vmatpush3.bf16.msra.mxu0 (!%p229_p2), %v866_v4 }
   0x9   : > { %868 = vmatprep.subr.bf16.mxu0 (!%p229_p2), %v926_v3 }
   0xc   : > { %870 = vmatpush3.bf16.msra.mxu0 (!%p229_p2), %v869_v7 }
   0xd   : > { %s1102_s22 = smov (!%p264_p3, %s766_s22), 1 }
   0xe   : > { %s802_s7 = sshll.u32 %s1102_s22, 5  ;;  %s271_s17 = scalar_lea.vmem %s1095_s1, %s1102_s22 }
   0xf   : > { %s268_s10 = scalar_lea.vmem %s1094_s0, %s802_s7  ;;  %s274_s20 = scalar_lea.vmem %s1096_s2, %s1102_s22 }
  0x10   : > { %v813_v8 = vld [vmem:[%s268_s10] sm:$0xff]   ;;  %v828_v9 = vld [vmem:[%s268_s10 + $0x8] sm:$0xff]   ;;  %v829_v10 = vld [vmem:[%s268_s10 + $0x10] sm:$0xff]   ;;  %s279_s27 = scalar_lea.vmem %s1100_s6, %s802_s7 }
  0x11   : > { %v992_v11 = vunpack.c.l.bf16 %v813_v8  ;;  %v994_v12 = vunpack.c.h.bf16 %v813_v8  ;;  %v996_v13 = vunpack.c.l.bf16 %v828_v9  ;;  %v998_v14 = vunpack.c.h.bf16 %v828_v9  ;;  %v830_v16 = vld [vmem:[%s268_s10 + $0x18] sm:$0xff]   ;;  %v882_v9 = vld [vmem:[%s1098_s4] sm:$0xff]  }
  0x12   : > { %v1000_v15 = vunpack.c.l.bf16 %v829_v10  ;;  %v1008_v20 = vunpack.c.h.bf16 %v829_v10  ;;  %v1018_v26 = vunpack.c.l.bf16 %v830_v16  ;;  %v1029_v36 = vunpack.c.h.bf16 %v830_v16  ;;  %v883_v10 = vld [vmem:[%s1098_s4 + $0x8] sm:$0xff]   ;;  %853 = vmatprep.subr.bf16.mxu1 %v882_v9 }
  0x13   : > { %v304_v17 = vsel %vm303_vm1, %v992_v11, 0.0  ;;  %v305_v18 = vsel %vm303_vm1, %v994_v12, 0.0  ;;  %v307_v19 = vsel %vm303_vm1, %v996_v13, 0.0  ;;  %v309_v22 = vsel %vm303_vm1, %v998_v14, 0.0  ;;  %854 = vmatpush3.bf16.msra.mxu1 %v882_v9 }
  0x14   : > { %v306_v21 = vadd.f32 %v305_v18, %v304_v17  ;;  %v326_v23 = vmul.f32 %v992_v11, %v992_v11  ;;  %v327_v24 = vmul.f32 %v994_v12, %v994_v12  ;;  %v328_v25 = vmul.f32 %v996_v13, %v996_v13  ;;  %855 = vmatprep.subr.bf16.mxu1 %v883_v10 }
  0x15   : > { %v329_v28 = vmul.f32 %v998_v14, %v998_v14  ;;  %v311_v29 = vsel %vm303_vm1, %v1000_v15, 0.0  ;;  %v330_v30 = vmul.f32 %v1000_v15, %v1000_v15  ;;  %v313_v37 = vsel %vm303_vm1, %v1008_v20, 0.0 }
  0x16   : > { %v308_v27 = vadd.f32 %v307_v19, %v306_v21  ;;  %v334_v31 = vsel %vm303_vm1, %v326_v23, 0.0  ;;  %v335_v32 = vsel %vm303_vm1, %v327_v24, 0.0  ;;  %v337_v35 = vsel %vm303_vm1, %v328_v25, 0.0 }
  0x17   : > { %v336_v34 = vadd.f32 %v335_v32, %v334_v31  ;;  %v331_v38 = vmul.f32 %v1008_v20, %v1008_v20  ;;  %v339_v39 = vsel %vm303_vm1, %v329_v28, 0.0  ;;  %v315_v42 = vsel %vm303_vm1, %v1018_v26, 0.0  ;;  %856 = vmatpush3.bf16.msra.mxu1 %v883_v10  ;;  %v289_v28 = vld [vmem:[%s271_s17] sm:$0x1] }
  0x18   : > { %v310_v33 = vadd.f32 %v309_v22, %v308_v27  ;;  %v332_v43 = vmul.f32 %v1018_v26, %v1018_v26  ;;  %v341_v44 = vsel %vm303_vm1, %v330_v30, 0.0  ;;  %v317_v47 = vsel %vm303_vm1, %v1029_v36, 0.0 }
  0x19   : > { %v338_v41 = vadd.f32 %v337_v35, %v336_v34  ;;  %v333_v48 = vmul.f32 %v1029_v36, %v1029_v36  ;;  %v343_v49 = vsel %vm303_vm1, %v331_v38, 0.0  ;;  %v439_v22 = vlaneseq }
  0x1a   : > { %v312_v40 = vadd.f32 %v311_v29, %v310_v33  ;;  %v345_v52 = vsel %vm303_vm1, %v332_v43, 0.0  ;;  %v463_v30 = vadd.f32 1.0, %v289_v28 }
  0x1b   : > { %v340_v46 = vadd.f32 %v339_v39, %v338_v41  ;;  %v347_v55 = vsel %vm303_vm1, %v333_v48, 0.0  ;;  %v440_v25 = vshrl.u32 %v439_v22, 7 }
  0x1c   : > { %v314_v45 = vadd.f32 %v313_v37, %v312_v40 }
  0x1d   : > { %v342_v51 = vadd.f32 %v341_v44, %v340_v46  ;;  %v441_v27 = vsub.s32 0, %v440_v25  ;;  %v453_v31 = vsub.s32 1, %v440_v25 }
  0x1e   : > { %v316_v50 = vadd.f32 %v315_v42, %v314_v45 }
  0x1f   : > { %v344_v54 = vadd.f32 %v343_v49, %v342_v51  ;;  %v468_v33 = vrot.slane %v463_v30, %v441_v27 }
  0x20   : > { %v318_v53 = vadd.f32 %v317_v47, %v316_v50  ;;  %v776_v47 = vld [vmem:[%s274_s20] ss:$0 sm:$0xff] }
  0x21   : > { %v346_v57 = vadd.f32 %v345_v52, %v344_v54 }
  0x22   : > { %v319_v56 = vrot.slane %v318_v53, 4 }
  0x23   : > { %v348_v59 = vadd.f32 %v347_v55, %v346_v57 }
  0x24   : > { %v320_v58 = vadd.f32 %v319_v56, %v318_v53 }
  0x25   : > { %v349_v61 = vrot.slane %v348_v59, 4 }
  0x26   : > { %v321_v60 = vrot.slane %v320_v58, 2 }
  0x27   : > { %v350_v63 = vadd.f32 %v349_v61, %v348_v59 }
  0x28   : > { %v322_v62 = vadd.f32 %v321_v60, %v320_v58 }
  0x29   : > { %v351_v1 = vrot.slane %v350_v63, 2 }
  0x2a   : > { %v323_v0 = vrot.slane %v322_v62, 1 }
  0x2b   : > { %v352_v3 = vadd.f32 %v351_v1, %v350_v63 }
  0x2c   : > { %v324_v2 = vadd.f32 %v323_v0, %v322_v62 }
  0x2d   : > { %v353_v4 = vrot.slane %v352_v3, 1 }
  0x2e   : > { %v325_v5 = vmul.f32 0.015625, %v324_v2 }
  0x2f   : > { %v354_v6 = vadd.f32 %v353_v4, %v352_v3 }
  0x31   : > { %v355_v7 = vmul.f32 0.015625, %v354_v6 }
  0x33   : > { %v357_v8 = vsel %vm356_vm2, %v325_v5, %v355_v7 }
  0x34   : > { %851 = vmatmul.mubr.msk.f32.vlgmr.msra.gmra.mrb[0].mxu0 %vm303_vm1, %v357_v8 }
 0x107   : > { %v427_v16 = vpop.f32.mrb[0].mxu0 }
 0x108   : > { %v431_v17 = vmul.f32 %v427_v16, %v427_v16  ;;  %v852_v18 = vpop.f32.mrb[1].mxu0  ;;  %v442_v29 = vrot.slane %v427_v16, %v441_v27 }
 0x10a   : > { %v433_v19 = vrot.slane %v431_v17, 7  ;;  %v443_v34 = vsub.f32 %v992_v11, %v442_v29  ;;  %v444_v37 = vsub.f32 %v994_v12, %v442_v29  ;;  %v445_v38 = vsub.f32 %v996_v13, %v442_v29 }
 0x10b   : > { %v446_v39 = vsub.f32 %v998_v14, %v442_v29  ;;  %v447_v40 = vsub.f32 %v1000_v15, %v442_v29  ;;  %v448_v41 = vsub.f32 %v1008_v20, %v442_v29  ;;  %v449_v42 = vsub.f32 %v1018_v26, %v442_v29 }
 0x10c   : > { %v435_v21 = vsub.f32 %v427_v16, %v433_v19  ;;  %v450_v43 = vsub.f32 %v1029_v36, %v442_v29 }
 0x10e   : > { %v436_v23 = vmax.f32 %v435_v21, 0.0 }
 0x110   : > { %v437_v24 = vadd.f32 1e-05, %v436_v23 }
 0x112   : > { %884 = vrsqrt.f32 %v437_v24 }
 0x11c   : > { %v885_v32 = vpop.eup %884 }
 0x11d   : > { %v454_v35 = vrot.slane %v885_v32, %v453_v31 }
 0x11f   : > { %v455_v11 = vmul.f32 %v454_v35, %v443_v34  ;;  %v456_v44 = vmul.f32 %v454_v35, %v444_v37  ;;  %v457_v45 = vmul.f32 %v454_v35, %v445_v38  ;;  %v458_v46 = vmul.f32 %v454_v35, %v446_v39 }
 0x120   : > { %v459_v48 = vmul.f32 %v454_v35, %v447_v40  ;;  %v460_v49 = vmul.f32 %v454_v35, %v448_v41  ;;  %v461_v12 = vmul.f32 %v454_v35, %v449_v42  ;;  %v462_v50 = vmul.f32 %v454_v35, %v450_v43 }
 0x121   : > { %v470_v13 = vmul.f32 %v468_v33, %v455_v11  ;;  %v471_v51 = vmul.f32 %v468_v33, %v456_v44  ;;  %v472_v14 = vmul.f32 %v468_v33, %v457_v45  ;;  %v473_v52 = vmul.f32 %v468_v33, %v458_v46 }
 0x122   : > { %v474_v15 = vmul.f32 %v468_v33, %v459_v48  ;;  %v475_v53 = vmul.f32 %v468_v33, %v460_v49  ;;  %v476_v20 = vmul.f32 %v468_v33, %v461_v12  ;;  %v477_v54 = vmul.f32 %v468_v33, %v462_v50  ;;  %v785_v48 = vld [vmem:[%s1099_s5] ss:$0 sm:$0xff] }
 0x123   : > { %v484_v26 = vadd.f32 %v776_v47, %v470_v13  ;;  %v485_v55 = vadd.f32 %v776_v47, %v471_v51  ;;  %v486_v36 = vadd.f32 %v776_v47, %v472_v14  ;;  %v487_v56 = vadd.f32 %v776_v47, %v473_v52 }
 0x124   : > { %v488_v57 = vadd.f32 %v776_v47, %v474_v15  ;;  %v489_v58 = vadd.f32 %v776_v47, %v475_v53  ;;  %v490_v62 = vadd.f32 %v776_v47, %v476_v20  ;;  %v491_v0 = vadd.f32 %v776_v47, %v477_v54 }
 0x125   : > { %v777_v59 = vmul.f32 -1.442695, %v484_v26  ;;  %v778_v60 = vmul.f32 -1.442695, %v485_v55  ;;  %v779_v61 = vmul.f32 -1.442695, %v486_v36 }
 0x126   : > { %v780_v63 = vmul.f32 -1.442695, %v487_v56  ;;  %v781_v1 = vmul.f32 -1.442695, %v488_v57  ;;  %v782_v2 = vmul.f32 -1.442695, %v489_v58 }
 0x127   : > { %886 = vpow2.f32 %v777_v59  ;;  %v783_v3 = vmul.f32 -1.442695, %v490_v62  ;;  %v784_v4 = vmul.f32 -1.442695, %v491_v0 }
 0x128   : > { %888 = vpow2.f32 %v778_v60 }
 0x129   : > { %890 = vpow2.f32 %v779_v61 }
 0x12a   : > { %892 = vpow2.f32 %v780_v63 }
 0x12b   : > { %894 = vpow2.f32 %v781_v1 }
 0x12c   : > { %896 = vpow2.f32 %v782_v2 }
 0x12d   : > { %898 = vpow2.f32 %v783_v3 }
 0x12e   : > { %900 = vpow2.f32 %v784_v4 }
 0x131   : > { %v887_v5 = vpop.eup %886 }
 0x132   : > { %v889_v6 = vpop.eup %888  ;;  %v516_v7 = vadd.f32 1.0, %v887_v5 }
 0x133   : > { %v891_v8 = vpop.eup %890  ;;  %v517_v9 = vadd.f32 1.0, %v889_v6 }
 0x134   : > { %v893_v10 = vpop.eup %892  ;;  %902 = vrcp.f32 %v516_v7  ;;  %v518_v16 = vadd.f32 1.0, %v891_v8 }
 0x135   : > { %v895_v17 = vpop.eup %894  ;;  %904 = vrcp.f32 %v517_v9  ;;  %v519_v18 = vadd.f32 1.0, %v893_v10 }
 0x136   : > { %v897_v19 = vpop.eup %896  ;;  %906 = vrcp.f32 %v518_v16  ;;  %v520_v21 = vadd.f32 1.0, %v895_v17 }
 0x137   : > { %v899_v22 = vpop.eup %898  ;;  %908 = vrcp.f32 %v519_v18  ;;  %v521_v23 = vadd.f32 1.0, %v897_v19 }
 0x138   : > { %v901_v24 = vpop.eup %900  ;;  %910 = vrcp.f32 %v520_v21  ;;  %v522_v25 = vadd.f32 1.0, %v899_v22 }
 0x139   : > { %912 = vrcp.f32 %v521_v23  ;;  %v523_v27 = vadd.f32 1.0, %v901_v24 }
 0x13a   : > { %914 = vrcp.f32 %v522_v25 }
 0x13b   : > { %916 = vrcp.f32 %v523_v27 }
 0x13e   : > { %v903_v28 = vpop.eup %902 }
 0x13f   : > { %v905_v29 = vpop.eup %904  ;;  %v540_v30 = vmul.f32 %v903_v28, %v484_v26 }
 0x140   : > { %v907_v31 = vpop.eup %906  ;;  %v541_v32 = vmul.f32 %v905_v29, %v485_v55 }
 0x141   : > { %v909_v33 = vpop.eup %908  ;;  %v542_v34 = vmul.f32 %v907_v31, %v486_v36 }
 0x142   : > { %v911_v35 = vpop.eup %910  ;;  %v548_v37 = vpack.c.bf16 %v541_v32, %v540_v30  ;;  %v543_v38 = vmul.f32 %v909_v33, %v487_v56 }
 0x143   : > { %v913_v39 = vpop.eup %912  ;;  %v544_v40 = vmul.f32 %v911_v35, %v488_v57 }
 0x144   : > { %v915_v41 = vpop.eup %914  ;;  %857 = vmatprep.mubr.msk.bf16.mxu1 %vm303_vm1, %v548_v37  ;;  %v549_v42 = vpack.c.bf16 %v543_v38, %v542_v34  ;;  %v545_v43 = vmul.f32 %v913_v39, %v489_v58 }
 0x145   : > { %v917_v11 = vpop.eup %916  ;;  %v546_v45 = vmul.f32 %v915_v41, %v490_v62 }
 0x146   : > { %858 = vmatmul.mubr.msk.bf16.vlgmr.msra.gmra.mrb[0].mxu1 %vm303_vm1, %v549_v42  ;;  %v550_v44 = vpack.c.bf16 %v545_v43, %v544_v40  ;;  %v547_v46 = vmul.f32 %v917_v11, %v491_v0 }
 0x148   : > { %861 = vmatprep.mubr.msk.bf16.mxu1 %vm303_vm1, %v550_v44  ;;  %v551_v47 = vpack.c.bf16 %v547_v46, %v546_v45 }
 0x14e   : > { %862 = vmatmul.mubr.msk.bf16.gmra.mrb[4].mxu1 %vm303_vm1, %v551_v47 }
 0x219   : > { %v859_v49 = vpop.f32.mrb[0].mxu1 }
 0x21a   : > { %v630_v12 = vadd.f32 %v859_v49, %v785_v48  ;;  %v621_v50 = vpop.f32.mrb[1].mxu1 }
 0x21b   : > { %v622_v13 = vadd.f32 %v785_v48, %v621_v50  ;;  %v860_v51 = vpop.f32.mrb[2].mxu1 }
 0x21c   : > { %v806_v14 = vpack.c.bf16 %v630_v12, %v630_v12  ;;  %v633_v52 = vadd.f32 %v860_v51, %v785_v48  ;;  %v624_v15 = vpop.f32.mrb[3].mxu1 }
 0x21d   : > { %v804_v53 = vpack.c.bf16 %v622_v13, %v622_v13  ;;  %v625_v20 = vadd.f32 %v785_v48, %v624_v15 }
 0x21e   : > { %687 = vst.msk [vmem:[%s279_s27 + $0x8] sm:$0xf] %vm684_vm3, %v806_v14  ;;  %v807_v54 = vpack.c.bf16 %v633_v52, %v633_v52 }
 0x21f   : > { %685 = vst.msk [vmem:[%s279_s27] sm:$0xf] %vm684_vm3, %v804_v53  ;;  %v805_v26 = vpack.c.bf16 %v625_v20, %v625_v20 }
 0x220   : > { %688 = vst.msk [vmem:[%s279_s27 + $0xc] sm:$0xf] %vm684_vm3, %v807_v54 }
 0x221   : > { %686 = vst.msk [vmem:[%s279_s27 + $0x4] sm:$0xf] %vm684_vm3, %v805_v26  ;;  %v863_v55 = vpop.f32.mrb[4].mxu1 }
 0x222   : > { %v646_v36 = vadd.f32 %v863_v55, %v785_v48  ;;  %v637_v56 = vpop.f32.mrb[5].mxu1 }
 0x223   : > { %v638_v57 = vadd.f32 %v785_v48, %v637_v56  ;;  %v864_v58 = vpop.f32.mrb[6].mxu1 }
 0x224   : > { %v810_v59 = vpack.c.bf16 %v646_v36, %v646_v36  ;;  %v649_v60 = vadd.f32 %v864_v58, %v785_v48  ;;  %v640_v61 = vpop.f32.mrb[7].mxu1 }
 0x225   : > { %v808_v62 = vpack.c.bf16 %v638_v57, %v638_v57  ;;  %v641_v63 = vadd.f32 %v785_v48, %v640_v61 }
 0x226   : > { %691 = vst.msk [vmem:[%s279_s27 + $0x18] sm:$0xf] %vm684_vm3, %v810_v59  ;;  %v811_v0 = vpack.c.bf16 %v649_v60, %v649_v60 }
 0x227   : > { %689 = vst.msk [vmem:[%s279_s27 + $0x10] sm:$0xf] %vm684_vm3, %v808_v62  ;;  %v809_v1 = vpack.c.bf16 %v641_v63, %v641_v63 }
 0x228   : > { %692 = vst.msk [vmem:[%s279_s27 + $0x1c] sm:$0xf] %vm684_vm3, %v811_v0 }
 0x229   : > { %690 = vst.msk [vmem:[%s279_s27 + $0x14] sm:$0xf] %vm684_vm3, %v809_v1 }
 0x22a PF: > { %s16_s21 = sadd.s32 1, %s924_s21  }
 0x22b   : > { %p13_p4 = scmp.ge.s32.totalorder %s16_s21, 4  }
 0x22d   :  { %15 = sbr.rel (!%p13_p4) target bundleno = 1 (0x1), region = 80 }

// kernel: downsample_block.39
= control target key start
LH: loop header
LB: loop body
LE: loop exit
PB: predicated region body
PF: predicated region fallthrough
CT: control target
= control target key end

     0   :  { %s501_s12 = smov 0   ;;  %s535_s0 = inlined_call_operand.vmem [shape: bf16[2,64,32], index: 0, kind: input, shape index: {}]   ;;  %s536_s1 = inlined_call_operand.vmem [shape: bf16[32,64], index: 1, kind: input, shape index: {}]   ;;  %s537_s2 = inlined_call_operand.vmem [shape: f32[1,64], index: 2, kind: input, shape index: {}]   ;;  %s538_s3 = inlined_call_operand.vmem [shape: bf16[2,64,64], index: 3, kind: output, shape index: {}]  }
   0x1 LB: > { %s397_s13 = sadd.s32 4294967295, %s479_s12   ;;  %p401_p0 = scmp.ge.s32.totalorder %s479_s12, 1  ;;  %s479_s12 = sphi %s501_s12, %s13_s12  }
   0x2   : > { %p137_p1 = scmp.lt.s32.totalorder %s479_s12, 3 }
   0x4   : > { %p138_p2 = pnand %p401_p0, %p137_p1 }
   0x5   : > { %v467_v0 = vld [vmem:[%s536_s1] sm:$0xff] (!%p138_p2)   ;;  %p161_p3 = scmp.lt.s32.totalorder (!%p138_p2), %s397_s13, 1  ;;  %v468_v1 = vld [vmem:[%s536_s1 + $0x8] sm:$0xff] (!%p138_p2)   ;;  %vm223_vm0 = vcmask (!%p138_p2), 261120   ;;  %vm333_vm1 = vcmask (!%p138_p2), 519168  }
   0x6   : > { %141 = sbr.rel (%p138_p2) target bundleno = 238 (0xee), region = 32  ;;  %443 = vmatprep.subr.bf16.mxu0 (!%p138_p2), %v467_v0  ;;  %455 = vmatprep.subr.bf16.mxu1 (!%p138_p2), %v467_v0  ;;  %v406_v6 = vld [vmem:[%s537_s2] ss:$0 sm:$0xff] (!%p138_p2) }
   0x7   : > { %444 = vmatpush3.bf16.msra.mxu0 (!%p138_p2), %v467_v0  ;;  %457 = vmatpush3.bf16.msra.mxu1 (!%p138_p2), %v467_v0 }
   0x8   : > { %445 = vmatprep.subr.bf16.mxu0 (!%p138_p2), %v468_v1  ;;  %456 = vmatprep.subr.bf16.mxu1 (!%p138_p2), %v468_v1 }
   0xb   : > { %446 = vmatpush3.bf16.msra.mxu0 (!%p138_p2), %v468_v1  ;;  %458 = vmatpush3.bf16.msra.mxu1 (!%p138_p2), %v468_v1 }
   0xd   : > { %s540_s13 = smov (!%p161_p3, %s397_s13), 1 }
   0xe   : > { %s427_s18 = sshll.u32 %s540_s13, 5 }
   0xf   : > { %s165_s21 = scalar_lea.vmem %s535_s0, %s427_s18  ;;  %s170_s26 = scalar_lea.vmem %s538_s3, %s427_s18 }
  0x10   : > { %v469_v2 = vld [vmem:[%s165_s21] sm:$0xff]   ;;  %v470_v3 = vld [vmem:[%s165_s21 + $0x10] sm:$0xff]   ;;  %v471_v4 = vld [vmem:[%s165_s21 + $0x8] sm:$0xff]  }
  0x11   : > { %447 = vmatprep.mubr.msk.bf16.mxu0 %vm223_vm0, %v469_v2  ;;  %451 = vmatprep.mubr.msk.bf16.mxu1 %vm223_vm0, %v470_v3  ;;  %v472_v5 = vld [vmem:[%s165_s21 + $0x18] sm:$0xff]  }
  0x12   : > { %448 = vmatmul.mubr.msk.bf16.vlgmr.msra.gmra.mrb[0].mxu0 %vm223_vm0, %v471_v4  ;;  %452 = vmatmul.mubr.msk.bf16.vlgmr.msra.gmra.mrb[0].mxu1 %vm223_vm0, %v472_v5 }
  0xe5   : > { %v449_v7 = vpop.f32.mrb[0].mxu0  ;;  %v453_v9 = vpop.f32.mrb[0].mxu1 }
  0xe6   : > { %v279_v8 = vadd.f32 %v449_v7, %v406_v6  ;;  %v270_v10 = vpop.f32.mrb[1].mxu0  ;;  %v295_v11 = vadd.f32 %v453_v9, %v406_v6  ;;  %v286_v13 = vpop.f32.mrb[1].mxu1 }
  0xe7   : > { %v271_v12 = vadd.f32 %v406_v6, %v270_v10  ;;  %v450_v14 = vpop.f32.mrb[2].mxu0  ;;  %v287_v16 = vadd.f32 %v406_v6, %v286_v13  ;;  %v454_v18 = vpop.f32.mrb[2].mxu1 }
  0xe8   : > { %v431_v15 = vpack.c.bf16 %v279_v8, %v279_v8  ;;  %v282_v17 = vadd.f32 %v450_v14, %v406_v6  ;;  %v273_v19 = vpop.f32.mrb[3].mxu0  ;;  %v435_v20 = vpack.c.bf16 %v295_v11, %v295_v11  ;;  %v298_v22 = vadd.f32 %v454_v18, %v406_v6  ;;  %v289_v24 = vpop.f32.mrb[3].mxu1 }
  0xe9   : > { %v429_v21 = vpack.c.bf16 %v271_v12, %v271_v12  ;;  %v274_v23 = vadd.f32 %v406_v6, %v273_v19  ;;  %v433_v25 = vpack.c.bf16 %v287_v16, %v287_v16  ;;  %v290_v27 = vadd.f32 %v406_v6, %v289_v24 }
  0xea   : > { %336 = vst.msk [vmem:[%s170_s26 + $0x8] sm:$0xf] %vm333_vm1, %v431_v15  ;;  %v432_v26 = vpack.c.bf16 %v282_v17, %v282_v17  ;;  %340 = vst.msk [vmem:[%s170_s26 + $0x18] sm:$0xf] %vm333_vm1, %v435_v20  ;;  %v436_v28 = vpack.c.bf16 %v298_v22, %v298_v22 }
  0xeb   : > { %334 = vst.msk [vmem:[%s170_s26] sm:$0xf] %vm333_vm1, %v429_v21  ;;  %v430_v29 = vpack.c.bf16 %v274_v23, %v274_v23  ;;  %338 = vst.msk [vmem:[%s170_s26 + $0x10] sm:$0xf] %vm333_vm1, %v433_v25  ;;  %v434_v30 = vpack.c.bf16 %v290_v27, %v290_v27 }
  0xec   : > { %337 = vst.msk [vmem:[%s170_s26 + $0xc] sm:$0xf] %vm333_vm1, %v432_v26  ;;  %341 = vst.msk [vmem:[%s170_s26 + $0x1c] sm:$0xf] %vm333_vm1, %v436_v28 }
  0xed   : > { %335 = vst.msk [vmem:[%s170_s26 + $0x4] sm:$0xf] %vm333_vm1, %v430_v29  ;;  %339 = vst.msk [vmem:[%s170_s26 + $0x14] sm:$0xf] %vm333_vm1, %v434_v30 }
  0xee PF: > { %s13_s12 = sadd.s32 1, %s479_s12  }
  0xef   : > { %p10_p4 = scmp.ge.s32.totalorder %s13_s12, 4  }
  0xf1   :  { %12 = sbr.rel (!%p10_p4) target bundleno = 1 (0x1), region = 62 }

// kernel: downsample_block.35
= control target key start
LH: loop header
LB: loop body
LE: loop exit
PB: predicated region body
PF: predicated region fallthrough
CT: control target
= control target key end

     0   :  { %s2167_s12 = smov 0   ;;  %s2622_s0 = inlined_call_operand.vmem [shape: bf16[2,110,32], index: 0, kind: input, shape index: {}]   ;;  %s2623_s1 = inlined_call_operand.vmem [shape: bf16[9,32,32], index: 1, kind: input, shape index: {}]   ;;  %s2624_s2 = inlined_call_operand.vmem [shape: f32[1,32], index: 2, kind: input, shape index: {}]   ;;  %s2625_s3 = inlined_call_operand.vmem [shape: bf16[2,80,32], index: 3, kind: output, shape index: {}]  }
   0x1 LB: > { %s1653_s13 = sadd.s32 4294967295, %s2143_s12   ;;  %p1657_p0 = scmp.ge.s32.totalorder %s2143_s12, 1  ;;  %s2143_s12 = sphi %s2167_s12, %s13_s12  }
   0x2   : > { %p137_p1 = scmp.lt.s32.totalorder %s2143_s12, 3 }
   0x4   : > { %p138_p2 = pnand %p1657_p0, %p137_p1 }
   0x5   : > { %v2096_v0 = vld [vmem:[%s2623_s1 + $0x10] sm:$0xff] (!%p138_p2)   ;;  %v2145_v1 = vmov (!%p138_p2), 0.0   ;;  %v2097_v2 = vld [vmem:[%s2623_s1 + $0x18] sm:$0xff] (!%p138_p2)   ;;  %p161_p3 = scmp.lt.s32.totalorder (!%p138_p2), %s1653_s13, 1  ;;  %vm2146_vm0 = vmmov (!%p138_p2), 0   ;;  %vm277_vm2 = vcmask (!%p138_p2), 261120  }
   0x6   : > { %141 = sbr.rel (%p138_p2) target bundleno = 424 (0x1a8), region = 32  ;;  %1864 = vmatprep.subr.bf16.mxu0 (!%p138_p2), %v2145_v1  ;;  %2080 = vmatprep.subr.bf16.mxu1 (!%p138_p2), %v2145_v1  ;;  %vm220_vm1 = vsmask.f32 (!%p138_p2), 7424  ;;  %v2102_v21 = vld [vmem:[%s2623_s1 + $0x20] sm:$0xff] (!%p138_p2)   ;;  %v2106_v33 = vld [vmem:[%s2623_s1 + $0x28] sm:$0xff] (!%p138_p2)   ;;  %v2108_v48 = vld [vmem:[%s2623_s1 + $0x30] sm:$0xff] (!%p138_p2)  }
   0x7   : > { %1865 = vmatpush3.bf16.msra.mxu0 (!%p138_p2), %v2096_v0  ;;  %2082 = vmatpush3.bf16.msra.mxu1 (!%p138_p2), %v2096_v0  ;;  %v2103_v27 = vld [vmem:[%s2623_s1] sm:$0xff] (!%p138_p2)   ;;  %v2107_v36 = vld [vmem:[%s2623_s1 + $0x8] sm:$0xff] (!%p138_p2)   ;;  %vm470_vm3 = vcmask (!%p138_p2), 1046528   ;;  %v2111_v52 = vld [vmem:[%s2623_s1 + $0x38] sm:$0xff] (!%p138_p2)   ;;  %vm766_vm4 = vsmask.f32 (!%p138_p2), 6400 }
   0x8   : > { %1866 = vmatprep.subr.bf16.mxu0 (!%p138_p2), %v2145_v1  ;;  %2081 = vmatprep.subr.bf16.mxu1 (!%p138_p2), %v2145_v1  ;;  %v2110_v54 = vld [vmem:[%s2623_s1 + $0x40] sm:$0xff] (!%p138_p2)   ;;  %v2112_v56 = vld [vmem:[%s2623_s1 + $0x48] sm:$0xff] (!%p138_p2)   ;;  %vm939_vm5 = vcmask (!%p138_p2), 1045504   ;;  %vm1235_vm6 = vsmask.f32 (!%p138_p2), 5376  ;;  %vm1408_vm7 = vcmask (!%p138_p2), 1044480  }
   0x9   : > { %1868 = vmatprep.mubr.msk.bf16.mxu0 (!%p138_p2), %vm2146_vm0, %v2145_v1  ;;  %1880 = vmatprep.mubr.msk.bf16.mxu1 (!%p138_p2), %vm2146_vm0, %v2145_v1  ;;  %vm1587_vm8 = vcmask (!%p138_p2), 257024  }
   0xb   : > { %1867 = vmatpush3.bf16.msra.mxu0 (!%p138_p2), %v2097_v2  ;;  %2083 = vmatpush3.bf16.msra.mxu1 (!%p138_p2), %v2097_v2 }
   0xc   : > { %1912 = vmatprep.subr.bf16.mxu0 (!%p138_p2), %v2145_v1  ;;  %1888 = vmatprep.subr.bf16.mxu1 (!%p138_p2), %v2145_v1 }
   0xd   : > { %s2627_s13 = smov (!%p161_p3, %s1653_s13), 1 }
   0xe   : > { %s2084_s18 = smul.u32 56, %s2627_s13 }
  0x10   : > { %s2197_s21 = scalar_lea.vmem %s2622_s0, %s2084_s18 }
  0x11   : > { %v172_v3 = vld [vmem:[%s2197_s21] sm:$0xf]  ;;  %v2201_v4 = vld [vmem:[%s2197_s21 + $0x4] sm:$0xf]  ;;  %v2207_v6 = vld [vmem:[%s2197_s21 + $0x8] sm:$0xff]  }
  0x12   : > { %v2204_v5 = vcombine.low %v172_v3, %v2201_v4  ;;  %v229_v9 = vshll.u32 %v2207_v6, 16  ;;  %v2213_v10 = vld [vmem:[%s2197_s21 + $0x18] sm:$0xff]   ;;  %v2216_v11 = vld [vmem:[%s2197_s21 + $0x20] sm:$0xff]   ;;  %v2219_v12 = vld [vmem:[%s2197_s21 + $0x10] sm:$0xff]   ;;  %v233_v22 = vshrl.u32 %v2207_v6, 16  ;;  %v472_v51 = vrot.slane %v2207_v6, 1 }
  0x13   : > { %v245_v15 = vshll.u32 %v2213_v10, 16  ;;  %v249_v16 = vshrl.u32 %v2213_v10, 16  ;;  %v253_v17 = vshll.u32 %v2216_v11, 16  ;;  %v2225_v18 = vld [vmem:[%s2197_s21 + $0x28] ss:$0 sps:$4 sm:$0x11]  }
  0x14   : > { %v222_v7 = vshrl.u32 %v2204_v5, 16  ;;  %v224_v8 = vshll.u32 %v2204_v5, 16  ;;  %v231_v14 = vrot.slane %v229_v9, 1  ;;  %v237_v23 = vshll.u32 %v2219_v12, 16  ;;  %v461_v41 = vld [vmem:[%s2197_s21] sm:$0xe] }
  0x15   : > { %v247_v20 = vrot.slane %v245_v15, 1  ;;  %v255_v24 = vrot.slane %v253_v17, 1  ;;  %v257_v28 = vshrl.u32 %v2216_v11, 16  ;;  %v261_v29 = vshll.u32 %v2225_v18, 16  ;;  %v2264_v42 = vld [vmem:[%s2197_s21 + $0x24] sm:$0xff]   ;;  %v2335_v2 = vld [vmem:[%s2197_s21 + $0xc] sm:$0xff]  }
  0x16   : > { %v226_v13 = vrot.slane %v224_v8, 1  ;;  %v235_v31 = vor.u32 %v233_v22, %v231_v14  ;;  %v239_v32 = vrot.slane %v237_v23, 1  ;;  %v241_v38 = vshrl.u32 %v2219_v12, 16  ;;  %v2122_v43 = vld [vmem:[%s2197_s21 + $0x2c] ss:$0 sps:$4 sm:$0x11]  }
  0x17   : > { %v251_v26 = vor.u32 %v249_v16, %v247_v20  ;;  %v259_v34 = vor.u32 %v257_v28, %v255_v24  ;;  %v263_v35 = vrot.slane %v261_v29, 1  ;;  %v1688_v45 = vcombine.low %v461_v41, %v2201_v4  ;;  %v592_v61 = vld [vmem:[%s2197_s21 + $0x4] sm:$0xe]  ;;  %v2330_v62 = vld [vmem:[%s2197_s21 + $0x8] sm:$0xf]  ;;  %v2115_v17 = vld [vmem:[%s2623_s1 + $0x50] sm:$0xff]  }
  0x18   : > { %v227_v19 = vor.u32 %v226_v13, %v222_v7  ;;  %v240_v37 = vsel %vm220_vm1, %v235_v31, %v239_v32  ;;  %v243_v40 = vor.u32 %v241_v38, %v239_v32  ;;  %v643_v46 = vrot.slane %v2264_v42, 1  ;;  %v2120_v23 = vld [vmem:[%s2623_s1 + $0x58] sm:$0xff]  }
  0x19   : > { %v256_v30 = vsel %vm220_vm1, %v251_v26, %v255_v24  ;;  %v264_v39 = vsel %vm220_vm1, %v259_v34, %v263_v35  ;;  %v645_v47 = vrot.slane %v2122_v43, 1  ;;  %v471_v50 = vrot.slane %v1688_v45, 1  ;;  %v2375_v29 = vld [vmem:[%s2197_s21 + $0x1c] sm:$0xff]  }
  0x1a   : > { %v232_v25 = vsel %vm220_vm1, %v227_v19, %v231_v14  ;;  %1881 = vmatmul.mubr.msk.bf16.vlgmr.msra.gmra.mrb[0].mxu1 %vm277_vm2, %v256_v30  ;;  %v248_v44 = vsel %vm220_vm1, %v243_v40, %v247_v20  ;;  %v474_v55 = vrot.slane %v2219_v12, 1  ;;  %v476_v58 = vrot.slane %v2213_v10, 1 }
  0x1b   : > { %1869 = vmatmul.mubr.msk.bf16.vlgmr.msra.gmra.mrb[0].mxu0 %vm277_vm2, %v232_v25  ;;  %1889 = vmatpush3.bf16.msra.mxu1 %v2103_v27  ;;  %v2279_v49 = vsel %vm470_vm3, %v643_v46, %v645_v47  ;;  %v473_v53 = vsel %vm470_vm3, %v471_v50, %v472_v51  ;;  %v478_v60 = vrot.slane %v2216_v11, 1  ;;  %v1700_v0 = vcombine.low %v592_v61, %v2330_v62  ;;  %v2117_v25 = vld [vmem:[%s2623_s1 + $0x60] sm:$0xff]   ;;  %v2404_v47 = vld [vmem:[%s2197_s21 + $0x2c] ss:$0 sps:$4 sm:$0x33]  }
  0x1c   : > { %1913 = vmatpush3.bf16.msra.mxu0 %v2102_v21  ;;  %1872 = vmatprep.mubr.msk.bf16.mxu0 %vm2146_vm0, %v2145_v1  ;;  %v475_v57 = vsel %vm470_vm3, %v472_v51, %v474_v55  ;;  %v477_v59 = vsel %vm470_vm3, %v474_v55, %v476_v58  ;;  %v480_v3 = vrot.slane %v2225_v18, 1  ;;  %v779_v7 = vshll.u32 %v2335_v2, 16  ;;  %v2354_v18 = vld [vmem:[%s2197_s21 + $0x14] sm:$0xff]  }
  0x1d   : > { %1914 = vmatprep.subr.bf16.mxu0 %v2145_v1  ;;  %1884 = vmatprep.mubr.msk.bf16.mxu1 %vm2146_vm0, %v2145_v1  ;;  %v479_v63 = vsel %vm470_vm3, %v476_v58, %v478_v60  ;;  %v768_v4 = vshrl.u32 %v1700_v0, 16  ;;  %v636_v8 = vrot.slane %v1700_v0, 1  ;;  %v637_v9 = vrot.slane %v2335_v2, 1  ;;  %v1061_v58 = vld [vmem:[%s2197_s21 + $0x8] sm:$0xc] }
  0x1e   : > { %1890 = vmatprep.subr.bf16.mxu1 %v2145_v1  ;;  %v781_v15 = vrot.slane %v779_v7, 2  ;;  %v785_v20 = vshrl.u32 %v2354_v18, 16  ;;  %v788_v21 = vshll.u32 %v2354_v18, 16  ;;  %v639_v22 = vrot.slane %v2354_v18, 1 }
  0x1f   : > { %1891 = vmatpush3.bf16.msra.mxu1 %v2107_v36  ;;  %v638_v16 = vsel %vm470_vm3, %v636_v8, %v637_v9  ;;  %v794_v31 = vshrl.u32 %v2375_v29, 16  ;;  %v797_v32 = vshll.u32 %v2375_v29, 16  ;;  %v641_v34 = vrot.slane %v2375_v29, 1  ;;  %v2128_v8 = vld [vmem:[%s2623_s1 + $0x80] sm:$0xff]  }
  0x20   : > { %1915 = vmatpush3.bf16.msra.mxu0 %v2106_v33  ;;  %1936 = vmatprep.subr.bf16.mxu1 %v2145_v1  ;;  %v787_v26 = vrot.slane %v785_v20, 1  ;;  %v790_v27 = vrot.slane %v788_v21, 2  ;;  %v640_v28 = vsel %vm470_vm3, %v637_v9, %v639_v22  ;;  %v2121_v33 = vld [vmem:[%s2623_s1 + $0x68] sm:$0xff]   ;;  %v803_v40 = vshrl.u32 %v2264_v42, 16  ;;  %v2458_v9 = vld [vmem:[%s2197_s21 + $0x18] sm:$0xff]  }
  0x21   : > { %1960 = vmatprep.subr.bf16.mxu0 %v2145_v1  ;;  %v796_v36 = vrot.slane %v794_v31, 1  ;;  %v642_v38 = vsel %vm470_vm3, %v639_v22, %v641_v34  ;;  %v806_v41 = vshll.u32 %v2264_v42, 16  ;;  %v812_v51 = vshrl.u32 %v2404_v47, 16  ;;  %v2488_v20 = vld [vmem:[%s2197_s21 + $0x28] sm:$0xff]  }
  0x22   : > { %1885 = vmatmul.mubr.msk.bf16.gmra.mrb[4].mxu1 %vm277_vm2, %v264_v39  ;;  %v791_v30 = vor.u32 %v790_v27, %v787_v26  ;;  %v941_v61 = vrot.slane %v2335_v2, 2  ;;  %v1112_v22 = vrot.slane %v2488_v20, 2 }
  0x23   : > { %1873 = vmatmul.mubr.msk.bf16.gmra.mrb[4].mxu0 %vm277_vm2, %v240_v37  ;;  %1892 = vmatprep.mubr.msk.bf16.mxu1 %vm2146_vm0, %v2145_v1  ;;  %v799_v37 = vrot.slane %v797_v32, 2  ;;  %v808_v45 = vrot.slane %v806_v41, 2 }
  0x24   : > { %1876 = vmatprep.mubr.msk.bf16.mxu0 %vm2146_vm0, %v2145_v1 }
  0x25   : > { %v800_v39 = vor.u32 %v799_v37, %v796_v36 }
  0x27   : > { %v801_v43 = vsel %vm766_vm4, %v791_v30, %v800_v39 }
  0x2a   : > { %1893 = vmatmul.mubr.msk.bf16.vlgmr.msra.gmra.mrb[8].mxu1 %vm277_vm2, %v2204_v5  ;;  %v771_v5 = vshll.u32 %v1700_v0, 16  ;;  %v2435_v0 = vld [vmem:[%s2197_s21 + $0x10] sm:$0xff]  }
  0x2b   : > { %1877 = vmatmul.mubr.msk.bf16.gmra.mrb[8].mxu0 %vm277_vm2, %v248_v44  ;;  %1937 = vmatpush3.bf16.msra.mxu1 %v2108_v48  ;;  %v805_v44 = vrot.slane %v803_v40, 1  ;;  %v644_v48 = vsel %vm470_vm3, %v641_v34, %v643_v46  ;;  %v1248_v26 = vshll.u32 %v2435_v0, 16 }
  0x2c   : > { %1916 = vmatprep.mubr.msk.bf16.mxu0 %vm2146_vm0, %v2145_v1  ;;  %1896 = vmatprep.mubr.msk.bf16.mxu1 %vm2146_vm0, %v2145_v1  ;;  %v773_v13 = vrot.slane %v771_v5, 2  ;;  %v943_v5 = vrot.slane %v2354_v18, 2 }
  0x2d   : > { %1938 = vmatprep.subr.bf16.mxu1 %v2145_v1  ;;  %v809_v50 = vor.u32 %v808_v45, %v805_v44 }
  0x2f   : > { %1939 = vmatpush3.bf16.msra.mxu1 %v2111_v52  ;;  %v815_v52 = vshll.u32 %v2404_v47, 16  ;;  %v810_v46 = vsel %vm766_vm4, %v800_v39, %v809_v50  ;;  %v1257_v39 = vshll.u32 %v2458_v9, 16 }
  0x30   : > { %1984 = vmatprep.subr.bf16.mxu1 %v2145_v1 }
  0x31   : > { %v817_v55 = vrot.slane %v815_v52, 2  ;;  %v1259_v45 = vrot.slane %v1257_v39, 3 }
  0x32   : > { %1897 = vmatmul.mubr.msk.bf16.gmra.mrb[12].mxu1 %vm277_vm2, %v2207_v6  ;;  %v776_v6 = vshrl.u32 %v2335_v2, 16 }
  0x33   : > { %1917 = vmatmul.mubr.msk.bf16.vlgmr.msra.gmra.mrb[12].mxu0 %vm277_vm2, %v473_v53  ;;  %1900 = vmatprep.mubr.msk.bf16.mxu1 %vm2146_vm0, %v2145_v1  ;;  %v930_v53 = vld [vmem:[%s2197_s21 + $0x4] sm:$0xc] }
  0x34   : > { %1961 = vmatpush3.bf16.msra.mxu0 %v2110_v54  ;;  %1920 = vmatprep.mubr.msk.bf16.mxu0 %vm2146_vm0, %v2145_v1  ;;  %v778_v14 = vrot.slane %v776_v6, 1  ;;  %v814_v54 = vrot.slane %v812_v51, 1  ;;  %v2131_v6 = vld [vmem:[%s2623_s1 + $0x78] sm:$0xff]  }
  0x35   : > { %1962 = vmatprep.subr.bf16.mxu0 %v2145_v1 }
  0x36   : > { %v782_v19 = vor.u32 %v781_v15, %v778_v14  ;;  %v945_v14 = vrot.slane %v2375_v29, 2 }
  0x38   : > { %1963 = vmatpush3.bf16.msra.mxu0 %v2112_v56  ;;  %v792_v35 = vsel %vm766_vm4, %v782_v19, %v791_v30  ;;  %v1729_v56 = vcombine.low %v930_v53, %v2330_v62 }
  0x39   : > { %2008 = vmatprep.subr.bf16.mxu0 %v2145_v1 }
  0x3a   : > { %1901 = vmatmul.mubr.msk.bf16.gmra.mrb[16].mxu1 %vm277_vm2, %v2219_v12  ;;  %v770_v12 = vrot.slane %v768_v4, 1  ;;  %v1106_v4 = vrot.slane %v2435_v0, 2 }
  0x3b   : > { %1921 = vmatmul.mubr.msk.bf16.gmra.mrb[16].mxu0 %vm277_vm2, %v475_v57  ;;  %1904 = vmatprep.mubr.msk.bf16.mxu1 %vm2146_vm0, %v2145_v1  ;;  %v818_v57 = vor.u32 %v817_v55, %v814_v54 }
  0x3c   : > { %1924 = vmatprep.mubr.msk.bf16.mxu0 %vm2146_vm0, %v2145_v1 }
  0x3d   : > { %v819_v62 = vsel %vm766_vm4, %v809_v50, %v818_v57 }
  0x42   : > { %1905 = vmatmul.mubr.msk.bf16.gmra.mrb[20].mxu1 %vm277_vm2, %v2213_v10  ;;  %v481_v10 = vsel %vm470_vm3, %v478_v60, %v480_v3  ;;  %v940_v60 = vrot.slane %v1729_v56, 2  ;;  %v1412_v56 = vrot.slane %v2458_v9, 3 }
  0x43   : > { %1925 = vmatmul.mubr.msk.bf16.gmra.mrb[20].mxu0 %vm277_vm2, %v477_v59  ;;  %1908 = vmatprep.mubr.msk.bf16.mxu1 %vm2146_vm0, %v2145_v1  ;;  %v2427_v59 = vld [vmem:[%s2197_s21 + $0xc] sm:$0xf] }
  0x44   : > { %1928 = vmatprep.mubr.msk.bf16.mxu0 %vm2146_vm0, %v2145_v1  ;;  %v942_v3 = vsel %vm939_vm5, %v940_v60, %v941_v61 }
  0x4a   : > { %1909 = vmatmul.mubr.msk.bf16.gmra.mrb[24].mxu1 %vm277_vm2, %v2216_v11  ;;  %v774_v11 = vor.u32 %v773_v13, %v770_v12  ;;  %v1108_v12 = vrot.slane %v2458_v9, 2  ;;  %v2132_v13 = vld [vmem:[%s2623_s1 + $0x88] sm:$0xff]  }
  0x4b   : > { %1929 = vmatmul.mubr.msk.bf16.gmra.mrb[24].mxu0 %vm277_vm2, %v479_v63  ;;  %1940 = vmatprep.mubr.msk.bf16.mxu1 %vm2146_vm0, %v2145_v1  ;;  %v1741_v63 = vcombine.low %v1061_v58, %v2427_v59  ;;  %v1272_v58 = vshrl.u32 %v2488_v20, 16 }
  0x4c   : > { %1932 = vmatprep.mubr.msk.bf16.mxu0 %vm2146_vm0, %v2145_v1  ;;  %v783_v24 = vsel %vm766_vm4, %v774_v11, %v782_v19  ;;  %v1109_v15 = vsel %vm939_vm5, %v1106_v4, %v1108_v12  ;;  %v947_v11 = vrot.slane %v2264_v42, 2 }
  0x4d   : > { %v1105_v2 = vrot.slane %v1741_v63, 2  ;;  %v1237_v42 = vshrl.u32 %v1741_v63, 16 }
  0x4e   : > { %v948_v21 = vsel %vm939_vm5, %v945_v14, %v947_v11 }
  0x4f   : > { %v1107_v7 = vsel %vm939_vm5, %v1105_v2, %v1106_v4  ;;  %v1239_v30 = vrot.slane %v1237_v42, 2 }
  0x52   : > { %1941 = vmatmul.mubr.msk.bf16.vlgmr.msra.gmra.mrb[28].mxu1 %vm277_vm2, %v638_v16  ;;  %v2475_v16 = vld [vmem:[%s2197_s21 + $0x20] sm:$0xff]  }
  0x53   : > { %1933 = vmatmul.mubr.msk.bf16.gmra.mrb[28].mxu0 %vm277_vm2, %v481_v10  ;;  %1985 = vmatpush3.bf16.msra.mxu1 %v2115_v17  ;;  %v944_v10 = vsel %vm939_vm5, %v941_v61, %v943_v5  ;;  %v946_v17 = vsel %vm939_vm5, %v943_v5, %v945_v14  ;;  %v1110_v18 = vrot.slane %v2475_v16, 2  ;;  %v1263_v51 = vshrl.u32 %v2475_v16, 16 }
  0x54   : > { %1964 = vmatprep.mubr.msk.bf16.mxu0 %vm2146_vm0, %v2145_v1  ;;  %1944 = vmatprep.mubr.msk.bf16.mxu1 %vm2146_vm0, %v2145_v1  ;;  %v1266_v52 = vshll.u32 %v2475_v16, 16 }
  0x55   : > { %1986 = vmatprep.subr.bf16.mxu1 %v2145_v1  ;;  %v1111_v19 = vsel %vm939_vm5, %v1108_v12, %v1110_v18  ;;  %v1113_v27 = vsel %vm939_vm5, %v1110_v18, %v1112_v22  ;;  %v1265_v54 = vrot.slane %v1263_v51, 2 }
  0x56   : > { %v1268_v55 = vrot.slane %v1266_v52, 3 }
  0x57   : > { %1987 = vmatpush3.bf16.msra.mxu1 %v2120_v23  ;;  %v949_v23 = vrot.slane %v2404_v47, 2 }
  0x58   : > { %2032 = vmatprep.subr.bf16.mxu1 %v2145_v1  ;;  %v1269_v57 = vor.u32 %v1268_v55, %v1265_v54 }
  0x59   : > { %v950_v29 = vsel %vm939_vm5, %v947_v11, %v949_v23 }
  0x5a   : > { %1945 = vmatmul.mubr.msk.bf16.gmra.mrb[32].mxu1 %vm277_vm2, %v640_v28  ;;  %v2134_v28 = vld [vmem:[%s2197_s21 + $0x30] ss:$0 sps:$4 sm:$0x33]  }
  0x5b   : > { %1965 = vmatmul.mubr.msk.bf16.vlgmr.msra.gmra.mrb[32].mxu0 %vm277_vm2, %v783_v24  ;;  %1948 = vmatprep.mubr.msk.bf16.mxu1 %vm2146_vm0, %v2145_v1  ;;  %v1240_v24 = vshll.u32 %v1741_v63, 16  ;;  %v1114_v34 = vrot.slane %v2134_v28, 2 }
  0x5c   : > { %2009 = vmatpush3.bf16.msra.mxu0 %v2117_v25  ;;  %1968 = vmatprep.mubr.msk.bf16.mxu0 %vm2146_vm0, %v2145_v1  ;;  %v1245_v25 = vshrl.u32 %v2435_v0, 16 }
  0x5d   : > { %2010 = vmatprep.subr.bf16.mxu0 %v2145_v1  ;;  %v1242_v31 = vrot.slane %v1240_v24, 3  ;;  %v1115_v40 = vsel %vm939_vm5, %v1112_v22, %v1114_v34 }
  0x5e   : > { %v1247_v32 = vrot.slane %v1245_v25, 2 }
  0x5f   : > { %v1243_v36 = vor.u32 %v1242_v31, %v1239_v30 }
  0x60   : > { %2011 = vmatpush3.bf16.msra.mxu0 %v2121_v33  ;;  %v1250_v33 = vrot.slane %v1248_v26, 3 }
  0x61   : > { %2056 = vmatprep.subr.bf16.mxu0 %v2145_v1 }
  0x62   : > { %1949 = vmatmul.mubr.msk.bf16.gmra.mrb[36].mxu1 %vm277_vm2, %v642_v38  ;;  %v1251_v37 = vor.u32 %v1250_v33, %v1247_v32  ;;  %v1254_v38 = vshrl.u32 %v2458_v9, 16  ;;  %v1416_v9 = vrot.slane %v2488_v20, 3 }
  0x63   : > { %1969 = vmatmul.mubr.msk.bf16.gmra.mrb[36].mxu0 %vm277_vm2, %v792_v35  ;;  %1952 = vmatprep.mubr.msk.bf16.mxu1 %vm2146_vm0, %v2145_v1  ;;  %v1399_v35 = vld [vmem:[%s2197_s21 + $0x8] sm:$0x8] }
  0x64   : > { %1972 = vmatprep.mubr.msk.bf16.mxu0 %vm2146_vm0, %v2145_v1  ;;  %v1770_v41 = vcombine.low %v1399_v35, %v2427_v59  ;;  %v1256_v44 = vrot.slane %v1254_v38, 2  ;;  %v1275_v59 = vshll.u32 %v2488_v20, 16 }
  0x66   : > { %v1409_v47 = vrot.slane %v1770_v41, 3  ;;  %v1260_v50 = vor.u32 %v1259_v45, %v1256_v44  ;;  %v1277_v63 = vrot.slane %v1275_v59, 3 }
  0x68   : > { %v1270_v61 = vsel %vm1235_vm6, %v1260_v50, %v1269_v57 }
  0x6a   : > { %1953 = vmatmul.mubr.msk.bf16.gmra.mrb[40].mxu1 %vm277_vm2, %v644_v48  ;;  %v1410_v48 = vrot.slane %v2435_v0, 3  ;;  %v2136_v0 = vld [vmem:[%s2197_s21 + $0x30] ss:$0 sps:$4 sm:$0x77]   ;;  %s2085_s21 = smul.u32 40, %s2627_s13 }
  0x6b   : > { %1973 = vmatmul.mubr.msk.bf16.gmra.mrb[40].mxu0 %vm277_vm2, %v801_v43  ;;  %1956 = vmatprep.mubr.msk.bf16.mxu1 %vm2146_vm0, %v2145_v1  ;;  %v1252_v43 = vsel %vm1235_vm6, %v1243_v36, %v1251_v37  ;;  %v1281_v2 = vshrl.u32 %v2136_v0, 16  ;;  %v1284_v4 = vshll.u32 %v2136_v0, 16  ;;  %v1418_v14 = vrot.slane %v2136_v0, 3 }
  0x6c   : > { %1976 = vmatprep.mubr.msk.bf16.mxu0 %vm2146_vm0, %v2145_v1  ;;  %v1411_v53 = vsel %vm1408_vm7, %v1409_v47, %v1410_v48  ;;  %v1413_v60 = vsel %vm1408_vm7, %v1410_v48, %v1412_v56  ;;  %s2583_s13 = scalar_lea.vmem %s2625_s3, %s2085_s21 }
  0x72   : > { %1957 = vmatmul.mubr.msk.bf16.gmra.mrb[44].mxu1 %vm277_vm2, %v2279_v49  ;;  %v2125_v49 = vld [vmem:[%s2623_s1 + $0x70] sm:$0xff]  }
  0x73   : > { %1977 = vmatmul.mubr.msk.bf16.gmra.mrb[44].mxu0 %vm277_vm2, %v810_v46  ;;  %1988 = vmatprep.mubr.msk.bf16.mxu1 %vm2146_vm0, %v2145_v1  ;;  %v1261_v46 = vsel %vm1235_vm6, %v1251_v37, %v1260_v50 }
  0x74   : > { %1980 = vmatprep.mubr.msk.bf16.mxu0 %vm2146_vm0, %v2145_v1 }
  0x7a   : > { %1989 = vmatmul.mubr.msk.bf16.vlgmr.msra.gmra.mrb[48].mxu1 %vm277_vm2, %v942_v3  ;;  %v1414_v3 = vrot.slane %v2475_v16, 3 }
  0x7b   : > { %1981 = vmatmul.mubr.msk.bf16.gmra.mrb[48].mxu0 %vm277_vm2, %v819_v62  ;;  %2033 = vmatpush3.bf16.msra.mxu1 %v2125_v49  ;;  %v1274_v62 = vrot.slane %v1272_v58, 2 }
  0x7c   : > { %2012 = vmatprep.mubr.msk.bf16.mxu0 %vm2146_vm0, %v2145_v1  ;;  %1992 = vmatprep.mubr.msk.bf16.mxu1 %vm2146_vm0, %v2145_v1  ;;  %v1415_v5 = vsel %vm1408_vm7, %v1412_v56, %v1414_v3  ;;  %v1417_v12 = vsel %vm1408_vm7, %v1414_v3, %v1416_v9 }
  0x7d   : > { %2034 = vmatprep.subr.bf16.mxu1 %v2145_v1  ;;  %v1278_v49 = vor.u32 %v1277_v63, %v1274_v62 }
  0x7f   : > { %2035 = vmatpush3.bf16.msra.mxu1 %v2131_v6  ;;  %v1279_v6 = vsel %vm1235_vm6, %v1269_v57, %v1278_v49 }
  0x82   : > { %1993 = vmatmul.mubr.msk.bf16.gmra.mrb[52].mxu1 %vm277_vm2, %v944_v10 }
  0x83   : > { %2013 = vmatmul.mubr.msk.bf16.vlgmr.msra.gmra.mrb[52].mxu0 %vm277_vm2, %v1107_v7  ;;  %1996 = vmatprep.mubr.msk.bf16.mxu1 %vm2146_vm0, %v2145_v1  ;;  %v1283_v7 = vrot.slane %v1281_v2, 2 }
  0x84   : > { %2057 = vmatpush3.bf16.msra.mxu0 %v2128_v8  ;;  %2016 = vmatprep.mubr.msk.bf16.mxu0 %vm2146_vm0, %v2145_v1  ;;  %v1286_v8 = vrot.slane %v1284_v4, 3 }
  0x85   : > { %2058 = vmatprep.subr.bf16.mxu0 %v2145_v1 }
  0x86   : > { %v1287_v10 = vor.u32 %v1286_v8, %v1283_v7 }
  0x88   : > { %2059 = vmatpush3.bf16.msra.mxu0 %v2132_v13  ;;  %v1288_v13 = vsel %vm1235_vm6, %v1278_v49, %v1287_v10 }
  0x8a   : > { %1997 = vmatmul.mubr.msk.bf16.gmra.mrb[56].mxu1 %vm277_vm2, %v946_v17 }
  0x8b   : > { %2017 = vmatmul.mubr.msk.bf16.gmra.mrb[56].mxu0 %vm277_vm2, %v1109_v15  ;;  %2000 = vmatprep.mubr.msk.bf16.mxu1 %vm2146_vm0, %v2145_v1  ;;  %v1419_v15 = vsel %vm1408_vm7, %v1416_v9, %v1418_v14 }
  0x8c   : > { %2020 = vmatprep.mubr.msk.bf16.mxu0 %vm2146_vm0, %v2145_v1 }
  0x92   : > { %2001 = vmatmul.mubr.msk.bf16.gmra.mrb[60].mxu1 %vm277_vm2, %v948_v21 }
  0x93   : > { %2021 = vmatmul.mubr.msk.bf16.gmra.mrb[60].mxu0 %vm277_vm2, %v1111_v19  ;;  %2004 = vmatprep.mubr.msk.bf16.mxu1 %vm2146_vm0, %v2145_v1 }
  0x94   : > { %2024 = vmatprep.mubr.msk.bf16.mxu0 %vm2146_vm0, %v2145_v1 }
  0x9a   : > { %2005 = vmatmul.mubr.msk.bf16.gmra.mrb[64].mxu1 %vm277_vm2, %v950_v29 }
  0x9b   : > { %2025 = vmatmul.mubr.msk.bf16.gmra.mrb[64].mxu0 %vm277_vm2, %v1113_v27  ;;  %2036 = vmatprep.mubr.msk.bf16.mxu1 %vm2146_vm0, %v2145_v1 }
  0x9c   : > { %2028 = vmatprep.mubr.msk.bf16.mxu0 %vm2146_vm0, %v2145_v1 }
  0xa2   : > { %2037 = vmatmul.mubr.msk.bf16.vlgmr.msra.gmra.mrb[68].mxu1 %vm277_vm2, %v1252_v43 }
  0xa3   : > { %2029 = vmatmul.mubr.msk.bf16.gmra.mrb[68].mxu0 %vm277_vm2, %v1115_v40  ;;  %2040 = vmatprep.mubr.msk.bf16.mxu1 %vm2146_vm0, %v2145_v1 }
  0xa4   : > { %2060 = vmatprep.mubr.msk.bf16.mxu0 %vm2146_vm0, %v2145_v1 }
  0xaa   : > { %2041 = vmatmul.mubr.msk.bf16.gmra.mrb[72].mxu1 %vm277_vm2, %v1261_v46 }
  0xab   : > { %2061 = vmatmul.mubr.msk.bf16.vlgmr.msra.gmra.mrb[72].mxu0 %vm277_vm2, %v1411_v53  ;;  %2044 = vmatprep.mubr.msk.bf16.mxu1 %vm2146_vm0, %v2145_v1 }
  0xac   : > { %2064 = vmatprep.mubr.msk.bf16.mxu0 %vm2146_vm0, %v2145_v1 }
  0xb2   : > { %2045 = vmatmul.mubr.msk.bf16.gmra.mrb[76].mxu1 %vm277_vm2, %v1270_v61 }
  0xb3   : > { %2065 = vmatmul.mubr.msk.bf16.gmra.mrb[76].mxu0 %vm277_vm2, %v1413_v60  ;;  %2048 = vmatprep.mubr.msk.bf16.mxu1 %vm2146_vm0, %v2145_v1 }
  0xb4   : > { %2068 = vmatprep.mubr.msk.bf16.mxu0 %vm2146_vm0, %v2145_v1 }
  0xba   : > { %2049 = vmatmul.mubr.msk.bf16.gmra.mrb[80].mxu1 %vm277_vm2, %v1279_v6 }
  0xbb   : > { %2069 = vmatmul.mubr.msk.bf16.gmra.mrb[80].mxu0 %vm277_vm2, %v1415_v5  ;;  %2052 = vmatprep.mubr.msk.bf16.mxu1 %vm2146_vm0, %v2145_v1 }
  0xbc   : > { %2072 = vmatprep.mubr.msk.bf16.mxu0 %vm2146_vm0, %v2145_v1 }
  0xc2   : > { %2053 = vmatmul.mubr.msk.bf16.gmra.mrb[84].mxu1 %vm277_vm2, %v1288_v13 }
  0xc3   : > { %2073 = vmatmul.mubr.msk.bf16.gmra.mrb[84].mxu0 %vm277_vm2, %v1417_v12 }
  0xc4   : > { %2076 = vmatprep.mubr.msk.bf16.mxu0 %vm2146_vm0, %v2145_v1 }
  0xcb   : > { %2077 = vmatmul.mubr.msk.bf16.gmra.mrb[88].mxu0 %vm277_vm2, %v1419_v15 }
  0xed   : > { %v351_v11 = vpop.f32.mrb[0].mxu1 }
  0xee   : > { %v327_v16 = vpop.f32.mrb[0].mxu0  ;;  %v1882_v20 = vpop.f32.mrb[1].mxu1 }
  0xef   : > { %v1870_v17 = vpop.f32.mrb[1].mxu0  ;;  %v354_v21 = vpop.f32.mrb[2].mxu1 }
  0xf0   : > { %v330_v18 = vpop.f32.mrb[2].mxu0  ;;  %v1883_v22 = vpop.f32.mrb[3].mxu1 }
  0xf1   : > { %v1871_v19 = vpop.f32.mrb[3].mxu0 }
  0xf5   : > { %v359_v25 = vpop.f32.mrb[4].mxu1 }
  0xf6   : > { %v335_v23 = vpop.f32.mrb[4].mxu0  ;;  %v1886_v26 = vpop.f32.mrb[5].mxu1 }
  0xf7   : > { %v1874_v42 = vpop.f32.mrb[5].mxu0  ;;  %v362_v27 = vpop.f32.mrb[6].mxu1 }
  0xf8   : > { %v338_v24 = vpop.f32.mrb[6].mxu0  ;;  %v1887_v28 = vpop.f32.mrb[7].mxu1 }
  0xf9   : > { %v1875_v1 = vpop.f32.mrb[7].mxu0 }
  0xfd   : > { %v422_v31 = vpop.f32.mrb[8].mxu1 }
  0xfe   : > { %v343_v29 = vpop.f32.mrb[8].mxu0  ;;  %v423_v33 = vadd.f32 %v422_v31, %v327_v16  ;;  %v1894_v34 = vpop.f32.mrb[9].mxu1 }
  0xff   : > { %v1878_v30 = vpop.f32.mrb[9].mxu0  ;;  %v425_v36 = vpop.f32.mrb[10].mxu1 }
 0x100   : > { %v346_v32 = vpop.f32.mrb[10].mxu0  ;;  %v426_v37 = vadd.f32 %v425_v36, %v330_v18  ;;  %v1895_v38 = vpop.f32.mrb[11].mxu1 }
 0x101   : > { %v1879_v35 = vpop.f32.mrb[11].mxu0 }
 0x105   : > { %v430_v43 = vpop.f32.mrb[12].mxu1 }
 0x106   : > { %v543_v39 = vpop.f32.mrb[12].mxu0  ;;  %v431_v45 = vadd.f32 %v430_v43, %v335_v23  ;;  %v1898_v47 = vpop.f32.mrb[13].mxu1 }
 0x107   : > { %v582_v40 = vadd.f32 %v543_v39, %v423_v33  ;;  %v1918_v41 = vpop.f32.mrb[13].mxu0  ;;  %v433_v51 = vpop.f32.mrb[14].mxu1 }
 0x108   : > { %v546_v44 = vpop.f32.mrb[14].mxu0  ;;  %v434_v52 = vadd.f32 %v433_v51, %v338_v24  ;;  %v1899_v53 = vpop.f32.mrb[15].mxu1 }
 0x109   : > { %v583_v48 = vadd.f32 %v546_v44, %v426_v37  ;;  %v1919_v50 = vpop.f32.mrb[15].mxu0 }
 0x10d   : > { %v438_v56 = vpop.f32.mrb[16].mxu1 }
 0x10e   : > { %v551_v46 = vpop.f32.mrb[16].mxu0  ;;  %v439_v58 = vadd.f32 %v438_v56, %v343_v29  ;;  %v1902_v59 = vpop.f32.mrb[17].mxu1 }
 0x10f   : > { %v584_v54 = vadd.f32 %v551_v46, %v431_v45  ;;  %v1922_v55 = vpop.f32.mrb[17].mxu0  ;;  %v441_v62 = vpop.f32.mrb[18].mxu1 }
 0x110   : > { %v554_v57 = vpop.f32.mrb[18].mxu0  ;;  %v442_v63 = vadd.f32 %v441_v62, %v346_v32  ;;  %v1903_v0 = vpop.f32.mrb[19].mxu1 }
 0x111   : > { %v585_v60 = vadd.f32 %v554_v57, %v434_v52  ;;  %v1923_v61 = vpop.f32.mrb[19].mxu0 }
 0x115   : > { %v446_v4 = vpop.f32.mrb[20].mxu1 }
 0x116   : > { %v559_v3 = vpop.f32.mrb[20].mxu0  ;;  %v447_v6 = vadd.f32 %v446_v4, %v351_v11  ;;  %v1906_v7 = vpop.f32.mrb[21].mxu1 }
 0x117   : > { %v586_v49 = vadd.f32 %v559_v3, %v439_v58  ;;  %v1926_v2 = vpop.f32.mrb[21].mxu0  ;;  %v449_v10 = vpop.f32.mrb[22].mxu1 }
 0x118   : > { %v562_v5 = vpop.f32.mrb[22].mxu0  ;;  %v450_v12 = vadd.f32 %v449_v10, %v354_v21  ;;  %v1907_v13 = vpop.f32.mrb[23].mxu1 }
 0x119   : > { %v587_v8 = vadd.f32 %v562_v5, %v442_v63  ;;  %v1927_v9 = vpop.f32.mrb[23].mxu0 }
 0x11d   : > { %v454_v17 = vpop.f32.mrb[24].mxu1 }
 0x11e   : > { %v567_v14 = vpop.f32.mrb[24].mxu0  ;;  %v455_v19 = vadd.f32 %v454_v17, %v359_v25  ;;  %v1910_v20 = vpop.f32.mrb[25].mxu1 }
 0x11f   : > { %v588_v15 = vadd.f32 %v567_v14, %v447_v6  ;;  %v1930_v16 = vpop.f32.mrb[25].mxu0  ;;  %v457_v42 = vpop.f32.mrb[26].mxu1 }
 0x120   : > { %v570_v18 = vpop.f32.mrb[26].mxu0  ;;  %v458_v24 = vadd.f32 %v457_v42, %v362_v27  ;;  %v1911_v1 = vpop.f32.mrb[27].mxu1 }
 0x121   : > { %v589_v22 = vadd.f32 %v570_v18, %v450_v12  ;;  %v1931_v23 = vpop.f32.mrb[27].mxu0 }
 0x125   : > { %v708_v29 = vpop.f32.mrb[28].mxu1 }
 0x126   : > { %v575_v26 = vpop.f32.mrb[28].mxu0  ;;  %v747_v31 = vadd.f32 %v708_v29, %v582_v40  ;;  %v1942_v21 = vpop.f32.mrb[29].mxu1 }
 0x127   : > { %v590_v11 = vadd.f32 %v575_v26, %v455_v19  ;;  %v1934_v28 = vpop.f32.mrb[29].mxu0  ;;  %v711_v34 = vpop.f32.mrb[30].mxu1 }
 0x128   : > { %v578_v30 = vpop.f32.mrb[30].mxu0  ;;  %v748_v35 = vadd.f32 %v711_v34, %v583_v48  ;;  %v1943_v36 = vpop.f32.mrb[31].mxu1 }
 0x129   : > { %v591_v32 = vadd.f32 %v578_v30, %v458_v24  ;;  %v1935_v33 = vpop.f32.mrb[31].mxu0 }
 0x12d   : > { %v716_v39 = vpop.f32.mrb[32].mxu1 }
 0x12e   : > { %v881_v37 = vpop.f32.mrb[32].mxu0  ;;  %v749_v43 = vadd.f32 %v716_v39, %v584_v54  ;;  %v1946_v27 = vpop.f32.mrb[33].mxu1 }
 0x12f   : > { %v920_v25 = vadd.f32 %v881_v37, %v747_v31  ;;  %v1966_v38 = vpop.f32.mrb[33].mxu0  ;;  %v719_v47 = vpop.f32.mrb[34].mxu1 }
 0x130   : > { %v884_v41 = vpop.f32.mrb[34].mxu0  ;;  %v750_v50 = vadd.f32 %v719_v47, %v585_v60  ;;  %v1947_v51 = vpop.f32.mrb[35].mxu1 }
 0x131   : > { %v921_v44 = vadd.f32 %v884_v41, %v748_v35  ;;  %v1967_v45 = vpop.f32.mrb[35].mxu0 }
 0x135   : > { %v724_v46 = vpop.f32.mrb[36].mxu1 }
 0x136   : > { %v889_v52 = vpop.f32.mrb[36].mxu0  ;;  %v751_v56 = vadd.f32 %v724_v46, %v586_v49  ;;  %v1950_v48 = vpop.f32.mrb[37].mxu1 }
 0x137   : > { %v922_v40 = vadd.f32 %v889_v52, %v749_v43  ;;  %v1970_v53 = vpop.f32.mrb[37].mxu0  ;;  %v727_v59 = vpop.f32.mrb[38].mxu1 }
 0x138   : > { %v892_v55 = vpop.f32.mrb[38].mxu0  ;;  %v752_v61 = vadd.f32 %v727_v59, %v587_v8  ;;  %v1951_v62 = vpop.f32.mrb[39].mxu1 }
 0x139   : > { %v923_v57 = vadd.f32 %v892_v55, %v750_v50  ;;  %v1971_v58 = vpop.f32.mrb[39].mxu0 }
 0x13d   : > { %v732_v3 = vpop.f32.mrb[40].mxu1 }
 0x13e   : > { %v897_v63 = vpop.f32.mrb[40].mxu0  ;;  %v753_v4 = vadd.f32 %v732_v3, %v588_v15  ;;  %v1954_v60 = vpop.f32.mrb[41].mxu1 }
 0x13f   : > { %v924_v54 = vadd.f32 %v897_v63, %v751_v56  ;;  %v1974_v0 = vpop.f32.mrb[41].mxu0  ;;  %v735_v7 = vpop.f32.mrb[42].mxu1 }
 0x140   : > { %v900_v2 = vpop.f32.mrb[42].mxu0  ;;  %v754_v9 = vadd.f32 %v735_v7, %v589_v22  ;;  %v1955_v10 = vpop.f32.mrb[43].mxu1 }
 0x141   : > { %v925_v5 = vadd.f32 %v900_v2, %v752_v61  ;;  %v1975_v6 = vpop.f32.mrb[43].mxu0 }
 0x145   : > { %v740_v14 = vpop.f32.mrb[44].mxu1 }
 0x146   : > { %v905_v12 = vpop.f32.mrb[44].mxu0  ;;  %v755_v17 = vadd.f32 %v740_v14, %v590_v11  ;;  %v1958_v8 = vpop.f32.mrb[45].mxu1 }
 0x147   : > { %v926_v49 = vadd.f32 %v905_v12, %v753_v4  ;;  %v1978_v13 = vpop.f32.mrb[45].mxu0  ;;  %v743_v20 = vpop.f32.mrb[46].mxu1 }
 0x148   : > { %v908_v16 = vpop.f32.mrb[46].mxu0  ;;  %v756_v23 = vadd.f32 %v743_v20, %v591_v32  ;;  %v1959_v42 = vpop.f32.mrb[47].mxu1 }
 0x149   : > { %v927_v18 = vadd.f32 %v908_v16, %v754_v9  ;;  %v1979_v19 = vpop.f32.mrb[47].mxu0 }
 0x14d   : > { %v1012_v26 = vpop.f32.mrb[48].mxu1 }
 0x14e   : > { %v913_v24 = vpop.f32.mrb[48].mxu0  ;;  %v1051_v29 = vadd.f32 %v1012_v26, %v920_v25  ;;  %v1990_v22 = vpop.f32.mrb[49].mxu1 }
 0x14f   : > { %v928_v15 = vadd.f32 %v913_v24, %v755_v17  ;;  %v1982_v1 = vpop.f32.mrb[49].mxu0  ;;  %v1015_v21 = vpop.f32.mrb[50].mxu1 }
 0x150   : > { %v916_v28 = vpop.f32.mrb[50].mxu0  ;;  %v1052_v33 = vadd.f32 %v1015_v21, %v921_v44  ;;  %v1991_v34 = vpop.f32.mrb[51].mxu1 }
 0x151   : > { %v929_v30 = vadd.f32 %v916_v28, %v756_v23  ;;  %v1983_v31 = vpop.f32.mrb[51].mxu0 }
 0x155   : > { %v1020_v37 = vpop.f32.mrb[52].mxu1 }
 0x156   : > { %v1177_v35 = vpop.f32.mrb[52].mxu0  ;;  %v1053_v39 = vadd.f32 %v1020_v37, %v922_v40  ;;  %v1994_v32 = vpop.f32.mrb[53].mxu1 }
 0x157   : > { %v1216_v11 = vadd.f32 %v1177_v35, %v1051_v29  ;;  %v2014_v36 = vpop.f32.mrb[53].mxu0  ;;  %v1023_v27 = vpop.f32.mrb[54].mxu1 }
 0x158   : > { %v1180_v38 = vpop.f32.mrb[54].mxu0  ;;  %v1054_v45 = vadd.f32 %v1023_v27, %v923_v57  ;;  %v1995_v47 = vpop.f32.mrb[55].mxu1 }
 0x159   : > { %v1217_v41 = vadd.f32 %v1180_v38, %v1052_v33  ;;  %v2015_v43 = vpop.f32.mrb[55].mxu0 }
 0x15d   : > { %v1028_v52 = vpop.f32.mrb[56].mxu1 }
 0x15e   : > { %v1185_v50 = vpop.f32.mrb[56].mxu0  ;;  %v1055_v46 = vadd.f32 %v1028_v52, %v924_v54  ;;  %v1998_v44 = vpop.f32.mrb[57].mxu1 }
 0x15f   : > { %v1218_v25 = vadd.f32 %v1185_v50, %v1053_v39  ;;  %v2018_v51 = vpop.f32.mrb[57].mxu0  ;;  %v1031_v48 = vpop.f32.mrb[58].mxu1 }
 0x160   : > { %v1188_v53 = vpop.f32.mrb[58].mxu0  ;;  %v1056_v58 = vadd.f32 %v1031_v48, %v925_v5  ;;  %v1999_v59 = vpop.f32.mrb[59].mxu1 }
 0x161   : > { %v1219_v55 = vadd.f32 %v1188_v53, %v1054_v45  ;;  %v2019_v56 = vpop.f32.mrb[59].mxu0 }
 0x165   : > { %v1036_v63 = vpop.f32.mrb[60].mxu1 }
 0x166   : > { %v1193_v61 = vpop.f32.mrb[60].mxu0  ;;  %v1057_v3 = vadd.f32 %v1036_v63, %v926_v49  ;;  %v2002_v57 = vpop.f32.mrb[61].mxu1 }
 0x167   : > { %v1220_v40 = vadd.f32 %v1193_v61, %v1055_v46  ;;  %v2022_v62 = vpop.f32.mrb[61].mxu0  ;;  %v1039_v60 = vpop.f32.mrb[62].mxu1 }
 0x168   : > { %v1196_v0 = vpop.f32.mrb[62].mxu0  ;;  %v1058_v6 = vadd.f32 %v1039_v60, %v927_v18  ;;  %v2003_v7 = vpop.f32.mrb[63].mxu1 }
 0x169   : > { %v2563_v2 = vadd.f32 %v1196_v0, %v1056_v58  ;;  %v2023_v4 = vpop.f32.mrb[63].mxu0 }
 0x16d   : > { %v1044_v12 = vpop.f32.mrb[64].mxu1 }
 0x16e   : > { %v1201_v54 = vpop.f32.mrb[64].mxu0  ;;  %v1059_v13 = vadd.f32 %v1044_v12, %v928_v15  ;;  %v2006_v14 = vpop.f32.mrb[65].mxu1 }
 0x16f   : > { %v2565_v9 = vadd.f32 %v1201_v54, %v1057_v3  ;;  %v2026_v10 = vpop.f32.mrb[65].mxu0  ;;  %v1047_v49 = vpop.f32.mrb[66].mxu1 }
 0x170   : > { %v1204_v5 = vpop.f32.mrb[66].mxu0  ;;  %v1060_v8 = vadd.f32 %v1047_v49, %v929_v30  ;;  %v2007_v19 = vpop.f32.mrb[67].mxu1  ;;  %v2577_v30 = vld [vmem:[%s2624_s2] ss:$0 sm:$0xff] }
 0x171   : > { %v2567_v16 = vadd.f32 %v1204_v5, %v1058_v6  ;;  %v2027_v17 = vpop.f32.mrb[67].mxu0 }
 0x175   : > { %v1350_v42 = vpop.f32.mrb[68].mxu1 }
 0x176   : > { %v1209_v20 = vpop.f32.mrb[68].mxu0  ;;  %v1389_v1 = vadd.f32 %v1350_v42, %v1216_v11  ;;  %v2038_v26 = vpop.f32.mrb[69].mxu1 }
 0x177   : > { %v2569_v23 = vadd.f32 %v1209_v20, %v1059_v13  ;;  %v2030_v18 = vpop.f32.mrb[69].mxu0  ;;  %v1353_v15 = vpop.f32.mrb[70].mxu1 }
 0x178   : > { %v1212_v24 = vpop.f32.mrb[70].mxu0  ;;  %v1390_v22 = vadd.f32 %v1353_v15, %v1217_v41  ;;  %v2039_v31 = vpop.f32.mrb[71].mxu1 }
 0x179   : > { %v2571_v28 = vadd.f32 %v1212_v24, %v1060_v8  ;;  %v2031_v29 = vpop.f32.mrb[71].mxu0 }
 0x17d   : > { %v1358_v35 = vpop.f32.mrb[72].mxu1 }
 0x17e   : > { %v1481_v21 = vpop.f32.mrb[72].mxu0  ;;  %v1391_v37 = vadd.f32 %v1358_v35, %v1218_v25  ;;  %v2042_v38 = vpop.f32.mrb[73].mxu1 }
 0x17f   : > { %v1520_v33 = vadd.f32 %v1481_v21, %v1389_v1  ;;  %v2062_v34 = vpop.f32.mrb[73].mxu0  ;;  %v1361_v41 = vpop.f32.mrb[74].mxu1 }
 0x180   : > { %v1484_v36 = vpop.f32.mrb[74].mxu0  ;;  %v1392_v27 = vadd.f32 %v1361_v41, %v1219_v55  ;;  %v2043_v47 = vpop.f32.mrb[75].mxu1 }
 0x181   : > { %v1537_v11 = vadd.f32 %v2577_v30, %v1520_v33  ;;  %v1521_v39 = vadd.f32 %v1484_v36, %v1390_v22  ;;  %v2063_v32 = vpop.f32.mrb[75].mxu0 }
 0x183   : > { %v1791_v43 = vpack.c.bf16 %v1537_v11, %v1537_v11  ;;  %v1538_v45 = vadd.f32 %v2577_v30, %v1521_v39 }
 0x185   : > { %1588 = vst.msk [vmem:[%s2583_s13] sm:$0xf] %vm1587_vm8, %v1791_v43  ;;  %v1792_v50 = vpack.c.bf16 %v1538_v45, %v1538_v45  ;;  %v1366_v53 = vpop.f32.mrb[76].mxu1 }
 0x186   : > { %v1489_v25 = vpop.f32.mrb[76].mxu0  ;;  %v1393_v44 = vadd.f32 %v1366_v53, %v1220_v40  ;;  %v2046_v48 = vpop.f32.mrb[77].mxu1 }
 0x187   : > { %1589 = vst.msk [vmem:[%s2583_s13 + $0x4] sm:$0xf] %vm1587_vm8, %v1792_v50  ;;  %v1522_v51 = vadd.f32 %v1489_v25, %v1391_v37  ;;  %v2066_v52 = vpop.f32.mrb[77].mxu0  ;;  %v1369_v59 = vpop.f32.mrb[78].mxu1 }
 0x188   : > { %v1492_v46 = vpop.f32.mrb[78].mxu0  ;;  %v1394_v62 = vadd.f32 %v1369_v59, %v2563_v2  ;;  %v2047_v0 = vpop.f32.mrb[79].mxu1 }
 0x189   : > { %v1539_v56 = vadd.f32 %v2577_v30, %v1522_v51  ;;  %v1523_v55 = vadd.f32 %v1492_v46, %v1392_v27  ;;  %v2067_v58 = vpop.f32.mrb[79].mxu0 }
 0x18b   : > { %v1793_v61 = vpack.c.bf16 %v1539_v56, %v1539_v56  ;;  %v1540_v63 = vadd.f32 %v2577_v30, %v1523_v55 }
 0x18d   : > { %1590 = vst.msk [vmem:[%s2583_s13 + $0x8] sm:$0xf] %vm1587_vm8, %v1793_v61  ;;  %v1794_v3 = vpack.c.bf16 %v1540_v63, %v1540_v63  ;;  %v1374_v60 = vpop.f32.mrb[80].mxu1 }
 0x18e   : > { %v1497_v57 = vpop.f32.mrb[80].mxu0  ;;  %v1395_v7 = vadd.f32 %v1374_v60, %v2565_v9  ;;  %v2050_v2 = vpop.f32.mrb[81].mxu1 }
 0x18f   : > { %1591 = vst.msk [vmem:[%s2583_s13 + $0xc] sm:$0xf] %vm1587_vm8, %v1794_v3  ;;  %v1524_v40 = vadd.f32 %v1497_v57, %v1393_v44  ;;  %v2070_v4 = vpop.f32.mrb[81].mxu0  ;;  %v1377_v5 = vpop.f32.mrb[82].mxu1 }
 0x190   : > { %v1500_v6 = vpop.f32.mrb[82].mxu0  ;;  %v1396_v14 = vadd.f32 %v1377_v5, %v2567_v16  ;;  %v2051_v49 = vpop.f32.mrb[83].mxu1 }
 0x191   : > { %v1541_v54 = vadd.f32 %v2577_v30, %v1524_v40  ;;  %v1525_v10 = vadd.f32 %v1500_v6, %v1394_v62  ;;  %v2071_v12 = vpop.f32.mrb[83].mxu0 }
 0x193   : > { %v1795_v13 = vpack.c.bf16 %v1541_v54, %v1541_v54  ;;  %v1542_v17 = vadd.f32 %v2577_v30, %v1525_v10 }
 0x195   : > { %1592 = vst.msk [vmem:[%s2583_s13 + $0x10] sm:$0xf] %vm1587_vm8, %v1795_v13  ;;  %v1796_v8 = vpack.c.bf16 %v1542_v17, %v1542_v17  ;;  %v1382_v18 = vpop.f32.mrb[84].mxu1 }
 0x196   : > { %v1505_v19 = vpop.f32.mrb[84].mxu0  ;;  %v1397_v24 = vadd.f32 %v1382_v18, %v2569_v23  ;;  %v2054_v16 = vpop.f32.mrb[85].mxu1 }
 0x197   : > { %1593 = vst.msk [vmem:[%s2583_s13 + $0x14] sm:$0xf] %vm1587_vm8, %v1796_v8  ;;  %v1526_v9 = vadd.f32 %v1505_v19, %v1395_v7  ;;  %v2074_v20 = vpop.f32.mrb[85].mxu0  ;;  %v1385_v15 = vpop.f32.mrb[86].mxu1 }
 0x198   : > { %v1508_v42 = vpop.f32.mrb[86].mxu0  ;;  %v1398_v31 = vadd.f32 %v1385_v15, %v2571_v28  ;;  %v2055_v33 = vpop.f32.mrb[87].mxu1 }
 0x199   : > { %v1543_v1 = vadd.f32 %v2577_v30, %v1526_v9  ;;  %v1527_v26 = vadd.f32 %v1508_v42, %v1396_v14  ;;  %v2075_v29 = vpop.f32.mrb[87].mxu0 }
 0x19b   : > { %v1797_v22 = vpack.c.bf16 %v1543_v1, %v1543_v1  ;;  %v1544_v21 = vadd.f32 %v2577_v30, %v1527_v26 }
 0x19d   : > { %1594 = vst.msk [vmem:[%s2583_s13 + $0x18] sm:$0xf] %vm1587_vm8, %v1797_v22  ;;  %v1798_v34 = vpack.c.bf16 %v1544_v21, %v1544_v21 }
 0x19e   : > { %v1513_v35 = vpop.f32.mrb[88].mxu0 }
 0x19f   : > { %1595 = vst.msk [vmem:[%s2583_s13 + $0x1c] sm:$0xf] %vm1587_vm8, %v1798_v34  ;;  %v1528_v23 = vadd.f32 %v1513_v35, %v1397_v24  ;;  %v2078_v36 = vpop.f32.mrb[89].mxu0 }
 0x1a0   : > { %v1516_v37 = vpop.f32.mrb[90].mxu0 }
 0x1a1   : > { %v1545_v11 = vadd.f32 %v2577_v30, %v1528_v23  ;;  %v1529_v38 = vadd.f32 %v1516_v37, %v1398_v31  ;;  %v2079_v39 = vpop.f32.mrb[91].mxu0 }
 0x1a3   : > { %v1799_v32 = vpack.c.bf16 %v1545_v11, %v1545_v11  ;;  %v1546_v28 = vadd.f32 %v2577_v30, %v1529_v38 }
 0x1a5   : > { %1596 = vst.msk [vmem:[%s2583_s13 + $0x20] sm:$0xf] %vm1587_vm8, %v1799_v32  ;;  %v1800_v41 = vpack.c.bf16 %v1546_v28, %v1546_v28 }
 0x1a7   : > { %1597 = vst.msk [vmem:[%s2583_s13 + $0x24] sm:$0xf] %vm1587_vm8, %v1800_v41 }
 0x1a8 PF: > { %s13_s12 = sadd.s32 1, %s2143_s12  }
 0x1a9   : > { %p10_p4 = scmp.ge.s32.totalorder %s13_s12, 4  }
 0x1ab   :  { %12 = sbr.rel (!%p10_p4) target bundleno = 1 (0x1), region = 70 }

// kernel: downsample_block.40
= control target key start
LH: loop header
LB: loop body
LE: loop exit
PB: predicated region body
PF: predicated region fallthrough
CT: control target
= control target key end

     0   :  { %s1012_s21 = smov 0   ;;  %s1160_s0 = inlined_call_operand.vmem [shape: bf16[2,64,64], index: 0, kind: input, shape index: {}]   ;;  %s1161_s1 = inlined_call_operand.vmem [shape: f32[2,1,64], index: 1, kind: input, shape index: {}]   ;;  %s1162_s2 = inlined_call_operand.vmem [shape: f32[2,1,64], index: 2, kind: input, shape index: {}]   ;;  %s1163_s3 = inlined_call_operand.vmem [shape: f32[64,64], index: 3, kind: input, shape index: {}]   ;;  %s1164_s4 = inlined_call_operand.vmem [shape: bf16[64,32], index: 4, kind: input, shape index: {}]   ;;  %s1165_s5 = inlined_call_operand.vmem [shape: f32[1,32], index: 5, kind: input, shape index: {}]   ;;  %s1166_s6 = inlined_call_operand.vmem [shape: bf16[2,64,32], index: 6, kind: output, shape index: {}]  }
   0x1 LB: > { %s786_s22 = sadd.s32 4294967295, %s972_s21   ;;  %p790_p0 = scmp.ge.s32.totalorder %s972_s21, 1  ;;  %s972_s21 = sphi %s1012_s21, %s16_s21  }
   0x2   : > { %p228_p1 = scmp.lt.s32.totalorder %s972_s21, 3 }
   0x4   : > { %p229_p2 = pnand %p790_p0, %p228_p1 }
   0x5   : > { %v291_v0 = vld [vmem:[%s1163_s3] sm:$0xff] (!%p229_p2)  ;;  %v292_v1 = vld [vmem:[%s1163_s3 + $0x8] sm:$0xff] (!%p229_p2)  ;;  %v293_v2 = vld [vmem:[%s1163_s3 + $0x10] sm:$0xff] (!%p229_p2)  ;;  %v974_v3 = vmov (!%p229_p2), 0.0|0.0   ;;  %vm975_vm0 = vmmov (!%p229_p2), 0   ;;  %v976_v6 = vmov (!%p229_p2), 0.0  }
   0x6   : > { %232 = sbr.rel (%p229_p2) target bundleno = 554 (0x22a), region = 44  ;;  %905 = vmatprep.subr.bf16.mxu0 (!%p229_p2), %v974_v3  ;;  %v906_v4 = vpack.c.bf16 (!%p229_p2), %v292_v1, %v291_v0  ;;  %v294_v5 = vld [vmem:[%s1163_s3 + $0x18] sm:$0xff] (!%p229_p2)  ;;  %886 = vmatprep.mubr.msk.f32.mxu0 (!%p229_p2), %vm975_vm0, %v976_v6  ;;  %p264_p3 = scmp.lt.s32.totalorder (!%p229_p2), %s786_s22, 1  ;;  %v295_v7 = vld [vmem:[%s1163_s3 + $0x20] sm:$0xff] (!%p229_p2)  ;;  %v296_v9 = vld [vmem:[%s1163_s3 + $0x28] sm:$0xff] (!%p229_p2)  ;;  %vm307_vm1 = vcmask (!%p229_p2), 523264  }
   0x7   : > { %v909_v8 = vpack.c.bf16 (!%p229_p2), %v294_v5, %v293_v2  ;;  %v912_v10 = vpack.c.bf16 (!%p229_p2), %v296_v9, %v295_v7  ;;  %v297_v14 = vld [vmem:[%s1163_s3 + $0x30] sm:$0xff] (!%p229_p2)  ;;  %v298_v15 = vld [vmem:[%s1163_s3 + $0x38] sm:$0xff] (!%p229_p2)  ;;  %vm360_vm2 = vcmask (!%p229_p2), 1040384   ;;  %vm704_vm3 = vcmask (!%p229_p2), 257024  }
   0x8   : > { %907 = vmatpush3.bf16.msra.mxu0 (!%p229_p2), %v906_v4  ;;  %v915_v25 = vpack.c.bf16 (!%p229_p2), %v298_v15, %v297_v14  ;;  %v928_v15 = vld [vmem:[%s1164_s4] sm:$0xff] (!%p229_p2)  }
   0x9   : > { %908 = vmatprep.subr.bf16.mxu0 (!%p229_p2), %v974_v3  ;;  %889 = vmatprep.subr.bf16.mxu1 (!%p229_p2), %v928_v15 }
   0xa   : > { %890 = vmatpush3.bf16.msra.mxu1 (!%p229_p2), %v928_v15 }
   0xc   : > { %910 = vmatpush3.bf16.msra.mxu0 (!%p229_p2), %v909_v8 }
   0xd   : > { %s1168_s22 = smov (!%p264_p3, %s786_s22), 1  ;;  %911 = vmatprep.subr.bf16.mxu0 %v974_v3 }
   0xe   : > { %s824_s11 = sshll.u32 %s1168_s22, 5  ;;  %s271_s7 = scalar_lea.vmem %s1161_s1, %s1168_s22 }
   0xf   : > { %s268_s14 = scalar_lea.vmem %s1160_s0, %s824_s11  ;;  %s274_s10 = scalar_lea.vmem %s1162_s2, %s1168_s22 }
  0x10   : > { %v835_v11 = vld [vmem:[%s268_s14] sm:$0xff]   ;;  %v850_v12 = vld [vmem:[%s268_s14 + $0x8] sm:$0xff]   ;;  %v851_v13 = vld [vmem:[%s268_s14 + $0x10] sm:$0xff]   ;;  %913 = vmatpush3.bf16.msra.mxu0 %v912_v10  ;;  %s279_s16 = scalar_lea.vmem %s1166_s6, %s824_s11 }
  0x11   : > { %v1052_v16 = vunpack.c.l.bf16 %v835_v11  ;;  %v1054_v17 = vunpack.c.h.bf16 %v835_v11  ;;  %v1056_v18 = vunpack.c.l.bf16 %v850_v12  ;;  %v1058_v19 = vunpack.c.h.bf16 %v850_v12  ;;  %v852_v21 = vld [vmem:[%s268_s14 + $0x18] sm:$0xff]   ;;  %914 = vmatprep.subr.bf16.mxu0 %v974_v3 }
  0x12   : > { %v1060_v20 = vunpack.c.l.bf16 %v851_v13  ;;  %v1068_v26 = vunpack.c.h.bf16 %v851_v13  ;;  %v1078_v32 = vunpack.c.l.bf16 %v852_v21  ;;  %v1089_v42 = vunpack.c.h.bf16 %v852_v21  ;;  %v929_v21 = vld [vmem:[%s1164_s4 + $0x8] sm:$0xff]  }
  0x13   : > { %v308_v22 = vsel %vm307_vm1, %v1052_v16, 0.0  ;;  %v309_v23 = vsel %vm307_vm1, %v1054_v17, 0.0  ;;  %v311_v24 = vsel %vm307_vm1, %v1056_v18, 0.0  ;;  %v313_v28 = vsel %vm307_vm1, %v1058_v19, 0.0  ;;  %891 = vmatprep.subr.bf16.mxu1 %v929_v21 }
  0x14   : > { %v310_v27 = vadd.f32 %v309_v23, %v308_v22  ;;  %v330_v29 = vmul.f32 %v1052_v16, %v1052_v16  ;;  %v331_v30 = vmul.f32 %v1054_v17, %v1054_v17  ;;  %v332_v31 = vmul.f32 %v1056_v18, %v1056_v18  ;;  %916 = vmatpush3.bf16.msra.mxu0 %v915_v25  ;;  %v930_v22 = vld [vmem:[%s1164_s4 + $0x10] sm:$0xff]   ;;  %v931_v23 = vld [vmem:[%s1164_s4 + $0x18] sm:$0xff]  }
  0x15   : > { %v333_v34 = vmul.f32 %v1058_v19, %v1058_v19  ;;  %v315_v35 = vsel %vm307_vm1, %v1060_v20, 0.0  ;;  %v334_v36 = vmul.f32 %v1060_v20, %v1060_v20  ;;  %v317_v43 = vsel %vm307_vm1, %v1068_v26, 0.0  ;;  %892 = vmatpush3.bf16.msra.mxu1 %v929_v21 }
  0x16   : > { %v312_v33 = vadd.f32 %v311_v24, %v310_v27  ;;  %v338_v37 = vsel %vm307_vm1, %v330_v29, 0.0  ;;  %v339_v38 = vsel %vm307_vm1, %v331_v30, 0.0  ;;  %v341_v41 = vsel %vm307_vm1, %v332_v31, 0.0  ;;  %893 = vmatprep.subr.bf16.mxu1 %v930_v22 }
  0x17   : > { %v340_v40 = vadd.f32 %v339_v38, %v338_v37  ;;  %v335_v44 = vmul.f32 %v1068_v26, %v1068_v26  ;;  %v343_v45 = vsel %vm307_vm1, %v333_v34, 0.0  ;;  %v319_v48 = vsel %vm307_vm1, %v1078_v32, 0.0 }
  0x18   : > { %v314_v39 = vadd.f32 %v313_v28, %v312_v33  ;;  %v336_v49 = vmul.f32 %v1078_v32, %v1078_v32  ;;  %v345_v50 = vsel %vm307_vm1, %v334_v36, 0.0  ;;  %v321_v53 = vsel %vm307_vm1, %v1089_v42, 0.0  ;;  %v289_v36 = vld [vmem:[%s271_s7] sm:$0x1] }
  0x19   : > { %v342_v47 = vadd.f32 %v341_v41, %v340_v40  ;;  %v337_v54 = vmul.f32 %v1089_v42, %v1089_v42  ;;  %v347_v55 = vsel %vm307_vm1, %v335_v44, 0.0  ;;  %894 = vmatpush3.bf16.msra.mxu1 %v930_v22  ;;  %v443_v30 = vlaneseq }
  0x1a   : > { %v316_v46 = vadd.f32 %v315_v35, %v314_v39  ;;  %v349_v58 = vsel %vm307_vm1, %v336_v49, 0.0  ;;  %895 = vmatprep.subr.bf16.mxu1 %v931_v23  ;;  %v467_v38 = vadd.f32 1.0, %v289_v36 }
  0x1b   : > { %v344_v52 = vadd.f32 %v343_v45, %v342_v47  ;;  %v351_v61 = vsel %vm307_vm1, %v337_v54, 0.0  ;;  %v444_v34 = vshrl.u32 %v443_v30, 7 }
  0x1c   : > { %v318_v51 = vadd.f32 %v317_v43, %v316_v46 }
  0x1d   : > { %v346_v57 = vadd.f32 %v345_v50, %v344_v52  ;;  %896 = vmatpush3.bf16.msra.mxu1 %v931_v23  ;;  %v445_v35 = vsub.s32 0, %v444_v34  ;;  %v457_v39 = vsub.s32 1, %v444_v34 }
  0x1e   : > { %v320_v56 = vadd.f32 %v319_v48, %v318_v51 }
  0x1f   : > { %v348_v60 = vadd.f32 %v347_v55, %v346_v57  ;;  %v472_v41 = vrot.slane %v467_v38, %v445_v35  ;;  %v796_v55 = vld [vmem:[%s274_s10] ss:$0 sm:$0xff] }
  0x20   : > { %v322_v59 = vadd.f32 %v321_v53, %v320_v56 }
  0x21   : > { %v350_v63 = vadd.f32 %v349_v58, %v348_v60 }
  0x22   : > { %v323_v62 = vrot.slane %v322_v59, 4 }
  0x23   : > { %v352_v1 = vadd.f32 %v351_v61, %v350_v63 }
  0x24   : > { %v324_v0 = vadd.f32 %v323_v62, %v322_v59 }
  0x25   : > { %v353_v3 = vrot.slane %v352_v1, 4 }
  0x26   : > { %v325_v2 = vrot.slane %v324_v0, 2 }
  0x27   : > { %v354_v5 = vadd.f32 %v353_v3, %v352_v1 }
  0x28   : > { %v326_v4 = vadd.f32 %v325_v2, %v324_v0 }
  0x29   : > { %v355_v7 = vrot.slane %v354_v5, 2 }
  0x2a   : > { %v327_v6 = vrot.slane %v326_v4, 1 }
  0x2b   : > { %v356_v9 = vadd.f32 %v355_v7, %v354_v5 }
  0x2c   : > { %v328_v8 = vadd.f32 %v327_v6, %v326_v4 }
  0x2d   : > { %v357_v10 = vrot.slane %v356_v9, 1 }
  0x2e   : > { %v329_v11 = vmul.f32 0.015625, %v328_v8 }
  0x2f   : > { %v358_v12 = vadd.f32 %v357_v10, %v356_v9 }
  0x31   : > { %v359_v13 = vmul.f32 0.015625, %v358_v12 }
  0x33   : > { %v361_v14 = vsel %vm360_vm2, %v329_v11, %v359_v13 }
  0x34   : > { %887 = vmatmul.mubr.msk.f32.vlgmr.msra.gmra.mrb[0].mxu0 %vm307_vm1, %v361_v14 }
 0x107   : > { %v431_v24 = vpop.f32.mrb[0].mxu0 }
 0x108   : > { %v435_v25 = vmul.f32 %v431_v24, %v431_v24  ;;  %v888_v27 = vpop.f32.mrb[1].mxu0  ;;  %v446_v37 = vrot.slane %v431_v24, %v445_v35 }
 0x10a   : > { %v437_v28 = vrot.slane %v435_v25, 7  ;;  %v447_v43 = vsub.f32 %v1052_v16, %v446_v37  ;;  %v448_v45 = vsub.f32 %v1054_v17, %v446_v37  ;;  %v449_v46 = vsub.f32 %v1056_v18, %v446_v37 }
 0x10b   : > { %v450_v47 = vsub.f32 %v1058_v19, %v446_v37  ;;  %v451_v48 = vsub.f32 %v1060_v20, %v446_v37  ;;  %v452_v49 = vsub.f32 %v1068_v26, %v446_v37  ;;  %v453_v50 = vsub.f32 %v1078_v32, %v446_v37 }
 0x10c   : > { %v439_v29 = vsub.f32 %v431_v24, %v437_v28  ;;  %v454_v51 = vsub.f32 %v1089_v42, %v446_v37 }
 0x10e   : > { %v440_v31 = vmax.f32 %v439_v29, 0.0 }
 0x110   : > { %v441_v33 = vadd.f32 1e-05, %v440_v31 }
 0x112   : > { %932 = vrsqrt.f32 %v441_v33 }
 0x11c   : > { %v933_v40 = vpop.eup %932 }
 0x11d   : > { %v458_v44 = vrot.slane %v933_v40, %v457_v39 }
 0x11f   : > { %v459_v16 = vmul.f32 %v458_v44, %v447_v43  ;;  %v460_v52 = vmul.f32 %v458_v44, %v448_v45  ;;  %v461_v53 = vmul.f32 %v458_v44, %v449_v46  ;;  %v462_v54 = vmul.f32 %v458_v44, %v450_v47 }
 0x120   : > { %v463_v56 = vmul.f32 %v458_v44, %v451_v48  ;;  %v464_v57 = vmul.f32 %v458_v44, %v452_v49  ;;  %v465_v17 = vmul.f32 %v458_v44, %v453_v50  ;;  %v466_v58 = vmul.f32 %v458_v44, %v454_v51 }
 0x121   : > { %v474_v18 = vmul.f32 %v472_v41, %v459_v16  ;;  %v475_v59 = vmul.f32 %v472_v41, %v460_v52  ;;  %v476_v19 = vmul.f32 %v472_v41, %v461_v53  ;;  %v477_v60 = vmul.f32 %v472_v41, %v462_v54 }
 0x122   : > { %v478_v20 = vmul.f32 %v472_v41, %v463_v56  ;;  %v479_v61 = vmul.f32 %v472_v41, %v464_v57  ;;  %v480_v26 = vmul.f32 %v472_v41, %v465_v17  ;;  %v481_v62 = vmul.f32 %v472_v41, %v466_v58  ;;  %v805_v56 = vld [vmem:[%s1165_s5] ss:$0 sm:$0xff] }
 0x123   : > { %v488_v32 = vadd.f32 %v796_v55, %v474_v18  ;;  %v489_v63 = vadd.f32 %v796_v55, %v475_v59  ;;  %v490_v42 = vadd.f32 %v796_v55, %v476_v19  ;;  %v491_v0 = vadd.f32 %v796_v55, %v477_v60 }
 0x124   : > { %v492_v1 = vadd.f32 %v796_v55, %v478_v20  ;;  %v493_v2 = vadd.f32 %v796_v55, %v479_v61  ;;  %v494_v6 = vadd.f32 %v796_v55, %v480_v26  ;;  %v495_v8 = vadd.f32 %v796_v55, %v481_v62 }
 0x125   : > { %v797_v3 = vmul.f32 -1.442695, %v488_v32  ;;  %v798_v4 = vmul.f32 -1.442695, %v489_v63  ;;  %v799_v5 = vmul.f32 -1.442695, %v490_v42 }
 0x126   : > { %v800_v7 = vmul.f32 -1.442695, %v491_v0  ;;  %v801_v9 = vmul.f32 -1.442695, %v492_v1  ;;  %v802_v10 = vmul.f32 -1.442695, %v493_v2 }
 0x127   : > { %934 = vpow2.f32 %v797_v3  ;;  %v803_v11 = vmul.f32 -1.442695, %v494_v6  ;;  %v804_v12 = vmul.f32 -1.442695, %v495_v8 }
 0x128   : > { %936 = vpow2.f32 %v798_v4 }
 0x129   : > { %938 = vpow2.f32 %v799_v5 }
 0x12a   : > { %940 = vpow2.f32 %v800_v7 }
 0x12b   : > { %942 = vpow2.f32 %v801_v9 }
 0x12c   : > { %944 = vpow2.f32 %v802_v10 }
 0x12d   : > { %946 = vpow2.f32 %v803_v11 }
 0x12e   : > { %948 = vpow2.f32 %v804_v12 }
 0x131   : > { %v935_v13 = vpop.eup %934 }
 0x132   : > { %v937_v14 = vpop.eup %936  ;;  %v520_v15 = vadd.f32 1.0, %v935_v13 }
 0x133   : > { %v939_v21 = vpop.eup %938  ;;  %v521_v22 = vadd.f32 1.0, %v937_v14 }
 0x134   : > { %v941_v23 = vpop.eup %940  ;;  %950 = vrcp.f32 %v520_v15  ;;  %v522_v24 = vadd.f32 1.0, %v939_v21 }
 0x135   : > { %v943_v25 = vpop.eup %942  ;;  %952 = vrcp.f32 %v521_v22  ;;  %v523_v27 = vadd.f32 1.0, %v941_v23 }
 0x136   : > { %v945_v28 = vpop.eup %944  ;;  %954 = vrcp.f32 %v522_v24  ;;  %v524_v29 = vadd.f32 1.0, %v943_v25 }
 0x137   : > { %v947_v30 = vpop.eup %946  ;;  %956 = vrcp.f32 %v523_v27  ;;  %v525_v31 = vadd.f32 1.0, %v945_v28 }
 0x138   : > { %v949_v33 = vpop.eup %948  ;;  %958 = vrcp.f32 %v524_v29  ;;  %v526_v34 = vadd.f32 1.0, %v947_v30 }
 0x139   : > { %960 = vrcp.f32 %v525_v31  ;;  %v527_v35 = vadd.f32 1.0, %v949_v33 }
 0x13a   : > { %962 = vrcp.f32 %v526_v34 }
 0x13b   : > { %964 = vrcp.f32 %v527_v35 }
 0x13e   : > { %v951_v36 = vpop.eup %950 }
 0x13f   : > { %v953_v37 = vpop.eup %952  ;;  %v544_v38 = vmul.f32 %v951_v36, %v488_v32 }
 0x140   : > { %v955_v39 = vpop.eup %954  ;;  %v545_v40 = vmul.f32 %v953_v37, %v489_v63 }
 0x141   : > { %v957_v41 = vpop.eup %956  ;;  %v546_v43 = vmul.f32 %v955_v39, %v490_v42 }
 0x142   : > { %v959_v44 = vpop.eup %958  ;;  %v552_v45 = vpack.c.bf16 %v545_v40, %v544_v38  ;;  %v547_v46 = vmul.f32 %v957_v41, %v491_v0 }
 0x143   : > { %v961_v47 = vpop.eup %960  ;;  %v548_v48 = vmul.f32 %v959_v44, %v492_v1 }
 0x144   : > { %v963_v49 = vpop.eup %962  ;;  %897 = vmatprep.mubr.msk.bf16.mxu1 %vm307_vm1, %v552_v45  ;;  %v553_v50 = vpack.c.bf16 %v547_v46, %v546_v43  ;;  %v549_v51 = vmul.f32 %v961_v47, %v493_v2 }
 0x145   : > { %v965_v16 = vpop.eup %964  ;;  %v550_v53 = vmul.f32 %v963_v49, %v494_v6 }
 0x146   : > { %898 = vmatmul.mubr.msk.bf16.vlgmr.msra.gmra.mrb[0].mxu1 %vm307_vm1, %v553_v50  ;;  %v554_v52 = vpack.c.bf16 %v549_v51, %v548_v48  ;;  %v551_v54 = vmul.f32 %v965_v16, %v495_v8 }
 0x148   : > { %901 = vmatprep.mubr.msk.bf16.mxu1 %vm307_vm1, %v554_v52  ;;  %v555_v55 = vpack.c.bf16 %v551_v54, %v550_v53 }
 0x14e   : > { %902 = vmatmul.mubr.msk.bf16.gmra.mrb[4].mxu1 %vm307_vm1, %v555_v55 }
 0x219   : > { %v899_v57 = vpop.f32.mrb[0].mxu1 }
 0x21a   : > { %v650_v17 = vadd.f32 %v899_v57, %v805_v56  ;;  %v641_v58 = vpop.f32.mrb[1].mxu1 }
 0x21b   : > { %v642_v18 = vadd.f32 %v805_v56, %v641_v58  ;;  %v900_v59 = vpop.f32.mrb[2].mxu1 }
 0x21c   : > { %v828_v19 = vpack.c.bf16 %v650_v17, %v650_v17  ;;  %v653_v60 = vadd.f32 %v900_v59, %v805_v56  ;;  %v644_v20 = vpop.f32.mrb[3].mxu1 }
 0x21d   : > { %v826_v61 = vpack.c.bf16 %v642_v18, %v642_v18  ;;  %v645_v26 = vadd.f32 %v805_v56, %v644_v20 }
 0x21e   : > { %707 = vst.msk [vmem:[%s279_s16 + $0x8] sm:$0xf] %vm704_vm3, %v828_v19  ;;  %v829_v62 = vpack.c.bf16 %v653_v60, %v653_v60 }
 0x21f   : > { %705 = vst.msk [vmem:[%s279_s16] sm:$0xf] %vm704_vm3, %v826_v61  ;;  %v827_v32 = vpack.c.bf16 %v645_v26, %v645_v26 }
 0x220   : > { %708 = vst.msk [vmem:[%s279_s16 + $0xc] sm:$0xf] %vm704_vm3, %v829_v62 }
 0x221   : > { %706 = vst.msk [vmem:[%s279_s16 + $0x4] sm:$0xf] %vm704_vm3, %v827_v32  ;;  %v903_v63 = vpop.f32.mrb[4].mxu1 }
 0x222   : > { %v666_v42 = vadd.f32 %v903_v63, %v805_v56  ;;  %v657_v0 = vpop.f32.mrb[5].mxu1 }
 0x223   : > { %v658_v1 = vadd.f32 %v805_v56, %v657_v0  ;;  %v904_v2 = vpop.f32.mrb[6].mxu1 }
 0x224   : > { %v832_v3 = vpack.c.bf16 %v666_v42, %v666_v42  ;;  %v669_v4 = vadd.f32 %v904_v2, %v805_v56  ;;  %v660_v5 = vpop.f32.mrb[7].mxu1 }
 0x225   : > { %v830_v6 = vpack.c.bf16 %v658_v1, %v658_v1  ;;  %v661_v7 = vadd.f32 %v805_v56, %v660_v5 }
 0x226   : > { %711 = vst.msk [vmem:[%s279_s16 + $0x18] sm:$0xf] %vm704_vm3, %v832_v3  ;;  %v833_v8 = vpack.c.bf16 %v669_v4, %v669_v4 }
 0x227   : > { %709 = vst.msk [vmem:[%s279_s16 + $0x10] sm:$0xf] %vm704_vm3, %v830_v6  ;;  %v831_v9 = vpack.c.bf16 %v661_v7, %v661_v7 }
 0x228   : > { %712 = vst.msk [vmem:[%s279_s16 + $0x1c] sm:$0xf] %vm704_vm3, %v833_v8 }
 0x229   : > { %710 = vst.msk [vmem:[%s279_s16 + $0x14] sm:$0xf] %vm704_vm3, %v831_v9 }
 0x22a PF: > { %s16_s21 = sadd.s32 1, %s972_s21  }
 0x22b   : > { %p13_p4 = scmp.ge.s32.totalorder %s16_s21, 4  }
 0x22d   :  { %15 = sbr.rel (!%p13_p4) target bundleno = 1 (0x1), region = 80 }

// kernel: downsample_block.57
= control target key start
LH: loop header
LB: loop body
LE: loop exit
PB: predicated region body
PF: predicated region fallthrough
CT: control target
= control target key end

     0   :  { %s638_s12 = smov 0   ;;  %s640_s13 = smov 0   ;;  %s729_s0 = inlined_call_operand.vmem [shape: bf16[2,8,4,64], index: 0, kind: input, shape index: {}]   ;;  %s730_s1 = inlined_call_operand.vmem [shape: bf16[2,64,32], index: 1, kind: input, shape index: {}]   ;;  %s731_s2 = inlined_call_operand.vmem [shape: f32[1,32], index: 2, kind: input, shape index: {}]   ;;  %s732_s3 = inlined_call_operand.vmem [shape: bf16[2,4,4,32], index: 3, kind: output, shape index: {}]  }
   0x1   :  { %s642_s14 = smov 0   ;;  %s644_s15 = smov 0  }
   0x2   :  { %s646_s16 = smov 0  }
   0x3 LB: > { %s22_s17 = sadd.s32 1, %s606_s14  ;;  %s25_s18 = sadd.s32 1, %s610_s15  ;;  %s614_s16 = sphi %s646_s16, %s13_s16   ;;  %s610_s15 = sphi %s644_s15, %s736_s15   ;;  %s606_s14 = sphi %s642_s14, %s735_s14   ;;  %s602_s13 = sphi %s640_s13, %s734_s13   ;;  %s598_s12 = sphi %s638_s12, %s733_s12  }
   0x4   : > { %p23_p0 = scmp.ge.s32.totalorder %s22_s17, 4  ;;  %p464_p1 = scmp.ge.s32.totalorder %s614_s16, 1 }
   0x5   : > { %p158_p2 = scmp.lt.s32.totalorder %s614_s16, 9 }
   0x6   : > { %s738_s17 = smov (%p23_p0, %s22_s17), 0  ;;  %s740_s18 = smov (!%p23_p0, %s25_s18), %s610_s15 }
   0x7   : > { %p159_p3 = pnand %p464_p1, %p158_p2  ;;  %p27_p4 = scmp.ge.s32.totalorder %s740_s18, 2 }
   0x8   : > { %v568_v0 = vld [vmem:[%s730_s1 + $0x20] sm:$0xff] (!%p159_p3)   ;;  %v616_v1 = vmov (!%p159_p3), 0.0   ;;  %v570_v3 = vld [vmem:[%s730_s1 + $0x28] sm:$0xff] (!%p159_p3)   ;;  %vm617_vm0 = vmmov (!%p159_p3), 0   ;;  %s465_s25 = sshll.u32 (!%p159_p3), %s598_s12, 1  ;;  %p190_p5 = scmp.lt.s32.totalorder (!%p159_p3), %s602_s13, 1 }
   0x9   : > { %s742_s18 = smov (%p27_p4, %s740_s18), 0  ;;  %162 = sbr.rel (%p159_p3) target bundleno = 246 (0xf6), region = 32 }
   0xa   : > { %502 = vmatprep.subr.bf16.mxu0 (!%p159_p3), %v616_v1  ;;  %514 = vmatprep.subr.bf16.mxu1 (!%p159_p3), %v616_v1  ;;  %v569_v2 = vld [vmem:[%s730_s1] sm:$0xff] (!%p159_p3)   ;;  %v571_v4 = vld [vmem:[%s730_s1 + $0x8] sm:$0xff] (!%p159_p3)   ;;  %p192_p6 = scmp.lt.s32.totalorder (!%p159_p3), %s465_s25, 7  ;;  %v572_v5 = vld [vmem:[%s730_s1 + $0x30] sm:$0xff] (!%p159_p3)   ;;  %vm252_vm1 = vcmask (!%p159_p3), 523264   ;;  %p201_p7 = scmp.lt.s32.totalorder (!%p159_p3), %s598_s12, 3 }
   0xb   : > { %503 = vmatpush3.bf16.msra.mxu0 (!%p159_p3), %v568_v0  ;;  %510 = vmatprep.mubr.msk.bf16.mxu0 (!%p159_p3), %vm617_vm0, %v616_v1  ;;  %v573_v6 = vld [vmem:[%s730_s1 + $0x10] sm:$0xff] (!%p159_p3)   ;;  %v574_v7 = vld [vmem:[%s730_s1 + $0x38] sm:$0xff] (!%p159_p3)   ;;  %v489_v13 = vld [vmem:[%s731_s2] ss:$0 sm:$0xff] (!%p159_p3)  ;;  %vm372_vm2 = vcmask (!%p159_p3), 254976  }
   0xc   : > { %515 = vmatpush3.bf16.msra.mxu1 (!%p159_p3), %v569_v2  ;;  %504 = vmatprep.subr.bf16.mxu0 (!%p159_p3), %v616_v1  ;;  %v575_v8 = vld [vmem:[%s730_s1 + $0x18] sm:$0xff] (!%p159_p3)  }
   0xd   : > { %516 = vmatprep.subr.bf16.mxu1 (!%p159_p3), %v616_v1  ;;  %522 = vmatprep.mubr.msk.bf16.mxu1 (!%p159_p3), %vm617_vm0, %v616_v1 }
   0xf   : > { %505 = vmatpush3.bf16.msra.mxu0 (!%p159_p3), %v570_v3 }
  0x10   : > { %s744_s13 = smov (!%p190_p5, %s602_s13), 1  ;;  %s746_s25 = smov (!%p192_p6, %s465_s25), 7  ;;  %517 = vmatpush3.bf16.msra.mxu1 %v571_v4  ;;  %506 = vmatprep.subr.bf16.mxu0 %v616_v1 }
  0x11   : > { %s466_s5 = sshll.u32 %s744_s13, 3  ;;  %518 = vmatprep.subr.bf16.mxu1 %v616_v1  ;;  %s748_s12 = smov (!%p201_p7, %s598_s12), 3 }
  0x12   : > { %s195_s6 = sadd.s32 %s466_s5, %s746_s25  ;;  %s468_s22 = sshll.u32 %s744_s13, 2 }
  0x13   : > { %s467_s7 = sshll.u32 %s195_s6, 1  ;;  %507 = vmatpush3.bf16.msra.mxu0 %v572_v5  ;;  %s204_s23 = sadd.s32 %s468_s22, %s748_s12 }
  0x14   : > { %519 = vmatpush3.bf16.msra.mxu1 %v573_v6  ;;  %508 = vmatprep.subr.bf16.mxu0 %v616_v1  ;;  %s197_s21 = scalar_lea.vmem %s729_s0, %s467_s7  ;;  %s469_s26 = sshll.u32 %s204_s23, 1 }
  0x15   : > { %520 = vmatprep.subr.bf16.mxu1 %v616_v1  ;;  %v470_v9 = vld [vmem:[%s197_s21 + $0x2] sm:$0x3]  ;;  %v208_v10 = vld [vmem:[%s197_s21] sm:$0x3]  ;;  %s206_s13 = scalar_lea.vmem %s732_s3, %s469_s26 }
  0x17   : > { %509 = vmatpush3.bf16.msra.mxu0 %v574_v7 }
  0x18   : > { %521 = vmatpush3.bf16.msra.mxu1 %v575_v8 }
  0x1a   : > { %511 = vmatmul.mubr.msk.bf16.vlgmr.msra.gmra.mrb[0].mxu0 %vm252_vm1, %v470_v9 }
  0x1b   : > { %523 = vmatmul.mubr.msk.bf16.vlgmr.msra.gmra.mrb[0].mxu1 %vm252_vm1, %v208_v10 }
  0xed   : > { %v290_v11 = vpop.f32.mrb[0].mxu0 }
  0xee   : > { %v357_v12 = vpop.f32.mrb[0].mxu1  ;;  %v512_v14 = vpop.f32.mrb[1].mxu0 }
  0xef   : > { %v358_v15 = vadd.f32 %v357_v12, %v290_v11  ;;  %v524_v16 = vpop.f32.mrb[1].mxu1  ;;  %v293_v17 = vpop.f32.mrb[2].mxu0 }
  0xf0   : > { %v360_v18 = vpop.f32.mrb[2].mxu1  ;;  %v513_v19 = vpop.f32.mrb[3].mxu0 }
  0xf1   : > { %v370_v20 = vadd.f32 %v489_v13, %v358_v15  ;;  %v525_v21 = vpop.f32.mrb[3].mxu1 }
  0xf3   : > { %v371_v22 = vpack.c.bf16 %v370_v20, %v370_v20 }
  0xf5   : > { %373 = vst.msk [vmem:[%s206_s13] sm:$0x3] %vm372_vm2, %v371_v22 }
  0xf6 PF: > { %s13_s16 = sadd.s32 1, %s614_s16   ;;  %s733_s12 = smov %s606_s14 }
  0xf7   : > { %p10_p8 = scmp.ge.s32.totalorder %s13_s16, 10   ;;  %s734_s13 = smov %s610_s15 }
  0xf8   : > { %s735_s14 = smov %s738_s17  ;;  %s736_s15 = smov %s742_s18 }
  0xf9   :  { %12 = sbr.rel (!%p10_p8) target bundleno = 3 (0x3), region = 64 }

// kernel: downsample_block.58
= control target key start
LH: loop header
LB: loop body
LE: loop exit
PB: predicated region body
PF: predicated region fallthrough
CT: control target
= control target key end

     0   :  { %s723_s21 = smov 0   ;;  %s782_s0 = inlined_call_operand.vmem [shape: bf16[2,16,32], index: 0, kind: input, shape index: {}]   ;;  %s783_s1 = inlined_call_operand.vmem [shape: f32[2,1,32], index: 1, kind: input, shape index: {}]   ;;  %s784_s2 = inlined_call_operand.vmem [shape: f32[2,1,32], index: 2, kind: input, shape index: {}]   ;;  %s785_s3 = inlined_call_operand.vmem [shape: f32[32,32], index: 3, kind: input, shape index: {}]   ;;  %s786_s4 = inlined_call_operand.vmem [shape: bf16[32,64], index: 4, kind: input, shape index: {}]   ;;  %s787_s5 = inlined_call_operand.vmem [shape: f32[1,64], index: 5, kind: input, shape index: {}]   ;;  %s788_s6 = inlined_call_operand.vmem [shape: bf16[2,16,64], index: 6, kind: output, shape index: {}]  }
   0x1 LB: > { %s592_s22 = sadd.s32 4294967295, %s683_s21   ;;  %p596_p0 = scmp.ge.s32.totalorder %s683_s21, 1  ;;  %s683_s21 = sphi %s723_s21, %s16_s21  }
   0x2   : > { %p228_p1 = scmp.lt.s32.totalorder %s683_s21, 3 }
   0x4   : > { %p229_p2 = pnand %p596_p0, %p228_p1 }
   0x5   : > { %v285_v0 = vld [vmem:[%s785_s3] sm:$0xff] (!%p229_p2)  ;;  %v286_v1 = vld [vmem:[%s785_s3 + $0x8] sm:$0xff] (!%p229_p2)  ;;  %v287_v2 = vld [vmem:[%s785_s3 + $0x10] sm:$0xff] (!%p229_p2)  ;;  %v685_v3 = vmov (!%p229_p2), 0.0|0.0   ;;  %vm686_vm0 = vmmov (!%p229_p2), 0   ;;  %v687_v6 = vmov (!%p229_p2), 0.0   ;;  %v397_v41 = vlaneseq (!%p229_p2) }
   0x6   : > { %232 = sbr.rel (%p229_p2) target bundleno = 530 (0x212), region = 44  ;;  %648 = vmatprep.subr.bf16.mxu0 (!%p229_p2), %v685_v3  ;;  %v649_v4 = vpack.c.bf16 (!%p229_p2), %v286_v1, %v285_v0  ;;  %v288_v5 = vld [vmem:[%s785_s3 + $0x18] sm:$0xff] (!%p229_p2)  ;;  %637 = vmatprep.mubr.msk.f32.mxu0 (!%p229_p2), %vm686_vm0, %v687_v6  ;;  %p264_p3 = scmp.lt.s32.totalorder (!%p229_p2), %s592_s22, 1  ;;  %vm291_vm1 = vcmask (!%p229_p2), 261120   ;;  %vm314_vm2 = vcmask (!%p229_p2), 1040384   ;;  %v665_v34 = vld [vmem:[%s786_s4] sm:$0xff] (!%p229_p2)  }
   0x7   : > { %640 = vmatprep.subr.bf16.mxu1 (!%p229_p2), %v687_v6  ;;  %644 = vmatprep.mubr.msk.bf16.mxu1 (!%p229_p2), %vm686_vm0, %v687_v6  ;;  %v652_v7 = vpack.c.bf16 (!%p229_p2), %v288_v5, %v287_v2  ;;  %v666_v35 = vld [vmem:[%s786_s4 + $0x8] sm:$0xff] (!%p229_p2)   ;;  %v398_v44 = vshrl.u32 (!%p229_p2), %v397_v41, 7  ;;  %vm516_vm3 = vcmask (!%p229_p2), 519168  }
   0x8   : > { %650 = vmatpush3.bf16.msra.mxu0 (!%p229_p2), %v649_v4  ;;  %641 = vmatpush3.bf16.msra.mxu1 (!%p229_p2), %v665_v34 }
   0x9   : > { %651 = vmatprep.subr.bf16.mxu0 (!%p229_p2), %v685_v3  ;;  %642 = vmatprep.subr.bf16.mxu1 (!%p229_p2), %v687_v6  ;;  %v399_v45 = vsub.s32 (!%p229_p2), 0, %v398_v44  ;;  %v405_v48 = vsub.s32 (!%p229_p2), 1, %v398_v44 }
   0xc   : > { %653 = vmatpush3.bf16.msra.mxu0 (!%p229_p2), %v652_v7  ;;  %643 = vmatpush3.bf16.msra.mxu1 (!%p229_p2), %v666_v35 }
   0xd   : > { %s790_s22 = smov (!%p264_p3, %s592_s22), 1 }
   0xe   : > { %s613_s7 = sshll.u32 %s790_s22, 3  ;;  %s271_s17 = scalar_lea.vmem %s783_s1, %s790_s22 }
   0xf   : > { %s268_s10 = scalar_lea.vmem %s782_s0, %s613_s7  ;;  %v283_v46 = vld [vmem:[%s271_s17] sm:$0x1]  ;;  %s274_s20 = scalar_lea.vmem %s784_s2, %s790_s22 }
  0x10   : > { %v618_v8 = vld [vmem:[%s268_s10] sm:$0xff]   ;;  %v409_v49 = vadd.f32 1.0, %v283_v46  ;;  %s279_s27 = scalar_lea.vmem %s788_s6, %s613_s7 }
  0x11   : > { %v619_v9 = vunpack.c.l.bf16 %v618_v8  ;;  %v620_v10 = vunpack.c.h.bf16 %v618_v8  ;;  %v602_v57 = vld [vmem:[%s274_s20] ss:$0 sm:$0xff] }
  0x12   : > { %v414_v54 = vrot.slane %v409_v49, %v399_v45 }
  0x13   : > { %v292_v11 = vsel %vm291_vm1, %v619_v9, 0.0  ;;  %v293_v12 = vsel %vm291_vm1, %v620_v10, 0.0  ;;  %v302_v13 = vmul.f32 %v619_v9, %v619_v9  ;;  %v303_v14 = vmul.f32 %v620_v10, %v620_v10 }
  0x14   : > { %v294_v15 = vadd.f32 %v293_v12, %v292_v11 }
  0x15   : > { %v304_v16 = vsel %vm291_vm1, %v302_v13, 0.0  ;;  %v305_v17 = vsel %vm291_vm1, %v303_v14, 0.0 }
  0x16   : > { %v295_v18 = vrot.slane %v294_v15, 4  ;;  %v306_v19 = vadd.f32 %v305_v17, %v304_v16 }
  0x18   : > { %v296_v20 = vadd.f32 %v295_v18, %v294_v15  ;;  %v307_v21 = vrot.slane %v306_v19, 4 }
  0x1a   : > { %v297_v22 = vrot.slane %v296_v20, 2  ;;  %v308_v23 = vadd.f32 %v307_v21, %v306_v19 }
  0x1c   : > { %v298_v24 = vadd.f32 %v297_v22, %v296_v20  ;;  %v309_v25 = vrot.slane %v308_v23, 2 }
  0x1e   : > { %v299_v26 = vrot.slane %v298_v24, 1  ;;  %v310_v27 = vadd.f32 %v309_v25, %v308_v23 }
  0x20   : > { %v300_v28 = vadd.f32 %v299_v26, %v298_v24  ;;  %v311_v29 = vrot.slane %v310_v27, 1 }
  0x22   : > { %v301_v30 = vmul.f32 0.0625, %v300_v28  ;;  %v312_v31 = vadd.f32 %v311_v29, %v310_v27 }
  0x24   : > { %v313_v32 = vmul.f32 0.0625, %v312_v31 }
  0x26   : > { %v315_v33 = vsel %vm314_vm2, %v301_v30, %v313_v32 }
  0x27   : > { %638 = vmatmul.mubr.msk.f32.vlgmr.msra.gmra.mrb[0].mxu0 %vm291_vm1, %v315_v33 }
  0xfa   : > { %v385_v36 = vpop.f32.mrb[0].mxu0 }
  0xfb   : > { %v389_v37 = vmul.f32 %v385_v36, %v385_v36  ;;  %v639_v38 = vpop.f32.mrb[1].mxu0  ;;  %v400_v47 = vrot.slane %v385_v36, %v399_v45 }
  0xfd   : > { %v391_v39 = vrot.slane %v389_v37, 7  ;;  %v401_v51 = vsub.f32 %v619_v9, %v400_v47  ;;  %v402_v52 = vsub.f32 %v620_v10, %v400_v47  ;;  %v605_v9 = vld [vmem:[%s787_s5] ss:$0 sm:$0xff] }
  0xff   : > { %v393_v40 = vsub.f32 %v385_v36, %v391_v39 }
 0x101   : > { %v394_v42 = vmax.f32 %v393_v40, 0.0 }
 0x103   : > { %v395_v43 = vadd.f32 1e-05, %v394_v42 }
 0x105   : > { %667 = vrsqrt.f32 %v395_v43 }
 0x10f   : > { %v668_v50 = vpop.eup %667 }
 0x110   : > { %v406_v53 = vrot.slane %v668_v50, %v405_v48 }
 0x112   : > { %v407_v55 = vmul.f32 %v406_v53, %v401_v51  ;;  %v408_v56 = vmul.f32 %v406_v53, %v402_v52 }
 0x114   : > { %v416_v58 = vmul.f32 %v414_v54, %v407_v55  ;;  %v417_v59 = vmul.f32 %v414_v54, %v408_v56 }
 0x116   : > { %v424_v60 = vadd.f32 %v602_v57, %v416_v58  ;;  %v425_v61 = vadd.f32 %v602_v57, %v417_v59 }
 0x118   : > { %v603_v62 = vmul.f32 -1.442695, %v424_v60  ;;  %v604_v63 = vmul.f32 -1.442695, %v425_v61 }
 0x11a   : > { %669 = vpow2.f32 %v603_v62 }
 0x11b   : > { %671 = vpow2.f32 %v604_v63 }
 0x124   : > { %v670_v0 = vpop.eup %669 }
 0x125   : > { %v672_v1 = vpop.eup %671  ;;  %v432_v2 = vadd.f32 1.0, %v670_v0 }
 0x126   : > { %v433_v3 = vadd.f32 1.0, %v672_v1 }
 0x127   : > { %673 = vrcp.f32 %v432_v2 }
 0x128   : > { %675 = vrcp.f32 %v433_v3 }
 0x131   : > { %v674_v4 = vpop.eup %673 }
 0x132   : > { %v676_v5 = vpop.eup %675  ;;  %v438_v6 = vmul.f32 %v674_v4, %v424_v60 }
 0x133   : > { %v439_v7 = vmul.f32 %v676_v5, %v425_v61 }
 0x135   : > { %v440_v8 = vpack.c.bf16 %v439_v7, %v438_v6 }
 0x137   : > { %645 = vmatmul.mubr.msk.bf16.vlgmr.msra.gmra.mrb[0].mxu1 %vm291_vm1, %v440_v8 }
 0x20a   : > { %v501_v10 = vpop.f32.mrb[0].mxu1 }
 0x20b   : > { %v502_v11 = vadd.f32 %v605_v9, %v501_v10  ;;  %v646_v12 = vpop.f32.mrb[1].mxu1 }
 0x20c   : > { %v504_v13 = vpop.f32.mrb[2].mxu1 }
 0x20d   : > { %v615_v14 = vpack.c.bf16 %v502_v11, %v502_v11  ;;  %v505_v15 = vadd.f32 %v605_v9, %v504_v13  ;;  %v647_v16 = vpop.f32.mrb[3].mxu1 }
 0x20f   : > { %517 = vst.msk [vmem:[%s279_s27] sm:$0xf] %vm516_vm3, %v615_v14  ;;  %v616_v17 = vpack.c.bf16 %v505_v15, %v505_v15 }
 0x211   : > { %518 = vst.msk [vmem:[%s279_s27 + $0x4] sm:$0xf] %vm516_vm3, %v616_v17 }
 0x212 PF: > { %s16_s21 = sadd.s32 1, %s683_s21  }
 0x213   : > { %p13_p4 = scmp.ge.s32.totalorder %s16_s21, 4  }
 0x215   :  { %15 = sbr.rel (!%p13_p4) target bundleno = 1 (0x1), region = 80 }

// kernel: downsample_block.59
= control target key start
LH: loop header
LB: loop body
LE: loop exit
PB: predicated region body
PF: predicated region fallthrough
CT: control target
= control target key end

     0   :  { %s741_s12 = smov 0   ;;  %s743_s13 = smov 0   ;;  %s856_s0 = inlined_call_operand.vmem [shape: bf16[2,8,4,128], index: 0, kind: input, shape index: {}]   ;;  %s857_s1 = inlined_call_operand.vmem [shape: bf16[2,128,64], index: 1, kind: input, shape index: {}]   ;;  %s858_s2 = inlined_call_operand.vmem [shape: f32[1,64], index: 2, kind: input, shape index: {}]   ;;  %s859_s3 = inlined_call_operand.vmem [shape: bf16[2,4,4,64], index: 3, kind: output, shape index: {}]  }
   0x1   :  { %s745_s14 = smov 0   ;;  %s747_s15 = smov 0  }
   0x2   :  { %s749_s16 = smov 0  }
   0x3 LB: > { %s22_s17 = sadd.s32 1, %s709_s14  ;;  %s25_s18 = sadd.s32 1, %s713_s15  ;;  %s717_s16 = sphi %s749_s16, %s13_s16   ;;  %s713_s15 = sphi %s747_s15, %s863_s15   ;;  %s709_s14 = sphi %s745_s14, %s862_s14   ;;  %s705_s13 = sphi %s743_s13, %s861_s13   ;;  %s701_s12 = sphi %s741_s12, %s860_s12  }
   0x4   : > { %p23_p0 = scmp.ge.s32.totalorder %s22_s17, 4  ;;  %p521_p1 = scmp.ge.s32.totalorder %s717_s16, 1 }
   0x5   : > { %p158_p2 = scmp.lt.s32.totalorder %s717_s16, 9 }
   0x6   : > { %s865_s17 = smov (%p23_p0, %s22_s17), 0  ;;  %s867_s18 = smov (!%p23_p0, %s25_s18), %s713_s15 }
   0x7   : > { %p159_p3 = pnand %p521_p1, %p158_p2  ;;  %p27_p4 = scmp.ge.s32.totalorder %s867_s18, 2 }
   0x8   : > { %v663_v0 = vld [vmem:[%s857_s1 + $0x40] sm:$0xff] (!%p159_p3)   ;;  %v719_v1 = vmov (!%p159_p3), 0.0   ;;  %v665_v3 = vld [vmem:[%s857_s1 + $0x48] sm:$0xff] (!%p159_p3)   ;;  %vm720_vm0 = vmmov (!%p159_p3), 0   ;;  %v667_v5 = vld [vmem:[%s857_s1 + $0x50] sm:$0xff] (!%p159_p3)   ;;  %s522_s4 = sshll.u32 (!%p159_p3), %s701_s12, 1 }
   0x9   : > { %s869_s18 = smov (%p27_p4, %s867_s18), 0  ;;  %162 = sbr.rel (%p159_p3) target bundleno = 262 (0x106), region = 32 }
   0xa   : > { %581 = vmatprep.subr.bf16.mxu0 (!%p159_p3), %v719_v1  ;;  %601 = vmatprep.subr.bf16.mxu1 (!%p159_p3), %v719_v1  ;;  %v664_v2 = vld [vmem:[%s857_s1] sm:$0xff] (!%p159_p3)   ;;  %v666_v4 = vld [vmem:[%s857_s1 + $0x8] sm:$0xff] (!%p159_p3)   ;;  %v668_v6 = vld [vmem:[%s857_s1 + $0x10] sm:$0xff] (!%p159_p3)   ;;  %p190_p5 = scmp.lt.s32.totalorder (!%p159_p3), %s705_s13, 1  ;;  %p192_p6 = scmp.lt.s32.totalorder (!%p159_p3), %s522_s4, 7  ;;  %vm429_vm1 = vcmask (!%p159_p3), 517120  }
   0xb   : > { %582 = vmatpush3.bf16.msra.mxu0 (!%p159_p3), %v663_v0  ;;  %597 = vmatprep.mubr.msk.bf16.mxu0 (!%p159_p3), %vm720_vm0, %v719_v1  ;;  %v669_v7 = vld [vmem:[%s857_s1 + $0x58] sm:$0xff] (!%p159_p3)   ;;  %v671_v9 = vld [vmem:[%s857_s1 + $0x60] sm:$0xff] (!%p159_p3)   ;;  %v673_v11 = vld [vmem:[%s857_s1 + $0x68] sm:$0xff] (!%p159_p3)   ;;  %p201_p7 = scmp.lt.s32.totalorder (!%p159_p3), %s701_s12, 3 }
   0xc   : > { %602 = vmatpush3.bf16.msra.mxu1 (!%p159_p3), %v664_v2  ;;  %583 = vmatprep.subr.bf16.mxu0 (!%p159_p3), %v719_v1  ;;  %v670_v8 = vld [vmem:[%s857_s1 + $0x18] sm:$0xff] (!%p159_p3)   ;;  %v672_v10 = vld [vmem:[%s857_s1 + $0x20] sm:$0xff] (!%p159_p3)   ;;  %v674_v12 = vld [vmem:[%s857_s1 + $0x28] sm:$0xff] (!%p159_p3)  }
   0xd   : > { %603 = vmatprep.subr.bf16.mxu1 (!%p159_p3), %v719_v1  ;;  %617 = vmatprep.mubr.msk.bf16.mxu1 (!%p159_p3), %vm720_vm0, %v719_v1  ;;  %v675_v13 = vld [vmem:[%s857_s1 + $0x70] sm:$0xff] (!%p159_p3)   ;;  %v677_v15 = vld [vmem:[%s857_s1 + $0x78] sm:$0xff] (!%p159_p3)   ;;  %v560_v21 = vld [vmem:[%s858_s2] ss:$0 sm:$0xff] (!%p159_p3) }
   0xe   : > { %v676_v14 = vld [vmem:[%s857_s1 + $0x30] sm:$0xff] (!%p159_p3)   ;;  %v678_v16 = vld [vmem:[%s857_s1 + $0x38] sm:$0xff] (!%p159_p3)  }
   0xf   : > { %584 = vmatpush3.bf16.msra.mxu0 (!%p159_p3), %v665_v3 }
  0x10   : > { %604 = vmatpush3.bf16.msra.mxu1 %v666_v4  ;;  %585 = vmatprep.subr.bf16.mxu0 %v719_v1  ;;  %s871_s13 = smov (!%p190_p5, %s705_s13), 1  ;;  %s873_s4 = smov (!%p192_p6, %s522_s4), 7 }
  0x11   : > { %605 = vmatprep.subr.bf16.mxu1 %v719_v1  ;;  %s523_s22 = sshll.u32 %s871_s13, 3  ;;  %s875_s12 = smov (!%p201_p7, %s701_s12), 3 }
  0x12   : > { %s195_s25 = sadd.s32 %s523_s22, %s873_s4  ;;  %s525_s11 = sshll.u32 %s871_s13, 2 }
  0x13   : > { %586 = vmatpush3.bf16.msra.mxu0 %v667_v5  ;;  %s524_s30 = sshll.u32 %s195_s25, 1  ;;  %s204_s19 = sadd.s32 %s525_s11, %s875_s12 }
  0x14   : > { %606 = vmatpush3.bf16.msra.mxu1 %v668_v6  ;;  %587 = vmatprep.subr.bf16.mxu0 %v719_v1  ;;  %s197_s10 = scalar_lea.vmem %s856_s0, %s524_s30  ;;  %s526_s22 = sshll.u32 %s204_s19, 1 }
  0x15   : > { %607 = vmatprep.subr.bf16.mxu1 %v719_v1  ;;  %v527_v17 = vld [vmem:[%s197_s10 + $0x2] sm:$0x3]  ;;  %v208_v18 = vld [vmem:[%s197_s10] sm:$0x3]  ;;  %s206_s13 = scalar_lea.vmem %s859_s3, %s526_s22 }
  0x17   : > { %588 = vmatpush3.bf16.msra.mxu0 %v669_v7 }
  0x18   : > { %608 = vmatpush3.bf16.msra.mxu1 %v670_v8  ;;  %589 = vmatprep.subr.bf16.mxu0 %v719_v1 }
  0x19   : > { %609 = vmatprep.subr.bf16.mxu1 %v719_v1 }
  0x1b   : > { %590 = vmatpush3.bf16.msra.mxu0 %v671_v9 }
  0x1c   : > { %610 = vmatpush3.bf16.msra.mxu1 %v672_v10  ;;  %591 = vmatprep.subr.bf16.mxu0 %v719_v1 }
  0x1d   : > { %611 = vmatprep.subr.bf16.mxu1 %v719_v1 }
  0x1f   : > { %592 = vmatpush3.bf16.msra.mxu0 %v673_v11 }
  0x20   : > { %612 = vmatpush3.bf16.msra.mxu1 %v674_v12  ;;  %593 = vmatprep.subr.bf16.mxu0 %v719_v1 }
  0x21   : > { %613 = vmatprep.subr.bf16.mxu1 %v719_v1 }
  0x23   : > { %594 = vmatpush3.bf16.msra.mxu0 %v675_v13 }
  0x24   : > { %614 = vmatpush3.bf16.msra.mxu1 %v676_v14  ;;  %595 = vmatprep.subr.bf16.mxu0 %v719_v1 }
  0x25   : > { %615 = vmatprep.subr.bf16.mxu1 %v719_v1 }
  0x27   : > { %596 = vmatpush3.bf16.msra.mxu0 %v677_v15 }
  0x28   : > { %616 = vmatpush3.bf16.msra.mxu1 %v678_v16 }
  0x2a   : > { %598 = vmatmul.mubr.bf16.vlgmr.msra.gmra.mrb[0].mxu0 %v527_v17 }
  0x2b   : > { %618 = vmatmul.mubr.bf16.vlgmr.msra.gmra.mrb[0].mxu1 %v208_v18 }
  0xfd   : > { %v326_v19 = vpop.f32.mrb[0].mxu0 }
  0xfe   : > { %v414_v20 = vpop.f32.mrb[0].mxu1  ;;  %v599_v22 = vpop.f32.mrb[1].mxu0 }
  0xff   : > { %v415_v23 = vadd.f32 %v414_v20, %v326_v19  ;;  %v619_v24 = vpop.f32.mrb[1].mxu1  ;;  %v329_v25 = vpop.f32.mrb[2].mxu0 }
 0x100   : > { %v417_v26 = vpop.f32.mrb[2].mxu1  ;;  %v600_v27 = vpop.f32.mrb[3].mxu0 }
 0x101   : > { %v427_v28 = vadd.f32 %v560_v21, %v415_v23  ;;  %v620_v29 = vpop.f32.mrb[3].mxu1 }
 0x103   : > { %v428_v30 = vpack.c.bf16 %v427_v28, %v427_v28 }
 0x105   : > { %430 = vst.msk [vmem:[%s206_s13] sm:$0x3] %vm429_vm1, %v428_v30 }
 0x106 PF: > { %s13_s16 = sadd.s32 1, %s717_s16   ;;  %s860_s12 = smov %s709_s14 }
 0x107   : > { %p10_p8 = scmp.ge.s32.totalorder %s13_s16, 10   ;;  %s861_s13 = smov %s713_s15 }
 0x108   : > { %s862_s14 = smov %s865_s17  ;;  %s863_s15 = smov %s869_s18 }
 0x109   :  { %12 = sbr.rel (!%p10_p8) target bundleno = 3 (0x3), region = 64 }

</bundles_post_ra>
